<compile_context>
chip_gen: v7x
topology: tpu7x:2x2x1
jax: 0.10.0
libtpu: 0.0.40
codegen_flags: <defaults>
</compile_context>

<pallas_src>
import jax
import jax.numpy as jnp
from jax.experimental import pallas as pl
from jax.experimental.pallas import tpu as pltpu

# ----------------------------- config ---------------------------------------
IMG = 32                 # original: 96
PATCH = 16               # original: 16
IN_CH = 1
HIDDEN = 64              # original: 768
MLP_DIM = 128            # original: 3072
NUM_HEADS = 4            # original: 12
NUM_LAYERS = 2           # original: 12
DECONV_CH = 16           # MONAI default deconv_chns
OUT_CH = 1
DECONV_K = 4             # two stride-4 transposed convs (4*4 == patch 16)
TEMP = 0.05
LN_EPS = 1e-5
NEG_INF = -1e9

N_PER_AXIS = IMG // PATCH            # 2
N_PATCH = N_PER_AXIS ** 3            # 8
PATCH_VOL = IN_CH * PATCH ** 3       # 4096 (== OUT_CH * PATCH**3)
HEAD_DIM = HIDDEN // NUM_HEADS
ATTN_SCALE = HEAD_DIM ** -0.5

K_TILE = 1024                        # patch-embed contraction chunk
K_STEPS = PATCH_VOL // K_TILE        # 4 grid steps
assert K_STEPS * K_TILE == PATCH_VOL


# ----------------------------- in-kernel helpers ------------------------------
def _layernorm(x, g, b):
    mu = jnp.mean(x, axis=-1, keepdims=True)
    xc = x - mu
    var = jnp.mean(xc * xc, axis=-1, keepdims=True)
    return xc * jax.lax.rsqrt(var + LN_EPS) * g + b


def _softmax_last(x):
    m = jnp.max(x, axis=-1, keepdims=True)
    e = jnp.exp(x - m)
    return e * pl.reciprocal(jnp.sum(e, axis=-1, keepdims=True), approx=True)


def _gelu_tanh(x):
    # TODO(synk): torch.nn.GELU() is exact (erf); tanh approximation is used
    # inside the kernel because erf has no guaranteed Mosaic lowering.
    c0 = 0.7978845608028654  # sqrt(2/pi)
    return 0.5 * x * (1.0 + jnp.tanh(c0 * (x + 0.044715 * x * x * x)))


# ----------------------------- fused kernel ----------------------------------
def _vit_ssl_kernel(
    patches_ref, patch_w_ref, posb_ref, gt_ref,
    ln1_g_ref, ln1_b_ref, qkv_w_ref, proj_w_ref, proj_b_ref,
    ln2_g_ref, ln2_b_ref, mlp_w1_ref, mlp_b1_ref, mlp_w2_ref, mlp_b2_ref,
    lnf_g_ref, lnf_b_ref, w_dec_ref, b_dec_ref,
    gram_w_ref, gram_u_ref, gram_c_ref,
    loss_ref,
    tok_acc,
):
    f32 = jnp.float32
    bf16 = jnp.bfloat16
    step = pl.program_id(0)

    @pl.when(step == 0)
    def _():
        tok_acc[...] = jnp.zeros_like(tok_acc)

    # Streamed patch-embedding contraction chunk (bf16 MXU, f32 accumulate).
    # DMA of the next patches/patch_w chunk overlaps this matmul.
    tok_acc[...] += jnp.dot(patches_ref[...], patch_w_ref[...],
                            preferred_element_type=f32)

    @pl.when(step == pl.num_programs(0) - 1)
    def _():
        t = tok_acc.shape[0]                    # 2 * B * N_PATCH tokens
        n_gt = gt_ref.shape[0]                  # B * N_PATCH (view-1 rows)
        n_samples = 2 * (n_gt // N_PATCH)       # 2B per-sample vectors
        half = n_samples // 2

        tok = tok_acc[...] + posb_ref[...]      # + pos emb + conv bias (f32)

        # ---- block-diagonal additive attention bias, generated in-register ----
        ri = jax.lax.broadcasted_iota(jnp.int32, (t, t), 0)
        ci = jax.lax.broadcasted_iota(jnp.int32, (t, t), 1)
        inv_np = 1.0 / float(N_PATCH)
        r_id = jnp.floor((ri.astype(f32) + 0.5) * inv_np)
        c_id = jnp.floor((ci.astype(f32) + 0.5) * inv_np)
        bias = jnp.where(r_id == c_id, 0.0, NEG_INF).astype(f32)

        # ---- transformer encoder (unrolled; fine at NUM_LAYERS=2) ----
        # TODO(synk): switch to a layer grid axis / streamed weights before
        # scaling to the real 12-layer / 768-hidden config (VMEM on v7x).
        for l in range(NUM_LAYERS):
            xn = _layernorm(tok, ln1_g_ref[l], ln1_b_ref[l]).astype(bf16)
            qkv = jnp.dot(xn, qkv_w_ref[l],
                          preferred_element_type=f32).astype(bf16)       # (T, 3H)
            # head-major (NH, T, HD); slicing lanes + leading-dim stack only
            q = jnp.stack([qkv[:, h * HEAD_DIM:(h + 1) * HEAD_DIM]
                           for h in range(NUM_HEADS)], axis=0)
            kt = jnp.stack([qkv[:, HIDDEN + h * HEAD_DIM:HIDDEN + (h + 1) * HEAD_DIM]
                            for h in range(NUM_HEADS)], axis=0)
            vt = jnp.stack([qkv[:, 2 * HIDDEN + h * HEAD_DIM:2 * HIDDEN + (h + 1) * HEAD_DIM]
                            for h in range(NUM_HEADS)], axis=0)
            # ATTN_SCALE is folded into the q-columns of qkv_w on the host.
            s = jnp.einsum('hqd,hkd->hqk', q, kt,
                           preferred_element_type=f32)                   # (NH,T,T)
            p = _softmax_last(s + bias[None, :, :]).astype(bf16)
            ctx = jnp.einsum('hqk,hkd->hqd', p, vt,
                             preferred_element_type=f32)                 # (NH,T,HD)
            attn = jnp.concatenate([ctx[h] for h in range(NUM_HEADS)],
                                   axis=-1).astype(bf16)                 # (T, H)
            tok = tok + jnp.dot(attn, proj_w_ref[l],
                                preferred_element_type=f32) + proj_b_ref[l]
            xn2 = _layernorm(tok, ln2_g_ref[l], ln2_b_ref[l]).astype(bf16)
            h1 = _gelu_tanh(jnp.dot(xn2, mlp_w1_ref[l],
                                    preferred_element_type=f32) + mlp_b1_ref[l])
            tok = tok + jnp.dot(h1.astype(bf16), mlp_w2_ref[l],
                                preferred_element_type=f32) + mlp_b2_ref[l]

        tok = _layernorm(tok, lnf_g_ref[...], lnf_b_ref[...])            # (T, H)

        # ---- L1 reconstruction loss: decoder applied to view-1 rows only ----
        out_v1 = jnp.dot(tok[0:n_gt, :].astype(bf16), w_dec_ref[...],
                         preferred_element_type=f32) + b_dec_ref[...]    # (n_gt, 4096)
        diff = jnp.abs(out_v1 - gt_ref[...])
        r_11 = jnp.sum(diff, axis=(0, 1), keepdims=True) * (1.0 / diff.size)

        # ---- NT-Xent contrastive loss via the algebraically-folded decoder ----
        # <dec(x_i), dec(x_j)> = x_i (W W^T) x_j^T + x_i·u + x_j·u + b·b
        mg = jnp.dot(tok, gram_w_ref[...], preferred_element_type=f32)   # (T, H)
        tu = jnp.sum(tok * gram_u_ref[...], axis=-1, keepdims=True)      # (T, 1)
        c_bb = gram_c_ref[...]                                           # (1, 1)

        def blk(a, s_):
            return a[s_ * N_PATCH:(s_ + 1) * N_PATCH, :]

        lin = [jnp.sum(blk(tu, s_), axis=(0, 1), keepdims=True)
               for s_ in range(n_samples)]
        gram = [[None] * n_samples for _ in range(n_samples)]
        for i in range(n_samples):
            for j in range(i, n_samples):
                quad = jnp.sum(blk(mg, i) * blk(tok, j),
                               axis=(0, 1), keepdims=True)               # (1,1)
                g = quad + lin[i] + lin[j] + float(N_PATCH) * c_bb
                gram[i][j] = g
                gram[j][i] = g

        inv_norm = [1.0 / jnp.maximum(jnp.sqrt(gram[s_][s_]), 1e-12)     # F.normalize eps
                    for s_ in range(n_samples)]
        inv_t = 1.0 / TEMP
        sim = [[gram[i][j] * inv_norm[i] * inv_norm[j] * inv_t
                for j in range(n_samples)] for i in range(n_samples)]
        loss_sum = None
        for i in range(n_samples):
            pos = sim[i][(i + half) % n_samples]
            others = [sim[i][j] for j in range(n_samples) if j != i]     # incl. positive
            m = others[0]
            for o in others[1:]:
                m = jnp.maximum(m, o)
            denom = jnp.exp(others[0] - m)
            for o in others[1:]:
                denom = denom + jnp.exp(o - m)
            li = (m + jnp.log(denom)) - pos          # -(pos/T - logsumexp_others)
            loss_sum = li if loss_sum is None else loss_sum + li
        cl_11 = loss_sum * (1.0 / n_samples)

        loss_ref[...] = jnp.concatenate([r_11, cl_11], axis=1)           # (1, 2)


# ----------------------------- host-side layout prep --------------------------
def _extract_patches(x):
    """(B, C, D, H, W) -> (B*N_PATCH, C*PATCH^3); Conv3d(kernel==stride) im2col."""
    b = x.shape[0]
    p, n = PATCH, N_PER_AXIS
    x = x.reshape(b, IN_CH, n, p, n, p, n, p)
    x = x.transpose(0, 2, 4, 6, 1, 3, 5, 7)      # (B, nD,nH,nW, C, pD,pH,pW)
    return x.reshape(b * N_PATCH, PATCH_VOL)


def _compose_deconvs(w1, b1, w2, b2):
    """Fold ConvTranspose3d(k==s=4) x2 into one (HIDDEN, PATCH^3) affine map.

    w1: (Cin, C1, k, k, k), w2: (C1, 1, k, k, k)  [PyTorch layouts].
    Output voxel order is (pD, pH, pW) row-major, matching _extract_patches.
    """
    k = DECONV_K
    w2s = w2[:, 0]                                              # (C1, k, k, k)
    wc = jnp.einsum('icdef,cghk->idgehfk', w1, w2s)             # (Cin,kz1,kz2,ky1,ky2,kx1,kx2)
    wc = wc.reshape(w1.shape[0], PATCH ** 3)
    bt = jnp.einsum('c,cghk->ghk', b1, w2s) + b2[0]             # (k, k, k)
    bc = jnp.broadcast_to(bt[None, :, None, :, None, :], (k,) * 6).reshape(1, PATCH ** 3)
    return wc, bc


def _const_spec(arr):
    zeros = (0,) * arr.ndim
    return pl.BlockSpec(arr.shape, lambda k: zeros)


def vit_autoenc_ssl_forward(params, image, image_2, gt_image):
    b = image.shape[0]
    t = 2 * b * N_PATCH

    # TODO(synk): _extract_patches is still a host-side XLA 8-D transpose (an
    # extra HBM round trip of the input volumes); fold into the kernel via a
    # patch-indexed BlockSpec when scaling to the real image size.
    patches = jnp.concatenate(
        [_extract_patches(image), _extract_patches(image_2)], axis=0
    ).astype(jnp.bfloat16)                        # bf16 DMA (kernel truncates anyway)
    gt_patches = _extract_patches(gt_image)       # f32: L1 reference precision
    posb = (jnp.tile(params['pos_emb'].reshape(N_PATCH, HIDDEN), (2 * b, 1))
            + params['patch_b'][None, :]).astype(jnp.float32)

    w_dec, b_dec = _compose_deconvs(params['deconv1_w'], params['deconv1_b'],
                                    params['deconv2_w'], params['deconv2_b'])
    # Algebraic fold of the decoder for the contrastive Gram (f32, host-side).
    gram_w = jnp.dot(w_dec, w_dec.T)                               # (H, H)
    gram_u = jnp.sum(w_dec * b_dec, axis=1).reshape(1, HIDDEN)     # (1, H)
    gram_c = jnp.sum(b_dec * b_dec).reshape(1, 1)                  # (1, 1)

    blocks = params['blocks']

    def scaled_qkv(w):   # fold ATTN_SCALE into the q columns
        return jnp.concatenate([w[:, :HIDDEN] * ATTN_SCALE, w[:, HIDDEN:]], axis=1)

    qkv_w = jnp.stack([scaled_qkv(layer['qkv_w']) for layer in blocks]).astype(jnp.bfloat16)
    proj_w = jnp.stack([layer['proj_w'] for layer in blocks]).astype(jnp.bfloat16)
    mlp_w1 = jnp.stack([layer['mlp_w1'] for layer in blocks]).astype(jnp.bfloat16)
    mlp_w2 = jnp.stack([layer['mlp_w2'] for layer in blocks]).astype(jnp.bfloat16)
    vec = lambda name: jnp.stack([layer[name] for layer in blocks])[:, None, :]

    operands, in_specs = [], []

    def add_const(arr):
        operands.append(arr)
        in_specs.append(_const_spec(arr))

    # streamed (grid-blocked) operands
    operands.append(patches)
    in_specs.append(pl.BlockSpec((t, K_TILE), lambda k: (0, k)))
    operands.append(params['patch_w'].astype(jnp.bfloat16))
    in_specs.append(pl.BlockSpec((K_TILE, HIDDEN), lambda k: (k, 0)))
    # grid-constant operands (DMA'd once, kept resident)
    add_const(posb)
    add_const(gt_patches)
    add_const(vec('norm1_g')); add_const(vec('norm1_b'))
    add_const(qkv_w); add_const(proj_w); add_const(vec('proj_b'))
    add_const(vec('norm2_g')); add_const(vec('norm2_b'))
    add_const(mlp_w1); add_const(vec('mlp_b1'))
    add_const(mlp_w2); add_const(vec('mlp_b2'))
    add_const(params['norm_g'].reshape(1, HIDDEN))
    add_const(params['norm_b'].reshape(1, HIDDEN))
    add_const(w_dec.astype(jnp.bfloat16)); add_const(b_dec)
    add_const(gram_w); add_const(gram_u); add_const(gram_c)

    losses = pl.pallas_call(
        _vit_ssl_kernel,
        out_shape=jax.ShapeDtypeStruct((1, 2), jnp.float32),
        grid=(K_STEPS,),
        in_specs=in_specs,
        out_specs=pl.BlockSpec((1, 2), lambda k: (0, 0)),
        scratch_shapes=[pltpu.VMEM((t, HIDDEN), jnp.float32)],
        compiler_params=pltpu.CompilerParams(
            dimension_semantics=("arbitrary",)),
    )(*operands)

    r = losses[0, 0]
    cl = losses[0, 1]
    total = r + cl * r            # matches the reference: r_loss + cl_loss * r_loss
    # hidden states returned by ViTAutoEnc are unused by the loss -> skipped
    return {'loss': total, 'recon_loss': r, 'cl_loss': cl}


# ----------------------------- parameter init --------------------------------
def init_params(key):
    def nrm(k, shape, scale=0.02):
        return (scale * jax.random.normal(k, shape)).astype(jnp.float32)

    keys = jax.random.split(key, 4 + NUM_LAYERS)
    params = {
        'patch_w': nrm(keys[0], (PATCH_VOL, HIDDEN)),
        'patch_b': jnp.zeros((HIDDEN,), jnp.float32),
        'pos_emb': nrm(keys[1], (1, N_PATCH, HIDDEN)),
        'norm_g': jnp.ones((HIDDEN,), jnp.float32),
        'norm_b': jnp.zeros((HIDDEN,), jnp.float32),
        # PyTorch ConvTranspose3d weight layout: (Cin, Cout, kD, kH, kW)
        'deconv1_w': nrm(keys[2], (HIDDEN, DECONV_CH, DECONV_K, DECONV_K, DECONV_K)),
        'deconv1_b': jnp.zeros((DECONV_CH,), jnp.float32),
        'deconv2_w': nrm(keys[3], (DECONV_CH, OUT_CH, DECONV_K, DECONV_K, DECONV_K)),
        'deconv2_b': jnp.zeros((OUT_CH,), jnp.float32),
        'blocks': [],
    }
    for li in range(NUM_LAYERS):
        bk = jax.random.split(keys[4 + li], 4)
        params['blocks'].append({
            'norm1_g': jnp.ones((HIDDEN,), jnp.float32),
            'norm1_b': jnp.zeros((HIDDEN,), jnp.float32),
            'qkv_w': nrm(bk[0], (HIDDEN, 3 * HIDDEN)),   # qkv_bias=False -> no bias
            'proj_w': nrm(bk[1], (HIDDEN, HIDDEN)),
            'proj_b': jnp.zeros((HIDDEN,), jnp.float32),
            'norm2_g': jnp.ones((HIDDEN,), jnp.float32),
            'norm2_b': jnp.zeros((HIDDEN,), jnp.float32),
            'mlp_w1': nrm(bk[2], (HIDDEN, MLP_DIM)),
            'mlp_b1': jnp.zeros((MLP_DIM,), jnp.float32),
            'mlp_w2': nrm(bk[3], (MLP_DIM, HIDDEN)),
            'mlp_b2': jnp.zeros((HIDDEN,), jnp.float32),
        })
    return params


# ----------------------------- main -------------------------------------------
if __name__ == "__main__":
    key = jax.random.PRNGKey(0)
    kp, k1, k2, k3 = jax.random.split(key, 4)
    params = init_params(kp)

    B = 2
    shape = (B, IN_CH, IMG, IMG, IMG)      # NCDHW
    image = jax.random.normal(k1, shape, jnp.float32)
    image_2 = jax.random.normal(k2, shape, jnp.float32)
    gt_image = jax.random.normal(k3, shape, jnp.float32)

    fwd = jax.jit(vit_autoenc_ssl_forward)
    out = fwd(params, image, image_2, gt_image)
    jax.block_until_ready(out)
    print("KERNEL_OK")
</pallas_src>

<mosaic_0001>
module attributes {stable_mosaic.version = 11 : i64} {
  func.func @_vit_ssl_kernel(%arg0: i32, %arg1: memref<32x1024xbf16, #tpu.memory_space<vmem>>, %arg2: memref<1024x64xbf16, #tpu.memory_space<vmem>>, %arg3: memref<32x64xf32, #tpu.memory_space<vmem>>, %arg4: memref<16x4096xf32, #tpu.memory_space<vmem>>, %arg5: memref<2x1x64xf32, #tpu.memory_space<vmem>>, %arg6: memref<2x1x64xf32, #tpu.memory_space<vmem>>, %arg7: memref<2x64x192xbf16, #tpu.memory_space<vmem>>, %arg8: memref<2x64x64xbf16, #tpu.memory_space<vmem>>, %arg9: memref<2x1x64xf32, #tpu.memory_space<vmem>>, %arg10: memref<2x1x64xf32, #tpu.memory_space<vmem>>, %arg11: memref<2x1x64xf32, #tpu.memory_space<vmem>>, %arg12: memref<2x64x128xbf16, #tpu.memory_space<vmem>>, %arg13: memref<2x1x128xf32, #tpu.memory_space<vmem>>, %arg14: memref<2x128x64xbf16, #tpu.memory_space<vmem>>, %arg15: memref<2x1x64xf32, #tpu.memory_space<vmem>>, %arg16: memref<1x64xf32, #tpu.memory_space<vmem>>, %arg17: memref<1x64xf32, #tpu.memory_space<vmem>>, %arg18: memref<64x4096xbf16, #tpu.memory_space<vmem>>, %arg19: memref<1x4096xf32, #tpu.memory_space<vmem>>, %arg20: memref<64x64xf32, #tpu.memory_space<vmem>>, %arg21: memref<1x64xf32, #tpu.memory_space<vmem>>, %arg22: memref<1x1xf32, #tpu.memory_space<vmem>>, %arg23: memref<1x2xf32, #tpu.memory_space<vmem>>, %arg24: memref<32x64xf32, #tpu.memory_space<vmem>>) attributes {dimension_semantics = [#tpu.dimension_semantics<arbitrary>], iteration_bounds = array<i64: 4>, scalar_prefetch = 0 : i64, scratch_operands = 1 : i64, tpu.core_type = #tpu.core_type<tc>, window_params = [{transform_indices = @transform_0, window_bounds = array<i64: 32, 1024>}, {transform_indices = @transform_1, window_bounds = array<i64: 1024, 64>}, {pipeline_mode = #tpu.pipeline_mode<synchronous>, transform_indices = @transform_2, window_bounds = array<i64: 32, 64>}, {pipeline_mode = #tpu.pipeline_mode<synchronous>, transform_indices = @transform_3, window_bounds = array<i64: 16, 4096>}, {pipeline_mode = #tpu.pipeline_mode<synchronous>, transform_indices = @transform_4, window_bounds = array<i64: 2, 1, 64>}, {pipeline_mode = #tpu.pipeline_mode<synchronous>, transform_indices = @transform_5, window_bounds = array<i64: 2, 1, 64>}, {pipeline_mode = #tpu.pipeline_mode<synchronous>, transform_indices = @transform_6, window_bounds = array<i64: 2, 64, 192>}, {pipeline_mode = #tpu.pipeline_mode<synchronous>, transform_indices = @transform_7, window_bounds = array<i64: 2, 64, 64>}, {pipeline_mode = #tpu.pipeline_mode<synchronous>, transform_indices = @transform_8, window_bounds = array<i64: 2, 1, 64>}, {pipeline_mode = #tpu.pipeline_mode<synchronous>, transform_indices = @transform_9, window_bounds = array<i64: 2, 1, 64>}, {pipeline_mode = #tpu.pipeline_mode<synchronous>, transform_indices = @transform_10, window_bounds = array<i64: 2, 1, 64>}, {pipeline_mode = #tpu.pipeline_mode<synchronous>, transform_indices = @transform_11, window_bounds = array<i64: 2, 64, 128>}, {pipeline_mode = #tpu.pipeline_mode<synchronous>, transform_indices = @transform_12, window_bounds = array<i64: 2, 1, 128>}, {pipeline_mode = #tpu.pipeline_mode<synchronous>, transform_indices = @transform_13, window_bounds = array<i64: 2, 128, 64>}, {pipeline_mode = #tpu.pipeline_mode<synchronous>, transform_indices = @transform_14, window_bounds = array<i64: 2, 1, 64>}, {pipeline_mode = #tpu.pipeline_mode<synchronous>, transform_indices = @transform_15, window_bounds = array<i64: 1, 64>}, {pipeline_mode = #tpu.pipeline_mode<synchronous>, transform_indices = @transform_16, window_bounds = array<i64: 1, 64>}, {pipeline_mode = #tpu.pipeline_mode<synchronous>, transform_indices = @transform_17, window_bounds = array<i64: 64, 4096>}, {pipeline_mode = #tpu.pipeline_mode<synchronous>, transform_indices = @transform_18, window_bounds = array<i64: 1, 4096>}, {pipeline_mode = #tpu.pipeline_mode<synchronous>, transform_indices = @transform_19, window_bounds = array<i64: 64, 64>}, {pipeline_mode = #tpu.pipeline_mode<synchronous>, transform_indices = @transform_20, window_bounds = array<i64: 1, 64>}, {pipeline_mode = #tpu.pipeline_mode<synchronous>, transform_indices = @transform_21, window_bounds = array<i64: 1, 1>}, {pipeline_mode = #tpu.pipeline_mode<synchronous>, transform_indices = @transform_22, window_bounds = array<i64: 1, 2>}]} {
    %c0_i32 = arith.constant 0 : i32
    %0 = arith.cmpi eq, %arg0, %c0_i32 : i32
    %1 = arith.extui %0 : i1 to i32
    %c0_i32_0 = arith.constant 0 : i32
    %2 = arith.cmpi ne, %1, %c0_i32_0 : i32
    scf.if %2 {
      %cst_9 = arith.constant 0.000000e+00 : f32
      %12 = vector.broadcast %cst_9 : f32 to vector<32x64xf32>
      %c0_10 = arith.constant 0 : index
      %c0_11 = arith.constant 0 : index
      %13 = vector.load %arg24[%c0_10, %c0_11] : memref<32x64xf32, #tpu.memory_space<vmem>>, vector<32x64xf32>
      tpu.vector_store %arg24[%c0_10, %c0_11], %12 {strides = array<i32>} : memref<32x64xf32, #tpu.memory_space<vmem>>, vector<32x64xf32>,
    } else {
    }
    %c0 = arith.constant 0 : index
    %c0_1 = arith.constant 0 : index
    %3 = vector.load %arg24[%c0, %c0_1] : memref<32x64xf32, #tpu.memory_space<vmem>>, vector<32x64xf32>
    %c0_2 = arith.constant 0 : index
    %c0_3 = arith.constant 0 : index
    %4 = vector.load %arg1[%c0_2, %c0_3] : memref<32x1024xbf16, #tpu.memory_space<vmem>>, vector<32x1024xbf16>
    %c0_4 = arith.constant 0 : index
    %c0_5 = arith.constant 0 : index
    %5 = vector.load %arg2[%c0_4, %c0_5] : memref<1024x64xbf16, #tpu.memory_space<vmem>>, vector<1024x64xbf16>
    %cst = arith.constant dense<0.000000e+00> : vector<32x64xf32>
    %6 = tpu.matmul %4, %5, %cst {dimension_numbers = #tpu.dot_dimension_numbers<[1], [0], [0], [1], [0, 0, 1, 1], [], []>} : vector<32x1024xbf16>, vector<1024x64xbf16>, vector<32x64xf32> -> vector<32x64xf32>
    %7 = arith.addf %3, %6 : vector<32x64xf32>
    %c0_6 = arith.constant 0 : index
    %c0_7 = arith.constant 0 : index
    %8 = vector.load %arg24[%c0_6, %c0_7] : memref<32x64xf32, #tpu.memory_space<vmem>>, vector<32x64xf32>
    tpu.vector_store %arg24[%c0_6, %c0_7], %7 {strides = array<i32>} : memref<32x64xf32, #tpu.memory_space<vmem>>, vector<32x64xf32>,
    %c3_i32 = arith.constant 3 : i32
    %9 = arith.cmpi eq, %arg0, %c3_i32 : i32
    %10 = arith.extui %9 : i1 to i32
    %c0_i32_8 = arith.constant 0 : i32
    %11 = arith.cmpi ne, %10, %c0_i32_8 : i32
    scf.if %11 {
      %c0_9 = arith.constant 0 : index
      %c0_10 = arith.constant 0 : index
      %12 = vector.load %arg24[%c0_9, %c0_10] : memref<32x64xf32, #tpu.memory_space<vmem>>, vector<32x64xf32>
      %c0_11 = arith.constant 0 : index
      %c0_12 = arith.constant 0 : index
      %13 = vector.load %arg3[%c0_11, %c0_12] : memref<32x64xf32, #tpu.memory_space<vmem>>, vector<32x64xf32>
      %14 = arith.addf %12, %13 : vector<32x64xf32>
      %15 = tpu.iota {dimensions = array<i32: 0>} : vector<32x32xi32>
      %16 = tpu.iota {dimensions = array<i32: 1>} : vector<32x32xi32>
      %17 = arith.sitofp %15 : vector<32x32xi32> to vector<32x32xf32>
      %cst_13 = arith.constant 5.000000e-01 : f32
      %18 = vector.broadcast %cst_13 : f32 to vector<32x32xf32>
      %19 = arith.addf %17, %18 : vector<32x32xf32>
      %cst_14 = arith.constant 1.250000e-01 : f32
      %20 = vector.broadcast %cst_14 : f32 to vector<32x32xf32>
      %21 = arith.mulf %19, %20 : vector<32x32xf32>
      %22 = math.floor %21 : vector<32x32xf32>
      %23 = arith.sitofp %16 : vector<32x32xi32> to vector<32x32xf32>
      %cst_15 = arith.constant 5.000000e-01 : f32
      %24 = vector.broadcast %cst_15 : f32 to vector<32x32xf32>
      %25 = arith.addf %23, %24 : vector<32x32xf32>
      %cst_16 = arith.constant 1.250000e-01 : f32
      %26 = vector.broadcast %cst_16 : f32 to vector<32x32xf32>
      %27 = arith.mulf %25, %26 : vector<32x32xf32>
      %28 = math.floor %27 : vector<32x32xf32>
      %29 = arith.cmpf oeq, %22, %28 : vector<32x32xf32>
      %cst_17 = arith.constant 0.000000e+00 : f32
      %cst_18 = arith.constant -1.000000e+09 : f32
      %30 = vector.broadcast %cst_17 : f32 to vector<32x32xf32>
      %31 = vector.broadcast %cst_18 : f32 to vector<32x32xf32>
      %32 = arith.select %29, %30, %31 : vector<32x32xi1>, vector<32x32xf32>
      %c0_19 = arith.constant 0 : index
      %c0_20 = arith.constant 0 : index
      %c0_21 = arith.constant 0 : index
      %33 = vector.load %arg5[%c0_19, %c0_20, %c0_21] : memref<2x1x64xf32, #tpu.memory_space<vmem>>, vector<1x1x64xf32>
      %34 = vector.shape_cast %33 : vector<1x1x64xf32> to vector<1x64xf32>
      %c0_22 = arith.constant 0 : index
      %c0_23 = arith.constant 0 : index
      %c0_24 = arith.constant 0 : index
      %35 = vector.load %arg6[%c0_22, %c0_23, %c0_24] : memref<2x1x64xf32, #tpu.memory_space<vmem>>, vector<1x1x64xf32>
      %36 = vector.shape_cast %35 : vector<1x1x64xf32> to vector<1x64xf32>
      %cst_25 = arith.constant dense<0.000000e+00> : vector<32xf32>
      %37 = vector.multi_reduction <add>, %14, %cst_25 [1] : vector<32x64xf32> to vector<32xf32>
      %38 = vector.shape_cast %37 : vector<32xf32> to vector<32x1xf32>
      %cst_26 = arith.constant 6.400000e+01 : f32
      %39 = vector.broadcast %cst_26 : f32 to vector<32x1xf32>
      %40 = arith.divf %38, %39 : vector<32x1xf32>
      %41 = vector.broadcast %40 : vector<32x1xf32> to vector<32x64xf32>
      %42 = arith.subf %14, %41 : vector<32x64xf32>
      %43 = arith.mulf %42, %42 : vector<32x64xf32>
      %cst_27 = arith.constant dense<0.000000e+00> : vector<32xf32>
      %44 = vector.multi_reduction <add>, %43, %cst_27 [1] : vector<32x64xf32> to vector<32xf32>
      %45 = vector.shape_cast %44 : vector<32xf32> to vector<32x1xf32>
      %cst_28 = arith.constant 6.400000e+01 : f32
      %46 = vector.broadcast %cst_28 : f32 to vector<32x1xf32>
      %47 = arith.divf %45, %46 : vector<32x1xf32>
      %cst_29 = arith.constant 9.99999974E-6 : f32
      %48 = vector.broadcast %cst_29 : f32 to vector<32x1xf32>
      %49 = arith.addf %47, %48 : vector<32x1xf32>
      %50 = math.rsqrt %49 : vector<32x1xf32>
      %51 = vector.broadcast %50 : vector<32x1xf32> to vector<32x64xf32>
      %52 = arith.mulf %42, %51 : vector<32x64xf32>
      %53 = vector.broadcast %34 : vector<1x64xf32> to vector<32x64xf32>
      %54 = arith.mulf %52, %53 : vector<32x64xf32>
      %55 = vector.broadcast %36 : vector<1x64xf32> to vector<32x64xf32>
      %56 = arith.addf %54, %55 : vector<32x64xf32>
      %57 = arith.truncf %56 : vector<32x64xf32> to vector<32x64xbf16>
      %c0_30 = arith.constant 0 : index
      %c0_31 = arith.constant 0 : index
      %c0_32 = arith.constant 0 : index
      %58 = vector.load %arg7[%c0_30, %c0_31, %c0_32] : memref<2x64x192xbf16, #tpu.memory_space<vmem>>, vector<1x64x192xbf16>
      %59 = vector.shape_cast %58 : vector<1x64x192xbf16> to vector<64x192xbf16>
      %cst_33 = arith.constant dense<0.000000e+00> : vector<32x192xf32>
      %60 = tpu.matmul %57, %59, %cst_33 {dimension_numbers = #tpu.dot_dimension_numbers<[1], [0], [0], [1], [0, 0, 1, 1], [], []>} : vector<32x64xbf16>, vector<64x192xbf16>, vector<32x192xf32> -> vector<32x192xf32>
      %61 = arith.truncf %60 : vector<32x192xf32> to vector<32x192xbf16>
      %62 = vector.extract_strided_slice %61 {offsets = [0, 0], sizes = [32, 16], strides = [1, 1]} : vector<32x192xbf16> to vector<32x16xbf16>
      %63 = vector.extract_strided_slice %61 {offsets = [0, 16], sizes = [32, 16], strides = [1, 1]} : vector<32x192xbf16> to vector<32x16xbf16>
      %64 = vector.extract_strided_slice %61 {offsets = [0, 32], sizes = [32, 16], strides = [1, 1]} : vector<32x192xbf16> to vector<32x16xbf16>
      %65 = vector.extract_strided_slice %61 {offsets = [0, 48], sizes = [32, 16], strides = [1, 1]} : vector<32x192xbf16> to vector<32x16xbf16>
      %66 = vector.shape_cast %62 : vector<32x16xbf16> to vector<1x32x16xbf16>
      %67 = vector.shape_cast %63 : vector<32x16xbf16> to vector<1x32x16xbf16>
      %68 = vector.shape_cast %64 : vector<32x16xbf16> to vector<1x32x16xbf16>
      %69 = vector.shape_cast %65 : vector<32x16xbf16> to vector<1x32x16xbf16>
      %70 = tpu.concatenate %66, %67, %68, %69 in 0 : vector<1x32x16xbf16>, vector<1x32x16xbf16>, vector<1x32x16xbf16>, vector<1x32x16xbf16> -> vector<4x32x16xbf16>
      %71 = vector.extract_strided_slice %61 {offsets = [0, 64], sizes = [32, 16], strides = [1, 1]} : vector<32x192xbf16> to vector<32x16xbf16>
      %72 = vector.extract_strided_slice %61 {offsets = [0, 80], sizes = [32, 16], strides = [1, 1]} : vector<32x192xbf16> to vector<32x16xbf16>
      %73 = vector.extract_strided_slice %61 {offsets = [0, 96], sizes = [32, 16], strides = [1, 1]} : vector<32x192xbf16> to vector<32x16xbf16>
      %74 = vector.extract_strided_slice %61 {offsets = [0, 112], sizes = [32, 16], strides = [1, 1]} : vector<32x192xbf16> to vector<32x16xbf16>
      %75 = vector.shape_cast %71 : vector<32x16xbf16> to vector<1x32x16xbf16>
      %76 = vector.shape_cast %72 : vector<32x16xbf16> to vector<1x32x16xbf16>
      %77 = vector.shape_cast %73 : vector<32x16xbf16> to vector<1x32x16xbf16>
      %78 = vector.shape_cast %74 : vector<32x16xbf16> to vector<1x32x16xbf16>
      %79 = tpu.concatenate %75, %76, %77, %78 in 0 : vector<1x32x16xbf16>, vector<1x32x16xbf16>, vector<1x32x16xbf16>, vector<1x32x16xbf16> -> vector<4x32x16xbf16>
      %80 = vector.extract_strided_slice %61 {offsets = [0, 128], sizes = [32, 16], strides = [1, 1]} : vector<32x192xbf16> to vector<32x16xbf16>
      %81 = vector.extract_strided_slice %61 {offsets = [0, 144], sizes = [32, 16], strides = [1, 1]} : vector<32x192xbf16> to vector<32x16xbf16>
      %82 = vector.extract_strided_slice %61 {offsets = [0, 160], sizes = [32, 16], strides = [1, 1]} : vector<32x192xbf16> to vector<32x16xbf16>
      %83 = vector.extract_strided_slice %61 {offsets = [0, 176], sizes = [32, 16], strides = [1, 1]} : vector<32x192xbf16> to vector<32x16xbf16>
      %84 = vector.shape_cast %80 : vector<32x16xbf16> to vector<1x32x16xbf16>
      %85 = vector.shape_cast %81 : vector<32x16xbf16> to vector<1x32x16xbf16>
      %86 = vector.shape_cast %82 : vector<32x16xbf16> to vector<1x32x16xbf16>
      %87 = vector.shape_cast %83 : vector<32x16xbf16> to vector<1x32x16xbf16>
      %88 = tpu.concatenate %84, %85, %86, %87 in 0 : vector<1x32x16xbf16>, vector<1x32x16xbf16>, vector<1x32x16xbf16>, vector<1x32x16xbf16> -> vector<4x32x16xbf16>
      "tpu.trace_start"() <{level = 10 : i32, message = "hqd,hkd->hqk"}> : () -> ()
      %cst_34 = arith.constant dense<0.000000e+00> : vector<4x32x32xf32>
      %89 = tpu.matmul %70, %79, %cst_34 {dimension_numbers = #tpu.dot_dimension_numbers<[2], [2], [1], [1], [0, 0, 0, 1, 1, 1], [0], [0]>} : vector<4x32x16xbf16>, vector<4x32x16xbf16>, vector<4x32x32xf32> -> vector<4x32x32xf32>
      "tpu.trace_stop"() : () -> ()
      %90 = vector.shape_cast %32 : vector<32x32xf32> to vector<1x32x32xf32>
      %91 = vector.broadcast %90 : vector<1x32x32xf32> to vector<4x32x32xf32>
      %92 = arith.addf %89, %91 : vector<4x32x32xf32>
      %cst_35 = arith.constant dense<0xFF800000> : vector<4x32xf32>
      %93 = vector.multi_reduction <maximumf>, %92, %cst_35 [2] : vector<4x32x32xf32> to vector<4x32xf32>
      %94 = vector.shape_cast %93 : vector<4x32xf32> to vector<4x32x1xf32>
      %95 = vector.broadcast %94 : vector<4x32x1xf32> to vector<4x32x32xf32>
      %96 = arith.subf %92, %95 : vector<4x32x32xf32>
      %97 = math.exp %96 : vector<4x32x32xf32>
      %cst_36 = arith.constant dense<0.000000e+00> : vector<4x32xf32>
      %98 = vector.multi_reduction <add>, %97, %cst_36 [2] : vector<4x32x32xf32> to vector<4x32xf32>
      %99 = vector.shape_cast %98 : vector<4x32xf32> to vector<4x32x1xf32>
      %100 = tpu.reciprocal %99 {approx = true} : vector<4x32x1xf32> -> vector<4x32x1xf32>
      %101 = vector.broadcast %100 : vector<4x32x1xf32> to vector<4x32x32xf32>
      %102 = arith.mulf %97, %101 : vector<4x32x32xf32>
      %103 = arith.truncf %102 : vector<4x32x32xf32> to vector<4x32x32xbf16>
      "tpu.trace_start"() <{level = 10 : i32, message = "hqk,hkd->hqd"}> : () -> ()
      %cst_37 = arith.constant dense<0.000000e+00> : vector<4x32x16xf32>
      %104 = tpu.matmul %103, %88, %cst_37 {dimension_numbers = #tpu.dot_dimension_numbers<[2], [1], [1], [2], [0, 0, 0, 1, 1, 2], [0], [0]>} : vector<4x32x32xbf16>, vector<4x32x16xbf16>, vector<4x32x16xf32> -> vector<4x32x16xf32>
      "tpu.trace_stop"() : () -> ()
      %105 = vector.extract_strided_slice %104 {offsets = [0, 0, 0], sizes = [1, 32, 16], strides = [1, 1, 1]} : vector<4x32x16xf32> to vector<1x32x16xf32>
      %106 = vector.shape_cast %105 : vector<1x32x16xf32> to vector<32x16xf32>
      %107 = vector.extract_strided_slice %104 {offsets = [1, 0, 0], sizes = [1, 32, 16], strides = [1, 1, 1]} : vector<4x32x16xf32> to vector<1x32x16xf32>
      %108 = vector.shape_cast %107 : vector<1x32x16xf32> to vector<32x16xf32>
      %109 = vector.extract_strided_slice %104 {offsets = [2, 0, 0], sizes = [1, 32, 16], strides = [1, 1, 1]} : vector<4x32x16xf32> to vector<1x32x16xf32>
      %110 = vector.shape_cast %109 : vector<1x32x16xf32> to vector<32x16xf32>
      %111 = vector.extract_strided_slice %104 {offsets = [3, 0, 0], sizes = [1, 32, 16], strides = [1, 1, 1]} : vector<4x32x16xf32> to vector<1x32x16xf32>
      %112 = vector.shape_cast %111 : vector<1x32x16xf32> to vector<32x16xf32>
      %113 = tpu.concatenate %106, %108, %110, %112 in 1 : vector<32x16xf32>, vector<32x16xf32>, vector<32x16xf32>, vector<32x16xf32> -> vector<32x64xf32>
      %114 = arith.truncf %113 : vector<32x64xf32> to vector<32x64xbf16>
      %c0_38 = arith.constant 0 : index
      %c0_39 = arith.constant 0 : index
      %c0_40 = arith.constant 0 : index
      %115 = vector.load %arg8[%c0_38, %c0_39, %c0_40] : memref<2x64x64xbf16, #tpu.memory_space<vmem>>, vector<1x64x64xbf16>
      %116 = vector.shape_cast %115 : vector<1x64x64xbf16> to vector<64x64xbf16>
      %cst_41 = arith.constant dense<0.000000e+00> : vector<32x64xf32>
      %117 = tpu.matmul %114, %116, %cst_41 {dimension_numbers = #tpu.dot_dimension_numbers<[1], [0], [0], [1], [0, 0, 1, 1], [], []>} : vector<32x64xbf16>, vector<64x64xbf16>, vector<32x64xf32> -> vector<32x64xf32>
      %118 = arith.addf %14, %117 : vector<32x64xf32>
      %c0_42 = arith.constant 0 : index
      %c0_43 = arith.constant 0 : index
      %c0_44 = arith.constant 0 : index
      %119 = vector.load %arg9[%c0_42, %c0_43, %c0_44] : memref<2x1x64xf32, #tpu.memory_space<vmem>>, vector<1x1x64xf32>
      %120 = vector.shape_cast %119 : vector<1x1x64xf32> to vector<1x64xf32>
      %121 = vector.broadcast %120 : vector<1x64xf32> to vector<32x64xf32>
      %122 = arith.addf %118, %121 : vector<32x64xf32>
      %c0_45 = arith.constant 0 : index
      %c0_46 = arith.constant 0 : index
      %c0_47 = arith.constant 0 : index
      %123 = vector.load %arg10[%c0_45, %c0_46, %c0_47] : memref<2x1x64xf32, #tpu.memory_space<vmem>>, vector<1x1x64xf32>
      %124 = vector.shape_cast %123 : vector<1x1x64xf32> to vector<1x64xf32>
      %c0_48 = arith.constant 0 : index
      %c0_49 = arith.constant 0 : index
      %c0_50 = arith.constant 0 : index
      %125 = vector.load %arg11[%c0_48, %c0_49, %c0_50] : memref<2x1x64xf32, #tpu.memory_space<vmem>>, vector<1x1x64xf32>
      %126 = vector.shape_cast %125 : vector<1x1x64xf32> to vector<1x64xf32>
      %cst_51 = arith.constant dense<0.000000e+00> : vector<32xf32>
      %127 = vector.multi_reduction <add>, %122, %cst_51 [1] : vector<32x64xf32> to vector<32xf32>
      %128 = vector.shape_cast %127 : vector<32xf32> to vector<32x1xf32>
      %cst_52 = arith.constant 6.400000e+01 : f32
      %129 = vector.broadcast %cst_52 : f32 to vector<32x1xf32>
      %130 = arith.divf %128, %129 : vector<32x1xf32>
      %131 = vector.broadcast %130 : vector<32x1xf32> to vector<32x64xf32>
      %132 = arith.subf %122, %131 : vector<32x64xf32>
      %133 = arith.mulf %132, %132 : vector<32x64xf32>
      %cst_53 = arith.constant dense<0.000000e+00> : vector<32xf32>
      %134 = vector.multi_reduction <add>, %133, %cst_53 [1] : vector<32x64xf32> to vector<32xf32>
      %135 = vector.shape_cast %134 : vector<32xf32> to vector<32x1xf32>
      %cst_54 = arith.constant 6.400000e+01 : f32
      %136 = vector.broadcast %cst_54 : f32 to vector<32x1xf32>
      %137 = arith.divf %135, %136 : vector<32x1xf32>
      %cst_55 = arith.constant 9.99999974E-6 : f32
      %138 = vector.broadcast %cst_55 : f32 to vector<32x1xf32>
      %139 = arith.addf %137, %138 : vector<32x1xf32>
      %140 = math.rsqrt %139 : vector<32x1xf32>
      %141 = vector.broadcast %140 : vector<32x1xf32> to vector<32x64xf32>
      %142 = arith.mulf %132, %141 : vector<32x64xf32>
      %143 = vector.broadcast %124 : vector<1x64xf32> to vector<32x64xf32>
      %144 = arith.mulf %142, %143 : vector<32x64xf32>
      %145 = vector.broadcast %126 : vector<1x64xf32> to vector<32x64xf32>
      %146 = arith.addf %144, %145 : vector<32x64xf32>
      %147 = arith.truncf %146 : vector<32x64xf32> to vector<32x64xbf16>
      %c0_56 = arith.constant 0 : index
      %c0_57 = arith.constant 0 : index
      %c0_58 = arith.constant 0 : index
      %148 = vector.load %arg12[%c0_56, %c0_57, %c0_58] : memref<2x64x128xbf16, #tpu.memory_space<vmem>>, vector<1x64x128xbf16>
      %149 = vector.shape_cast %148 : vector<1x64x128xbf16> to vector<64x128xbf16>
      %cst_59 = arith.constant dense<0.000000e+00> : vector<32x128xf32>
      %150 = tpu.matmul %147, %149, %cst_59 {dimension_numbers = #tpu.dot_dimension_numbers<[1], [0], [0], [1], [0, 0, 1, 1], [], []>} : vector<32x64xbf16>, vector<64x128xbf16>, vector<32x128xf32> -> vector<32x128xf32>
      %c0_60 = arith.constant 0 : index
      %c0_61 = arith.constant 0 : index
      %c0_62 = arith.constant 0 : index
      %151 = vector.load %arg13[%c0_60, %c0_61, %c0_62] : memref<2x1x128xf32, #tpu.memory_space<vmem>>, vector<1x1x128xf32>
      %152 = vector.shape_cast %151 : vector<1x1x128xf32> to vector<1x128xf32>
      %153 = vector.broadcast %152 : vector<1x128xf32> to vector<32x128xf32>
      %154 = arith.addf %150, %153 : vector<32x128xf32>
      %cst_63 = arith.constant 5.000000e-01 : f32
      %155 = vector.broadcast %cst_63 : f32 to vector<32x128xf32>
      %156 = arith.mulf %155, %154 : vector<32x128xf32>
      %cst_64 = arith.constant 4.471500e-02 : f32
      %157 = vector.broadcast %cst_64 : f32 to vector<32x128xf32>
      %158 = arith.mulf %157, %154 : vector<32x128xf32>
      %159 = arith.mulf %158, %154 : vector<32x128xf32>
      %160 = arith.mulf %159, %154 : vector<32x128xf32>
      %161 = arith.addf %154, %160 : vector<32x128xf32>
      %cst_65 = arith.constant 0.797884583 : f32
      %162 = vector.broadcast %cst_65 : f32 to vector<32x128xf32>
      %163 = arith.mulf %162, %161 : vector<32x128xf32>
      %164 = math.tanh %163 : vector<32x128xf32>
      %cst_66 = arith.constant 1.000000e+00 : f32
      %165 = vector.broadcast %cst_66 : f32 to vector<32x128xf32>
      %166 = arith.addf %165, %164 : vector<32x128xf32>
      %167 = arith.mulf %156, %166 : vector<32x128xf32>
      %168 = arith.truncf %167 : vector<32x128xf32> to vector<32x128xbf16>
      %c0_67 = arith.constant 0 : index
      %c0_68 = arith.constant 0 : index
      %c0_69 = arith.constant 0 : index
      %169 = vector.load %arg14[%c0_67, %c0_68, %c0_69] : memref<2x128x64xbf16, #tpu.memory_space<vmem>>, vector<1x128x64xbf16>
      %170 = vector.shape_cast %169 : vector<1x128x64xbf16> to vector<128x64xbf16>
      %cst_70 = arith.constant dense<0.000000e+00> : vector<32x64xf32>
      %171 = tpu.matmul %168, %170, %cst_70 {dimension_numbers = #tpu.dot_dimension_numbers<[1], [0], [0], [1], [0, 0, 1, 1], [], []>} : vector<32x128xbf16>, vector<128x64xbf16>, vector<32x64xf32> -> vector<32x64xf32>
      %172 = arith.addf %122, %171 : vector<32x64xf32>
      %c0_71 = arith.constant 0 : index
      %c0_72 = arith.constant 0 : index
      %c0_73 = arith.constant 0 : index
      %173 = vector.load %arg15[%c0_71, %c0_72, %c0_73] : memref<2x1x64xf32, #tpu.memory_space<vmem>>, vector<1x1x64xf32>
      %174 = vector.shape_cast %173 : vector<1x1x64xf32> to vector<1x64xf32>
      %175 = vector.broadcast %174 : vector<1x64xf32> to vector<32x64xf32>
      %176 = arith.addf %172, %175 : vector<32x64xf32>
      %c1 = arith.constant 1 : index
      %c0_74 = arith.constant 0 : index
      %c0_75 = arith.constant 0 : index
      %177 = vector.load %arg5[%c1, %c0_74, %c0_75] : memref<2x1x64xf32, #tpu.memory_space<vmem>>, vector<1x1x64xf32>
      %178 = vector.shape_cast %177 : vector<1x1x64xf32> to vector<1x64xf32>
      %c1_76 = arith.constant 1 : index
      %c0_77 = arith.constant 0 : index
      %c0_78 = arith.constant 0 : index
      %179 = vector.load %arg6[%c1_76, %c0_77, %c0_78] : memref<2x1x64xf32, #tpu.memory_space<vmem>>, vector<1x1x64xf32>
      %180 = vector.shape_cast %179 : vector<1x1x64xf32> to vector<1x64xf32>
      %cst_79 = arith.constant dense<0.000000e+00> : vector<32xf32>
      %181 = vector.multi_reduction <add>, %176, %cst_79 [1] : vector<32x64xf32> to vector<32xf32>
      %182 = vector.shape_cast %181 : vector<32xf32> to vector<32x1xf32>
      %cst_80 = arith.constant 6.400000e+01 : f32
      %183 = vector.broadcast %cst_80 : f32 to vector<32x1xf32>
      %184 = arith.divf %182, %183 : vector<32x1xf32>
      %185 = vector.broadcast %184 : vector<32x1xf32> to vector<32x64xf32>
      %186 = arith.subf %176, %185 : vector<32x64xf32>
      %187 = arith.mulf %186, %186 : vector<32x64xf32>
      %cst_81 = arith.constant dense<0.000000e+00> : vector<32xf32>
      %188 = vector.multi_reduction <add>, %187, %cst_81 [1] : vector<32x64xf32> to vector<32xf32>
      %189 = vector.shape_cast %188 : vector<32xf32> to vector<32x1xf32>
      %cst_82 = arith.constant 6.400000e+01 : f32
      %190 = vector.broadcast %cst_82 : f32 to vector<32x1xf32>
      %191 = arith.divf %189, %190 : vector<32x1xf32>
      %cst_83 = arith.constant 9.99999974E-6 : f32
      %192 = vector.broadcast %cst_83 : f32 to vector<32x1xf32>
      %193 = arith.addf %191, %192 : vector<32x1xf32>
      %194 = math.rsqrt %193 : vector<32x1xf32>
      %195 = vector.broadcast %194 : vector<32x1xf32> to vector<32x64xf32>
      %196 = arith.mulf %186, %195 : vector<32x64xf32>
      %197 = vector.broadcast %178 : vector<1x64xf32> to vector<32x64xf32>
      %198 = arith.mulf %196, %197 : vector<32x64xf32>
      %199 = vector.broadcast %180 : vector<1x64xf32> to vector<32x64xf32>
      %200 = arith.addf %198, %199 : vector<32x64xf32>
      %201 = arith.truncf %200 : vector<32x64xf32> to vector<32x64xbf16>
      %c1_84 = arith.constant 1 : index
      %c0_85 = arith.constant 0 : index
      %c0_86 = arith.constant 0 : index
      %202 = vector.load %arg7[%c1_84, %c0_85, %c0_86] : memref<2x64x192xbf16, #tpu.memory_space<vmem>>, vector<1x64x192xbf16>
      %203 = vector.shape_cast %202 : vector<1x64x192xbf16> to vector<64x192xbf16>
      %cst_87 = arith.constant dense<0.000000e+00> : vector<32x192xf32>
      %204 = tpu.matmul %201, %203, %cst_87 {dimension_numbers = #tpu.dot_dimension_numbers<[1], [0], [0], [1], [0, 0, 1, 1], [], []>} : vector<32x64xbf16>, vector<64x192xbf16>, vector<32x192xf32> -> vector<32x192xf32>
      %205 = arith.truncf %204 : vector<32x192xf32> to vector<32x192xbf16>
      %206 = vector.extract_strided_slice %205 {offsets = [0, 0], sizes = [32, 16], strides = [1, 1]} : vector<32x192xbf16> to vector<32x16xbf16>
      %207 = vector.extract_strided_slice %205 {offsets = [0, 16], sizes = [32, 16], strides = [1, 1]} : vector<32x192xbf16> to vector<32x16xbf16>
      %208 = vector.extract_strided_slice %205 {offsets = [0, 32], sizes = [32, 16], strides = [1, 1]} : vector<32x192xbf16> to vector<32x16xbf16>
      %209 = vector.extract_strided_slice %205 {offsets = [0, 48], sizes = [32, 16], strides = [1, 1]} : vector<32x192xbf16> to vector<32x16xbf16>
      %210 = vector.shape_cast %206 : vector<32x16xbf16> to vector<1x32x16xbf16>
      %211 = vector.shape_cast %207 : vector<32x16xbf16> to vector<1x32x16xbf16>
      %212 = vector.shape_cast %208 : vector<32x16xbf16> to vector<1x32x16xbf16>
      %213 = vector.shape_cast %209 : vector<32x16xbf16> to vector<1x32x16xbf16>
      %214 = tpu.concatenate %210, %211, %212, %213 in 0 : vector<1x32x16xbf16>, vector<1x32x16xbf16>, vector<1x32x16xbf16>, vector<1x32x16xbf16> -> vector<4x32x16xbf16>
      %215 = vector.extract_strided_slice %205 {offsets = [0, 64], sizes = [32, 16], strides = [1, 1]} : vector<32x192xbf16> to vector<32x16xbf16>
      %216 = vector.extract_strided_slice %205 {offsets = [0, 80], sizes = [32, 16], strides = [1, 1]} : vector<32x192xbf16> to vector<32x16xbf16>
      %217 = vector.extract_strided_slice %205 {offsets = [0, 96], sizes = [32, 16], strides = [1, 1]} : vector<32x192xbf16> to vector<32x16xbf16>
      %218 = vector.extract_strided_slice %205 {offsets = [0, 112], sizes = [32, 16], strides = [1, 1]} : vector<32x192xbf16> to vector<32x16xbf16>
      %219 = vector.shape_cast %215 : vector<32x16xbf16> to vector<1x32x16xbf16>
      %220 = vector.shape_cast %216 : vector<32x16xbf16> to vector<1x32x16xbf16>
      %221 = vector.shape_cast %217 : vector<32x16xbf16> to vector<1x32x16xbf16>
      %222 = vector.shape_cast %218 : vector<32x16xbf16> to vector<1x32x16xbf16>
      %223 = tpu.concatenate %219, %220, %221, %222 in 0 : vector<1x32x16xbf16>, vector<1x32x16xbf16>, vector<1x32x16xbf16>, vector<1x32x16xbf16> -> vector<4x32x16xbf16>
      %224 = vector.extract_strided_slice %205 {offsets = [0, 128], sizes = [32, 16], strides = [1, 1]} : vector<32x192xbf16> to vector<32x16xbf16>
      %225 = vector.extract_strided_slice %205 {offsets = [0, 144], sizes = [32, 16], strides = [1, 1]} : vector<32x192xbf16> to vector<32x16xbf16>
      %226 = vector.extract_strided_slice %205 {offsets = [0, 160], sizes = [32, 16], strides = [1, 1]} : vector<32x192xbf16> to vector<32x16xbf16>
      %227 = vector.extract_strided_slice %205 {offsets = [0, 176], sizes = [32, 16], strides = [1, 1]} : vector<32x192xbf16> to vector<32x16xbf16>
      %228 = vector.shape_cast %224 : vector<32x16xbf16> to vector<1x32x16xbf16>
      %229 = vector.shape_cast %225 : vector<32x16xbf16> to vector<1x32x16xbf16>
      %230 = vector.shape_cast %226 : vector<32x16xbf16> to vector<1x32x16xbf16>
      %231 = vector.shape_cast %227 : vector<32x16xbf16> to vector<1x32x16xbf16>
      %232 = tpu.concatenate %228, %229, %230, %231 in 0 : vector<1x32x16xbf16>, vector<1x32x16xbf16>, vector<1x32x16xbf16>, vector<1x32x16xbf16> -> vector<4x32x16xbf16>
      "tpu.trace_start"() <{level = 10 : i32, message = "hqd,hkd->hqk"}> : () -> ()
      %cst_88 = arith.constant dense<0.000000e+00> : vector<4x32x32xf32>
      %233 = tpu.matmul %214, %223, %cst_88 {dimension_numbers = #tpu.dot_dimension_numbers<[2], [2], [1], [1], [0, 0, 0, 1, 1, 1], [0], [0]>} : vector<4x32x16xbf16>, vector<4x32x16xbf16>, vector<4x32x32xf32> -> vector<4x32x32xf32>
      "tpu.trace_stop"() : () -> ()
      %234 = vector.shape_cast %32 : vector<32x32xf32> to vector<1x32x32xf32>
      %235 = vector.broadcast %234 : vector<1x32x32xf32> to vector<4x32x32xf32>
      %236 = arith.addf %233, %235 : vector<4x32x32xf32>
      %cst_89 = arith.constant dense<0xFF800000> : vector<4x32xf32>
      %237 = vector.multi_reduction <maximumf>, %236, %cst_89 [2] : vector<4x32x32xf32> to vector<4x32xf32>
      %238 = vector.shape_cast %237 : vector<4x32xf32> to vector<4x32x1xf32>
      %239 = vector.broadcast %238 : vector<4x32x1xf32> to vector<4x32x32xf32>
      %240 = arith.subf %236, %239 : vector<4x32x32xf32>
      %241 = math.exp %240 : vector<4x32x32xf32>
      %cst_90 = arith.constant dense<0.000000e+00> : vector<4x32xf32>
      %242 = vector.multi_reduction <add>, %241, %cst_90 [2] : vector<4x32x32xf32> to vector<4x32xf32>
      %243 = vector.shape_cast %242 : vector<4x32xf32> to vector<4x32x1xf32>
      %244 = tpu.reciprocal %243 {approx = true} : vector<4x32x1xf32> -> vector<4x32x1xf32>
      %245 = vector.broadcast %244 : vector<4x32x1xf32> to vector<4x32x32xf32>
      %246 = arith.mulf %241, %245 : vector<4x32x32xf32>
      %247 = arith.truncf %246 : vector<4x32x32xf32> to vector<4x32x32xbf16>
      "tpu.trace_start"() <{level = 10 : i32, message = "hqk,hkd->hqd"}> : () -> ()
      %cst_91 = arith.constant dense<0.000000e+00> : vector<4x32x16xf32>
      %248 = tpu.matmul %247, %232, %cst_91 {dimension_numbers = #tpu.dot_dimension_numbers<[2], [1], [1], [2], [0, 0, 0, 1, 1, 2], [0], [0]>} : vector<4x32x32xbf16>, vector<4x32x16xbf16>, vector<4x32x16xf32> -> vector<4x32x16xf32>
      "tpu.trace_stop"() : () -> ()
      %249 = vector.extract_strided_slice %248 {offsets = [0, 0, 0], sizes = [1, 32, 16], strides = [1, 1, 1]} : vector<4x32x16xf32> to vector<1x32x16xf32>
      %250 = vector.shape_cast %249 : vector<1x32x16xf32> to vector<32x16xf32>
      %251 = vector.extract_strided_slice %248 {offsets = [1, 0, 0], sizes = [1, 32, 16], strides = [1, 1, 1]} : vector<4x32x16xf32> to vector<1x32x16xf32>
      %252 = vector.shape_cast %251 : vector<1x32x16xf32> to vector<32x16xf32>
      %253 = vector.extract_strided_slice %248 {offsets = [2, 0, 0], sizes = [1, 32, 16], strides = [1, 1, 1]} : vector<4x32x16xf32> to vector<1x32x16xf32>
      %254 = vector.shape_cast %253 : vector<1x32x16xf32> to vector<32x16xf32>
      %255 = vector.extract_strided_slice %248 {offsets = [3, 0, 0], sizes = [1, 32, 16], strides = [1, 1, 1]} : vector<4x32x16xf32> to vector<1x32x16xf32>
      %256 = vector.shape_cast %255 : vector<1x32x16xf32> to vector<32x16xf32>
      %257 = tpu.concatenate %250, %252, %254, %256 in 1 : vector<32x16xf32>, vector<32x16xf32>, vector<32x16xf32>, vector<32x16xf32> -> vector<32x64xf32>
      %258 = arith.truncf %257 : vector<32x64xf32> to vector<32x64xbf16>
      %c1_92 = arith.constant 1 : index
      %c0_93 = arith.constant 0 : index
      %c0_94 = arith.constant 0 : index
      %259 = vector.load %arg8[%c1_92, %c0_93, %c0_94] : memref<2x64x64xbf16, #tpu.memory_space<vmem>>, vector<1x64x64xbf16>
      %260 = vector.shape_cast %259 : vector<1x64x64xbf16> to vector<64x64xbf16>
      %cst_95 = arith.constant dense<0.000000e+00> : vector<32x64xf32>
      %261 = tpu.matmul %258, %260, %cst_95 {dimension_numbers = #tpu.dot_dimension_numbers<[1], [0], [0], [1], [0, 0, 1, 1], [], []>} : vector<32x64xbf16>, vector<64x64xbf16>, vector<32x64xf32> -> vector<32x64xf32>
      %262 = arith.addf %176, %261 : vector<32x64xf32>
      %c1_96 = arith.constant 1 : index
      %c0_97 = arith.constant 0 : index
      %c0_98 = arith.constant 0 : index
      %263 = vector.load %arg9[%c1_96, %c0_97, %c0_98] : memref<2x1x64xf32, #tpu.memory_space<vmem>>, vector<1x1x64xf32>
      %264 = vector.shape_cast %263 : vector<1x1x64xf32> to vector<1x64xf32>
      %265 = vector.broadcast %264 : vector<1x64xf32> to vector<32x64xf32>
      %266 = arith.addf %262, %265 : vector<32x64xf32>
      %c1_99 = arith.constant 1 : index
      %c0_100 = arith.constant 0 : index
      %c0_101 = arith.constant 0 : index
      %267 = vector.load %arg10[%c1_99, %c0_100, %c0_101] : memref<2x1x64xf32, #tpu.memory_space<vmem>>, vector<1x1x64xf32>
      %268 = vector.shape_cast %267 : vector<1x1x64xf32> to vector<1x64xf32>
      %c1_102 = arith.constant 1 : index
      %c0_103 = arith.constant 0 : index
      %c0_104 = arith.constant 0 : index
      %269 = vector.load %arg11[%c1_102, %c0_103, %c0_104] : memref<2x1x64xf32, #tpu.memory_space<vmem>>, vector<1x1x64xf32>
      %270 = vector.shape_cast %269 : vector<1x1x64xf32> to vector<1x64xf32>
      %cst_105 = arith.constant dense<0.000000e+00> : vector<32xf32>
      %271 = vector.multi_reduction <add>, %266, %cst_105 [1] : vector<32x64xf32> to vector<32xf32>
      %272 = vector.shape_cast %271 : vector<32xf32> to vector<32x1xf32>
      %cst_106 = arith.constant 6.400000e+01 : f32
      %273 = vector.broadcast %cst_106 : f32 to vector<32x1xf32>
      %274 = arith.divf %272, %273 : vector<32x1xf32>
      %275 = vector.broadcast %274 : vector<32x1xf32> to vector<32x64xf32>
      %276 = arith.subf %266, %275 : vector<32x64xf32>
      %277 = arith.mulf %276, %276 : vector<32x64xf32>
      %cst_107 = arith.constant dense<0.000000e+00> : vector<32xf32>
      %278 = vector.multi_reduction <add>, %277, %cst_107 [1] : vector<32x64xf32> to vector<32xf32>
      %279 = vector.shape_cast %278 : vector<32xf32> to vector<32x1xf32>
      %cst_108 = arith.constant 6.400000e+01 : f32
      %280 = vector.broadcast %cst_108 : f32 to vector<32x1xf32>
      %281 = arith.divf %279, %280 : vector<32x1xf32>
      %cst_109 = arith.constant 9.99999974E-6 : f32
      %282 = vector.broadcast %cst_109 : f32 to vector<32x1xf32>
      %283 = arith.addf %281, %282 : vector<32x1xf32>
      %284 = math.rsqrt %283 : vector<32x1xf32>
      %285 = vector.broadcast %284 : vector<32x1xf32> to vector<32x64xf32>
      %286 = arith.mulf %276, %285 : vector<32x64xf32>
      %287 = vector.broadcast %268 : vector<1x64xf32> to vector<32x64xf32>
      %288 = arith.mulf %286, %287 : vector<32x64xf32>
      %289 = vector.broadcast %270 : vector<1x64xf32> to vector<32x64xf32>
      %290 = arith.addf %288, %289 : vector<32x64xf32>
      %291 = arith.truncf %290 : vector<32x64xf32> to vector<32x64xbf16>
      %c1_110 = arith.constant 1 : index
      %c0_111 = arith.constant 0 : index
      %c0_112 = arith.constant 0 : index
      %292 = vector.load %arg12[%c1_110, %c0_111, %c0_112] : memref<2x64x128xbf16, #tpu.memory_space<vmem>>, vector<1x64x128xbf16>
      %293 = vector.shape_cast %292 : vector<1x64x128xbf16> to vector<64x128xbf16>
      %cst_113 = arith.constant dense<0.000000e+00> : vector<32x128xf32>
      %294 = tpu.matmul %291, %293, %cst_113 {dimension_numbers = #tpu.dot_dimension_numbers<[1], [0], [0], [1], [0, 0, 1, 1], [], []>} : vector<32x64xbf16>, vector<64x128xbf16>, vector<32x128xf32> -> vector<32x128xf32>
      %c1_114 = arith.constant 1 : index
      %c0_115 = arith.constant 0 : index
      %c0_116 = arith.constant 0 : index
      %295 = vector.load %arg13[%c1_114, %c0_115, %c0_116] : memref<2x1x128xf32, #tpu.memory_space<vmem>>, vector<1x1x128xf32>
      %296 = vector.shape_cast %295 : vector<1x1x128xf32> to vector<1x128xf32>
      %297 = vector.broadcast %296 : vector<1x128xf32> to vector<32x128xf32>
      %298 = arith.addf %294, %297 : vector<32x128xf32>
      %cst_117 = arith.constant 5.000000e-01 : f32
      %299 = vector.broadcast %cst_117 : f32 to vector<32x128xf32>
      %300 = arith.mulf %299, %298 : vector<32x128xf32>
      %cst_118 = arith.constant 4.471500e-02 : f32
      %301 = vector.broadcast %cst_118 : f32 to vector<32x128xf32>
      %302 = arith.mulf %301, %298 : vector<32x128xf32>
      %303 = arith.mulf %302, %298 : vector<32x128xf32>
      %304 = arith.mulf %303, %298 : vector<32x128xf32>
      %305 = arith.addf %298, %304 : vector<32x128xf32>
      %cst_119 = arith.constant 0.797884583 : f32
      %306 = vector.broadcast %cst_119 : f32 to vector<32x128xf32>
      %307 = arith.mulf %306, %305 : vector<32x128xf32>
      %308 = math.tanh %307 : vector<32x128xf32>
      %cst_120 = arith.constant 1.000000e+00 : f32
      %309 = vector.broadcast %cst_120 : f32 to vector<32x128xf32>
      %310 = arith.addf %309, %308 : vector<32x128xf32>
      %311 = arith.mulf %300, %310 : vector<32x128xf32>
      %312 = arith.truncf %311 : vector<32x128xf32> to vector<32x128xbf16>
      %c1_121 = arith.constant 1 : index
      %c0_122 = arith.constant 0 : index
      %c0_123 = arith.constant 0 : index
      %313 = vector.load %arg14[%c1_121, %c0_122, %c0_123] : memref<2x128x64xbf16, #tpu.memory_space<vmem>>, vector<1x128x64xbf16>
      %314 = vector.shape_cast %313 : vector<1x128x64xbf16> to vector<128x64xbf16>
      %cst_124 = arith.constant dense<0.000000e+00> : vector<32x64xf32>
      %315 = tpu.matmul %312, %314, %cst_124 {dimension_numbers = #tpu.dot_dimension_numbers<[1], [0], [0], [1], [0, 0, 1, 1], [], []>} : vector<32x128xbf16>, vector<128x64xbf16>, vector<32x64xf32> -> vector<32x64xf32>
      %316 = arith.addf %266, %315 : vector<32x64xf32>
      %c1_125 = arith.constant 1 : index
      %c0_126 = arith.constant 0 : index
      %c0_127 = arith.constant 0 : index
      %317 = vector.load %arg15[%c1_125, %c0_126, %c0_127] : memref<2x1x64xf32, #tpu.memory_space<vmem>>, vector<1x1x64xf32>
      %318 = vector.shape_cast %317 : vector<1x1x64xf32> to vector<1x64xf32>
      %319 = vector.broadcast %318 : vector<1x64xf32> to vector<32x64xf32>
      %320 = arith.addf %316, %319 : vector<32x64xf32>
      %c0_128 = arith.constant 0 : index
      %c0_129 = arith.constant 0 : index
      %321 = vector.load %arg16[%c0_128, %c0_129] : memref<1x64xf32, #tpu.memory_space<vmem>>, vector<1x64xf32>
      %c0_130 = arith.constant 0 : index
      %c0_131 = arith.constant 0 : index
      %322 = vector.load %arg17[%c0_130, %c0_131] : memref<1x64xf32, #tpu.memory_space<vmem>>, vector<1x64xf32>
      %cst_132 = arith.constant dense<0.000000e+00> : vector<32xf32>
      %323 = vector.multi_reduction <add>, %320, %cst_132 [1] : vector<32x64xf32> to vector<32xf32>
      %324 = vector.shape_cast %323 : vector<32xf32> to vector<32x1xf32>
      %cst_133 = arith.constant 6.400000e+01 : f32
      %325 = vector.broadcast %cst_133 : f32 to vector<32x1xf32>
      %326 = arith.divf %324, %325 : vector<32x1xf32>
      %327 = vector.broadcast %326 : vector<32x1xf32> to vector<32x64xf32>
      %328 = arith.subf %320, %327 : vector<32x64xf32>
      %329 = arith.mulf %328, %328 : vector<32x64xf32>
      %cst_134 = arith.constant dense<0.000000e+00> : vector<32xf32>
      %330 = vector.multi_reduction <add>, %329, %cst_134 [1] : vector<32x64xf32> to vector<32xf32>
      %331 = vector.shape_cast %330 : vector<32xf32> to vector<32x1xf32>
      %cst_135 = arith.constant 6.400000e+01 : f32
      %332 = vector.broadcast %cst_135 : f32 to vector<32x1xf32>
      %333 = arith.divf %331, %332 : vector<32x1xf32>
      %cst_136 = arith.constant 9.99999974E-6 : f32
      %334 = vector.broadcast %cst_136 : f32 to vector<32x1xf32>
      %335 = arith.addf %333, %334 : vector<32x1xf32>
      %336 = math.rsqrt %335 : vector<32x1xf32>
      %337 = vector.broadcast %336 : vector<32x1xf32> to vector<32x64xf32>
      %338 = arith.mulf %328, %337 : vector<32x64xf32>
      %339 = vector.broadcast %321 : vector<1x64xf32> to vector<32x64xf32>
      %340 = arith.mulf %338, %339 : vector<32x64xf32>
      %341 = vector.broadcast %322 : vector<1x64xf32> to vector<32x64xf32>
      %342 = arith.addf %340, %341 : vector<32x64xf32>
      %343 = vector.extract_strided_slice %342 {offsets = [0, 0], sizes = [16, 64], strides = [1, 1]} : vector<32x64xf32> to vector<16x64xf32>
      %344 = arith.truncf %343 : vector<16x64xf32> to vector<16x64xbf16>
      %c0_137 = arith.constant 0 : index
      %c0_138 = arith.constant 0 : index
      %345 = vector.load %arg18[%c0_137, %c0_138] : memref<64x4096xbf16, #tpu.memory_space<vmem>>, vector<64x4096xbf16>
      %cst_139 = arith.constant dense<0.000000e+00> : vector<16x4096xf32>
      %346 = tpu.matmul %344, %345, %cst_139 {dimension_numbers = #tpu.dot_dimension_numbers<[1], [0], [0], [1], [0, 0, 1, 1], [], []>} : vector<16x64xbf16>, vector<64x4096xbf16>, vector<16x4096xf32> -> vector<16x4096xf32>
      %c0_140 = arith.constant 0 : index
      %c0_141 = arith.constant 0 : index
      %347 = vector.load %arg19[%c0_140, %c0_141] : memref<1x4096xf32, #tpu.memory_space<vmem>>, vector<1x4096xf32>
      %348 = vector.broadcast %347 : vector<1x4096xf32> to vector<16x4096xf32>
      %349 = arith.addf %346, %348 : vector<16x4096xf32>
      %c0_142 = arith.constant 0 : index
      %c0_143 = arith.constant 0 : index
      %350 = vector.load %arg4[%c0_142, %c0_143] : memref<16x4096xf32, #tpu.memory_space<vmem>>, vector<16x4096xf32>
      %351 = arith.subf %349, %350 : vector<16x4096xf32>
      %352 = math.absf %351 : vector<16x4096xf32>
      %353 = vector.shape_cast %352 : vector<16x4096xf32> to vector<1x16x4096xf32>
      %cst_144 = arith.constant dense<0.000000e+00> : vector<1xf32>
      %354 = vector.multi_reduction <add>, %353, %cst_144 [1, 2] : vector<1x16x4096xf32> to vector<1xf32>
      %355 = vector.shape_cast %354 : vector<1xf32> to vector<1x1x1xf32>
      %356 = vector.extract %355[0, 0, 0] : f32 from vector<1x1x1xf32>
      %357 = vector.broadcast %356 : f32 to vector<1x1xf32>
      %cst_145 = arith.constant 1.52587891E-5 : f32
      %358 = vector.broadcast %cst_145 : f32 to vector<1x1xf32>
      %359 = arith.mulf %357, %358 : vector<1x1xf32>
      %c0_146 = arith.constant 0 : index
      %c0_147 = arith.constant 0 : index
      %360 = vector.load %arg20[%c0_146, %c0_147] : memref<64x64xf32, #tpu.memory_space<vmem>>, vector<64x64xf32>
      %cst_148 = arith.constant dense<0.000000e+00> : vector<32x64xf32>
      %361 = tpu.matmul %342, %360, %cst_148 {dimension_numbers = #tpu.dot_dimension_numbers<[1], [0], [0], [1], [0, 0, 1, 1], [], []>} : vector<32x64xf32>, vector<64x64xf32>, vector<32x64xf32> -> vector<32x64xf32>
      %c0_149 = arith.constant 0 : index
      %c0_150 = arith.constant 0 : index
      %362 = vector.load %arg21[%c0_149, %c0_150] : memref<1x64xf32, #tpu.memory_space<vmem>>, vector<1x64xf32>
      %363 = vector.broadcast %362 : vector<1x64xf32> to vector<32x64xf32>
      %364 = arith.mulf %342, %363 : vector<32x64xf32>
      %cst_151 = arith.constant dense<0.000000e+00> : vector<32xf32>
      %365 = vector.multi_reduction <add>, %364, %cst_151 [1] : vector<32x64xf32> to vector<32xf32>
      %366 = vector.shape_cast %365 : vector<32xf32> to vector<32x1xf32>
      %c0_152 = arith.constant 0 : index
      %c0_153 = arith.constant 0 : index
      %367 = vector.load %arg22[%c0_152, %c0_153] : memref<1x1xf32, #tpu.memory_space<vmem>>, vector<1x1xf32>
      %368 = vector.extract_strided_slice %366 {offsets = [0, 0], sizes = [8, 1], strides = [1, 1]} : vector<32x1xf32> to vector<8x1xf32>
      %369 = vector.shape_cast %368 : vector<8x1xf32> to vector<1x8x1xf32>
      %cst_154 = arith.constant dense<0.000000e+00> : vector<1xf32>
      %370 = vector.multi_reduction <add>, %369, %cst_154 [1, 2] : vector<1x8x1xf32> to vector<1xf32>
      %371 = vector.shape_cast %370 : vector<1xf32> to vector<1x1x1xf32>
      %372 = vector.extract %371[0, 0, 0] : f32 from vector<1x1x1xf32>
      %373 = vector.broadcast %372 : f32 to vector<1x1xf32>
      %374 = vector.extract_strided_slice %366 {offsets = [8, 0], sizes = [8, 1], strides = [1, 1]} : vector<32x1xf32> to vector<8x1xf32>
      %375 = vector.shape_cast %374 : vector<8x1xf32> to vector<1x8x1xf32>
      %cst_155 = arith.constant dense<0.000000e+00> : vector<1xf32>
      %376 = vector.multi_reduction <add>, %375, %cst_155 [1, 2] : vector<1x8x1xf32> to vector<1xf32>
      %377 = vector.shape_cast %376 : vector<1xf32> to vector<1x1x1xf32>
      %378 = vector.extract %377[0, 0, 0] : f32 from vector<1x1x1xf32>
      %379 = vector.broadcast %378 : f32 to vector<1x1xf32>
      %380 = vector.extract_strided_slice %366 {offsets = [16, 0], sizes = [8, 1], strides = [1, 1]} : vector<32x1xf32> to vector<8x1xf32>
      %381 = vector.shape_cast %380 : vector<8x1xf32> to vector<1x8x1xf32>
      %cst_156 = arith.constant dense<0.000000e+00> : vector<1xf32>
      %382 = vector.multi_reduction <add>, %381, %cst_156 [1, 2] : vector<1x8x1xf32> to vector<1xf32>
      %383 = vector.shape_cast %382 : vector<1xf32> to vector<1x1x1xf32>
      %384 = vector.extract %383[0, 0, 0] : f32 from vector<1x1x1xf32>
      %385 = vector.broadcast %384 : f32 to vector<1x1xf32>
      %386 = vector.extract_strided_slice %366 {offsets = [24, 0], sizes = [8, 1], strides = [1, 1]} : vector<32x1xf32> to vector<8x1xf32>
      %387 = vector.shape_cast %386 : vector<8x1xf32> to vector<1x8x1xf32>
      %cst_157 = arith.constant dense<0.000000e+00> : vector<1xf32>
      %388 = vector.multi_reduction <add>, %387, %cst_157 [1, 2] : vector<1x8x1xf32> to vector<1xf32>
      %389 = vector.shape_cast %388 : vector<1xf32> to vector<1x1x1xf32>
      %390 = vector.extract %389[0, 0, 0] : f32 from vector<1x1x1xf32>
      %391 = vector.broadcast %390 : f32 to vector<1x1xf32>
      %392 = vector.extract_strided_slice %361 {offsets = [0, 0], sizes = [8, 64], strides = [1, 1]} : vector<32x64xf32> to vector<8x64xf32>
      %393 = vector.extract_strided_slice %342 {offsets = [0, 0], sizes = [8, 64], strides = [1, 1]} : vector<32x64xf32> to vector<8x64xf32>
      %394 = arith.mulf %392, %393 : vector<8x64xf32>
      %395 = vector.shape_cast %394 : vector<8x64xf32> to vector<1x8x64xf32>
      %cst_158 = arith.constant dense<0.000000e+00> : vector<1xf32>
      %396 = vector.multi_reduction <add>, %395, %cst_158 [1, 2] : vector<1x8x64xf32> to vector<1xf32>
      %397 = vector.shape_cast %396 : vector<1xf32> to vector<1x1x1xf32>
      %398 = vector.extract %397[0, 0, 0] : f32 from vector<1x1x1xf32>
      %399 = vector.broadcast %398 : f32 to vector<1x1xf32>
      %400 = arith.addf %399, %373 : vector<1x1xf32>
      %401 = arith.addf %400, %373 : vector<1x1xf32>
      %cst_159 = arith.constant 8.000000e+00 : f32
      %402 = vector.broadcast %cst_159 : f32 to vector<1x1xf32>
      %403 = arith.mulf %402, %367 : vector<1x1xf32>
      %404 = arith.addf %401, %403 : vector<1x1xf32>
      %405 = vector.extract_strided_slice %361 {offsets = [0, 0], sizes = [8, 64], strides = [1, 1]} : vector<32x64xf32> to vector<8x64xf32>
      %406 = vector.extract_strided_slice %342 {offsets = [8, 0], sizes = [8, 64], strides = [1, 1]} : vector<32x64xf32> to vector<8x64xf32>
      %407 = arith.mulf %405, %406 : vector<8x64xf32>
      %408 = vector.shape_cast %407 : vector<8x64xf32> to vector<1x8x64xf32>
      %cst_160 = arith.constant dense<0.000000e+00> : vector<1xf32>
      %409 = vector.multi_reduction <add>, %408, %cst_160 [1, 2] : vector<1x8x64xf32> to vector<1xf32>
      %410 = vector.shape_cast %409 : vector<1xf32> to vector<1x1x1xf32>
      %411 = vector.extract %410[0, 0, 0] : f32 from vector<1x1x1xf32>
      %412 = vector.broadcast %411 : f32 to vector<1x1xf32>
      %413 = arith.addf %412, %373 : vector<1x1xf32>
      %414 = arith.addf %413, %379 : vector<1x1xf32>
      %cst_161 = arith.constant 8.000000e+00 : f32
      %415 = vector.broadcast %cst_161 : f32 to vector<1x1xf32>
      %416 = arith.mulf %415, %367 : vector<1x1xf32>
      %417 = arith.addf %414, %416 : vector<1x1xf32>
      %418 = vector.extract_strided_slice %361 {offsets = [0, 0], sizes = [8, 64], strides = [1, 1]} : vector<32x64xf32> to vector<8x64xf32>
      %419 = vector.extract_strided_slice %342 {offsets = [16, 0], sizes = [8, 64], strides = [1, 1]} : vector<32x64xf32> to vector<8x64xf32>
      %420 = arith.mulf %418, %419 : vector<8x64xf32>
      %421 = vector.shape_cast %420 : vector<8x64xf32> to vector<1x8x64xf32>
      %cst_162 = arith.constant dense<0.000000e+00> : vector<1xf32>
      %422 = vector.multi_reduction <add>, %421, %cst_162 [1, 2] : vector<1x8x64xf32> to vector<1xf32>
      %423 = vector.shape_cast %422 : vector<1xf32> to vector<1x1x1xf32>
      %424 = vector.extract %423[0, 0, 0] : f32 from vector<1x1x1xf32>
      %425 = vector.broadcast %424 : f32 to vector<1x1xf32>
      %426 = arith.addf %425, %373 : vector<1x1xf32>
      %427 = arith.addf %426, %385 : vector<1x1xf32>
      %cst_163 = arith.constant 8.000000e+00 : f32
      %428 = vector.broadcast %cst_163 : f32 to vector<1x1xf32>
      %429 = arith.mulf %428, %367 : vector<1x1xf32>
      %430 = arith.addf %427, %429 : vector<1x1xf32>
      %431 = vector.extract_strided_slice %361 {offsets = [0, 0], sizes = [8, 64], strides = [1, 1]} : vector<32x64xf32> to vector<8x64xf32>
      %432 = vector.extract_strided_slice %342 {offsets = [24, 0], sizes = [8, 64], strides = [1, 1]} : vector<32x64xf32> to vector<8x64xf32>
      %433 = arith.mulf %431, %432 : vector<8x64xf32>
      %434 = vector.shape_cast %433 : vector<8x64xf32> to vector<1x8x64xf32>
      %cst_164 = arith.constant dense<0.000000e+00> : vector<1xf32>
      %435 = vector.multi_reduction <add>, %434, %cst_164 [1, 2] : vector<1x8x64xf32> to vector<1xf32>
      %436 = vector.shape_cast %435 : vector<1xf32> to vector<1x1x1xf32>
      %437 = vector.extract %436[0, 0, 0] : f32 from vector<1x1x1xf32>
      %438 = vector.broadcast %437 : f32 to vector<1x1xf32>
      %439 = arith.addf %438, %373 : vector<1x1xf32>
      %440 = arith.addf %439, %391 : vector<1x1xf32>
      %cst_165 = arith.constant 8.000000e+00 : f32
      %441 = vector.broadcast %cst_165 : f32 to vector<1x1xf32>
      %442 = arith.mulf %441, %367 : vector<1x1xf32>
      %443 = arith.addf %440, %442 : vector<1x1xf32>
      %444 = vector.extract_strided_slice %361 {offsets = [8, 0], sizes = [8, 64], strides = [1, 1]} : vector<32x64xf32> to vector<8x64xf32>
      %445 = vector.extract_strided_slice %342 {offsets = [8, 0], sizes = [8, 64], strides = [1, 1]} : vector<32x64xf32> to vector<8x64xf32>
      %446 = arith.mulf %444, %445 : vector<8x64xf32>
      %447 = vector.shape_cast %446 : vector<8x64xf32> to vector<1x8x64xf32>
      %cst_166 = arith.constant dense<0.000000e+00> : vector<1xf32>
      %448 = vector.multi_reduction <add>, %447, %cst_166 [1, 2] : vector<1x8x64xf32> to vector<1xf32>
      %449 = vector.shape_cast %448 : vector<1xf32> to vector<1x1x1xf32>
      %450 = vector.extract %449[0, 0, 0] : f32 from vector<1x1x1xf32>
      %451 = vector.broadcast %450 : f32 to vector<1x1xf32>
      %452 = arith.addf %451, %379 : vector<1x1xf32>
      %453 = arith.addf %452, %379 : vector<1x1xf32>
      %cst_167 = arith.constant 8.000000e+00 : f32
      %454 = vector.broadcast %cst_167 : f32 to vector<1x1xf32>
      %455 = arith.mulf %454, %367 : vector<1x1xf32>
      %456 = arith.addf %453, %455 : vector<1x1xf32>
      %457 = vector.extract_strided_slice %361 {offsets = [8, 0], sizes = [8, 64], strides = [1, 1]} : vector<32x64xf32> to vector<8x64xf32>
      %458 = vector.extract_strided_slice %342 {offsets = [16, 0], sizes = [8, 64], strides = [1, 1]} : vector<32x64xf32> to vector<8x64xf32>
      %459 = arith.mulf %457, %458 : vector<8x64xf32>
      %460 = vector.shape_cast %459 : vector<8x64xf32> to vector<1x8x64xf32>
      %cst_168 = arith.constant dense<0.000000e+00> : vector<1xf32>
      %461 = vector.multi_reduction <add>, %460, %cst_168 [1, 2] : vector<1x8x64xf32> to vector<1xf32>
      %462 = vector.shape_cast %461 : vector<1xf32> to vector<1x1x1xf32>
      %463 = vector.extract %462[0, 0, 0] : f32 from vector<1x1x1xf32>
      %464 = vector.broadcast %463 : f32 to vector<1x1xf32>
      %465 = arith.addf %464, %379 : vector<1x1xf32>
      %466 = arith.addf %465, %385 : vector<1x1xf32>
      %cst_169 = arith.constant 8.000000e+00 : f32
      %467 = vector.broadcast %cst_169 : f32 to vector<1x1xf32>
      %468 = arith.mulf %467, %367 : vector<1x1xf32>
      %469 = arith.addf %466, %468 : vector<1x1xf32>
      %470 = vector.extract_strided_slice %361 {offsets = [8, 0], sizes = [8, 64], strides = [1, 1]} : vector<32x64xf32> to vector<8x64xf32>
      %471 = vector.extract_strided_slice %342 {offsets = [24, 0], sizes = [8, 64], strides = [1, 1]} : vector<32x64xf32> to vector<8x64xf32>
      %472 = arith.mulf %470, %471 : vector<8x64xf32>
      %473 = vector.shape_cast %472 : vector<8x64xf32> to vector<1x8x64xf32>
      %cst_170 = arith.constant dense<0.000000e+00> : vector<1xf32>
      %474 = vector.multi_reduction <add>, %473, %cst_170 [1, 2] : vector<1x8x64xf32> to vector<1xf32>
      %475 = vector.shape_cast %474 : vector<1xf32> to vector<1x1x1xf32>
      %476 = vector.extract %475[0, 0, 0] : f32 from vector<1x1x1xf32>
      %477 = vector.broadcast %476 : f32 to vector<1x1xf32>
      %478 = arith.addf %477, %379 : vector<1x1xf32>
      %479 = arith.addf %478, %391 : vector<1x1xf32>
      %cst_171 = arith.constant 8.000000e+00 : f32
      %480 = vector.broadcast %cst_171 : f32 to vector<1x1xf32>
      %481 = arith.mulf %480, %367 : vector<1x1xf32>
      %482 = arith.addf %479, %481 : vector<1x1xf32>
      %483 = vector.extract_strided_slice %361 {offsets = [16, 0], sizes = [8, 64], strides = [1, 1]} : vector<32x64xf32> to vector<8x64xf32>
      %484 = vector.extract_strided_slice %342 {offsets = [16, 0], sizes = [8, 64], strides = [1, 1]} : vector<32x64xf32> to vector<8x64xf32>
      %485 = arith.mulf %483, %484 : vector<8x64xf32>
      %486 = vector.shape_cast %485 : vector<8x64xf32> to vector<1x8x64xf32>
      %cst_172 = arith.constant dense<0.000000e+00> : vector<1xf32>
      %487 = vector.multi_reduction <add>, %486, %cst_172 [1, 2] : vector<1x8x64xf32> to vector<1xf32>
      %488 = vector.shape_cast %487 : vector<1xf32> to vector<1x1x1xf32>
      %489 = vector.extract %488[0, 0, 0] : f32 from vector<1x1x1xf32>
      %490 = vector.broadcast %489 : f32 to vector<1x1xf32>
      %491 = arith.addf %490, %385 : vector<1x1xf32>
      %492 = arith.addf %491, %385 : vector<1x1xf32>
      %cst_173 = arith.constant 8.000000e+00 : f32
      %493 = vector.broadcast %cst_173 : f32 to vector<1x1xf32>
      %494 = arith.mulf %493, %367 : vector<1x1xf32>
      %495 = arith.addf %492, %494 : vector<1x1xf32>
      %496 = vector.extract_strided_slice %361 {offsets = [16, 0], sizes = [8, 64], strides = [1, 1]} : vector<32x64xf32> to vector<8x64xf32>
      %497 = vector.extract_strided_slice %342 {offsets = [24, 0], sizes = [8, 64], strides = [1, 1]} : vector<32x64xf32> to vector<8x64xf32>
      %498 = arith.mulf %496, %497 : vector<8x64xf32>
      %499 = vector.shape_cast %498 : vector<8x64xf32> to vector<1x8x64xf32>
      %cst_174 = arith.constant dense<0.000000e+00> : vector<1xf32>
      %500 = vector.multi_reduction <add>, %499, %cst_174 [1, 2] : vector<1x8x64xf32> to vector<1xf32>
      %501 = vector.shape_cast %500 : vector<1xf32> to vector<1x1x1xf32>
      %502 = vector.extract %501[0, 0, 0] : f32 from vector<1x1x1xf32>
      %503 = vector.broadcast %502 : f32 to vector<1x1xf32>
      %504 = arith.addf %503, %385 : vector<1x1xf32>
      %505 = arith.addf %504, %391 : vector<1x1xf32>
      %cst_175 = arith.constant 8.000000e+00 : f32
      %506 = vector.broadcast %cst_175 : f32 to vector<1x1xf32>
      %507 = arith.mulf %506, %367 : vector<1x1xf32>
      %508 = arith.addf %505, %507 : vector<1x1xf32>
      %509 = vector.extract_strided_slice %361 {offsets = [24, 0], sizes = [8, 64], strides = [1, 1]} : vector<32x64xf32> to vector<8x64xf32>
      %510 = vector.extract_strided_slice %342 {offsets = [24, 0], sizes = [8, 64], strides = [1, 1]} : vector<32x64xf32> to vector<8x64xf32>
      %511 = arith.mulf %509, %510 : vector<8x64xf32>
      %512 = vector.shape_cast %511 : vector<8x64xf32> to vector<1x8x64xf32>
      %cst_176 = arith.constant dense<0.000000e+00> : vector<1xf32>
      %513 = vector.multi_reduction <add>, %512, %cst_176 [1, 2] : vector<1x8x64xf32> to vector<1xf32>
      %514 = vector.shape_cast %513 : vector<1xf32> to vector<1x1x1xf32>
      %515 = vector.extract %514[0, 0, 0] : f32 from vector<1x1x1xf32>
      %516 = vector.broadcast %515 : f32 to vector<1x1xf32>
      %517 = arith.addf %516, %391 : vector<1x1xf32>
      %518 = arith.addf %517, %391 : vector<1x1xf32>
      %cst_177 = arith.constant 8.000000e+00 : f32
      %519 = vector.broadcast %cst_177 : f32 to vector<1x1xf32>
      %520 = arith.mulf %519, %367 : vector<1x1xf32>
      %521 = arith.addf %518, %520 : vector<1x1xf32>
      %522 = math.sqrt %404 : vector<1x1xf32>
      %cst_178 = arith.constant 9.99999996E-13 : f32
      %523 = vector.broadcast %cst_178 : f32 to vector<1x1xf32>
      %524 = arith.maximumf %522, %523 : vector<1x1xf32>
      %cst_179 = arith.constant 1.000000e+00 : f32
      %525 = vector.broadcast %cst_179 : f32 to vector<1x1xf32>
      %526 = arith.divf %525, %524 : vector<1x1xf32>
      %527 = math.sqrt %456 : vector<1x1xf32>
      %cst_180 = arith.constant 9.99999996E-13 : f32
      %528 = vector.broadcast %cst_180 : f32 to vector<1x1xf32>
      %529 = arith.maximumf %527, %528 : vector<1x1xf32>
      %cst_181 = arith.constant 1.000000e+00 : f32
      %530 = vector.broadcast %cst_181 : f32 to vector<1x1xf32>
      %531 = arith.divf %530, %529 : vector<1x1xf32>
      %532 = math.sqrt %495 : vector<1x1xf32>
      %cst_182 = arith.constant 9.99999996E-13 : f32
      %533 = vector.broadcast %cst_182 : f32 to vector<1x1xf32>
      %534 = arith.maximumf %532, %533 : vector<1x1xf32>
      %cst_183 = arith.constant 1.000000e+00 : f32
      %535 = vector.broadcast %cst_183 : f32 to vector<1x1xf32>
      %536 = arith.divf %535, %534 : vector<1x1xf32>
      %537 = math.sqrt %521 : vector<1x1xf32>
      %cst_184 = arith.constant 9.99999996E-13 : f32
      %538 = vector.broadcast %cst_184 : f32 to vector<1x1xf32>
      %539 = arith.maximumf %537, %538 : vector<1x1xf32>
      %cst_185 = arith.constant 1.000000e+00 : f32
      %540 = vector.broadcast %cst_185 : f32 to vector<1x1xf32>
      %541 = arith.divf %540, %539 : vector<1x1xf32>
      %542 = arith.mulf %417, %526 : vector<1x1xf32>
      %543 = arith.mulf %542, %531 : vector<1x1xf32>
      %cst_186 = arith.constant 2.000000e+01 : f32
      %544 = vector.broadcast %cst_186 : f32 to vector<1x1xf32>
      %545 = arith.mulf %543, %544 : vector<1x1xf32>
      %546 = arith.mulf %430, %526 : vector<1x1xf32>
      %547 = arith.mulf %546, %536 : vector<1x1xf32>
      %cst_187 = arith.constant 2.000000e+01 : f32
      %548 = vector.broadcast %cst_187 : f32 to vector<1x1xf32>
      %549 = arith.mulf %547, %548 : vector<1x1xf32>
      %550 = arith.mulf %443, %526 : vector<1x1xf32>
      %551 = arith.mulf %550, %541 : vector<1x1xf32>
      %cst_188 = arith.constant 2.000000e+01 : f32
      %552 = vector.broadcast %cst_188 : f32 to vector<1x1xf32>
      %553 = arith.mulf %551, %552 : vector<1x1xf32>
      %554 = arith.mulf %417, %531 : vector<1x1xf32>
      %555 = arith.mulf %554, %526 : vector<1x1xf32>
      %cst_189 = arith.constant 2.000000e+01 : f32
      %556 = vector.broadcast %cst_189 : f32 to vector<1x1xf32>
      %557 = arith.mulf %555, %556 : vector<1x1xf32>
      %558 = arith.mulf %469, %531 : vector<1x1xf32>
      %559 = arith.mulf %558, %536 : vector<1x1xf32>
      %cst_190 = arith.constant 2.000000e+01 : f32
      %560 = vector.broadcast %cst_190 : f32 to vector<1x1xf32>
      %561 = arith.mulf %559, %560 : vector<1x1xf32>
      %562 = arith.mulf %482, %531 : vector<1x1xf32>
      %563 = arith.mulf %562, %541 : vector<1x1xf32>
      %cst_191 = arith.constant 2.000000e+01 : f32
      %564 = vector.broadcast %cst_191 : f32 to vector<1x1xf32>
      %565 = arith.mulf %563, %564 : vector<1x1xf32>
      %566 = arith.mulf %430, %536 : vector<1x1xf32>
      %567 = arith.mulf %566, %526 : vector<1x1xf32>
      %cst_192 = arith.constant 2.000000e+01 : f32
      %568 = vector.broadcast %cst_192 : f32 to vector<1x1xf32>
      %569 = arith.mulf %567, %568 : vector<1x1xf32>
      %570 = arith.mulf %469, %536 : vector<1x1xf32>
      %571 = arith.mulf %570, %531 : vector<1x1xf32>
      %cst_193 = arith.constant 2.000000e+01 : f32
      %572 = vector.broadcast %cst_193 : f32 to vector<1x1xf32>
      %573 = arith.mulf %571, %572 : vector<1x1xf32>
      %574 = arith.mulf %508, %536 : vector<1x1xf32>
      %575 = arith.mulf %574, %541 : vector<1x1xf32>
      %cst_194 = arith.constant 2.000000e+01 : f32
      %576 = vector.broadcast %cst_194 : f32 to vector<1x1xf32>
      %577 = arith.mulf %575, %576 : vector<1x1xf32>
      %578 = arith.mulf %443, %541 : vector<1x1xf32>
      %579 = arith.mulf %578, %526 : vector<1x1xf32>
      %cst_195 = arith.constant 2.000000e+01 : f32
      %580 = vector.broadcast %cst_195 : f32 to vector<1x1xf32>
      %581 = arith.mulf %579, %580 : vector<1x1xf32>
      %582 = arith.mulf %482, %541 : vector<1x1xf32>
      %583 = arith.mulf %582, %531 : vector<1x1xf32>
      %cst_196 = arith.constant 2.000000e+01 : f32
      %584 = vector.broadcast %cst_196 : f32 to vector<1x1xf32>
      %585 = arith.mulf %583, %584 : vector<1x1xf32>
      %586 = arith.mulf %508, %541 : vector<1x1xf32>
      %587 = arith.mulf %586, %536 : vector<1x1xf32>
      %cst_197 = arith.constant 2.000000e+01 : f32
      %588 = vector.broadcast %cst_197 : f32 to vector<1x1xf32>
      %589 = arith.mulf %587, %588 : vector<1x1xf32>
      %590 = arith.maximumf %545, %549 : vector<1x1xf32>
      %591 = arith.maximumf %590, %553 : vector<1x1xf32>
      %592 = arith.subf %545, %591 : vector<1x1xf32>
      %593 = math.exp %592 : vector<1x1xf32>
      %594 = arith.subf %549, %591 : vector<1x1xf32>
      %595 = math.exp %594 : vector<1x1xf32>
      %596 = arith.addf %593, %595 : vector<1x1xf32>
      %597 = arith.subf %553, %591 : vector<1x1xf32>
      %598 = math.exp %597 : vector<1x1xf32>
      %599 = arith.addf %596, %598 : vector<1x1xf32>
      %600 = math.log %599 : vector<1x1xf32>
      %601 = arith.addf %591, %600 : vector<1x1xf32>
      %602 = arith.subf %601, %549 : vector<1x1xf32>
      %603 = arith.maximumf %557, %561 : vector<1x1xf32>
      %604 = arith.maximumf %603, %565 : vector<1x1xf32>
      %605 = arith.subf %557, %604 : vector<1x1xf32>
      %606 = math.exp %605 : vector<1x1xf32>
      %607 = arith.subf %561, %604 : vector<1x1xf32>
      %608 = math.exp %607 : vector<1x1xf32>
      %609 = arith.addf %606, %608 : vector<1x1xf32>
      %610 = arith.subf %565, %604 : vector<1x1xf32>
      %611 = math.exp %610 : vector<1x1xf32>
      %612 = arith.addf %609, %611 : vector<1x1xf32>
      %613 = math.log %612 : vector<1x1xf32>
      %614 = arith.addf %604, %613 : vector<1x1xf32>
      %615 = arith.subf %614, %565 : vector<1x1xf32>
      %616 = arith.addf %602, %615 : vector<1x1xf32>
      %617 = arith.maximumf %569, %573 : vector<1x1xf32>
      %618 = arith.maximumf %617, %577 : vector<1x1xf32>
      %619 = arith.subf %569, %618 : vector<1x1xf32>
      %620 = math.exp %619 : vector<1x1xf32>
      %621 = arith.subf %573, %618 : vector<1x1xf32>
      %622 = math.exp %621 : vector<1x1xf32>
      %623 = arith.addf %620, %622 : vector<1x1xf32>
      %624 = arith.subf %577, %618 : vector<1x1xf32>
      %625 = math.exp %624 : vector<1x1xf32>
      %626 = arith.addf %623, %625 : vector<1x1xf32>
      %627 = math.log %626 : vector<1x1xf32>
      %628 = arith.addf %618, %627 : vector<1x1xf32>
      %629 = arith.subf %628, %569 : vector<1x1xf32>
      %630 = arith.addf %616, %629 : vector<1x1xf32>
      %631 = arith.maximumf %581, %585 : vector<1x1xf32>
      %632 = arith.maximumf %631, %589 : vector<1x1xf32>
      %633 = arith.subf %581, %632 : vector<1x1xf32>
      %634 = math.exp %633 : vector<1x1xf32>
      %635 = arith.subf %585, %632 : vector<1x1xf32>
      %636 = math.exp %635 : vector<1x1xf32>
      %637 = arith.addf %634, %636 : vector<1x1xf32>
      %638 = arith.subf %589, %632 : vector<1x1xf32>
      %639 = math.exp %638 : vector<1x1xf32>
      %640 = arith.addf %637, %639 : vector<1x1xf32>
      %641 = math.log %640 : vector<1x1xf32>
      %642 = arith.addf %632, %641 : vector<1x1xf32>
      %643 = arith.subf %642, %585 : vector<1x1xf32>
      %644 = arith.addf %630, %643 : vector<1x1xf32>
      %cst_198 = arith.constant 2.500000e-01 : f32
      %645 = vector.broadcast %cst_198 : f32 to vector<1x1xf32>
      %646 = arith.mulf %644, %645 : vector<1x1xf32>
      %647 = tpu.concatenate %359, %646 in 1 : vector<1x1xf32>, vector<1x1xf32> -> vector<1x2xf32>
      %c0_199 = arith.constant 0 : index
      %c0_200 = arith.constant 0 : index
      %648 = vector.load %arg23[%c0_199, %c0_200] : memref<1x2xf32, #tpu.memory_space<vmem>>, vector<1x2xf32>
      tpu.vector_store %arg23[%c0_199, %c0_200], %647 {strides = array<i32>} : memref<1x2xf32, #tpu.memory_space<vmem>>, vector<1x2xf32>,
    } else {
    }
    return
  }
  func.func @transform_0(%arg0: i32) -> (i32, i32) {
    %c0_i32 = arith.constant 0 : i32
    %c0_i32_0 = arith.constant 0 : i32
    return %c0_i32, %arg0 : i32, i32
  }
  func.func @transform_1(%arg0: i32) -> (i32, i32) {
    %c0_i32 = arith.constant 0 : i32
    %c0_i32_0 = arith.constant 0 : i32
    return %arg0, %c0_i32 : i32, i32
  }
  func.func @transform_2(%arg0: i32) -> (i32, i32) {
    %c0_i32 = arith.constant 0 : i32
    %c0_i32_0 = arith.constant 0 : i32
    %c0_i32_1 = arith.constant 0 : i32
    return %c0_i32, %c0_i32_0 : i32, i32
  }
  func.func @transform_3(%arg0: i32) -> (i32, i32) {
    %c0_i32 = arith.constant 0 : i32
    %c0_i32_0 = arith.constant 0 : i32
    %c0_i32_1 = arith.constant 0 : i32
    return %c0_i32, %c0_i32_0 : i32, i32
  }
  func.func @transform_4(%arg0: i32) -> (i32, i32, i32) {
    %c0_i32 = arith.constant 0 : i32
    %c0_i32_0 = arith.constant 0 : i32
    %c0_i32_1 = arith.constant 0 : i32
    %c0_i32_2 = arith.constant 0 : i32
    return %c0_i32, %c0_i32_0, %c0_i32_1 : i32, i32, i32
  }
  func.func @transform_5(%arg0: i32) -> (i32, i32, i32) {
    %c0_i32 = arith.constant 0 : i32
    %c0_i32_0 = arith.constant 0 : i32
    %c0_i32_1 = arith.constant 0 : i32
    %c0_i32_2 = arith.constant 0 : i32
    return %c0_i32, %c0_i32_0, %c0_i32_1 : i32, i32, i32
  }
  func.func @transform_6(%arg0: i32) -> (i32, i32, i32) {
    %c0_i32 = arith.constant 0 : i32
    %c0_i32_0 = arith.constant 0 : i32
    %c0_i32_1 = arith.constant 0 : i32
    %c0_i32_2 = arith.constant 0 : i32
    return %c0_i32, %c0_i32_0, %c0_i32_1 : i32, i32, i32
  }
  func.func @transform_7(%arg0: i32) -> (i32, i32, i32) {
    %c0_i32 = arith.constant 0 : i32
    %c0_i32_0 = arith.constant 0 : i32
    %c0_i32_1 = arith.constant 0 : i32
    %c0_i32_2 = arith.constant 0 : i32
    return %c0_i32, %c0_i32_0, %c0_i32_1 : i32, i32, i32
  }
  func.func @transform_8(%arg0: i32) -> (i32, i32, i32) {
    %c0_i32 = arith.constant 0 : i32
    %c0_i32_0 = arith.constant 0 : i32
    %c0_i32_1 = arith.constant 0 : i32
    %c0_i32_2 = arith.constant 0 : i32
    return %c0_i32, %c0_i32_0, %c0_i32_1 : i32, i32, i32
  }
  func.func @transform_9(%arg0: i32) -> (i32, i32, i32) {
    %c0_i32 = arith.constant 0 : i32
    %c0_i32_0 = arith.constant 0 : i32
    %c0_i32_1 = arith.constant 0 : i32
    %c0_i32_2 = arith.constant 0 : i32
    return %c0_i32, %c0_i32_0, %c0_i32_1 : i32, i32, i32
  }
  func.func @transform_10(%arg0: i32) -> (i32, i32, i32) {
    %c0_i32 = arith.constant 0 : i32
    %c0_i32_0 = arith.constant 0 : i32
    %c0_i32_1 = arith.constant 0 : i32
    %c0_i32_2 = arith.constant 0 : i32
    return %c0_i32, %c0_i32_0, %c0_i32_1 : i32, i32, i32
  }
  func.func @transform_11(%arg0: i32) -> (i32, i32, i32) {
    %c0_i32 = arith.constant 0 : i32
    %c0_i32_0 = arith.constant 0 : i32
    %c0_i32_1 = arith.constant 0 : i32
    %c0_i32_2 = arith.constant 0 : i32
    return %c0_i32, %c0_i32_0, %c0_i32_1 : i32, i32, i32
  }
  func.func @transform_12(%arg0: i32) -> (i32, i32, i32) {
    %c0_i32 = arith.constant 0 : i32
    %c0_i32_0 = arith.constant 0 : i32
    %c0_i32_1 = arith.constant 0 : i32
    %c0_i32_2 = arith.constant 0 : i32
    return %c0_i32, %c0_i32_0, %c0_i32_1 : i32, i32, i32
  }
  func.func @transform_13(%arg0: i32) -> (i32, i32, i32) {
    %c0_i32 = arith.constant 0 : i32
    %c0_i32_0 = arith.constant 0 : i32
    %c0_i32_1 = arith.constant 0 : i32
    %c0_i32_2 = arith.constant 0 : i32
    return %c0_i32, %c0_i32_0, %c0_i32_1 : i32, i32, i32
  }
  func.func @transform_14(%arg0: i32) -> (i32, i32, i32) {
    %c0_i32 = arith.constant 0 : i32
    %c0_i32_0 = arith.constant 0 : i32
    %c0_i32_1 = arith.constant 0 : i32
    %c0_i32_2 = arith.constant 0 : i32
    return %c0_i32, %c0_i32_0, %c0_i32_1 : i32, i32, i32
  }
  func.func @transform_15(%arg0: i32) -> (i32, i32) {
    %c0_i32 = arith.constant 0 : i32
    %c0_i32_0 = arith.constant 0 : i32
    %c0_i32_1 = arith.constant 0 : i32
    return %c0_i32, %c0_i32_0 : i32, i32
  }
  func.func @transform_16(%arg0: i32) -> (i32, i32) {
    %c0_i32 = arith.constant 0 : i32
    %c0_i32_0 = arith.constant 0 : i32
    %c0_i32_1 = arith.constant 0 : i32
    return %c0_i32, %c0_i32_0 : i32, i32
  }
  func.func @transform_17(%arg0: i32) -> (i32, i32) {
    %c0_i32 = arith.constant 0 : i32
    %c0_i32_0 = arith.constant 0 : i32
    %c0_i32_1 = arith.constant 0 : i32
    return %c0_i32, %c0_i32_0 : i32, i32
  }
  func.func @transform_18(%arg0: i32) -> (i32, i32) {
    %c0_i32 = arith.constant 0 : i32
    %c0_i32_0 = arith.constant 0 : i32
    %c0_i32_1 = arith.constant 0 : i32
    return %c0_i32, %c0_i32_0 : i32, i32
  }
  func.func @transform_19(%arg0: i32) -> (i32, i32) {
    %c0_i32 = arith.constant 0 : i32
    %c0_i32_0 = arith.constant 0 : i32
    %c0_i32_1 = arith.constant 0 : i32
    return %c0_i32, %c0_i32_0 : i32, i32
  }
  func.func @transform_20(%arg0: i32) -> (i32, i32) {
    %c0_i32 = arith.constant 0 : i32
    %c0_i32_0 = arith.constant 0 : i32
    %c0_i32_1 = arith.constant 0 : i32
    return %c0_i32, %c0_i32_0 : i32, i32
  }
  func.func @transform_21(%arg0: i32) -> (i32, i32) {
    %c0_i32 = arith.constant 0 : i32
    %c0_i32_0 = arith.constant 0 : i32
    %c0_i32_1 = arith.constant 0 : i32
    return %c0_i32, %c0_i32_0 : i32, i32
  }
  func.func @transform_22(%arg0: i32) -> (i32, i32) {
    %c0_i32 = arith.constant 0 : i32
    %c0_i32_0 = arith.constant 0 : i32
    %c0_i32_1 = arith.constant 0 : i32
    return %c0_i32, %c0_i32_0 : i32, i32
  }
}

</mosaic_0001>

<bundles_post_ra>
// kernel: vit_autoenc_ssl_forward.1
= control target key start
LH: loop header
LB: loop body
LE: loop exit
PB: predicated region body
PF: predicated region fallthrough
CT: control target
= control target key end

     0   :  { %s10564_s0 = inlined_call_operand.vmem [shape: bf16[32,4096], index: 0, kind: input, shape index: {}]   ;;  %s10565_s1 = inlined_call_operand.vmem [shape: bf16[4096,64], index: 1, kind: input, shape index: {}]   ;;  %s10566_s2 = inlined_call_operand.vmem [shape: f32[32,64], index: 2, kind: input, shape index: {}]   ;;  %s10567_s3 = inlined_call_operand.vmem [shape: f32[16,4096], index: 3, kind: input, shape index: {}]   ;;  %s10568_s4 = inlined_call_operand.vmem [shape: f32[2,1,64], index: 4, kind: input, shape index: {}]   ;;  %s10569_s5 = inlined_call_operand.vmem [shape: f32[2,1,64], index: 5, kind: input, shape index: {}]   ;;  %s10570_s6 = inlined_call_operand.vmem [shape: bf16[2,64,192], index: 6, kind: input, shape index: {}]   ;;  %s10571_s7 = inlined_call_operand.vmem [shape: bf16[2,64,64], index: 7, kind: input, shape index: {}]   ;;  %s10572_s8 = inlined_call_operand.vmem [shape: f32[2,1,64], index: 8, kind: input, shape index: {}]   ;;  %s10573_s9 = inlined_call_operand.vmem [shape: f32[2,1,64], index: 9, kind: input, shape index: {}]   ;;  %s10574_s10 = inlined_call_operand.vmem [shape: f32[2,1,64], index: 10, kind: input, shape index: {}]   ;;  %s10575_s11 = inlined_call_operand.vmem [shape: bf16[2,64,128], index: 11, kind: input, shape index: {}]   ;;  %s10576_s12 = inlined_call_operand.vmem [shape: f32[2,1,128], index: 12, kind: input, shape index: {}]   ;;  %s10577_s13 = inlined_call_operand.vmem [shape: bf16[2,128,64], index: 13, kind: input, shape index: {}]   ;;  %s10578_s14 = inlined_call_operand.vmem [shape: f32[2,1,64], index: 14, kind: input, shape index: {}]   ;;  %s10579_s15 = inlined_call_operand.vmem [shape: f32[1,64], index: 15, kind: input, shape index: {}]   ;;  %s10580_s16 = inlined_call_operand.vmem [shape: f32[1,64], index: 16, kind: input, shape index: {}]   ;;  %s10581_s17 = inlined_call_operand.vmem [shape: bf16[64,4096], index: 17, kind: input, shape index: {}]   ;;  %s10582_s18 = inlined_call_operand.vmem [shape: f32[1,4096], index: 18, kind: input, shape index: {}]   ;;  %s10583_s19 = inlined_call_operand.vmem [shape: f32[64,64], index: 19, kind: input, shape index: {}]   ;;  %s10584_s20 = inlined_call_operand.vmem [shape: f32[1,64], index: 20, kind: input, shape index: {}]   ;;  %s10585_s21 = inlined_call_operand.<no memory space> [shape: f32[1,1], index: 21, kind: input, shape index: {}]   ;;  %s10586_s22 = inlined_call_operand.vmem [shape: f32[1,2], index: 22, kind: output, shape index: {}]  }
   0x1   :  { %10608 = sst [smem:[#allocation7_spill]] %s10564_s0  ;;  %v27_v0 = vstv %s10585_s21 }
   0x2   :  { %10609 = sst [smem:[#allocation8_spill]] %s10565_s1  ;;  %28 = vst [vmem:[#allocation3] sm:$0x1] %v27_v0 }
   0x3   :  { %10610 = sst [smem:[#allocation9_spill]] %s10566_s2 }
   0x4   :  { %10611 = sst [smem:[#allocation10_spill]] %s10567_s3 }
   0x5   :  { %10612 = sst [smem:[#allocation11_spill]] %s10568_s4 }
   0x6   :  { %10613 = sst [smem:[#allocation12_spill]] %s10569_s5 }
   0x7   :  { %10614 = sst [smem:[#allocation13_spill]] %s10570_s6 }
   0x8   :  { %10615 = sst [smem:[#allocation14_spill]] %s10571_s7 }
   0x9   :  { %10616 = sst [smem:[#allocation15_spill]] %s10572_s8 }
   0xa   :  { %10617 = sst [smem:[#allocation16_spill]] %s10573_s9 }
   0xb   :  { %s8436_s29 = smov 0   ;;  %s8438_s30 = smov 0  }
   0xc   :  { %s8440_s4 = smov 0  }
   0xd LB: > { %s8452_s21 = sadd.s32 4294967295, %s8305_s4   ;;  %s8455_s0 = sadd.s32 1, %s8305_s4   ;;  %s8305_s4 = sphi %s8440_s4, %s10641_s4   ;;  %s8301_s30 = sphi %s8438_s30, %s10640_s30   ;;  %s8297_s29 = sphi %s8436_s29, %s10639_s29  }
   0xe   : > { %s38_s23 = ssub.s32 %s8305_s4, %s8455_s0  ;;  %s41_s1 = sadd.s32 1, %s8301_s30 }
   0xf   : > { %p39_p0 = scmp.eq.s32.totalorder %s38_s23, 0  ;;  %p48_p1 = scmp.ne.s32.totalorder %s8301_s30, %s8297_s29 }
  0x10   : > { %p49_p2 = scmp.eq.s32.totalorder %s8305_s4, 0  ;;  %p6907_p4 = scmp.ge.s32.totalorder %s8305_s4, 4 }
  0x11   : > { %s8464_s5 = scalar_select %p39_p0, %s8301_s30, %s41_s1  }
  0x12   : > { %p50_p3 = por %p49_p2, %p48_p1  ;;  %601 = sbr.rel (%p6907_p4) target bundleno = 43 (0x2b), region = 96 }
  0x19   : > { %604 = sbr.rel (!%p50_p3) target bundleno = 43 (0x2b), region = 100  ;;  %s606_s24 = sand.u32 (%p50_p3), 1, %s8301_s30  }
  0x1a   : > { %s7303_s6 = sshll.u32 (%p50_p3), %s8305_s4, 5  ;;  %s6908_s25 = sshll.u32 (%p50_p3), %s606_s24, 7 }
  0x1b   : > { %s10618_s27 = sld [smem:[#allocation7_spill]] (%p50_p3)  ;;  %s608_s28 = scalar_lea.vmem (%p50_p3), [#allocation4], %s6908_s25 }
  0x21   : > { %s8472_s3 = scalar_lea.vmem %s10618_s27, %s7303_s6 }
  0x22   : > { %v624_v1 = vld [vmem:[%s8472_s3] sm:$0xff]  ;;  %v626_v2 = vld [vmem:[%s8472_s3 + $0x8] sm:$0xff]  ;;  %v628_v3 = vld [vmem:[%s8472_s3 + $0x10] sm:$0xff] }
  0x23   : > { %625 = vst [vmem:[%s608_s28] sm:$0xff] %v624_v1  ;;  %627 = vst [vmem:[%s608_s28 + $0x8] sm:$0xff] %v626_v2  ;;  %v630_v4 = vld [vmem:[%s8472_s3 + $0x18] sm:$0xff]  ;;  %v632_v5 = vld [vmem:[%s8472_s3 + $0x80] sm:$0xff] }
  0x24   : > { %629 = vst [vmem:[%s608_s28 + $0x10] sm:$0xff] %v628_v3  ;;  %v634_v6 = vld [vmem:[%s8472_s3 + $0x88] sm:$0xff]  ;;  %631 = vst [vmem:[%s608_s28 + $0x18] sm:$0xff] %v630_v4  ;;  %v636_v7 = vld [vmem:[%s8472_s3 + $0x90] sm:$0xff] }
  0x25   : > { %633 = vst [vmem:[%s608_s28 + $0x20] sm:$0xff] %v632_v5  ;;  %635 = vst [vmem:[%s608_s28 + $0x28] sm:$0xff] %v634_v6  ;;  %v638_v8 = vld [vmem:[%s8472_s3 + $0x98] sm:$0xff]  ;;  %v640_v9 = vld [vmem:[%s8472_s3 + $0x100] sm:$0xff] }
  0x26   : > { %637 = vst [vmem:[%s608_s28 + $0x30] sm:$0xff] %v636_v7  ;;  %639 = vst [vmem:[%s608_s28 + $0x38] sm:$0xff] %v638_v8  ;;  %v642_v10 = vld [vmem:[%s8472_s3 + $0x108] sm:$0xff]  ;;  %v644_v11 = vld [vmem:[%s8472_s3 + $0x110] sm:$0xff] }
  0x27   : > { %641 = vst [vmem:[%s608_s28 + $0x40] sm:$0xff] %v640_v9  ;;  %v646_v12 = vld [vmem:[%s8472_s3 + $0x118] sm:$0xff]  ;;  %643 = vst [vmem:[%s608_s28 + $0x48] sm:$0xff] %v642_v10  ;;  %v648_v13 = vld [vmem:[%s8472_s3 + $0x180] sm:$0xff] }
  0x28   : > { %645 = vst [vmem:[%s608_s28 + $0x50] sm:$0xff] %v644_v11  ;;  %647 = vst [vmem:[%s608_s28 + $0x58] sm:$0xff] %v646_v12  ;;  %v650_v14 = vld [vmem:[%s8472_s3 + $0x188] sm:$0xff]  ;;  %v652_v15 = vld [vmem:[%s8472_s3 + $0x190] sm:$0xff] }
  0x29   : > { %649 = vst [vmem:[%s608_s28 + $0x60] sm:$0xff] %v648_v13  ;;  %651 = vst [vmem:[%s608_s28 + $0x68] sm:$0xff] %v650_v14  ;;  %v654_v16 = vld [vmem:[%s8472_s3 + $0x198] sm:$0xff] }
  0x2a   : > { %653 = vst [vmem:[%s608_s28 + $0x70] sm:$0xff] %v652_v15  ;;  %655 = vst [vmem:[%s608_s28 + $0x78] sm:$0xff] %v654_v16 }
  0x2b PF: > { %p6911_p5 = scmp.ge.s32.totalorder %s8305_s4, 1  ;;  %p669_p6 = scmp.lt.s32.totalorder %s8305_s4, 5 }
  0x2d   : > { %p670_p7 = pnand %p6911_p5, %p669_p6 }
  0x2e   : > { %s676_s23 = sand.u32 (!%p670_p7), 1, %s8297_s29   ;;  %s6913_s1 = sshll.u32 (!%p670_p7), %s8452_s21, 7 }
  0x2f   : > { %673 = sbr.rel (%p670_p7) target bundleno = 6996 (0x1b54), region = 127  ;;  %s6912_s24 = sshll.u32 (!%p670_p7), %s676_s23, 7 }
  0x30   : > { %p739_p8 = scmp.lt.s32.totalorder (!%p670_p7), %s6913_s1, 511  ;;  %s10619_s2 = sld [smem:[#allocation8_spill]] (!%p670_p7) }
  0x31   : > { %s8499_s3 = scalar_lea.vmem (!%p670_p7), [#allocation4], %s6912_s24  ;;  %p6915_p9 = scmp.ne.s32.totalorder (!%p670_p7), %s8452_s21, 0 }
  0x36   : > { %s10643_s1 = smov (!%p739_p8, %s6913_s1), 511  ;;  %748 = sbr.rel (%p6915_p9) target bundleno = 61 (0x3d), region = 135 }
  0x37   : > { %s6914_s6 = sshll.u32 %s10643_s1, 2  ;;  %vm749_vm0 = vcmask (!%p6915_p9), 523264   ;;  %v8307_v17 = vmov (!%p6915_p9), 0.0  }
  0x38   : > { %s8497_s27 = scalar_lea.vmem %s10619_s2, %s6914_s6  ;;  %750 = vst.msk [vmem:[#allocation2] sm:$0xff] (!%p6915_p9), %vm749_vm0, %v8307_v17  ;;  %751 = vst.msk [vmem:[#allocation2 + $0x8] sm:$0xff] (!%p6915_p9), %vm749_vm0, %v8307_v17 }
  0x39   : > { %752 = vst.msk [vmem:[#allocation2 + $0x10] sm:$0xff] (!%p6915_p9), %vm749_vm0, %v8307_v17  ;;  %753 = vst.msk [vmem:[#allocation2 + $0x18] sm:$0xff] (!%p6915_p9), %vm749_vm0, %v8307_v17 }
  0x3d PF: > { %v7871_v18 = vld [vmem:[%s8497_s27 + $0x40] sm:$0xff]   ;;  %v7875_v22 = vld [vmem:[%s8497_s27 + $0x48] sm:$0xff]   ;;  %v7879_v26 = vld [vmem:[%s8497_s27 + $0x50] sm:$0xff]   ;;  %vm1566_vm1 = vcmask 523264   ;;  %p6996_p10 = scmp.ne.s32.totalorder %s8452_s21, 3 }
  0x3e   : > { %v7872_v19 = vld [vmem:[%s8497_s27 + $0xc0] sm:$0xff]   ;;  %7304 = vmatprep.subr.bf16.mxu0 %v7871_v18  ;;  %v7876_v23 = vld [vmem:[%s8497_s27 + $0xc8] sm:$0xff]   ;;  %v7880_v27 = vld [vmem:[%s8497_s27 + $0xd0] sm:$0xff]  }
  0x3f   : > { %v7873_v20 = vld [vmem:[%s8497_s27] sm:$0xff]   ;;  %7332 = vmatprep.subr.bf16.mxu1 %v7872_v19  ;;  %v7877_v24 = vld [vmem:[%s8497_s27 + $0x8] sm:$0xff]   ;;  %v7881_v28 = vld [vmem:[%s8497_s27 + $0x10] sm:$0xff]  }
  0x40   : > { %v7874_v21 = vld [vmem:[%s8497_s27 + $0x80] sm:$0xff]   ;;  %7305 = vmatpush3.bf16.msra.mxu0 %v7873_v20  ;;  %v7878_v25 = vld [vmem:[%s8497_s27 + $0x88] sm:$0xff]   ;;  %v7882_v29 = vld [vmem:[%s8497_s27 + $0x90] sm:$0xff]  }
  0x41   : > { %7333 = vmatpush3.bf16.msra.mxu1 %v7874_v21  ;;  %7306 = vmatprep.subr.bf16.mxu0 %v7875_v22  ;;  %v7883_v30 = vld [vmem:[%s8497_s27 + $0x58] sm:$0xff]   ;;  %v7887_v34 = vld [vmem:[%s8497_s27 + $0x60] sm:$0xff]   ;;  %v7891_v38 = vld [vmem:[%s8497_s27 + $0x68] sm:$0xff]  }
  0x42   : > { %7334 = vmatprep.subr.bf16.mxu1 %v7876_v23  ;;  %v7884_v31 = vld [vmem:[%s8497_s27 + $0xd8] sm:$0xff]   ;;  %v7888_v35 = vld [vmem:[%s8497_s27 + $0xe0] sm:$0xff]   ;;  %v7892_v39 = vld [vmem:[%s8497_s27 + $0xe8] sm:$0xff]  }
  0x43   : > { %v7885_v32 = vld [vmem:[%s8497_s27 + $0x18] sm:$0xff]   ;;  %v7889_v36 = vld [vmem:[%s8497_s27 + $0x20] sm:$0xff]   ;;  %v7893_v40 = vld [vmem:[%s8497_s27 + $0x28] sm:$0xff]  }
  0x44   : > { %7307 = vmatpush3.bf16.msra.mxu0 %v7877_v24  ;;  %v7886_v33 = vld [vmem:[%s8497_s27 + $0x98] sm:$0xff]   ;;  %v7890_v37 = vld [vmem:[%s8497_s27 + $0xa0] sm:$0xff]   ;;  %v7894_v41 = vld [vmem:[%s8497_s27 + $0xa8] sm:$0xff]  }
  0x45   : > { %7335 = vmatpush3.bf16.msra.mxu1 %v7878_v25  ;;  %7308 = vmatprep.subr.bf16.mxu0 %v7879_v26  ;;  %v7895_v42 = vld [vmem:[%s8497_s27 + $0x70] sm:$0xff]   ;;  %v7899_v46 = vld [vmem:[%s8497_s27 + $0x78] sm:$0xff]   ;;  %v758_v50 = vld [vmem:[%s8499_s3] sm:$0xff] }
  0x46   : > { %7336 = vmatprep.subr.bf16.mxu1 %v7880_v27  ;;  %v7896_v43 = vld [vmem:[%s8497_s27 + $0xf0] sm:$0xff]   ;;  %v7900_v47 = vld [vmem:[%s8497_s27 + $0xf8] sm:$0xff]   ;;  %v762_v51 = vld [vmem:[%s8499_s3 + $0x20] sm:$0xff] }
  0x47   : > { %v7897_v44 = vld [vmem:[%s8497_s27 + $0x30] sm:$0xff]   ;;  %v7901_v48 = vld [vmem:[%s8497_s27 + $0x38] sm:$0xff]   ;;  %v6916_v53 = vcombine.low %v758_v50, %v762_v51  ;;  %v6917_v54 = vcombine.high %v758_v50, %v762_v51  ;;  %v7903_v58 = vld [vmem:[%s8497_s27 + $0x140] sm:$0xff]  }
  0x48   : > { %7309 = vmatpush3.bf16.msra.mxu0 %v7881_v28  ;;  %v7898_v45 = vld [vmem:[%s8497_s27 + $0xb0] sm:$0xff]   ;;  %v7902_v49 = vld [vmem:[%s8497_s27 + $0xb8] sm:$0xff]   ;;  %v7904_v59 = vld [vmem:[%s8497_s27 + $0x1c0] sm:$0xff]  }
  0x49   : > { %7337 = vmatpush3.bf16.msra.mxu1 %v7882_v29  ;;  %7310 = vmatprep.subr.bf16.mxu0 %v7883_v30  ;;  %v759_v52 = vld [vmem:[%s8499_s3 + $0x8] sm:$0xff]  ;;  %v7905_v60 = vld [vmem:[%s8497_s27 + $0x100] sm:$0xff]   ;;  %v7915_v6 = vld [vmem:[%s8497_s27 + $0x158] sm:$0xff]  }
  0x4a   : > { %7338 = vmatprep.subr.bf16.mxu1 %v7884_v31  ;;  %v763_v55 = vld [vmem:[%s8499_s3 + $0x28] sm:$0xff]  ;;  %1398 = vmatprep.mubr.bf16.mxu0 %v6917_v54  ;;  %v7906_v61 = vld [vmem:[%s8497_s27 + $0x180] sm:$0xff]   ;;  %v7916_v7 = vld [vmem:[%s8497_s27 + $0x1d8] sm:$0xff]  }
  0x4b   : > { %v6918_v56 = vcombine.low %v759_v52, %v763_v55  ;;  %v6919_v57 = vcombine.high %v759_v52, %v763_v55  ;;  %v7907_v62 = vld [vmem:[%s8497_s27 + $0x148] sm:$0xff]   ;;  %v7911_v2 = vld [vmem:[%s8497_s27 + $0x150] sm:$0xff]   ;;  %v7917_v8 = vld [vmem:[%s8497_s27 + $0x118] sm:$0xff]  }
  0x4c   : > { %7311 = vmatpush3.bf16.msra.mxu0 %v7885_v32  ;;  %v7908_v63 = vld [vmem:[%s8497_s27 + $0x1c8] sm:$0xff]   ;;  %v7912_v3 = vld [vmem:[%s8497_s27 + $0x1d0] sm:$0xff]   ;;  %v7918_v9 = vld [vmem:[%s8497_s27 + $0x198] sm:$0xff]  }
  0x4d   : > { %7339 = vmatpush3.bf16.msra.mxu1 %v7886_v33  ;;  %7312 = vmatprep.subr.bf16.mxu0 %v7887_v34  ;;  %v7909_v0 = vld [vmem:[%s8497_s27 + $0x108] sm:$0xff]   ;;  %v7913_v4 = vld [vmem:[%s8497_s27 + $0x110] sm:$0xff]   ;;  %v7919_v10 = vld [vmem:[%s8497_s27 + $0x160] sm:$0xff]  }
  0x4e   : > { %7340 = vmatprep.subr.bf16.mxu1 %v7888_v35  ;;  %1447 = vmatprep.mubr.bf16.mxu1 %v6919_v57  ;;  %v7910_v1 = vld [vmem:[%s8497_s27 + $0x188] sm:$0xff]   ;;  %v7914_v5 = vld [vmem:[%s8497_s27 + $0x190] sm:$0xff]   ;;  %v7920_v11 = vld [vmem:[%s8497_s27 + $0x1e0] sm:$0xff]  }
  0x4f   : > { %v7921_v12 = vld [vmem:[%s8497_s27 + $0x120] sm:$0xff]   ;;  %v767_v17 = vld [vmem:[%s8499_s3 + $0x48] sm:$0xff]  ;;  %v7931_v30 = vld [vmem:[%s8497_s27 + $0x178] sm:$0xff]  }
  0x50   : > { %7313 = vmatpush3.bf16.msra.mxu0 %v7889_v36  ;;  %v7922_v13 = vld [vmem:[%s8497_s27 + $0x1a0] sm:$0xff]   ;;  %v771_v18 = vld [vmem:[%s8499_s3 + $0x68] sm:$0xff]  ;;  %v7932_v31 = vld [vmem:[%s8497_s27 + $0x1f8] sm:$0xff]  }
  0x51   : > { %7341 = vmatpush3.bf16.msra.mxu1 %v7890_v37  ;;  %7314 = vmatprep.subr.bf16.mxu0 %v7891_v38  ;;  %v766_v14 = vld [vmem:[%s8499_s3 + $0x40] sm:$0xff]  ;;  %v6927_v20 = vcombine.high %v767_v17, %v771_v18  ;;  %v6926_v22 = vcombine.low %v767_v17, %v771_v18  ;;  %v7927_v26 = vld [vmem:[%s8497_s27 + $0x170] sm:$0xff]   ;;  %v7933_v32 = vld [vmem:[%s8497_s27 + $0x138] sm:$0xff]  }
  0x52   : > { %7342 = vmatprep.subr.bf16.mxu1 %v7892_v39  ;;  %v770_v15 = vld [vmem:[%s8499_s3 + $0x60] sm:$0xff]  ;;  %v7928_v27 = vld [vmem:[%s8497_s27 + $0x1f0] sm:$0xff]   ;;  %v7934_v33 = vld [vmem:[%s8497_s27 + $0x1b8] sm:$0xff]  }
  0x53   : > { %v6925_v16 = vcombine.high %v766_v14, %v770_v15  ;;  %v6924_v19 = vcombine.low %v766_v14, %v770_v15  ;;  %v7923_v21 = vld [vmem:[%s8497_s27 + $0x168] sm:$0xff]   ;;  %v7929_v28 = vld [vmem:[%s8497_s27 + $0x130] sm:$0xff]   ;;  %v761_v36 = vld [vmem:[%s8499_s3 + $0x18] sm:$0xff] }
  0x54   : > { %7315 = vmatpush3.bf16.msra.mxu0 %v7893_v40  ;;  %v7924_v23 = vld [vmem:[%s8497_s27 + $0x1e8] sm:$0xff]   ;;  %v7930_v29 = vld [vmem:[%s8497_s27 + $0x1b0] sm:$0xff]   ;;  %v765_v37 = vld [vmem:[%s8499_s3 + $0x38] sm:$0xff] }
  0x55   : > { %7343 = vmatpush3.bf16.msra.mxu1 %v7894_v41  ;;  %7316 = vmatprep.subr.bf16.mxu0 %v7895_v42  ;;  %v7925_v24 = vld [vmem:[%s8497_s27 + $0x128] sm:$0xff]   ;;  %v760_v34 = vld [vmem:[%s8499_s3 + $0x10] sm:$0xff]  ;;  %v6922_v40 = vcombine.low %v761_v36, %v765_v37  ;;  %v6923_v41 = vcombine.high %v761_v36, %v765_v37 }
  0x56   : > { %7344 = vmatprep.subr.bf16.mxu1 %v7896_v43  ;;  %v7926_v25 = vld [vmem:[%s8497_s27 + $0x1a8] sm:$0xff]   ;;  %v764_v35 = vld [vmem:[%s8499_s3 + $0x30] sm:$0xff] }
  0x57   : > { %v6920_v38 = vcombine.low %v760_v34, %v764_v35  ;;  %v6921_v39 = vcombine.high %v760_v34, %v764_v35  ;;  %v768_v42 = vld [vmem:[%s8499_s3 + $0x50] sm:$0xff] }
  0x58   : > { %7317 = vmatpush3.bf16.msra.mxu0 %v7897_v44  ;;  %v772_v43 = vld [vmem:[%s8499_s3 + $0x70] sm:$0xff]  ;;  %v769_v44 = vld [vmem:[%s8499_s3 + $0x58] sm:$0xff] }
  0x59   : > { %7345 = vmatpush3.bf16.msra.mxu1 %v7898_v45  ;;  %7318 = vmatprep.subr.bf16.mxu0 %v7899_v46  ;;  %v6929_v45 = vcombine.high %v768_v42, %v772_v43  ;;  %v773_v46 = vld [vmem:[%s8499_s3 + $0x78] sm:$0xff] }
  0x5a   : > { %7346 = vmatprep.subr.bf16.mxu1 %v7900_v47  ;;  %v6931_v47 = vcombine.high %v769_v44, %v773_v46 }
  0x5c   : > { %7319 = vmatpush3.bf16.msra.mxu0 %v7901_v48  ;;  %v6928_v48 = vcombine.low %v768_v42, %v772_v43 }
  0x5d   : > { %7347 = vmatpush3.bf16.msra.mxu1 %v7902_v49  ;;  %7360 = vmatprep.subr.bf16.mxu0 %v7903_v58  ;;  %v6930_v49 = vcombine.low %v769_v44, %v773_v46 }
  0x5e   : > { %7388 = vmatprep.subr.bf16.mxu1 %v7904_v59 }
  0x5f   : > { %1399 = vmatmul.mubr.bf16.vlgmr.msra.gmra.mrb[0].mxu0 %v6916_v53 }
  0x60   : > { %1448 = vmatmul.mubr.bf16.vlgmr.msra.gmra.mrb[0].mxu1 %v6918_v56  ;;  %7361 = vmatpush3.bf16.msra.mxu0 %v7905_v60 }
  0x61   : > { %7389 = vmatpush3.bf16.msra.mxu1 %v7906_v61  ;;  %7362 = vmatprep.subr.bf16.mxu0 %v7907_v62 }
  0x62   : > { %7390 = vmatprep.subr.bf16.mxu1 %v7908_v63  ;;  %1406 = vmatprep.mubr.bf16.mxu0 %v6925_v16 }
  0x63   : > { %1455 = vmatprep.mubr.bf16.mxu1 %v6927_v20 }
  0x64   : > { %7363 = vmatpush3.bf16.msra.mxu0 %v7909_v0 }
  0x65   : > { %7391 = vmatpush3.bf16.msra.mxu1 %v7910_v1  ;;  %7364 = vmatprep.subr.bf16.mxu0 %v7911_v2 }
  0x66   : > { %7392 = vmatprep.subr.bf16.mxu1 %v7912_v3 }
  0x67   : > { %1407 = vmatmul.mubr.bf16.gmra.mrb[4].mxu0 %v6924_v19 }
  0x68   : > { %7365 = vmatpush3.bf16.msra.mxu0 %v7913_v4  ;;  %1456 = vmatmul.mubr.bf16.gmra.mrb[4].mxu1 %v6926_v22 }
  0x69   : > { %7393 = vmatpush3.bf16.msra.mxu1 %v7914_v5  ;;  %7366 = vmatprep.subr.bf16.mxu0 %v7915_v6 }
  0x6a   : > { %7394 = vmatprep.subr.bf16.mxu1 %v7916_v7  ;;  %1496 = vmatprep.mubr.bf16.mxu0 %v6921_v39 }
  0x6b   : > { %1545 = vmatprep.mubr.bf16.mxu1 %v6923_v41 }
  0x6c   : > { %7367 = vmatpush3.bf16.msra.mxu0 %v7917_v8 }
  0x6d   : > { %7395 = vmatpush3.bf16.msra.mxu1 %v7918_v9  ;;  %7368 = vmatprep.subr.bf16.mxu0 %v7919_v10 }
  0x6e   : > { %7396 = vmatprep.subr.bf16.mxu1 %v7920_v11 }
  0x70   : > { %7369 = vmatpush3.bf16.msra.mxu0 %v7921_v12 }
  0x71   : > { %7397 = vmatpush3.bf16.msra.mxu1 %v7922_v13  ;;  %7370 = vmatprep.subr.bf16.mxu0 %v7923_v21 }
  0x72   : > { %7398 = vmatprep.subr.bf16.mxu1 %v7924_v23 }
  0x74   : > { %7371 = vmatpush3.bf16.msra.mxu0 %v7925_v24 }
  0x75   : > { %7399 = vmatpush3.bf16.msra.mxu1 %v7926_v25  ;;  %7372 = vmatprep.subr.bf16.mxu0 %v7927_v26 }
  0x76   : > { %7400 = vmatprep.subr.bf16.mxu1 %v7928_v27  ;;  %v754_v27 = vld [vmem:[#allocation2] sm:$0xff] }
  0x78   : > { %7373 = vmatpush3.bf16.msra.mxu0 %v7929_v28 }
  0x79   : > { %7401 = vmatpush3.bf16.msra.mxu1 %v7930_v29  ;;  %7374 = vmatprep.subr.bf16.mxu0 %v7931_v30  ;;  %v755_v30 = vld [vmem:[#allocation2 + $0x8] sm:$0xff] }
  0x7a   : > { %7402 = vmatprep.subr.bf16.mxu1 %v7932_v31 }
  0x7c   : > { %7375 = vmatpush3.bf16.msra.mxu0 %v7933_v32 }
  0x7d   : > { %7403 = vmatpush3.bf16.msra.mxu1 %v7934_v33 }
  0x7f   : > { %1497 = vmatmul.mubr.bf16.vlgmr.msra.gmra.mrb[8].mxu0 %v6920_v38 }
  0x80   : > { %1546 = vmatmul.mubr.bf16.vlgmr.msra.gmra.mrb[8].mxu1 %v6922_v40  ;;  %1504 = vmatprep.mubr.bf16.mxu0 %v6929_v45 }
  0x81   : > { %1553 = vmatprep.mubr.bf16.mxu1 %v6931_v47  ;;  %v756_v47 = vld [vmem:[#allocation2 + $0x10] sm:$0xff] }
  0x87   : > { %1505 = vmatmul.mubr.bf16.gmra.mrb[12].mxu0 %v6928_v48 }
  0x88   : > { %1554 = vmatmul.mubr.bf16.gmra.mrb[12].mxu1 %v6930_v49 }
 0x132   : > { %v7320_v50 = vpop.f32.mrb[0].mxu0 }
 0x133   : > { %v7348_v51 = vpop.f32.mrb[0].mxu1  ;;  %v7321_v52 = vpop.f32.mrb[1].mxu0 }
 0x134   : > { %v7322_v53 = vadd.f32 %v7321_v52, %v7320_v50  ;;  %v7349_v54 = vpop.f32.mrb[1].mxu1  ;;  %v7323_v55 = vpop.f32.mrb[2].mxu0  ;;  %v757_v50 = vld [vmem:[#allocation2 + $0x18] sm:$0xff] }
 0x135   : > { %v7350_v56 = vadd.f32 %v7349_v54, %v7348_v51  ;;  %v7351_v57 = vpop.f32.mrb[2].mxu1  ;;  %v7324_v58 = vpop.f32.mrb[3].mxu0 }
 0x136   : > { %v7325_v59 = vadd.f32 %v7324_v58, %v7323_v55  ;;  %v7352_v60 = vpop.f32.mrb[3].mxu1 }
 0x137   : > { %v1450_v61 = vadd.f32 %v7350_v56, %v7322_v53  ;;  %v7353_v62 = vadd.f32 %v7352_v60, %v7351_v57 }
 0x139   : > { %v1453_v63 = vadd.f32 %v7353_v62, %v7325_v59 }
 0x13a   : > { %v7326_v0 = vpop.f32.mrb[4].mxu0 }
 0x13b   : > { %v7354_v1 = vpop.f32.mrb[4].mxu1  ;;  %v7327_v2 = vpop.f32.mrb[5].mxu0 }
 0x13c   : > { %v7328_v3 = vadd.f32 %v7327_v2, %v7326_v0  ;;  %v7355_v4 = vpop.f32.mrb[5].mxu1  ;;  %v7329_v5 = vpop.f32.mrb[6].mxu0 }
 0x13d   : > { %v7356_v6 = vadd.f32 %v7355_v4, %v7354_v1  ;;  %v7357_v7 = vpop.f32.mrb[6].mxu1  ;;  %v7330_v8 = vpop.f32.mrb[7].mxu0 }
 0x13e   : > { %v7331_v9 = vadd.f32 %v7330_v8, %v7329_v5  ;;  %v7358_v10 = vpop.f32.mrb[7].mxu1 }
 0x13f   : > { %v1458_v11 = vadd.f32 %v7356_v6, %v7328_v3  ;;  %v7359_v12 = vadd.f32 %v7358_v10, %v7357_v7 }
 0x141   : > { %v1461_v13 = vadd.f32 %v7359_v12, %v7331_v9 }
 0x152   : > { %v7376_v14 = vpop.f32.mrb[8].mxu0 }
 0x153   : > { %v7404_v15 = vpop.f32.mrb[8].mxu1  ;;  %v7377_v16 = vpop.f32.mrb[9].mxu0 }
 0x154   : > { %v7405_v17 = vpop.f32.mrb[9].mxu1  ;;  %v7378_v18 = vadd.f32 %v7377_v16, %v7376_v14  ;;  %v7379_v20 = vpop.f32.mrb[10].mxu0 }
 0x155   : > { %v7406_v19 = vadd.f32 %v7405_v17, %v7404_v15  ;;  %v7407_v21 = vpop.f32.mrb[10].mxu1  ;;  %v7380_v22 = vpop.f32.mrb[11].mxu0 }
 0x156   : > { %v7408_v23 = vpop.f32.mrb[11].mxu1  ;;  %v1499_v24 = vadd.f32 %v7378_v18, %v1450_v61  ;;  %v7381_v25 = vadd.f32 %v7380_v22, %v7379_v20 }
 0x157   : > { %v7409_v26 = vadd.f32 %v7408_v23, %v7407_v21 }
 0x158   : > { %v1548_v28 = vadd.f32 %v7406_v19, %v1499_v24  ;;  %v1502_v29 = vadd.f32 %v7381_v25, %v1453_v63 }
 0x15a   : > { %v1562_v31 = vadd.f32 %v1548_v28, %v754_v27  ;;  %v1551_v32 = vadd.f32 %v7409_v26, %v1502_v29  ;;  %v7382_v33 = vpop.f32.mrb[12].mxu0 }
 0x15b   : > { %v7410_v34 = vpop.f32.mrb[12].mxu1  ;;  %v7383_v35 = vpop.f32.mrb[13].mxu0 }
 0x15c   : > { %v7411_v36 = vpop.f32.mrb[13].mxu1  ;;  %1567 = vst.msk [vmem:[#allocation2] sm:$0xff] %vm1566_vm1, %v1562_v31  ;;  %v1563_v37 = vadd.f32 %v1551_v32, %v755_v30  ;;  %v7384_v38 = vadd.f32 %v7383_v35, %v7382_v33  ;;  %v7385_v40 = vpop.f32.mrb[14].mxu0 }
 0x15d   : > { %v7412_v39 = vadd.f32 %v7411_v36, %v7410_v34  ;;  %v7413_v41 = vpop.f32.mrb[14].mxu1  ;;  %v7386_v42 = vpop.f32.mrb[15].mxu0 }
 0x15e   : > { %v7414_v43 = vpop.f32.mrb[15].mxu1  ;;  %1568 = vst.msk [vmem:[#allocation2 + $0x8] sm:$0xff] %vm1566_vm1, %v1563_v37  ;;  %v1507_v44 = vadd.f32 %v7384_v38, %v1458_v11  ;;  %v7387_v45 = vadd.f32 %v7386_v42, %v7385_v40 }
 0x15f   : > { %v7415_v46 = vadd.f32 %v7414_v43, %v7413_v41 }
 0x160   : > { %v1556_v48 = vadd.f32 %v7412_v39, %v1507_v44  ;;  %v1510_v49 = vadd.f32 %v7387_v45, %v1461_v13  ;;  %1574 = sbr.rel (%p6996_p10) target bundleno = 6996 (0x1b54), region = 139 }
 0x162   : > { %v1564_v51 = vadd.f32 %v1556_v48, %v756_v47  ;;  %v1559_v52 = vadd.f32 %v7415_v46, %v1510_v49 }
 0x164   : > { %1569 = vst.msk [vmem:[#allocation2 + $0x10] sm:$0xff] %vm1566_vm1, %v1564_v51  ;;  %v1565_v53 = vadd.f32 %v1559_v52, %v757_v50 }
 0x166   : > { %1570 = vst.msk [vmem:[#allocation2 + $0x18] sm:$0xff] %vm1566_vm1, %v1565_v53 }
 0x167   : > { %v1575_v54 = vld [vmem:[#allocation2] sm:$0xff]  ;;  %s10620_s28 = sld [smem:[#allocation9_spill]]  ;;  %v1576_v59 = vld [vmem:[#allocation2 + $0x8] sm:$0xff]  ;;  %s10621_s27 = sld [smem:[#allocation13_spill]]  ;;  %v8308_v31 = vmov 0   ;;  %vm1848_vm2 = vcmask 130048  }
 0x168   : > { %1785 = vmatprep.mubr.bf16.mxu0 %v8308_v31  ;;  %s10622_s24 = sld [smem:[#allocation11_spill]]  ;;  %s10623_s25 = sld [smem:[#allocation12_spill]]  ;;  %vm2105_vm6 = vcmask 261120   ;;  %vm2566_vm8 = vcmask 392192   ;;  %vm6504_vm9 = vcmask 7168  }
 0x169   : > { %s10604_s26 = smov 112   ;;  %s10592_s2 = smov 80  }
 0x16a   : > { %s10594_s3 = smov 64   ;;  %s10602_s29 = smov 96  }
 0x16b   : > { %v1577_v56 = vld [vmem:[#allocation2 + $0x10] sm:$0xff]  ;;  %s10624_s7 = sld [smem:[#allocation14_spill]]  ;;  %s10600_s21 = smov 16  }
 0x16c   : > { %s10598_s4 = smov 32   ;;  %s10625_s8 = sld [smem:[#allocation15_spill]] }
 0x16d   : > { %v1579_v55 = vld [vmem:[%s10620_s28] sm:$0xff]  ;;  %v1581_v58 = vld [vmem:[%s10620_s28 + $0x10] sm:$0xff]  ;;  %v1580_v60 = vld [vmem:[%s10620_s28 + $0x8] sm:$0xff]  ;;  %s10626_s9 = sld [smem:[#allocation16_spill]]  ;;  %s10633_s23 = smov 48  }
 0x16e   : > { %v8590_v57 = vadd.f32 %v1579_v55, %v1575_v54  ;;  %v8598_v61 = vadd.f32 %v1581_v58, %v1577_v56  ;;  %v8600_v62 = vadd.f32 %v1580_v60, %v1576_v59  ;;  %v1578_v63 = vld [vmem:[#allocation2 + $0x18] sm:$0xff]  ;;  %v7995_v26 = vld [vmem:[%s10621_s27 + $0x4] ss:$8 sps:$4 sm:$0xff]   ;;  %v7997_v27 = vld [vmem:[%s10621_s27] ss:$8 sps:$4 sm:$0xff]  }
 0x16f   : > { %v1582_v0 = vld [vmem:[%s10620_s28 + $0x18] sm:$0xff]  ;;  %1753 = vmatprep.subr.bf16.mxu0 %v7995_v26  ;;  %v8001_v30 = vld [vmem:[%s10621_s27 + $0x24] ss:$8 sps:$4 sm:$0xff]   ;;  %v8003_v32 = vld [vmem:[%s10621_s27 + $0x20] ss:$8 sps:$4 sm:$0xff]  }
 0x170   : > { %v1624_v1 = vsel %vm1566_vm1, %v8590_v57, 0.0  ;;  %v8607_v2 = vadd.f32 %v1582_v0, %v1578_v63  ;;  %v1630_v3 = vsel %vm1566_vm1, %v8598_v61, 0.0  ;;  %v1627_v4 = vsel %vm1566_vm1, %v8600_v62, 0.0  ;;  %v7998_v28 = vld [vmem:[%s10621_s27 + $0x14] ss:$8 sps:$4 sm:$0xff]   ;;  %1754 = vmatpush1.bf16.msra.mxu0 %v7997_v27 }
 0x171   : > { %1625 = vadd.xlane.f32.xlu0 %v1624_v1  ;;  %1631 = vadd.xlane.f32.xlu1 %v1630_v3  ;;  %v8000_v29 = vld [vmem:[%s10621_s27 + $0x10] ss:$8 sps:$4 sm:$0xff]   ;;  %v8004_v33 = vld [vmem:[%s10621_s27 + $0x34] ss:$8 sps:$4 sm:$0xff]   ;;  %v6997_v49 = vld [vmem:[%s10622_s24] ss:$0 sm:$0xff] }
 0x172   : > { %v1633_v5 = vsel %vm1566_vm1, %v8607_v2, 0.0  ;;  %1755 = vmatprep.subr.bf16.mxu0 %v7998_v28  ;;  %v8006_v34 = vld [vmem:[%s10621_s27 + $0x30] ss:$8 sps:$4 sm:$0xff]   ;;  %v6998_v54 = vld [vmem:[%s10623_s25] ss:$0 sm:$0xff] }
 0x174   : > { %1756 = vmatpush1.bf16.msra.mxu0 %v8000_v29 }
 0x175   : > { %1628 = vadd.xlane.f32.xlu0 %v1627_v4  ;;  %1634 = vadd.xlane.f32.xlu1 %v1633_v5 }
 0x176   : > { %1757 = vmatprep.subr.bf16.mxu0 %v8001_v30 }
 0x178   : > { %1758 = vmatpush1.bf16.msra.mxu0 %v8003_v32 }
 0x179   : > { %1759 = vmatprep.subr.bf16.mxu0 %v8004_v33 }
 0x17c   : > { %1760 = vmatpush1.bf16.msra.mxu0 %v8006_v34 }
 0x1fe   : > { %v1626_v6 = vpop.xlane.xlu0 %1625  ;;  %v1632_v8 = vpop.xlane.xlu1 %1631 }
 0x1ff   : > { %v1637_v7 = vmul.f32 0.015625, %v1626_v6  ;;  %v1639_v9 = vmul.f32 0.015625, %v1632_v8 }
 0x201   : > { %v1641_v10 = vsub.f32 %v8590_v57, %v1637_v7  ;;  %v8617_v12 = vsub.f32 %v8598_v61, %v1639_v9 }
 0x202   : > { %v1629_v11 = vpop.xlane.xlu0 %1628  ;;  %v1635_v14 = vpop.xlane.xlu1 %1634 }
 0x203   : > { %v1638_v13 = vmul.f32 0.015625, %v1629_v11  ;;  %v1645_v15 = vmul.f32 %v1641_v10, %v1641_v10  ;;  %v1640_v16 = vmul.f32 0.015625, %v1635_v14  ;;  %v1647_v17 = vmul.f32 %v8617_v12, %v8617_v12 }
 0x205   : > { %v1649_v18 = vsel %vm1566_vm1, %v1645_v15, 0.0  ;;  %v1642_v19 = vsub.f32 %v8600_v62, %v1638_v13  ;;  %v1644_v20 = vsub.f32 %v8607_v2, %v1640_v16  ;;  %v1655_v21 = vsel %vm1566_vm1, %v1647_v17, 0.0 }
 0x206   : > { %1650 = vadd.xlane.f32.xlu0 %v1649_v18 }
 0x207   : > { %v1646_v22 = vmul.f32 %v1642_v19, %v1642_v19  ;;  %v1648_v23 = vmul.f32 %v1644_v20, %v1644_v20 }
 0x209   : > { %v1652_v24 = vsel %vm1566_vm1, %v1646_v22, 0.0  ;;  %v1658_v25 = vsel %vm1566_vm1, %v1648_v23, 0.0 }
 0x20a   : > { %1656 = vadd.xlane.f32.xlu0 %v1655_v21  ;;  %1653 = vadd.xlane.f32.xlu1 %v1652_v24 }
 0x20e   : > { %1659 = vadd.xlane.f32.xlu1 %v1658_v25 }
 0x293   : > { %v1651_v35 = vpop.xlane.xlu0 %1650 }
 0x294   : > { %v1661_v36 = vmul.f32 0.015625, %v1651_v35 }
 0x296   : > { %v1665_v37 = vadd.f32 1e-05, %v1661_v36 }
 0x297   : > { %v1654_v38 = vpop.xlane.xlu1 %1653  ;;  %v1657_v39 = vpop.xlane.xlu0 %1656 }
 0x298   : > { %8051 = vrsqrt.f32 %v1665_v37  ;;  %v1662_v40 = vmul.f32 0.015625, %v1654_v38  ;;  %v1663_v41 = vmul.f32 0.015625, %v1657_v39 }
 0x29a   : > { %v1666_v42 = vadd.f32 1e-05, %v1662_v40  ;;  %v1667_v43 = vadd.f32 1e-05, %v1663_v41 }
 0x29b   : > { %v1660_v44 = vpop.xlane.xlu1 %1659 }
 0x29c   : > { %8053 = vrsqrt.f32 %v1666_v42  ;;  %v1664_v45 = vmul.f32 0.015625, %v1660_v44  ;;  %v1587_v42 = vlaneseq }
 0x29d   : > { %8055 = vrsqrt.f32 %v1667_v43 }
 0x29e   : > { %v1668_v46 = vadd.f32 1e-05, %v1664_v45  ;;  %v8708_v43 = vshrl.u32 %v1587_v42, 7  ;;  %v1593_v45 = vand.u32 127, %v1587_v42 }
 0x2a0   : > { %8057 = vrsqrt.f32 %v1668_v46  ;;  %v1590_v44 = vadd.s32 16, %v8708_v43  ;;  %v1589_v46 = vadd.s32 8, %v8708_v43 }
 0x2a2   : > { %v8052_v47 = vpop.eup %8051 }
 0x2a3   : > { %v1673_v48 = vmul.f32 %v8052_v47, %v1641_v10  ;;  %v1596_v47 = vcvt.s32.f32 %v1590_v44 }
 0x2a5   : > { %v1683_v52 = vmul.f32 %v6997_v49, %v1673_v48  ;;  %v1610_v48 = vcvt.s32.f32 %v1593_v45 }
 0x2a6   : > { %v8054_v50 = vpop.eup %8053 }
 0x2a7   : > { %v1674_v51 = vmul.f32 %v8054_v50, %v1642_v19  ;;  %v8056_v53 = vpop.eup %8055  ;;  %v1693_v58 = vadd.f32 %v6998_v54, %v1683_v52  ;;  %v1591_v50 = vadd.s32 24, %v8708_v43  ;;  %v1600_v52 = vadd.f32 0.5, %v1596_v47 }
 0x2a8   : > { %v1675_v60 = vmul.f32 %v8056_v53, %v8617_v12  ;;  %v1611_v53 = vadd.f32 0.5, %v1610_v48 }
 0x2a9   : > { %v1684_v55 = vmul.f32 %v6997_v49, %v1674_v51  ;;  %v1595_v51 = vcvt.s32.f32 %v1589_v46 }
 0x2aa   : > { %v8058_v56 = vpop.eup %8057  ;;  %v1685_v3 = vmul.f32 %v6997_v49, %v1675_v60 }
 0x2ab   : > { %v1694_v59 = vadd.f32 %v6998_v54, %v1684_v55  ;;  %v1676_v63 = vmul.f32 %v8058_v56, %v1644_v20  ;;  %v1597_v55 = vcvt.s32.f32 %v1591_v50  ;;  %v1599_v56 = vadd.f32 0.5, %v1595_v51 }
 0x2ac   : > { %v1695_v5 = vadd.f32 %v6998_v54, %v1685_v3 }
 0x2ad   : > { %v1697_v0 = vpack.c.bf16 %v1694_v59, %v1693_v58  ;;  %v1686_v1 = vmul.f32 %v6997_v49, %v1676_v63  ;;  %v1594_v49 = vcvt.s32.f32 %v8708_v43  ;;  %v1604_v58 = vmul.f32 0.125, %v1600_v52 }
 0x2ae   : > { %v1612_v59 = vmul.f32 0.125, %v1611_v53  ;;  %v1601_v63 = vadd.f32 0.5, %v1597_v55 }
 0x2af   : > { %7007 = vmatmul.mubr.msk.bf16.vlgmr.msra.gmra.mrb[0].mxu0 %vm1566_vm1, %v1697_v0  ;;  %v1696_v4 = vadd.f32 %v6998_v54, %v1686_v1  ;;  %v1598_v54 = vadd.f32 0.5, %v1594_v49  ;;  %v1603_v0 = vmul.f32 0.125, %v1599_v56  ;;  %v1608_v1 = vfloor.f32 %v1604_v58 }
 0x2b0   : > { %1795 = vmatprep.mubr.bf16.mxu0 %v8308_v31  ;;  %v1613_v3 = vfloor.f32 %v1612_v59 }
 0x2b1   : > { %v1698_v6 = vpack.c.bf16 %v1696_v4, %v1695_v5  ;;  %v1602_v60 = vmul.f32 0.125, %v1598_v54  ;;  %v1605_v5 = vmul.f32 0.125, %v1601_v63 }
 0x2b2   : > { %vm1616_vm3 = vcmp.eq.f32.partialorder %v1608_v1, %v1613_v3 }
 0x2b3   : > { %v1606_v4 = vfloor.f32 %v1602_v60 }
 0x2b5   : > { %vm1614_vm4 = vcmp.eq.f32.partialorder %v1606_v4, %v1613_v3 }
 0x2b7   : > { %7008 = vmatmul.mubr.msk.bf16.gmra.mrb[4].mxu0 %vm1566_vm1, %v1698_v6  ;;  %v1607_v6 = vfloor.f32 %v1603_v0 }
 0x2b9   : > { %vm1615_vm5 = vcmp.eq.f32.partialorder %v1607_v6, %v1613_v3 }
 0x382   : > { %v1787_v7 = vpop.f32.mrb[0].mxu0 }
 0x383   : > { %v1789_v8 = vpop.f32.mrb[1].mxu0 }
 0x384   : > { %v1791_v9 = vpop.f32.mrb[2].mxu0 }
 0x385   : > { %v1806_v10 = vpack.c.bf16 %v1791_v9, %v1787_v7  ;;  %v1793_v11 = vpop.f32.mrb[3].mxu0  ;;  %v1609_v7 = vfloor.f32 %v1605_v5 }
 0x386   : > { %v8662_v12 = vpack.c.bf16 %v1793_v11, %v1789_v8  ;;  %v8313_v8 = vmov -1e+09  }
 0x387   : > { %1812 = vrot.lane.b32.xlu0 %v1806_v10, %s10604_s26  ;;  %7540 = vmatprep.mubr.msk.bf16.mxu1 %vm1848_vm2, %v1806_v10  ;;  %v8714_v9 = vsel %vm1616_vm3, 0.0, %v8313_v8  ;;  %v8716_v11 = vsel %vm1614_vm4, 0.0, %v8313_v8  ;;  %vm1617_vm7 = vcmp.eq.f32.partialorder %v1609_v7, %v1613_v3 }
 0x38a   : > { %v1797_v13 = vpop.f32.mrb[4].mxu0 }
 0x38b   : > { %1820 = vrot.lane.b32.xlu0 %v1806_v10, %s10592_s2  ;;  %v1799_v14 = vpop.f32.mrb[5].mxu0 }
 0x38c   : > { %v1801_v15 = vpop.f32.mrb[6].mxu0 }
 0x38d   : > { %v1808_v16 = vpack.c.bf16 %v1801_v15, %v1797_v13  ;;  %v1803_v17 = vpop.f32.mrb[7].mxu0  ;;  %v8721_v15 = vsel %vm1615_vm5, 0.0, %v8313_v8 }
 0x38e   : > { %v8667_v18 = vpack.c.bf16 %v1803_v17, %v1799_v14 }
 0x38f   : > { %1844 = vrot.lane.b32.xlu0 %v1806_v10, %s10594_s3  ;;  %1814 = vrot.lane.b32.xlu1 %v1808_v16, %s10604_s26 }
 0x393   : > { %1816 = vrot.lane.b32.xlu1 %v1806_v10, %s10602_s29 }
 0x397   : > { %1818 = vrot.lane.b32.xlu1 %v1808_v16, %s10602_s29 }
 0x39b   : > { %1822 = vrot.lane.b32.xlu1 %v1808_v16, %s10592_s2 }
 0x39f   : > { %1846 = vrot.lane.b32.xlu1 %v1808_v16, %s10594_s3 }
 0x3f9   : > { %v1813_v19 = vpop.permute.xlu0 %1812 }
 0x3fa   : > { %7548 = vmatprep.mubr.msk.bf16.mxu0 %vm1848_vm2, %v1813_v19  ;;  %1910 = vrot.lane.b32.xlu0 %v1813_v19, %s10594_s3 }
 0x3fd   : > { %v1821_v20 = vpop.permute.xlu0 %1820 }
 0x401   : > { %v1815_v21 = vpop.permute.xlu1 %1814  ;;  %v1845_v22 = vpop.permute.xlu0 %1844 }
 0x402   : > { %1912 = vrot.lane.b32.xlu1 %v1815_v21, %s10594_s3  ;;  %7790 = vmatprep.subr.msk.bf16.mxu1 %vm1848_vm2, %v1845_v22  ;;  %v1856_v23 = vsel %vm1848_vm2, %v1845_v22, 0 }
 0x403   : > { %7537 = vmatpush3.bf16.xpose.msra.mxu1 %v1856_v23 }
 0x405   : > { %v1817_v24 = vpop.permute.xlu1 %1816 }
 0x406   : > { %1975 = vrot.lane.b32.xlu0 %v1817_v24, %s10594_s3 }
 0x409   : > { %v1819_v25 = vpop.permute.xlu1 %1818 }
 0x40a   : > { %1977 = vrot.lane.b32.xlu1 %v1819_v25, %s10594_s3  ;;  %2040 = vrot.lane.b32.xlu0 %v1821_v20, %s10594_s3 }
 0x40d   : > { %v1823_v26 = vpop.permute.xlu1 %1822 }
 0x40e   : > { %2042 = vrot.lane.b32.xlu1 %v1823_v26, %s10594_s3  ;;  %s10631_s3 = smov 16  }
 0x411   : > { %v1847_v27 = vpop.permute.xlu1 %1846 }
 0x412   : > { %7791 = vmatprep.subr.msk.bf16.mxu1 %vm1848_vm2, %v1847_v27  ;;  %v1859_v28 = vsel %vm1848_vm2, %v1847_v27, 0 }
 0x413   : > { %7539 = vmatpush3.bf16.xpose.msra.mxu1 %v1859_v28 }
 0x41a   : > { %7541 = vmatmul.mubr.msk.bf16.vlgmr.msra.gmra.mrb[0].mxu1 %vm1848_vm2, %v1808_v16 }
 0x41b   : > { %7556 = vmatprep.mubr.msk.bf16.mxu1 %vm1848_vm2, %v1817_v24 }
 0x46c   : > { %v1911_v29 = vpop.permute.xlu0 %1910 }
 0x46d   : > { %7792 = vmatprep.subr.msk.bf16.mxu0 %vm1848_vm2, %v1911_v29  ;;  %v1921_v30 = vsel %vm1848_vm2, %v1911_v29, 0 }
 0x46e   : > { %7545 = vmatpush3.bf16.xpose.msra.mxu0 %v1921_v30 }
 0x474   : > { %v1913_v32 = vpop.permute.xlu1 %1912 }
 0x475   : > { %7793 = vmatprep.subr.msk.bf16.mxu0 %vm1848_vm2, %v1913_v32  ;;  %v1924_v33 = vsel %vm1848_vm2, %v1913_v32, 0 }
 0x476   : > { %7547 = vmatpush3.bf16.xpose.msra.mxu0 %v1924_v33 }
 0x478   : > { %v1976_v34 = vpop.permute.xlu0 %1975 }
 0x479   : > { %7794 = vmatprep.subr.msk.bf16.mxu1 %vm1848_vm2, %v1976_v34  ;;  %v1986_v35 = vsel %vm1848_vm2, %v1976_v34, 0 }
 0x47a   : > { %7553 = vmatpush3.bf16.xpose.msra.mxu1 %v1986_v35 }
 0x47c   : > { %v1978_v36 = vpop.permute.xlu1 %1977  ;;  %v2041_v37 = vpop.permute.xlu0 %2040 }
 0x47d   : > { %7549 = vmatmul.mubr.msk.bf16.vlgmr.msra.gmra.mrb[8].mxu0 %vm1848_vm2, %v1815_v21  ;;  %7795 = vmatprep.subr.msk.bf16.mxu1 %vm1848_vm2, %v1978_v36  ;;  %v2051_v38 = vsel %vm1848_vm2, %v2041_v37, 0  ;;  %v1989_v40 = vsel %vm1848_vm2, %v1978_v36, 0  ;;  %v8728_v21 = vsel %vm1617_vm7, 0.0, %v8313_v8 }
 0x47e   : > { %7796 = vmatprep.subr.msk.bf16.mxu0 %vm1848_vm2, %v2041_v37  ;;  %7564 = vmatprep.mubr.msk.bf16.mxu0 %vm1848_vm2, %v1821_v20 }
 0x47f   : > { %7561 = vmatpush3.bf16.xpose.msra.mxu0 %v2051_v38 }
 0x480   : > { %v2043_v39 = vpop.permute.xlu1 %2042 }
 0x481   : > { %7797 = vmatprep.subr.msk.bf16.mxu0 %vm1848_vm2, %v2043_v39  ;;  %v2054_v41 = vsel %vm1848_vm2, %v2043_v39, 0 }
 0x482   : > { %7555 = vmatpush3.bf16.xpose.msra.mxu1 %v1989_v40 }
 0x483   : > { %7568 = vmatprep.subr.bf16.mxu1 %v8662_v12 }
 0x487   : > { %7563 = vmatpush3.bf16.xpose.msra.mxu0 %v2054_v41 }
 0x489   : > { %7557 = vmatmul.mubr.msk.bf16.vlgmr.msra.gmra.mrb[4].mxu1 %vm1848_vm2, %v1819_v25 }
 0x48a   : > { %7569 = vmatpush3.bf16.msra.mxu1 %v8662_v12 }
 0x48b   : > { %7570 = vmatprep.subr.bf16.mxu1 %v8667_v18 }
 0x48e   : > { %7565 = vmatmul.mubr.msk.bf16.vlgmr.msra.gmra.mrb[12].mxu0 %vm1848_vm2, %v1823_v26  ;;  %7571 = vmatpush3.bf16.msra.mxu1 %v8667_v18 }
 0x4ed   : > { %v7542_v10 = vpop.f32.mrb[0].mxu1 }
 0x4ee   : > { %v8719_v13 = vadd.f32 %v7542_v10, %v8714_v9  ;;  %v1895_v14 = vpop.f32.mrb[1].mxu1 }
 0x4ef   : > { %v7543_v16 = vpop.f32.mrb[2].mxu1  ;;  %v8724_v17 = vadd.f32 %v1895_v14, %v8716_v11 }
 0x4f0   : > { %v1898_v19 = vpop.f32.mrb[3].mxu1  ;;  %v2112_v20 = vsel %vm2105_vm6, %v8719_v13, -inf  ;;  %v8736_v24 = vadd.f32 %v7543_v16, %v8728_v21 }
 0x4f1   : > { %v8731_v22 = vadd.f32 %v1898_v19, %v8721_v15  ;;  %2113 = vmax.xlane.f32.xlu0 %v2112_v20  ;;  %v2106_v25 = vsel %vm2105_vm6, %v8724_v17, -inf }
 0x4f2   : > { %v2115_v26 = vsel %vm2105_vm6, %v8736_v24, -inf }
 0x4f3   : > { %v2109_v23 = vsel %vm2105_vm6, %v8731_v22, -inf }
 0x4f4   : > { %2110 = vmax.xlane.f32.xlu1 %v2109_v23 }
 0x4f5   : > { %2107 = vmax.xlane.f32.xlu0 %v2106_v25 }
 0x4f9   : > { %2116 = vmax.xlane.f32.xlu0 %v2115_v26 }
 0x550   : > { %v7550_v27 = vpop.f32.mrb[8].mxu0 }
 0x551   : > { %v8743_v28 = vadd.f32 %v7550_v27, %v8714_v9  ;;  %v1960_v29 = vpop.f32.mrb[9].mxu0 }
 0x552   : > { %v7551_v30 = vpop.f32.mrb[10].mxu0  ;;  %v8746_v32 = vadd.f32 %v1960_v29, %v8716_v11 }
 0x553   : > { %v8749_v33 = vadd.f32 %v7551_v30, %v8728_v21  ;;  %v1963_v34 = vpop.f32.mrb[11].mxu0  ;;  %v2124_v35 = vsel %vm2105_vm6, %v8743_v28, -inf }
 0x554   : > { %2125 = vmax.xlane.f32.xlu0 %v2124_v35  ;;  %v2118_v37 = vsel %vm2105_vm6, %v8746_v32, -inf  ;;  %v8769_v47 = vadd.f32 %v1963_v34, %v8721_v15 }
 0x555   : > { %v2127_v36 = vsel %vm2105_vm6, %v8749_v33, -inf }
 0x556   : > { %2128 = vmax.xlane.f32.xlu1 %v2127_v36  ;;  %v2121_v56 = vsel %vm2105_vm6, %v8769_v47, -inf }
 0x558   : > { %2119 = vmax.xlane.f32.xlu0 %v2118_v37 }
 0x55c   : > { %v7558_v38 = vpop.f32.mrb[4].mxu1 }
 0x55d   : > { %v8758_v39 = vadd.f32 %v7558_v38, %v8714_v9  ;;  %v2025_v40 = vpop.f32.mrb[5].mxu1 }
 0x55e   : > { %v7559_v41 = vpop.f32.mrb[6].mxu1  ;;  %v8761_v42 = vadd.f32 %v2025_v40, %v8716_v11 }
 0x55f   : > { %v8764_v44 = vadd.f32 %v7559_v41, %v8728_v21  ;;  %v2028_v45 = vpop.f32.mrb[7].mxu1  ;;  %v2136_v46 = vsel %vm2105_vm6, %v8758_v39, -inf }
 0x560   : > { %2137 = vmax.xlane.f32.xlu0 %v2136_v46  ;;  %v2130_v53 = vsel %vm2105_vm6, %v8761_v42, -inf  ;;  %v8779_v55 = vadd.f32 %v2028_v45, %v8721_v15 }
 0x561   : > { %v7566_v48 = vpop.f32.mrb[12].mxu0  ;;  %v2139_v49 = vsel %vm2105_vm6, %v8764_v44, -inf }
 0x562   : > { %v2090_v50 = vpop.f32.mrb[13].mxu0  ;;  %2140 = vmax.xlane.f32.xlu1 %v2139_v49  ;;  %v8774_v51 = vadd.f32 %v7566_v48, %v8714_v9  ;;  %v2133_v60 = vsel %vm2105_vm6, %v8779_v55, -inf }
 0x563   : > { %v7567_v52 = vpop.f32.mrb[14].mxu0  ;;  %v8784_v58 = vadd.f32 %v2090_v50, %v8716_v11 }
 0x564   : > { %v2093_v54 = vpop.f32.mrb[15].mxu0  ;;  %2131 = vmax.xlane.f32.xlu0 %v2130_v53  ;;  %v2148_v59 = vsel %vm2105_vm6, %v8774_v51, -inf  ;;  %v8803_v8 = vadd.f32 %v7567_v52, %v8728_v21 }
 0x565   : > { %v2142_v63 = vsel %vm2105_vm6, %v8784_v58, -inf }
 0x566   : > { %2122 = vmax.xlane.f32.xlu1 %v2121_v56  ;;  %v2151_v16 = vsel %vm2105_vm6, %v8803_v8, -inf }
 0x568   : > { %2149 = vmax.xlane.f32.xlu0 %v2148_v59 }
 0x56a   : > { %2134 = vmax.xlane.f32.xlu1 %v2133_v60 }
 0x56c   : > { %2143 = vmax.xlane.f32.xlu0 %v2142_v63 }
 0x57b   : > { %1828 = vrot.lane.b32.xlu1 %v8667_v18, %s10604_s26 }
 0x57e   : > { %v2114_v0 = vpop.xlane.xlu0 %2113 }
 0x57f   : > { %1832 = vrot.lane.b32.xlu1 %v8662_v12, %s10602_s29  ;;  %v2156_v1 = vsub.f32 %v8719_v13, %v2114_v0  ;;  %v8810_v13 = vadd.f32 %v2093_v54, %v8721_v15 }
 0x581   : > { %v2174_v4 = vmul.f32 1.442695, %v2156_v1  ;;  %v2145_v19 = vsel %vm2105_vm6, %v8810_v13, -inf  ;;  %v2111_v25 = vpop.xlane.xlu1 %2110 }
 0x582   : > { %1826 = vrot.lane.b32.xlu0 %v8662_v12, %s10604_s26  ;;  %v2108_v3 = vpop.xlane.xlu0 %2107  ;;  %v2155_v26 = vsub.f32 %v8731_v22, %v2111_v25 }
 0x583   : > { %v2154_v5 = vsub.f32 %v8724_v17, %v2108_v3  ;;  %8059 = vpow2.f32 %v2174_v4 }
 0x584   : > { %v2172_v29 = vmul.f32 1.442695, %v2155_v26 }
 0x585   : > { %v2170_v6 = vmul.f32 1.442695, %v2154_v5 }
 0x586   : > { %v2117_v20 = vpop.xlane.xlu0 %2116 }
 0x587   : > { %8061 = vpow2.f32 %v2170_v6  ;;  %v2157_v23 = vsub.f32 %v8736_v24, %v2117_v20 }
 0x589   : > { %v2176_v27 = vmul.f32 1.442695, %v2157_v23 }
 0x58b   : > { %8063 = vpow2.f32 %v2176_v27 }
 0x58c   : > { %8065 = vpow2.f32 %v2172_v29 }
 0x58d   : > { %v8800_v7 = vpop.eup %8059 }
 0x58e   : > { %v2208_v10 = vsel %vm2105_vm6, %v8800_v7, 0.0 }
 0x591   : > { %v8807_v14 = vpop.eup %8061 }
 0x592   : > { %v2202_v17 = vsel %vm2105_vm6, %v8807_v14, 0.0 }
 0x595   : > { %v8822_v30 = vpop.eup %8063 }
 0x596   : > { %v2211_v34 = vsel %vm2105_vm6, %v8822_v30, 0.0  ;;  %v8826_v35 = vpop.eup %8065 }
 0x597   : > { %v2205_v36 = vsel %vm2105_vm6, %v8826_v35, 0.0 }
 0x5a1   : > { %2209 = vadd.xlane.f32.xlu0 %v2208_v10 }
 0x5a3   : > { %2152 = vmax.xlane.f32.xlu1 %v2151_v16 }
 0x5a5   : > { %2203 = vadd.xlane.f32.xlu0 %v2202_v17 }
 0x5a7   : > { %2146 = vmax.xlane.f32.xlu1 %v2145_v19 }
 0x5b8   : > { %1834 = vrot.lane.b32.xlu1 %v8667_v18, %s10602_s29  ;;  %s10627_s29 = smov 112  }
 0x5dc   : > { %2212 = vadd.xlane.f32.xlu1 %v2211_v34 }
 0x5e0   : > { %2206 = vadd.xlane.f32.xlu1 %v2205_v36 }
 0x5e1   : > { %v2126_v24 = vpop.xlane.xlu0 %2125 }
 0x5e2   : > { %v2160_v37 = vsub.f32 %v8743_v28, %v2126_v24 }
 0x5e3   : > { %v2129_v22 = vpop.xlane.xlu1 %2128 }
 0x5e4   : > { %v2182_v38 = vmul.f32 1.442695, %v2160_v37  ;;  %v2161_v40 = vsub.f32 %v8749_v33, %v2129_v22 }
 0x5e5   : > { %v2120_v45 = vpop.xlane.xlu0 %2119 }
 0x5e6   : > { %8067 = vpow2.f32 %v2182_v38  ;;  %v2184_v41 = vmul.f32 1.442695, %v2161_v40  ;;  %v2158_v46 = vsub.f32 %v8746_v32, %v2120_v45 }
 0x5e8   : > { %8069 = vpow2.f32 %v2184_v41  ;;  %v2178_v50 = vmul.f32 1.442695, %v2158_v46 }
 0x5ed   : > { %v2138_v48 = vpop.xlane.xlu0 %2137 }
 0x5ee   : > { %v2164_v49 = vsub.f32 %v8758_v39, %v2138_v48 }
 0x5ef   : > { %v2141_v52 = vpop.xlane.xlu1 %2140 }
 0x5f0   : > { %v8834_v53 = vpop.eup %8067  ;;  %v2190_v54 = vmul.f32 1.442695, %v2164_v49  ;;  %v2165_v28 = vsub.f32 %v8764_v44, %v2141_v52 }
 0x5f1   : > { %v2132_v56 = vpop.xlane.xlu0 %2131  ;;  %v2220_v33 = vsel %vm2105_vm6, %v8834_v53, 0.0 }
 0x5f2   : > { %v8839_v59 = vpop.eup %8069  ;;  %8071 = vpow2.f32 %v2190_v54  ;;  %v2192_v60 = vmul.f32 1.442695, %v2165_v28  ;;  %v2162_v32 = vsub.f32 %v8761_v42, %v2132_v56  ;;  %2221 = vadd.xlane.f32.xlu0 %v2220_v33 }
 0x5f3   : > { %8073 = vpow2.f32 %v2178_v50  ;;  %v2123_v39 = vpop.xlane.xlu1 %2122  ;;  %v2223_v63 = vsel %vm2105_vm6, %v8839_v59, 0.0 }
 0x5f4   : > { %8075 = vpow2.f32 %v2192_v60  ;;  %v2186_v0 = vmul.f32 1.442695, %v2162_v32  ;;  %v2159_v44 = vsub.f32 %v8769_v47, %v2123_v39  ;;  %2224 = vadd.xlane.f32.xlu1 %v2223_v63 }
 0x5f5   : > { %v2150_v1 = vpop.xlane.xlu0 %2149 }
 0x5f6   : > { %v2180_v3 = vmul.f32 1.442695, %v2159_v44  ;;  %v2168_v4 = vsub.f32 %v8774_v51, %v2150_v1  ;;  %8077 = vpow2.f32 %v2186_v0 }
 0x5f7   : > { %v2135_v5 = vpop.xlane.xlu1 %2134 }
 0x5f8   : > { %8079 = vpow2.f32 %v2180_v3  ;;  %v2198_v6 = vmul.f32 1.442695, %v2168_v4  ;;  %v2163_v42 = vsub.f32 %v8779_v55, %v2135_v5 }
 0x5f9   : > { %v2144_v10 = vpop.xlane.xlu0 %2143 }
 0x5fa   : > { %v2188_v16 = vmul.f32 1.442695, %v2163_v42  ;;  %v2166_v17 = vsub.f32 %v8784_v58, %v2144_v10  ;;  %8081 = vpow2.f32 %v2198_v6 }
 0x5fb   : > { %v1829_v41 = vpop.permute.xlu1 %1828 }
 0x5fc   : > { %v8848_v19 = vpop.eup %8071  ;;  %8083 = vpow2.f32 %v2188_v16  ;;  %v2194_v47 = vmul.f32 1.442695, %v2166_v17 }
 0x5fd   : > { %v8850_v20 = vpop.eup %8073  ;;  %v8852_v23 = vpop.permute.xlu0 %1826  ;;  %v2232_v51 = vsel %vm2105_vm6, %v8848_v19, 0.0 }
 0x5fe   : > { %v8856_v25 = vpop.eup %8075  ;;  %2233 = vadd.xlane.f32.xlu0 %v2232_v51  ;;  %7576 = vmatprep.subr.bf16.mxu1 %v8852_v23  ;;  %8085 = vpow2.f32 %v2194_v47  ;;  %v2214_v26 = vsel %vm2105_vm6, %v8850_v20, 0.0 }
 0x5ff   : > { %v2235_v55 = vsel %vm2105_vm6, %v8856_v25, 0.0  ;;  %v8885_v45 = vpop.permute.xlu1 %1832 }
 0x600   : > { %2236 = vadd.xlane.f32.xlu1 %v2235_v55  ;;  %v8861_v58 = vpop.eup %8077 }
 0x601   : > { %v2226_v36 = vsel %vm2105_vm6, %v8861_v58, 0.0 }
 0x602   : > { %v8865_v27 = vpop.eup %8079  ;;  %2215 = vadd.xlane.f32.xlu0 %v2214_v26 }
 0x603   : > { %v2217_v29 = vsel %vm2105_vm6, %v8865_v27, 0.0 }
 0x604   : > { %2218 = vadd.xlane.f32.xlu1 %v2217_v29  ;;  %v8869_v34 = vpop.eup %8081 }
 0x605   : > { %v2244_v22 = vsel %vm2105_vm6, %v8869_v34, 0.0 }
 0x606   : > { %v8873_v24 = vpop.eup %8083  ;;  %2227 = vadd.xlane.f32.xlu0 %v2226_v36 }
 0x607   : > { %v2229_v37 = vsel %vm2105_vm6, %v8873_v24, 0.0 }
 0x608   : > { %2230 = vadd.xlane.f32.xlu1 %v2229_v37  ;;  %v8879_v38 = vpop.eup %8085 }
 0x609   : > { %v2238_v40 = vsel %vm2105_vm6, %v8879_v38, 0.0 }
 0x60a   : > { %2245 = vadd.xlane.f32.xlu0 %v2244_v22 }
 0x60e   : > { %2239 = vadd.xlane.f32.xlu0 %v2238_v40 }
 0x624   : > { %1838 = vrot.lane.b32.xlu0 %v8662_v12, %s10592_s2 }
 0x630   : > { %v2153_v46 = vpop.xlane.xlu1 %2152 }
 0x631   : > { %v2169_v48 = vsub.f32 %v8803_v8, %v2153_v46  ;;  %v2210_v8 = vpop.xlane.xlu0 %2209 }
 0x633   : > { %v2200_v49 = vmul.f32 1.442695, %v2169_v48 }
 0x634   : > { %v2147_v50 = vpop.xlane.xlu1 %2146 }
 0x635   : > { %8087 = vpow2.f32 %v2200_v49  ;;  %v2167_v52 = vsub.f32 %v8810_v13, %v2147_v50  ;;  %v2204_v13 = vpop.xlane.xlu0 %2203 }
 0x637   : > { %v2196_v54 = vmul.f32 1.442695, %v2167_v52 }
 0x638   : > { %v8899_v60 = vpop.permute.xlu1 %1834 }
 0x639   : > { %8089 = vpow2.f32 %v2196_v54 }
 0x63f   : > { %v8889_v28 = vpop.eup %8087 }
 0x640   : > { %v2247_v56 = vsel %vm2105_vm6, %v8889_v28, 0.0 }
 0x641   : > { %2248 = vadd.xlane.f32.xlu1 %v2247_v56 }
 0x643   : > { %v8893_v12 = vpop.eup %8089 }
 0x644   : > { %v2241_v33 = vsel %vm2105_vm6, %v8893_v12, 0.0 }
 0x645   : > { %2242 = vadd.xlane.f32.xlu1 %v2241_v33 }
 0x656   : > { %1840 = vrot.lane.b32.xlu1 %v8667_v18, %s10592_s2  ;;  %s10596_s2 = smov 48  }
 0x669   : > { %v2213_v32 = vpop.xlane.xlu1 %2212 }
 0x66a   : > { %8091 = vrcp.f32 %v2213_v32 }
 0x66b   : > { %8093 = vrcp.f32 %v2204_v13 }
 0x66c   : > { %8095 = vrcp.f32 %v2210_v8 }
 0x66d   : > { %v2207_v39 = vpop.xlane.xlu1 %2206 }
 0x66e   : > { %8097 = vrcp.f32 %v2207_v39 }
 0x674   : > { %v8092_v63 = vpop.eup %8091 }
 0x675   : > { %v8094_v0 = vpop.eup %8093  ;;  %v2269_v3 = vmul.f32 %v8092_v63, %v8822_v30 }
 0x676   : > { %v8096_v44 = vpop.eup %8095  ;;  %v2266_v4 = vmul.f32 %v8094_v0, %v8807_v14 }
 0x677   : > { %v2268_v5 = vmul.f32 %v8096_v44, %v8800_v7 }
 0x678   : > { %v8098_v1 = vpop.eup %8097 }
 0x679   : > { %v2267_v18 = vmul.f32 %v8098_v1, %v8826_v35  ;;  %v2283_v42 = vpack.c.bf16 %v2269_v3, %v2268_v5 }
 0x67b   : > { %v2282_v6 = vpack.c.bf16 %v2267_v18, %v2266_v4 }
 0x67d   : > { %7572 = vmatprep.mubr.msk.bf16.mxu1 %vm2105_vm6, %v2282_v6 }
 0x67e   : > { %7573 = vmatmul.mubr.msk.bf16.vlgmr.msra.gmra.mrb[8].mxu1 %vm2105_vm6, %v2283_v42 }
 0x67f   : > { %7577 = vmatpush3.bf16.msra.mxu1 %v8852_v23  ;;  %v2222_v10 = vpop.xlane.xlu0 %2221 }
 0x680   : > { %7578 = vmatprep.subr.bf16.mxu1 %v1829_v41 }
 0x681   : > { %v2225_v30 = vpop.xlane.xlu1 %2224 }
 0x682   : > { %8099 = vrcp.f32 %v2225_v30 }
 0x683   : > { %7579 = vmatpush3.bf16.msra.mxu1 %v1829_v41 }
 0x684   : > { %7584 = vmatprep.subr.bf16.mxu1 %v8885_v45 }
 0x68b   : > { %v2234_v16 = vpop.xlane.xlu0 %2233 }
 0x68c   : > { %v8100_v23 = vpop.eup %8099 }
 0x68d   : > { %v2237_v14 = vpop.xlane.xlu1 %2236  ;;  %v2273_v36 = vmul.f32 %v8100_v23, %v8839_v59 }
 0x68f   : > { %v2216_v35 = vpop.xlane.xlu0 %2215 }
 0x690   : > { %8101 = vrcp.f32 %v2216_v35 }
 0x691   : > { %8103 = vrcp.f32 %v2222_v10  ;;  %v2219_v7 = vpop.xlane.xlu1 %2218 }
 0x692   : > { %8105 = vrcp.f32 %v2219_v7 }
 0x693   : > { %v2228_v17 = vpop.xlane.xlu0 %2227 }
 0x694   : > { %8107 = vrcp.f32 %v2228_v17 }
 0x695   : > { %v2231_v47 = vpop.xlane.xlu1 %2230 }
 0x696   : > { %8109 = vrcp.f32 %v2231_v47 }
 0x697   : > { %8111 = vrcp.f32 %v2237_v14  ;;  %v2246_v26 = vpop.xlane.xlu0 %2245 }
 0x698   : > { %8113 = vrcp.f32 %v2234_v16  ;;  %v8009_v16 = vld [vmem:[%s10624_s7 + $0x10] sm:$0xff]  }
 0x69a   : > { %v8102_v51 = vpop.eup %8101 }
 0x69b   : > { %v8104_v55 = vpop.eup %8103  ;;  %v2270_v37 = vmul.f32 %v8102_v51, %v8850_v20  ;;  %v2240_v52 = vpop.xlane.xlu0 %2239  ;;  %v8010_v51 = vld [vmem:[%s10624_s7 + $0x18] sm:$0xff]  }
 0x69c   : > { %v8106_v29 = vpop.eup %8105  ;;  %v2272_v41 = vmul.f32 %v8104_v55, %v8834_v53 }
 0x69d   : > { %v2271_v22 = vmul.f32 %v8106_v29, %v8865_v27 }
 0x69e   : > { %v8108_v40 = vpop.eup %8107  ;;  %v2285_v49 = vpack.c.bf16 %v2273_v36, %v2272_v41 }
 0x69f   : > { %v2284_v46 = vpack.c.bf16 %v2271_v22, %v2270_v37  ;;  %v2274_v54 = vmul.f32 %v8108_v40, %v8861_v58  ;;  %v1839_v33 = vpop.permute.xlu0 %1838 }
 0x6a0   : > { %v8110_v48 = vpop.eup %8109 }
 0x6a1   : > { %v8112_v50 = vpop.eup %8111  ;;  %7580 = vmatprep.mubr.msk.bf16.mxu1 %vm2105_vm6, %v2284_v46  ;;  %v2275_v56 = vmul.f32 %v8110_v48, %v8873_v24 }
 0x6a2   : > { %7581 = vmatmul.mubr.msk.bf16.vlgmr.msra.gmra.mrb[12].mxu1 %vm2105_vm6, %v2285_v49  ;;  %v8114_v59 = vpop.eup %8113  ;;  %v2277_v27 = vmul.f32 %v8112_v50, %v8856_v25 }
 0x6a3   : > { %7585 = vmatpush3.bf16.msra.mxu1 %v8885_v45  ;;  %v2286_v20 = vpack.c.bf16 %v2275_v56, %v2274_v54  ;;  %v2276_v53 = vmul.f32 %v8114_v59, %v8848_v19 }
 0x6a4   : > { %7586 = vmatprep.subr.bf16.mxu1 %v8899_v60 }
 0x6a5   : > { %7588 = vmatprep.mubr.msk.bf16.mxu1 %vm2105_vm6, %v2286_v20  ;;  %v2287_v58 = vpack.c.bf16 %v2277_v27, %v2276_v53 }
 0x6a7   : > { %7587 = vmatpush3.bf16.msra.mxu1 %v8899_v60 }
 0x6a8   : > { %7592 = vmatprep.subr.bf16.mxu1 %v1839_v33 }
 0x6aa   : > { %7589 = vmatmul.mubr.msk.bf16.vlgmr.msra.gmra.mrb[16].mxu1 %vm2105_vm6, %v2287_v58 }
 0x6ab   : > { %7593 = vmatpush3.bf16.msra.mxu1 %v1839_v33 }
 0x6ce   : > { %v2249_v24 = vpop.xlane.xlu1 %2248 }
 0x6cf   : > { %8115 = vrcp.f32 %v2249_v24 }
 0x6d0   : > { %8117 = vrcp.f32 %v2240_v52 }
 0x6d1   : > { %8119 = vrcp.f32 %v2246_v26 }
 0x6d2   : > { %v2243_v45 = vpop.xlane.xlu1 %2242 }
 0x6d3   : > { %8121 = vrcp.f32 %v2243_v45 }
 0x6d6   : > { %v1841_v25 = vpop.permute.xlu1 %1840 }
 0x6d7   : > { %7594 = vmatprep.subr.bf16.mxu1 %v1841_v25 }
 0x6d8   : > { %7595 = vmatpush3.bf16.msra.mxu1 %v1841_v25 }
 0x6d9   : > { %v8116_v8 = vpop.eup %8115 }
 0x6da   : > { %v8118_v13 = vpop.eup %8117  ;;  %v2281_v60 = vmul.f32 %v8116_v8, %v8889_v28 }
 0x6db   : > { %v8120_v19 = vpop.eup %8119  ;;  %v2278_v39 = vmul.f32 %v8118_v13, %v8879_v38  ;;  %v8007_v38 = vld [vmem:[%s10624_s7] sm:$0xff]  }
 0x6dc   : > { %v2280_v0 = vmul.f32 %v8120_v19, %v8869_v34  ;;  %v8008_v34 = vld [vmem:[%s10624_s7 + $0x8] sm:$0xff]   ;;  %7600 = vmatprep.subr.bf16.mxu0 %v8007_v38 }
 0x6dd   : > { %v8122_v32 = vpop.eup %8121  ;;  %7601 = vmatpush3.bf16.msra.mxu0 %v8007_v38 }
 0x6de   : > { %v2279_v63 = vmul.f32 %v8122_v32, %v8893_v12  ;;  %v2289_v1 = vpack.c.bf16 %v2281_v60, %v2280_v0  ;;  %7602 = vmatprep.subr.bf16.mxu0 %v8008_v34 }
 0x6e0   : > { %v2288_v44 = vpack.c.bf16 %v2279_v63, %v2278_v39 }
 0x6e1   : > { %7603 = vmatpush3.bf16.msra.mxu0 %v8008_v34 }
 0x6e2   : > { %7596 = vmatprep.mubr.msk.bf16.mxu1 %vm2105_vm6, %v2288_v44  ;;  %7604 = vmatprep.subr.bf16.mxu0 %v8009_v16 }
 0x6e3   : > { %7597 = vmatmul.mubr.msk.bf16.vlgmr.msra.gmra.mrb[20].mxu1 %vm2105_vm6, %v2289_v1 }
 0x6e5   : > { %7605 = vmatpush3.bf16.msra.mxu0 %v8009_v16 }
 0x6e6   : > { %7606 = vmatprep.subr.bf16.mxu0 %v8010_v51 }
 0x6e9   : > { %7607 = vmatpush3.bf16.msra.mxu0 %v8010_v51 }
 0x751   : > { %v7574_v3 = vpop.f32.mrb[8].mxu1 }
 0x752   : > { %v2330_v4 = vpop.f32.mrb[9].mxu1 }
 0x753   : > { %v7575_v18 = vpop.f32.mrb[10].mxu1 }
 0x754   : > { %v2333_v5 = vpop.f32.mrb[11].mxu1 }
 0x775   : > { %v7582_v6 = vpop.f32.mrb[12].mxu1 }
 0x776   : > { %v2385_v42 = vpop.f32.mrb[13].mxu1 }
 0x777   : > { %v7583_v10 = vpop.f32.mrb[14].mxu1 }
 0x778   : > { %v7935_v28 = vpack.i.bf16 %v7583_v10, %v7582_v6  ;;  %v2388_v12 = vpop.f32.mrb[15].mxu1 }
 0x779   : > { %v7940_v30 = vpack.i.bf16 %v2388_v12, %v2385_v42  ;;  %v7031_v42 = vld [vmem:[%s10625_s8] ss:$0 sm:$0xff] }
 0x77a   : > { %7936 = vrot.lane.b32.xlu1 %v7935_v28, %s10600_s21 }
 0x77b   : > { %7941 = vrot.lane.b32.xlu0 %v7940_v30, %s10600_s21  ;;  %s10628_s21 = smov 96  }
 0x77d   : > { %v7590_v14 = vpop.f32.mrb[16].mxu1 }
 0x77e   : > { %v2440_v35 = vpop.f32.mrb[17].mxu1 }
 0x77f   : > { %v7591_v7 = vpop.f32.mrb[18].mxu1 }
 0x780   : > { %v7945_v17 = vpack.i.bf16 %v7591_v7, %v7590_v14  ;;  %v2443_v47 = vpop.f32.mrb[19].mxu1 }
 0x781   : > { %v7950_v23 = vpack.i.bf16 %v2443_v47, %v2440_v35 }
 0x782   : > { %7946 = vrot.lane.b32.xlu1 %v7945_v17, %s10598_s4 }
 0x783   : > { %7951 = vrot.lane.b32.xlu0 %v7950_v23, %s10598_s4  ;;  %s10629_s4 = smov 64  }
 0x7b6   : > { %v7598_v55 = vpop.f32.mrb[20].mxu1 }
 0x7b7   : > { %v2495_v26 = vpop.f32.mrb[21].mxu1 }
 0x7b8   : > { %v7599_v29 = vpop.f32.mrb[22].mxu1 }
 0x7b9   : > { %v7960_v36 = vpack.i.bf16 %v7599_v29, %v7598_v55  ;;  %v2498_v37 = vpop.f32.mrb[23].mxu1 }
 0x7ba   : > { %v7955_v22 = vpack.i.bf16 %v2498_v37, %v2495_v26 }
 0x7bb   : > { %7961 = vrot.lane.b32.xlu1 %v7960_v36, %s10596_s2 }
 0x7bc   : > { %7956 = vrot.lane.b32.xlu0 %v7955_v22, %s10596_s2  ;;  %s10630_s2 = smov 80  }
 0x7ec   : > { %v7937_v40 = vpop.permute.xlu1 %7936 }
 0x7ed   : > { %v7942_v41 = vpop.permute.xlu0 %7941  ;;  %v7939_v48 = vunpack.i.h.bf16 %v7937_v40  ;;  %v7938_v49 = vunpack.i.l.bf16 %v7937_v40 }
 0x7ee   : > { %v7944_v52 = vunpack.i.h.bf16 %v7942_v41  ;;  %v7943_v54 = vunpack.i.l.bf16 %v7942_v41 }
 0x7ef   : > { %v2561_v53 = vsel %vm1848_vm2, %v7575_v18, %v7939_v48  ;;  %v2560_v33 = vsel %vm1848_vm2, %v7574_v3, %v7938_v49 }
 0x7f0   : > { %v2559_v24 = vsel %vm1848_vm2, %v2333_v5, %v7944_v52  ;;  %v2558_v45 = vsel %vm1848_vm2, %v2330_v4, %v7943_v54 }
 0x7f4   : > { %v7947_v46 = vpop.permute.xlu1 %7946 }
 0x7f5   : > { %v7952_v50 = vpop.permute.xlu0 %7951  ;;  %v7949_v56 = vunpack.i.h.bf16 %v7947_v46  ;;  %v7948_v59 = vunpack.i.l.bf16 %v7947_v46 }
 0x7f6   : > { %v7954_v20 = vunpack.i.h.bf16 %v7952_v50  ;;  %v7953_v27 = vunpack.i.l.bf16 %v7952_v50 }
 0x7f7   : > { %v2565_v19 = vsel %vm2105_vm6, %v2561_v53, %v7949_v56  ;;  %v2564_v32 = vsel %vm2105_vm6, %v2560_v33, %v7948_v59  ;;  %v8012_v53 = vld [vmem:[%s10575_s11 + $0x8] sm:$0xff]   ;;  %v8013_v33 = vld [vmem:[%s10575_s11 + $0x10] sm:$0xff]  }
 0x7f8   : > { %v2562_v44 = vsel %vm2105_vm6, %v2558_v45, %v7953_v27  ;;  %v2563_v1 = vsel %vm2105_vm6, %v2559_v24, %v7954_v20  ;;  %v8011_v27 = vld [vmem:[%s10575_s11] sm:$0xff]  }
 0x7f9   : > { %7612 = vmatprep.subr.bf16.mxu1 %v8011_v27 }
 0x7fa   : > { %7613 = vmatpush3.bf16.msra.mxu1 %v8011_v27 }
 0x7fb   : > { %7614 = vmatprep.subr.bf16.mxu1 %v8012_v53 }
 0x7fe   : > { %7615 = vmatpush3.bf16.msra.mxu1 %v8012_v53 }
 0x7ff   : > { %7616 = vmatprep.subr.bf16.mxu1 %v8013_v33 }
 0x802   : > { %7617 = vmatpush3.bf16.msra.mxu1 %v8013_v33 }
 0x82d   : > { %v7962_v58 = vpop.permute.xlu1 %7961 }
 0x82e   : > { %v7964_v25 = vunpack.i.h.bf16 %v7962_v58  ;;  %v7963_v8 = vunpack.i.l.bf16 %v7962_v58  ;;  %v7957_v13 = vpop.permute.xlu0 %7956  ;;  %v8014_v58 = vld [vmem:[%s10575_s11 + $0x18] sm:$0xff]  }
 0x82f   : > { %v7959_v60 = vunpack.i.h.bf16 %v7957_v13  ;;  %v7958_v39 = vunpack.i.l.bf16 %v7957_v13  ;;  %7618 = vmatprep.subr.bf16.mxu1 %v8014_v58 }
 0x830   : > { %v2570_v63 = vsel %vm2566_vm8, %v2565_v19, %v7964_v25  ;;  %v2569_v0 = vsel %vm2566_vm8, %v2564_v32, %v7963_v8  ;;  %7619 = vmatpush3.bf16.msra.mxu1 %v8014_v58 }
 0x831   : > { %v2567_v3 = vsel %vm2566_vm8, %v2562_v44, %v7958_v39  ;;  %v2568_v4 = vsel %vm2566_vm8, %v2563_v1, %v7959_v60  ;;  %v2572_v18 = vpack.c.bf16 %v2570_v63, %v2569_v0 }
 0x832   : > { %v2571_v5 = vpack.c.bf16 %v2568_v4, %v2567_v3  ;;  %v7032_v3 = vld [vmem:[%s10626_s9] ss:$0 sm:$0xff] }
 0x834   : > { %7608 = vmatprep.mubr.msk.bf16.mxu0 %vm1566_vm1, %v2571_v5 }
 0x835   : > { %7609 = vmatmul.mubr.msk.bf16.vlgmr.msra.gmra.mrb[16].mxu0 %vm1566_vm1, %v2572_v18 }
 0x908   : > { %v7610_v6 = vpop.f32.mrb[16].mxu0 }
 0x909   : > { %v2645_v10 = vpop.f32.mrb[17].mxu0  ;;  %v2662_v38 = vadd.f32 %v7610_v6, %v8598_v61 }
 0x90a   : > { %v2660_v34 = vadd.f32 %v2645_v10, %v8590_v57  ;;  %v7611_v28 = vpop.f32.mrb[18].mxu0  ;;  %v7033_v10 = vld [vmem:[%s10574_s10] ss:$0 sm:$0xff] }
 0x90b   : > { %v2648_v12 = vpop.f32.mrb[19].mxu0  ;;  %v8970_v14 = vadd.f32 %v7031_v42, %v2662_v38  ;;  %v2663_v35 = vadd.f32 %v7611_v28, %v8607_v2 }
 0x90c   : > { %v8967_v30 = vadd.f32 %v7031_v42, %v2660_v34  ;;  %v2661_v16 = vadd.f32 %v2648_v12, %v8600_v62 }
 0x90d   : > { %v8979_v57 = vadd.f32 %v7031_v42, %v2663_v35  ;;  %v2683_v47 = vsel %vm1566_vm1, %v8970_v14, 0.0 }
 0x90e   : > { %v8973_v7 = vadd.f32 %v7031_v42, %v2661_v16  ;;  %v2677_v17 = vsel %vm1566_vm1, %v8967_v30, 0.0 }
 0x90f   : > { %2678 = vadd.xlane.f32.xlu0 %v2677_v17  ;;  %v2686_v62 = vsel %vm1566_vm1, %v8979_v57, 0.0 }
 0x910   : > { %v2680_v61 = vsel %vm1566_vm1, %v8973_v7, 0.0 }
 0x911   : > { %2681 = vadd.xlane.f32.xlu1 %v2680_v61 }
 0x913   : > { %2684 = vadd.xlane.f32.xlu0 %v2683_v47 }
 0x917   : > { %2687 = vadd.xlane.f32.xlu0 %v2686_v62 }
 0x99c   : > { %v2679_v2 = vpop.xlane.xlu0 %2678 }
 0x99d   : > { %v2689_v23 = vmul.f32 0.015625, %v2679_v2 }
 0x99e   : > { %v2682_v51 = vpop.xlane.xlu1 %2681 }
 0x99f   : > { %v2690_v55 = vmul.f32 0.015625, %v2682_v51  ;;  %v2693_v26 = vsub.f32 %v8967_v30, %v2689_v23  ;;  %v8015_v51 = vld [vmem:[%s10577_s13] sm:$0xff]  }
 0x9a0   : > { %v2685_v29 = vpop.xlane.xlu0 %2684  ;;  %7624 = vmatprep.subr.bf16.mxu0 %v8015_v51 }
 0x9a1   : > { %v2691_v36 = vmul.f32 0.015625, %v2685_v29  ;;  %v2697_v37 = vmul.f32 %v2693_v26, %v2693_v26  ;;  %v2694_v22 = vsub.f32 %v8973_v7, %v2690_v55  ;;  %7625 = vmatpush3.bf16.msra.mxu0 %v8015_v51  ;;  %v8016_v55 = vld [vmem:[%s10577_s13 + $0x8] sm:$0xff]   ;;  %v8018_v29 = vld [vmem:[%s10577_s13 + $0x18] sm:$0xff]  }
 0x9a2   : > { %7626 = vmatprep.subr.bf16.mxu0 %v8016_v55 }
 0x9a3   : > { %v2701_v40 = vsel %vm1566_vm1, %v2697_v37, 0.0  ;;  %v2698_v41 = vmul.f32 %v2694_v22, %v2694_v22  ;;  %v2695_v46 = vsub.f32 %v8970_v14, %v2691_v36  ;;  %v8019_v36 = vld [vmem:[%s10577_s13 + $0x20] sm:$0xff]   ;;  %v8020_v37 = vld [vmem:[%s10577_s13 + $0x28] sm:$0xff]  }
 0x9a4   : > { %2702 = vadd.xlane.f32.xlu0 %v2701_v40  ;;  %v2688_v48 = vpop.xlane.xlu0 %2687  ;;  %v8022_v40 = vld [vmem:[%s10577_s13 + $0x38] sm:$0xff]  }
 0x9a5   : > { %v2692_v49 = vmul.f32 0.015625, %v2688_v48  ;;  %v2704_v50 = vsel %vm1566_vm1, %v2698_v41, 0.0  ;;  %v2699_v52 = vmul.f32 %v2695_v46, %v2695_v46  ;;  %7627 = vmatpush3.bf16.msra.mxu0 %v8016_v55  ;;  %v7034_v41 = vld [vmem:[%s10576_s12] ss:$0 sm:$0xff] }
 0x9a6   : > { %2705 = vadd.xlane.f32.xlu1 %v2704_v50 }
 0x9a7   : > { %v2707_v54 = vsel %vm1566_vm1, %v2699_v52, 0.0  ;;  %v2696_v56 = vsub.f32 %v8979_v57, %v2692_v49 }
 0x9a8   : > { %2708 = vadd.xlane.f32.xlu0 %v2707_v54 }
 0x9a9   : > { %v2700_v59 = vmul.f32 %v2696_v56, %v2696_v56 }
 0x9ab   : > { %v2710_v20 = vsel %vm1566_vm1, %v2700_v59, 0.0 }
 0x9ac   : > { %2711 = vadd.xlane.f32.xlu1 %v2710_v20 }
 0xa31   : > { %v2703_v24 = vpop.xlane.xlu0 %2702 }
 0xa32   : > { %v2713_v45 = vmul.f32 0.015625, %v2703_v24 }
 0xa33   : > { %v2706_v25 = vpop.xlane.xlu1 %2705 }
 0xa34   : > { %v2717_v8 = vadd.f32 1e-05, %v2713_v45  ;;  %v2714_v13 = vmul.f32 0.015625, %v2706_v25 }
 0xa35   : > { %v2709_v19 = vpop.xlane.xlu0 %2708 }
 0xa36   : > { %8123 = vrsqrt.f32 %v2717_v8  ;;  %v2718_v32 = vadd.f32 1e-05, %v2714_v13  ;;  %v2715_v60 = vmul.f32 0.015625, %v2709_v19 }
 0xa38   : > { %8125 = vrsqrt.f32 %v2718_v32  ;;  %v2719_v39 = vadd.f32 1e-05, %v2715_v60 }
 0xa39   : > { %v2712_v63 = vpop.xlane.xlu1 %2711 }
 0xa3a   : > { %8127 = vrsqrt.f32 %v2719_v39  ;;  %v2716_v0 = vmul.f32 0.015625, %v2712_v63 }
 0xa3c   : > { %v2720_v44 = vadd.f32 1e-05, %v2716_v0 }
 0xa3e   : > { %8129 = vrsqrt.f32 %v2720_v44 }
 0xa40   : > { %v8124_v1 = vpop.eup %8123 }
 0xa41   : > { %v2725_v4 = vmul.f32 %v8124_v1, %v2693_v26  ;;  %v8017_v26 = vld [vmem:[%s10577_s13 + $0x10] sm:$0xff]  }
 0xa42   : > { %v8126_v18 = vpop.eup %8125  ;;  %7628 = vmatprep.subr.bf16.mxu0 %v8017_v26 }
 0xa43   : > { %v2726_v5 = vmul.f32 %v8126_v18, %v2694_v22  ;;  %v2735_v6 = vmul.f32 %v7032_v3, %v2725_v4  ;;  %7629 = vmatpush3.bf16.msra.mxu0 %v8017_v26  ;;  %v8021_v22 = vld [vmem:[%s10577_s13 + $0x30] sm:$0xff]   ;;  %v7049_v26 = vld [vmem:[%s10578_s14] ss:$0 sm:$0xff] }
 0xa44   : > { %v8128_v42 = vpop.eup %8127  ;;  %7630 = vmatprep.subr.bf16.mxu0 %v8018_v29 }
 0xa45   : > { %v2736_v38 = vmul.f32 %v7032_v3, %v2726_v5  ;;  %v2727_v34 = vmul.f32 %v8128_v42, %v2695_v46  ;;  %v2745_v28 = vadd.f32 %v7033_v10, %v2735_v6 }
 0xa47   : > { %v2746_v12 = vadd.f32 %v7033_v10, %v2736_v38  ;;  %v2737_v61 = vmul.f32 %v7032_v3, %v2727_v34  ;;  %7631 = vmatpush3.bf16.msra.mxu0 %v8018_v29 }
 0xa48   : > { %v8130_v16 = vpop.eup %8129  ;;  %7632 = vmatprep.subr.bf16.mxu0 %v8019_v36 }
 0xa49   : > { %v2749_v35 = vpack.c.bf16 %v2746_v12, %v2745_v28  ;;  %v2728_v17 = vmul.f32 %v8130_v16, %v2696_v56  ;;  %v2747_v62 = vadd.f32 %v7033_v10, %v2737_v61 }
 0xa4b   : > { %7620 = vmatprep.mubr.msk.bf16.mxu1 %vm1566_vm1, %v2749_v35  ;;  %v2738_v47 = vmul.f32 %v7032_v3, %v2728_v17  ;;  %7633 = vmatpush3.bf16.msra.mxu0 %v8019_v36 }
 0xa4c   : > { %7634 = vmatprep.subr.bf16.mxu0 %v8020_v37 }
 0xa4d   : > { %v2748_v2 = vadd.f32 %v7033_v10, %v2738_v47 }
 0xa4f   : > { %v2750_v23 = vpack.c.bf16 %v2748_v2, %v2747_v62  ;;  %7635 = vmatpush3.bf16.msra.mxu0 %v8020_v37 }
 0xa50   : > { %7636 = vmatprep.subr.bf16.mxu0 %v8021_v22 }
 0xa51   : > { %7621 = vmatmul.mubr.msk.bf16.vlgmr.msra.gmra.mrb[24].mxu1 %vm1566_vm1, %v2750_v23 }
 0xa52   : > { %3176 = vmatprep.mubr.bf16.mxu1 %v8308_v31 }
 0xa53   : > { %7637 = vmatpush3.bf16.msra.mxu0 %v8021_v22 }
 0xa54   : > { %7638 = vmatprep.subr.bf16.mxu0 %v8022_v40 }
 0xa57   : > { %7639 = vmatpush3.bf16.msra.mxu0 %v8022_v40 }
 0xb24   : > { %v7622_v46 = vpop.f32.mrb[24].mxu1 }
 0xb25   : > { %v2839_v48 = vadd.f32 %v7622_v46, %v7034_v41  ;;  %v2830_v49 = vpop.f32.mrb[25].mxu1 }
 0xb26   : > { %v2831_v50 = vadd.f32 %v7034_v41, %v2830_v49  ;;  %v7623_v52 = vpop.f32.mrb[26].mxu1 }
 0xb27   : > { %v2851_v54 = vmul.f32 0.044715, %v2839_v48  ;;  %v2842_v56 = vadd.f32 %v7623_v52, %v7034_v41  ;;  %v2833_v59 = vpop.f32.mrb[27].mxu1  ;;  %v2847_v34 = vmul.f32 0.5, %v2839_v48 }
 0xb28   : > { %v2849_v20 = vmul.f32 0.044715, %v2831_v50  ;;  %v2834_v27 = vadd.f32 %v7034_v41, %v2833_v59  ;;  %v2845_v16 = vmul.f32 0.5, %v2831_v50 }
 0xb29   : > { %v2855_v53 = vmul.f32 %v2851_v54, %v2839_v48  ;;  %v2852_v33 = vmul.f32 0.044715, %v2842_v56  ;;  %v2848_v28 = vmul.f32 0.5, %v2842_v56 }
 0xb2a   : > { %v2853_v58 = vmul.f32 %v2849_v20, %v2831_v50  ;;  %v2850_v24 = vmul.f32 0.044715, %v2834_v27  ;;  %v2846_v35 = vmul.f32 0.5, %v2834_v27 }
 0xb2b   : > { %v2859_v45 = vmul.f32 %v2855_v53, %v2839_v48  ;;  %v2856_v25 = vmul.f32 %v2852_v33, %v2842_v56 }
 0xb2c   : > { %v2857_v8 = vmul.f32 %v2853_v58, %v2831_v50  ;;  %v2854_v13 = vmul.f32 %v2850_v24, %v2834_v27 }
 0xb2d   : > { %v2863_v19 = vadd.f32 %v2859_v45, %v2839_v48  ;;  %v2860_v32 = vmul.f32 %v2856_v25, %v2842_v56 }
 0xb2e   : > { %v2858_v60 = vmul.f32 %v2854_v13, %v2834_v27  ;;  %v2861_v39 = vadd.f32 %v2857_v8, %v2831_v50 }
 0xb2f   : > { %v2867_v63 = vmul.f32 0.7978846, %v2863_v19  ;;  %v2864_v0 = vadd.f32 %v2860_v32, %v2842_v56 }
 0xb30   : > { %v2862_v44 = vadd.f32 %v2858_v60, %v2834_v27  ;;  %v2865_v1 = vmul.f32 0.7978846, %v2861_v39 }
 0xb31   : > { %8131 = vtanh.f32 %v2867_v63  ;;  %v2868_v3 = vmul.f32 0.7978846, %v2864_v0 }
 0xb32   : > { %v2866_v4 = vmul.f32 0.7978846, %v2862_v44  ;;  %8133 = vtanh.f32 %v2865_v1  ;;  %v8025_v1 = vld [vmem:[%s10621_s27 + $0x44] ss:$8 sps:$4 sm:$0xff]  }
 0xb33   : > { %8135 = vtanh.f32 %v2868_v3  ;;  %v8023_v3 = vld [vmem:[%s10621_s27 + $0x40] ss:$8 sps:$4 sm:$0xff]   ;;  %3144 = vmatprep.subr.bf16.mxu1 %v8025_v1 }
 0xb34   : > { %8137 = vtanh.f32 %v2866_v4  ;;  %3145 = vmatpush1.bf16.msra.mxu1 %v8023_v3  ;;  %v8028_v4 = vld [vmem:[%s10621_s27 + $0x54] ss:$8 sps:$4 sm:$0xff]  }
 0xb35   : > { %3146 = vmatprep.subr.bf16.mxu1 %v8028_v4 }
 0xb3b   : > { %v8132_v18 = vpop.eup %8131 }
 0xb3c   : > { %v8134_v5 = vpop.eup %8133  ;;  %v2875_v6 = vadd.f32 1.0, %v8132_v18  ;;  %v8026_v18 = vld [vmem:[%s10621_s27 + $0x50] ss:$8 sps:$4 sm:$0xff]  }
 0xb3d   : > { %v8136_v42 = vpop.eup %8135  ;;  %v2873_v10 = vadd.f32 1.0, %v8134_v5  ;;  %3147 = vmatpush1.bf16.msra.mxu1 %v8026_v18  ;;  %v8031_v5 = vld [vmem:[%s10621_s27 + $0x64] ss:$8 sps:$4 sm:$0xff]  }
 0xb3e   : > { %v8138_v38 = vpop.eup %8137  ;;  %v2876_v12 = vadd.f32 1.0, %v8136_v42  ;;  %v2879_v61 = vmul.f32 %v2875_v6, %v2847_v34  ;;  %v8029_v6 = vld [vmem:[%s10621_s27 + $0x60] ss:$8 sps:$4 sm:$0xff]   ;;  %v8034_v42 = vld [vmem:[%s10621_s27 + $0x74] ss:$8 sps:$4 sm:$0xff]   ;;  %3148 = vmatprep.subr.bf16.mxu1 %v8031_v5 }
 0xb3f   : > { %v2874_v17 = vadd.f32 1.0, %v8138_v38  ;;  %v2877_v62 = vmul.f32 %v2873_v10, %v2845_v16  ;;  %v8032_v10 = vld [vmem:[%s10621_s27 + $0x70] ss:$8 sps:$4 sm:$0xff]  }
 0xb40   : > { %v2880_v47 = vmul.f32 %v2876_v12, %v2848_v28 }
 0xb41   : > { %v2878_v2 = vmul.f32 %v2874_v17, %v2846_v35  ;;  %3149 = vmatpush1.bf16.msra.mxu1 %v8029_v6 }
 0xb42   : > { %v2882_v23 = vpack.c.bf16 %v2880_v47, %v2879_v61  ;;  %3150 = vmatprep.subr.bf16.mxu1 %v8034_v42 }
 0xb43   : > { %v2881_v51 = vpack.c.bf16 %v2878_v2, %v2877_v62 }
 0xb45   : > { %7640 = vmatprep.mubr.bf16.mxu0 %v2881_v51  ;;  %3151 = vmatpush1.bf16.msra.mxu1 %v8032_v10 }
 0xb46   : > { %7641 = vmatmul.mubr.bf16.vlgmr.msra.gmra.mrb[20].mxu0 %v2882_v23 }
 0xc19   : > { %v7642_v55 = vpop.f32.mrb[20].mxu0 }
 0xc1a   : > { %v2981_v29 = vpop.f32.mrb[21].mxu0  ;;  %v2998_v36 = vadd.f32 %v7642_v55, %v8970_v14  ;;  %v7052_v55 = vld [vmem:[%s10622_s24 + $0x1] ss:$0 sm:$0xff] }
 0xc1b   : > { %v2996_v37 = vadd.f32 %v2981_v29, %v8967_v30  ;;  %v7643_v22 = vpop.f32.mrb[22].mxu0 }
 0xc1c   : > { %v2984_v40 = vpop.f32.mrb[23].mxu0  ;;  %v2999_v46 = vadd.f32 %v7643_v22, %v8979_v57  ;;  %v9050_v49 = vadd.f32 %v7049_v26, %v2998_v36 }
 0xc1d   : > { %v9046_v41 = vadd.f32 %v7049_v26, %v2996_v37  ;;  %v2997_v48 = vadd.f32 %v2984_v40, %v8973_v7  ;;  %v7053_v40 = vld [vmem:[%s10623_s25 + $0x1] ss:$0 sm:$0xff] }
 0xc1e   : > { %v9056_v54 = vadd.f32 %v7049_v26, %v2999_v46  ;;  %v3021_v14 = vsel %vm1566_vm1, %v9050_v49, 0.0 }
 0xc1f   : > { %v9052_v50 = vadd.f32 %v7049_v26, %v2997_v48  ;;  %v3015_v52 = vsel %vm1566_vm1, %v9046_v41, 0.0 }
 0xc20   : > { %3016 = vadd.xlane.f32.xlu0 %v3015_v52  ;;  %v3024_v7 = vsel %vm1566_vm1, %v9056_v54, 0.0 }
 0xc21   : > { %v3018_v30 = vsel %vm1566_vm1, %v9052_v50, 0.0 }
 0xc22   : > { %3019 = vadd.xlane.f32.xlu1 %v3018_v30 }
 0xc24   : > { %3022 = vadd.xlane.f32.xlu0 %v3021_v14 }
 0xc26   : > { %3025 = vadd.xlane.f32.xlu1 %v3024_v7 }
 0xcad   : > { %v3017_v57 = vpop.xlane.xlu0 %3016 }
 0xcae   : > { %v3027_v56 = vmul.f32 0.015625, %v3017_v57 }
 0xcaf   : > { %v3020_v59 = vpop.xlane.xlu1 %3019 }
 0xcb0   : > { %v3028_v20 = vmul.f32 0.015625, %v3020_v59  ;;  %v3031_v27 = vsub.f32 %v9046_v41, %v3027_v56 }
 0xcb1   : > { %v3023_v53 = vpop.xlane.xlu0 %3022 }
 0xcb2   : > { %v3029_v33 = vmul.f32 0.015625, %v3023_v53  ;;  %v3035_v58 = vmul.f32 %v3031_v27, %v3031_v27  ;;  %v3032_v24 = vsub.f32 %v9052_v50, %v3028_v20 }
 0xcb3   : > { %v3026_v45 = vpop.xlane.xlu1 %3025 }
 0xcb4   : > { %v3030_v25 = vmul.f32 0.015625, %v3026_v45  ;;  %v3039_v8 = vsel %vm1566_vm1, %v3035_v58, 0.0  ;;  %v3036_v13 = vmul.f32 %v3032_v24, %v3032_v24  ;;  %v3033_v19 = vsub.f32 %v9050_v49, %v3029_v33 }
 0xcb5   : > { %3040 = vadd.xlane.f32.xlu0 %v3039_v8 }
 0xcb6   : > { %v3042_v32 = vsel %vm1566_vm1, %v3036_v13, 0.0  ;;  %v3037_v60 = vmul.f32 %v3033_v19, %v3033_v19  ;;  %v3034_v39 = vsub.f32 %v9056_v54, %v3030_v25 }
 0xcb7   : > { %3043 = vadd.xlane.f32.xlu1 %v3042_v32 }
 0xcb8   : > { %v3045_v63 = vsel %vm1566_vm1, %v3037_v60, 0.0  ;;  %v3038_v0 = vmul.f32 %v3034_v39, %v3034_v39 }
 0xcb9   : > { %3046 = vadd.xlane.f32.xlu0 %v3045_v63 }
 0xcba   : > { %v3048_v44 = vsel %vm1566_vm1, %v3038_v0, 0.0 }
 0xcbb   : > { %3049 = vadd.xlane.f32.xlu1 %v3048_v44 }
 0xd42   : > { %v3041_v38 = vpop.xlane.xlu0 %3040 }
 0xd43   : > { %v3051_v34 = vmul.f32 0.015625, %v3041_v38 }
 0xd44   : > { %v3044_v28 = vpop.xlane.xlu1 %3043 }
 0xd45   : > { %v3055_v12 = vadd.f32 1e-05, %v3051_v34  ;;  %v3052_v16 = vmul.f32 0.015625, %v3044_v28 }
 0xd46   : > { %v3047_v35 = vpop.xlane.xlu0 %3046 }
 0xd47   : > { %8139 = vrsqrt.f32 %v3055_v12  ;;  %v3056_v17 = vadd.f32 1e-05, %v3052_v16  ;;  %v3053_v61 = vmul.f32 0.015625, %v3047_v35 }
 0xd48   : > { %v3050_v47 = vpop.xlane.xlu1 %3049 }
 0xd49   : > { %8141 = vrsqrt.f32 %v3056_v17  ;;  %v3057_v62 = vadd.f32 1e-05, %v3053_v61  ;;  %v3054_v2 = vmul.f32 0.015625, %v3050_v47 }
 0xd4b   : > { %8143 = vrsqrt.f32 %v3057_v62  ;;  %v3058_v23 = vadd.f32 1e-05, %v3054_v2 }
 0xd4d   : > { %8145 = vrsqrt.f32 %v3058_v23 }
 0xd51   : > { %v8140_v51 = vpop.eup %8139 }
 0xd52   : > { %v3063_v26 = vmul.f32 %v8140_v51, %v3031_v27 }
 0xd53   : > { %v8142_v29 = vpop.eup %8141 }
 0xd54   : > { %v3064_v36 = vmul.f32 %v8142_v29, %v3032_v24  ;;  %v3073_v37 = vmul.f32 %v7052_v55, %v3063_v26 }
 0xd55   : > { %v8144_v22 = vpop.eup %8143 }
 0xd56   : > { %v3074_v46 = vmul.f32 %v7052_v55, %v3064_v36  ;;  %v3083_v52 = vadd.f32 %v7053_v40, %v3073_v37  ;;  %v3065_v14 = vmul.f32 %v8144_v22, %v3033_v19 }
 0xd57   : > { %v8146_v48 = vpop.eup %8145 }
 0xd58   : > { %v3084_v30 = vadd.f32 %v7053_v40, %v3074_v46  ;;  %v3066_v7 = vmul.f32 %v8146_v48, %v3034_v39  ;;  %v3075_v59 = vmul.f32 %v7052_v55, %v3065_v14 }
 0xd5a   : > { %v3087_v57 = vpack.c.bf16 %v3084_v30, %v3083_v52  ;;  %v3076_v56 = vmul.f32 %v7052_v55, %v3066_v7  ;;  %v3085_v27 = vadd.f32 %v7053_v40, %v3075_v59 }
 0xd5c   : > { %7070 = vmatmul.mubr.msk.bf16.vlgmr.msra.gmra.mrb[28].mxu1 %vm1566_vm1, %v3087_v57  ;;  %v3086_v20 = vadd.f32 %v7053_v40, %v3076_v56 }
 0xd5d   : > { %3186 = vmatprep.mubr.bf16.mxu1 %v8308_v31 }
 0xd5e   : > { %v3088_v53 = vpack.c.bf16 %v3086_v20, %v3085_v27 }
 0xd64   : > { %7071 = vmatmul.mubr.msk.bf16.gmra.mrb[32].mxu1 %vm1566_vm1, %v3088_v53 }
 0xe2f   : > { %v3178_v33 = vpop.f32.mrb[28].mxu1 }
 0xe30   : > { %v3180_v58 = vpop.f32.mrb[29].mxu1 }
 0xe31   : > { %v3182_v24 = vpop.f32.mrb[30].mxu1 }
 0xe32   : > { %v3197_v45 = vpack.c.bf16 %v3182_v24, %v3178_v33  ;;  %v3184_v25 = vpop.f32.mrb[31].mxu1 }
 0xe33   : > { %v9105_v8 = vpack.c.bf16 %v3184_v25, %v3180_v58 }
 0xe34   : > { %3203 = vrot.lane.b32.xlu0 %v3197_v45, %s10627_s29  ;;  %7648 = vmatprep.mubr.msk.bf16.mxu1 %vm1848_vm2, %v3197_v45 }
 0xe37   : > { %v3188_v13 = vpop.f32.mrb[32].mxu1 }
 0xe38   : > { %v3190_v19 = vpop.f32.mrb[33].mxu1 }
 0xe39   : > { %v3192_v32 = vpop.f32.mrb[34].mxu1 }
 0xe3a   : > { %v3199_v60 = vpack.c.bf16 %v3192_v32, %v3188_v13  ;;  %v3194_v39 = vpop.f32.mrb[35].mxu1 }
 0xe3b   : > { %v9109_v63 = vpack.c.bf16 %v3194_v39, %v3190_v19 }
 0xe3c   : > { %3209 = vrot.lane.b32.xlu0 %v3199_v60, %s10628_s21  ;;  %3205 = vrot.lane.b32.xlu1 %v3199_v60, %s10627_s29 }
 0xe40   : > { %3235 = vrot.lane.b32.xlu0 %v3197_v45, %s10629_s4  ;;  %3207 = vrot.lane.b32.xlu1 %v3197_v45, %s10628_s21 }
 0xe44   : > { %3237 = vrot.lane.b32.xlu0 %v3199_v60, %s10629_s4  ;;  %3211 = vrot.lane.b32.xlu1 %v3197_v45, %s10630_s2 }
 0xe48   : > { %3213 = vrot.lane.b32.xlu1 %v3199_v60, %s10630_s2 }
 0xea6   : > { %v3204_v0 = vpop.permute.xlu0 %3203 }
 0xea7   : > { %7656 = vmatprep.mubr.msk.bf16.mxu0 %vm1848_vm2, %v3204_v0  ;;  %3300 = vrot.lane.b32.xlu1 %v3204_v0, %s10629_s4 }
 0xeae   : > { %v3210_v44 = vpop.permute.xlu0 %3209  ;;  %v3206_v1 = vpop.permute.xlu1 %3205 }
 0xeaf   : > { %3302 = vrot.lane.b32.xlu1 %v3206_v1, %s10629_s4 }
 0xeb2   : > { %v3236_v3 = vpop.permute.xlu0 %3235  ;;  %v3208_v4 = vpop.permute.xlu1 %3207 }
 0xeb3   : > { %v3246_v18 = vsel %vm1848_vm2, %v3236_v3, 0  ;;  %7798 = vmatprep.subr.msk.bf16.mxu1 %vm1848_vm2, %v3236_v3  ;;  %3365 = vrot.lane.b32.xlu0 %v3208_v4, %s10629_s4 }
 0xeb4   : > { %7645 = vmatpush3.bf16.xpose.msra.mxu1 %v3246_v18 }
 0xeb6   : > { %v3238_v5 = vpop.permute.xlu0 %3237  ;;  %v3212_v6 = vpop.permute.xlu1 %3211 }
 0xeb7   : > { %7799 = vmatprep.subr.msk.bf16.mxu1 %vm1848_vm2, %v3238_v5  ;;  %3367 = vrot.lane.b32.xlu0 %v3210_v44, %s10629_s4  ;;  %v3249_v10 = vsel %vm1848_vm2, %v3238_v5, 0 }
 0xeb8   : > { %3430 = vrot.lane.b32.xlu1 %v3212_v6, %s10629_s4 }
 0xeba   : > { %v3214_v42 = vpop.permute.xlu1 %3213 }
 0xebc   : > { %3432 = vrot.lane.b32.xlu1 %v3214_v42, %s10629_s4  ;;  %7647 = vmatpush3.bf16.xpose.msra.mxu1 %v3249_v10 }
 0xec3   : > { %7649 = vmatmul.mubr.msk.bf16.vlgmr.msra.gmra.mrb[36].mxu1 %vm1848_vm2, %v3199_v60 }
 0xec4   : > { %7664 = vmatprep.mubr.msk.bf16.mxu1 %vm1848_vm2, %v3208_v4 }
 0xf19   : > { %v3301_v38 = vpop.permute.xlu1 %3300 }
 0xf1a   : > { %v3311_v34 = vsel %vm1848_vm2, %v3301_v38, 0  ;;  %7800 = vmatprep.subr.msk.bf16.mxu0 %vm1848_vm2, %v3301_v38 }
 0xf1b   : > { %7653 = vmatpush3.bf16.xpose.msra.mxu0 %v3311_v34 }
 0xf21   : > { %v3303_v28 = vpop.permute.xlu1 %3302 }
 0xf22   : > { %v3314_v12 = vsel %vm1848_vm2, %v3303_v28, 0  ;;  %7801 = vmatprep.subr.msk.bf16.mxu0 %vm1848_vm2, %v3303_v28 }
 0xf23   : > { %7655 = vmatpush3.bf16.xpose.msra.mxu0 %v3314_v12 }
 0xf25   : > { %v3366_v16 = vpop.permute.xlu0 %3365 }
 0xf26   : > { %v3376_v35 = vsel %vm1848_vm2, %v3366_v16, 0  ;;  %7802 = vmatprep.subr.msk.bf16.mxu1 %vm1848_vm2, %v3366_v16 }
 0xf27   : > { %7661 = vmatpush3.bf16.xpose.msra.mxu1 %v3376_v35 }
 0xf29   : > { %v3368_v17 = vpop.permute.xlu0 %3367 }
 0xf2a   : > { %v3431_v61 = vpop.permute.xlu1 %3430  ;;  %7657 = vmatmul.mubr.msk.bf16.vlgmr.msra.gmra.mrb[24].mxu0 %vm1848_vm2, %v3206_v1  ;;  %7803 = vmatprep.subr.msk.bf16.mxu1 %vm1848_vm2, %v3368_v17  ;;  %v3379_v62 = vsel %vm1848_vm2, %v3368_v17, 0 }
 0xf2b   : > { %v3441_v47 = vsel %vm1848_vm2, %v3431_v61, 0  ;;  %7804 = vmatprep.subr.msk.bf16.mxu0 %vm1848_vm2, %v3431_v61  ;;  %7672 = vmatprep.mubr.msk.bf16.mxu0 %vm1848_vm2, %v3212_v6 }
 0xf2c   : > { %7669 = vmatpush3.bf16.xpose.msra.mxu0 %v3441_v47 }
 0xf2e   : > { %v3433_v2 = vpop.permute.xlu1 %3432 }
 0xf2f   : > { %7805 = vmatprep.subr.msk.bf16.mxu0 %vm1848_vm2, %v3433_v2  ;;  %7663 = vmatpush3.bf16.xpose.msra.mxu1 %v3379_v62  ;;  %v3444_v23 = vsel %vm1848_vm2, %v3433_v2, 0 }
 0xf30   : > { %7676 = vmatprep.subr.bf16.mxu1 %v9105_v8 }
 0xf34   : > { %7671 = vmatpush3.bf16.xpose.msra.mxu0 %v3444_v23 }
 0xf36   : > { %7665 = vmatmul.mubr.msk.bf16.vlgmr.msra.gmra.mrb[40].mxu1 %vm1848_vm2, %v3210_v44 }
 0xf37   : > { %7677 = vmatpush3.bf16.msra.mxu1 %v9105_v8 }
 0xf38   : > { %7678 = vmatprep.subr.bf16.mxu1 %v9109_v63 }
 0xf3b   : > { %7673 = vmatmul.mubr.msk.bf16.vlgmr.msra.gmra.mrb[28].mxu0 %vm1848_vm2, %v3214_v42  ;;  %7679 = vmatpush3.bf16.msra.mxu1 %v9109_v63 }
 0xf96   : > { %v7650_v51 = vpop.f32.mrb[36].mxu1 }
 0xf97   : > { %v9152_v55 = vadd.f32 %v7650_v51, %v8714_v9  ;;  %v3285_v26 = vpop.f32.mrb[37].mxu1 }
 0xf98   : > { %v7651_v29 = vpop.f32.mrb[38].mxu1  ;;  %v9155_v36 = vadd.f32 %v3285_v26, %v8716_v11 }
 0xf99   : > { %v3288_v37 = vpop.f32.mrb[39].mxu1  ;;  %v3501_v22 = vsel %vm2105_vm6, %v9152_v55, -inf  ;;  %v9165_v48 = vadd.f32 %v7651_v29, %v8728_v21 }
 0xf9a   : > { %v9160_v40 = vadd.f32 %v3288_v37, %v8721_v15  ;;  %3502 = vmax.xlane.f32.xlu0 %v3501_v22  ;;  %v3495_v52 = vsel %vm2105_vm6, %v9155_v36, -inf }
 0xf9b   : > { %v3504_v30 = vsel %vm2105_vm6, %v9165_v48, -inf }
 0xf9c   : > { %v3498_v46 = vsel %vm2105_vm6, %v9160_v40, -inf }
 0xf9d   : > { %3499 = vmax.xlane.f32.xlu1 %v3498_v46 }
 0xf9e   : > { %3496 = vmax.xlane.f32.xlu0 %v3495_v52 }
 0xfa2   : > { %3505 = vmax.xlane.f32.xlu0 %v3504_v30 }
 0xffd   : > { %v7658_v14 = vpop.f32.mrb[24].mxu0 }
 0xffe   : > { %v9172_v7 = vadd.f32 %v7658_v14, %v8714_v9  ;;  %v3350_v57 = vpop.f32.mrb[25].mxu0 }
 0xfff   : > { %v7659_v56 = vpop.f32.mrb[26].mxu0  ;;  %v9185_v25 = vadd.f32 %v3350_v57, %v8716_v11 }
0x1000   : > { %v9175_v59 = vadd.f32 %v7659_v56, %v8728_v21  ;;  %v3353_v20 = vpop.f32.mrb[27].mxu0  ;;  %v3513_v27 = vsel %vm2105_vm6, %v9172_v7, -inf }
0x1001   : > { %3514 = vmax.xlane.f32.xlu0 %v3513_v27  ;;  %v9193_v60 = vadd.f32 %v3353_v20, %v8721_v15  ;;  %v3507_v4 = vsel %vm2105_vm6, %v9185_v25, -inf }
0x1002   : > { %v3516_v53 = vsel %vm2105_vm6, %v9175_v59, -inf }
0x1003   : > { %3517 = vmax.xlane.f32.xlu1 %v3516_v53  ;;  %v3510_v6 = vsel %vm2105_vm6, %v9193_v60, -inf }
0x1009   : > { %v7666_v33 = vpop.f32.mrb[40].mxu1 }
0x100a   : > { %v9182_v58 = vadd.f32 %v7666_v33, %v8714_v9  ;;  %v3415_v24 = vpop.f32.mrb[41].mxu1 }
0x100b   : > { %v7667_v45 = vpop.f32.mrb[42].mxu1  ;;  %v9198_v1 = vadd.f32 %v3415_v24, %v8716_v11 }
0x100c   : > { %v9188_v13 = vadd.f32 %v7667_v45, %v8728_v21  ;;  %v3418_v19 = vpop.f32.mrb[43].mxu1  ;;  %v3525_v32 = vsel %vm2105_vm6, %v9182_v58, -inf }
0x100d   : > { %3526 = vmax.xlane.f32.xlu0 %v3525_v32  ;;  %v9203_v5 = vadd.f32 %v3418_v19, %v8721_v15  ;;  %v3519_v10 = vsel %vm2105_vm6, %v9198_v1, -inf }
0x100e   : > { %v7674_v39 = vpop.f32.mrb[28].mxu0  ;;  %v3528_v0 = vsel %vm2105_vm6, %v9188_v13, -inf }
0x100f   : > { %v3480_v44 = vpop.f32.mrb[29].mxu0  ;;  %3529 = vmax.xlane.f32.xlu1 %v3528_v0  ;;  %v3522_v38 = vsel %vm2105_vm6, %v9203_v5, -inf  ;;  %v9215_v34 = vadd.f32 %v7674_v39, %v8714_v9 }
0x1010   : > { %v7675_v3 = vpop.f32.mrb[30].mxu0  ;;  %v9208_v42 = vadd.f32 %v3480_v44, %v8716_v11 }
0x1011   : > { %v3483_v18 = vpop.f32.mrb[31].mxu0  ;;  %3508 = vmax.xlane.f32.xlu0 %v3507_v4  ;;  %v3537_v12 = vsel %vm2105_vm6, %v9215_v34, -inf  ;;  %v9230_v47 = vadd.f32 %v7675_v3, %v8728_v21 }
0x1012   : > { %v3531_v28 = vsel %vm2105_vm6, %v9208_v42, -inf  ;;  %v9235_v2 = vadd.f32 %v3483_v18, %v8721_v15 }
0x1013   : > { %3511 = vmax.xlane.f32.xlu1 %v3510_v6  ;;  %v3540_v23 = vsel %vm2105_vm6, %v9230_v47, -inf }
0x1014   : > { %v3534_v26 = vsel %vm2105_vm6, %v9235_v2, -inf }
0x1015   : > { %3520 = vmax.xlane.f32.xlu0 %v3519_v10 }
0x1017   : > { %3523 = vmax.xlane.f32.xlu1 %v3522_v38 }
0x1019   : > { %3532 = vmax.xlane.f32.xlu0 %v3531_v28 }
0x101d   : > { %3538 = vmax.xlane.f32.xlu0 %v3537_v12 }
0x1027   : > { %v3503_v11 = vpop.xlane.xlu0 %3502 }
0x1028   : > { %3219 = vrot.lane.b32.xlu1 %v9109_v63, %s10627_s29  ;;  %v3545_v9 = vsub.f32 %v9152_v55, %v3503_v11 }
0x102a   : > { %v3563_v35 = vmul.f32 1.442695, %v3545_v9 }
0x102b   : > { %v3497_v16 = vpop.xlane.xlu0 %3496 }
0x102c   : > { %3223 = vrot.lane.b32.xlu1 %v9105_v8, %s10628_s21  ;;  %v3543_v17 = vsub.f32 %v9155_v36, %v3497_v16  ;;  %8147 = vpow2.f32 %v3563_v35  ;;  %v3500_v36 = vpop.xlane.xlu1 %3499 }
0x102d   : > { %v3544_v37 = vsub.f32 %v9160_v40, %v3500_v36 }
0x102e   : > { %v3559_v61 = vmul.f32 1.442695, %v3543_v17 }
0x102f   : > { %v3506_v15 = vpop.xlane.xlu0 %3505  ;;  %v3561_v46 = vmul.f32 1.442695, %v3544_v37 }
0x1030   : > { %8149 = vpow2.f32 %v3559_v61  ;;  %v3546_v29 = vsub.f32 %v9165_v48, %v3506_v15 }
0x1032   : > { %v3565_v22 = vmul.f32 1.442695, %v3546_v29 }
0x1033   : > { %3217 = vrot.lane.b32.xlu0 %v9105_v8, %s10627_s29 }
0x1034   : > { %8151 = vpow2.f32 %v3565_v22 }
0x1035   : > { %8153 = vpow2.f32 %v3561_v46 }
0x1036   : > { %v9232_v62 = vpop.eup %8147 }
0x1037   : > { %v3597_v51 = vsel %vm2105_vm6, %v9232_v62, 0.0 }
0x103a   : > { %v9241_v55 = vpop.eup %8149 }
0x103b   : > { %v3591_v21 = vsel %vm2105_vm6, %v9241_v55, 0.0 }
0x103e   : > { %v9251_v52 = vpop.eup %8151 }
0x103f   : > { %v3600_v30 = vsel %vm2105_vm6, %v9251_v52, 0.0  ;;  %v9255_v14 = vpop.eup %8153 }
0x1050   : > { %3541 = vmax.xlane.f32.xlu1 %v3540_v23 }
0x1052   : > { %3598 = vadd.xlane.f32.xlu0 %v3597_v51 }
0x1054   : > { %3535 = vmax.xlane.f32.xlu1 %v3534_v26 }
0x1056   : > { %3592 = vadd.xlane.f32.xlu0 %v3591_v21 }
0x1065   : > { %3229 = vrot.lane.b32.xlu1 %v9105_v8, %s10630_s2  ;;  %v3594_v8 = vsel %vm2105_vm6, %v9255_v14, 0.0 }
0x1089   : > { %3601 = vadd.xlane.f32.xlu1 %v3600_v30 }
0x108d   : > { %3595 = vadd.xlane.f32.xlu1 %v3594_v8 }
0x108e   : > { %v3515_v48 = vpop.xlane.xlu0 %3514 }
0x108f   : > { %v3549_v57 = vsub.f32 %v9172_v7, %v3515_v48 }
0x1090   : > { %v3518_v40 = vpop.xlane.xlu1 %3517 }
0x1091   : > { %v3571_v56 = vmul.f32 1.442695, %v3549_v57  ;;  %v3550_v20 = vsub.f32 %v9175_v59, %v3518_v40 }
0x1093   : > { %8155 = vpow2.f32 %v3571_v56  ;;  %v3573_v27 = vmul.f32 1.442695, %v3550_v20 }
0x1095   : > { %8157 = vpow2.f32 %v3573_v27 }
0x109a   : > { %v3527_v53 = vpop.xlane.xlu0 %3526 }
0x109b   : > { %v3553_v33 = vsub.f32 %v9182_v58, %v3527_v53 }
0x109c   : > { %v3530_v24 = vpop.xlane.xlu1 %3529 }
0x109d   : > { %v9262_v45 = vpop.eup %8155  ;;  %v3579_v19 = vmul.f32 1.442695, %v3553_v33  ;;  %v3554_v32 = vsub.f32 %v9188_v13, %v3530_v24 }
0x109e   : > { %v3509_v39 = vpop.xlane.xlu0 %3508  ;;  %v3609_v7 = vsel %vm2105_vm6, %v9262_v45, 0.0 }
0x109f   : > { %v9267_v0 = vpop.eup %8157  ;;  %8159 = vpow2.f32 %v3579_v19  ;;  %v3581_v59 = vmul.f32 1.442695, %v3554_v32  ;;  %v3547_v44 = vsub.f32 %v9185_v25, %v3509_v39  ;;  %3610 = vadd.xlane.f32.xlu0 %v3609_v7 }
0x10a0   : > { %v3512_v3 = vpop.xlane.xlu1 %3511  ;;  %v3612_v58 = vsel %vm2105_vm6, %v9267_v0, 0.0 }
0x10a1   : > { %8161 = vpow2.f32 %v3581_v59  ;;  %v3567_v4 = vmul.f32 1.442695, %v3547_v44  ;;  %v3548_v18 = vsub.f32 %v9193_v60, %v3512_v3  ;;  %3613 = vadd.xlane.f32.xlu1 %v3612_v58 }
0x10a2   : > { %v3521_v13 = vpop.xlane.xlu0 %3520 }
0x10a3   : > { %8163 = vpow2.f32 %v3567_v4  ;;  %v3569_v6 = vmul.f32 1.442695, %v3548_v18  ;;  %v3551_v10 = vsub.f32 %v9198_v1, %v3521_v13 }
0x10a4   : > { %v3524_v38 = vpop.xlane.xlu1 %3523 }
0x10a5   : > { %8165 = vpow2.f32 %v3569_v6  ;;  %v3575_v28 = vmul.f32 1.442695, %v3551_v10  ;;  %v3552_v25 = vsub.f32 %v9203_v5, %v3524_v38 }
0x10a6   : > { %v3533_v12 = vpop.xlane.xlu0 %3532 }
0x10a7   : > { %8167 = vpow2.f32 %v3575_v28  ;;  %v3577_v11 = vmul.f32 1.442695, %v3552_v25  ;;  %v3555_v60 = vsub.f32 %v9208_v42, %v3533_v12 }
0x10a8   : > { %v9275_v9 = vpop.permute.xlu1 %3219 }
0x10a9   : > { %v9277_v16 = vpop.eup %8159  ;;  %8169 = vpow2.f32 %v3577_v11  ;;  %v3583_v26 = vmul.f32 1.442695, %v3555_v60 }
0x10aa   : > { %v3539_v35 = vpop.xlane.xlu0 %3538  ;;  %v3621_v17 = vsel %vm2105_vm6, %v9277_v16, 0.0 }
0x10ab   : > { %v9282_v1 = vpop.eup %8161  ;;  %v3557_v61 = vsub.f32 %v9215_v34, %v3539_v35  ;;  %3622 = vadd.xlane.f32.xlu0 %v3621_v17 }
0x10ac   : > { %v3224_v5 = vpop.permute.xlu1 %3223  ;;  %v3624_v23 = vsel %vm2105_vm6, %v9282_v1, 0.0 }
0x10ad   : > { %v9287_v51 = vpop.eup %8163  ;;  %v3587_v21 = vmul.f32 1.442695, %v3557_v61  ;;  %3625 = vadd.xlane.f32.xlu1 %v3624_v23  ;;  %7692 = vmatprep.subr.bf16.mxu0 %v3224_v5 }
0x10ae   : > { %v3218_v42 = vpop.permute.xlu0 %3217  ;;  %7693 = vmatpush3.bf16.msra.mxu0 %v3224_v5  ;;  %v3603_v15 = vsel %vm2105_vm6, %v9287_v51, 0.0 }
0x10af   : > { %v9291_v29 = vpop.eup %8165  ;;  %8171 = vpow2.f32 %v3587_v21  ;;  %3604 = vadd.xlane.f32.xlu0 %v3603_v15  ;;  %7684 = vmatprep.subr.bf16.mxu1 %v3218_v42 }
0x10b0   : > { %v3606_v34 = vsel %vm2105_vm6, %v9291_v29, 0.0  ;;  %8173 = vpow2.f32 %v3583_v26 }
0x10b1   : > { %v9295_v36 = vpop.eup %8167  ;;  %3607 = vadd.xlane.f32.xlu1 %v3606_v34 }
0x10b2   : > { %v3615_v37 = vsel %vm2105_vm6, %v9295_v36, 0.0 }
0x10b3   : > { %v9299_v22 = vpop.eup %8169  ;;  %3616 = vadd.xlane.f32.xlu0 %v3615_v37 }
0x10b4   : > { %v3618_v46 = vsel %vm2105_vm6, %v9299_v22, 0.0 }
0x10b5   : > { %3619 = vadd.xlane.f32.xlu1 %v3618_v46 }
0x10b9   : > { %v9303_v30 = vpop.eup %8171 }
0x10ba   : > { %v3633_v8 = vsel %vm2105_vm6, %v9303_v30, 0.0  ;;  %v9307_v48 = vpop.eup %8173 }
0x10bb   : > { %3634 = vadd.xlane.f32.xlu0 %v3633_v8  ;;  %v3627_v57 = vsel %vm2105_vm6, %v9307_v48, 0.0 }
0x10bf   : > { %3628 = vadd.xlane.f32.xlu0 %v3627_v57 }
0x10d5   : > { %3225 = vrot.lane.b32.xlu0 %v9109_v63, %s10628_s21  ;;  %s10632_s21 = smov 32  }
0x10dd   : > { %v3542_v40 = vpop.xlane.xlu1 %3541 }
0x10de   : > { %v3558_v56 = vsub.f32 %v9230_v47, %v3542_v40 }
0x10df   : > { %v3599_v47 = vpop.xlane.xlu0 %3598 }
0x10e0   : > { %v3589_v20 = vmul.f32 1.442695, %v3558_v56 }
0x10e1   : > { %v3536_v27 = vpop.xlane.xlu1 %3535 }
0x10e2   : > { %8175 = vpow2.f32 %v3589_v20  ;;  %v3556_v53 = vsub.f32 %v9235_v2, %v3536_v27 }
0x10e3   : > { %v3593_v2 = vpop.xlane.xlu0 %3592 }
0x10e4   : > { %v3585_v33 = vmul.f32 1.442695, %v3556_v53 }
0x10e5   : > { %v3230_v7 = vpop.permute.xlu1 %3229 }
0x10e6   : > { %8177 = vpow2.f32 %v3585_v33 }
0x10ec   : > { %v9315_v24 = vpop.eup %8175 }
0x10ed   : > { %v3636_v19 = vsel %vm2105_vm6, %v9315_v24, 0.0 }
0x10ee   : > { %3637 = vadd.xlane.f32.xlu1 %v3636_v19 }
0x10f0   : > { %v9319_v32 = vpop.eup %8177 }
0x10f1   : > { %v3630_v39 = vsel %vm2105_vm6, %v9319_v32, 0.0 }
0x10f2   : > { %3631 = vadd.xlane.f32.xlu1 %v3630_v39 }
0x1103   : > { %3231 = vrot.lane.b32.xlu1 %v9109_v63, %s10630_s2 }
0x1116   : > { %v3602_v59 = vpop.xlane.xlu1 %3601 }
0x1117   : > { %8179 = vrcp.f32 %v3602_v59 }
0x1118   : > { %8181 = vrcp.f32 %v3593_v2 }
0x1119   : > { %8183 = vrcp.f32 %v3599_v47 }
0x111a   : > { %v3596_v44 = vpop.xlane.xlu1 %3595 }
0x111b   : > { %8185 = vrcp.f32 %v3596_v44 }
0x1121   : > { %v8180_v3 = vpop.eup %8179 }
0x1122   : > { %v8182_v58 = vpop.eup %8181  ;;  %v3658_v13 = vmul.f32 %v8180_v3, %v9251_v52 }
0x1123   : > { %v8184_v4 = vpop.eup %8183  ;;  %v3655_v6 = vmul.f32 %v8182_v58, %v9241_v55 }
0x1124   : > { %v3657_v63 = vmul.f32 %v8184_v4, %v9232_v62 }
0x1125   : > { %v8186_v18 = vpop.eup %8185 }
0x1126   : > { %v3656_v10 = vmul.f32 %v8186_v18, %v9255_v14  ;;  %v3672_v28 = vpack.c.bf16 %v3658_v13, %v3657_v63 }
0x1128   : > { %v3671_v38 = vpack.c.bf16 %v3656_v10, %v3655_v6 }
0x112a   : > { %7680 = vmatprep.mubr.msk.bf16.mxu1 %vm2105_vm6, %v3671_v38  ;;  %v8037_v38 = vld [vmem:[%s10624_s7 + $0x30] sm:$0xff]  }
0x112b   : > { %7681 = vmatmul.mubr.msk.bf16.vlgmr.msra.gmra.mrb[44].mxu1 %vm2105_vm6, %v3672_v28 }
0x112c   : > { %7685 = vmatpush3.bf16.msra.mxu1 %v3218_v42  ;;  %v3611_v25 = vpop.xlane.xlu0 %3610 }
0x112d   : > { %7686 = vmatprep.subr.bf16.mxu1 %v9275_v9 }
0x112e   : > { %v3614_v52 = vpop.xlane.xlu1 %3613 }
0x112f   : > { %8187 = vrcp.f32 %v3614_v52 }
0x1130   : > { %7687 = vmatpush3.bf16.msra.mxu1 %v9275_v9 }
0x1131   : > { %7700 = vmatprep.subr.bf16.mxu1 %v3230_v7 }
0x1138   : > { %v3623_v12 = vpop.xlane.xlu0 %3622 }
0x1139   : > { %v8188_v35 = vpop.eup %8187 }
0x113a   : > { %v3626_v55 = vpop.xlane.xlu1 %3625  ;;  %v3662_v23 = vmul.f32 %v8188_v35, %v9267_v0 }
0x113c   : > { %v3605_v14 = vpop.xlane.xlu0 %3604 }
0x113d   : > { %8189 = vrcp.f32 %v3605_v14 }
0x113e   : > { %8191 = vrcp.f32 %v3611_v25  ;;  %v3608_v62 = vpop.xlane.xlu1 %3607 }
0x113f   : > { %8193 = vrcp.f32 %v3608_v62  ;;  %v8038_v62 = vld [vmem:[%s10624_s7 + $0x38] sm:$0xff]  }
0x1140   : > { %v3617_v11 = vpop.xlane.xlu0 %3616 }
0x1141   : > { %8195 = vrcp.f32 %v3617_v11 }
0x1142   : > { %8197 = vrcp.f32 %v3626_v55  ;;  %v3620_v60 = vpop.xlane.xlu1 %3619 }
0x1143   : > { %8199 = vrcp.f32 %v3620_v60 }
0x1144   : > { %8201 = vrcp.f32 %v3623_v12 }
0x1147   : > { %v8190_v17 = vpop.eup %8189 }
0x1148   : > { %v8192_v9 = vpop.eup %8191  ;;  %v3635_v61 = vpop.xlane.xlu0 %3634  ;;  %v3659_v26 = vmul.f32 %v8190_v17, %v9287_v51 }
0x1149   : > { %v8194_v5 = vpop.eup %8193  ;;  %v3661_v15 = vmul.f32 %v8192_v9, %v9262_v45 }
0x114a   : > { %v3660_v21 = vmul.f32 %v8194_v5, %v9291_v29 }
0x114b   : > { %v8196_v42 = vpop.eup %8195  ;;  %v3674_v57 = vpack.c.bf16 %v3662_v23, %v3661_v15 }
0x114c   : > { %v8198_v34 = vpop.eup %8197  ;;  %v3629_v37 = vpop.xlane.xlu0 %3628  ;;  %v3673_v46 = vpack.c.bf16 %v3660_v21, %v3659_v26  ;;  %v3663_v56 = vmul.f32 %v8196_v42, %v9295_v36 }
0x114d   : > { %v8200_v8 = vpop.eup %8199  ;;  %v3666_v0 = vmul.f32 %v8198_v34, %v9282_v1 }
0x114e   : > { %v8202_v40 = vpop.eup %8201  ;;  %7688 = vmatprep.mubr.msk.bf16.mxu1 %vm2105_vm6, %v3673_v46  ;;  %v3664_v20 = vmul.f32 %v8200_v8, %v9299_v22 }
0x114f   : > { %7689 = vmatmul.mubr.msk.bf16.vlgmr.msra.gmra.mrb[48].mxu1 %vm2105_vm6, %v3674_v57  ;;  %v3665_v45 = vmul.f32 %v8202_v40, %v9277_v16 }
0x1150   : > { %7701 = vmatpush3.bf16.msra.mxu1 %v3230_v7  ;;  %v3226_v51 = vpop.permute.xlu0 %3225  ;;  %v3675_v29 = vpack.c.bf16 %v3664_v20, %v3663_v56 }
0x1151   : > { %7694 = vmatprep.subr.bf16.mxu0 %v3226_v51  ;;  %v3676_v27 = vpack.c.bf16 %v3666_v0, %v3665_v45 }
0x1152   : > { %7695 = vmatpush3.bf16.msra.mxu0 %v3226_v51  ;;  %7696 = vmatprep.mubr.msk.bf16.mxu0 %vm2105_vm6, %v3675_v29 }
0x1155   : > { %7697 = vmatmul.mubr.msk.bf16.vlgmr.msra.gmra.mrb[32].mxu0 %vm2105_vm6, %v3676_v27 }
0x117b   : > { %v3638_v53 = vpop.xlane.xlu1 %3637 }
0x117c   : > { %8203 = vrcp.f32 %v3638_v53 }
0x117d   : > { %8205 = vrcp.f32 %v3629_v37 }
0x117e   : > { %8207 = vrcp.f32 %v3635_v61 }
0x117f   : > { %v3632_v36 = vpop.xlane.xlu1 %3631 }
0x1180   : > { %8209 = vrcp.f32 %v3632_v36 }
0x1183   : > { %v3232_v1 = vpop.permute.xlu1 %3231 }
0x1184   : > { %7702 = vmatprep.subr.bf16.mxu1 %v3232_v1 }
0x1185   : > { %7703 = vmatpush3.bf16.msra.mxu1 %v3232_v1 }
0x1186   : > { %v8204_v22 = vpop.eup %8203 }
0x1187   : > { %v8206_v33 = vpop.eup %8205  ;;  %v3670_v39 = vmul.f32 %v8204_v22, %v9315_v24 }
0x1188   : > { %v8208_v19 = vpop.eup %8207  ;;  %v3667_v47 = vmul.f32 %v8206_v33, %v9307_v48  ;;  %v8035_v48 = vld [vmem:[%s10624_s7 + $0x20] sm:$0xff]  }
0x1189   : > { %v3669_v2 = vmul.f32 %v8208_v19, %v9303_v30  ;;  %v8036_v30 = vld [vmem:[%s10624_s7 + $0x28] sm:$0xff]   ;;  %7708 = vmatprep.subr.bf16.mxu0 %v8035_v48 }
0x118a   : > { %v8210_v16 = vpop.eup %8209  ;;  %7709 = vmatpush3.bf16.msra.mxu0 %v8035_v48 }
0x118b   : > { %v3668_v7 = vmul.f32 %v8210_v16, %v9319_v32  ;;  %v3678_v44 = vpack.c.bf16 %v3670_v39, %v3669_v2  ;;  %7710 = vmatprep.subr.bf16.mxu0 %v8036_v30 }
0x118d   : > { %v3677_v59 = vpack.c.bf16 %v3668_v7, %v3667_v47 }
0x118e   : > { %7711 = vmatpush3.bf16.msra.mxu0 %v8036_v30 }
0x118f   : > { %7704 = vmatprep.mubr.msk.bf16.mxu1 %vm2105_vm6, %v3677_v59  ;;  %7712 = vmatprep.subr.bf16.mxu0 %v8037_v38 }
0x1190   : > { %7705 = vmatmul.mubr.msk.bf16.vlgmr.msra.gmra.mrb[52].mxu1 %vm2105_vm6, %v3678_v44 }
0x1192   : > { %7713 = vmatpush3.bf16.msra.mxu0 %v8037_v38 }
0x1193   : > { %7714 = vmatprep.subr.bf16.mxu0 %v8038_v62 }
0x1196   : > { %7715 = vmatpush3.bf16.msra.mxu0 %v8038_v62 }
0x11fe   : > { %v7682_v3 = vpop.f32.mrb[44].mxu1 }
0x11ff   : > { %v3719_v58 = vpop.f32.mrb[45].mxu1 }
0x1200   : > { %v7683_v4 = vpop.f32.mrb[46].mxu1 }
0x1201   : > { %v3722_v18 = vpop.f32.mrb[47].mxu1 }
0x1222   : > { %v7690_v13 = vpop.f32.mrb[48].mxu1 }
0x1223   : > { %v3774_v6 = vpop.f32.mrb[49].mxu1 }
0x1224   : > { %v7691_v24 = vpop.f32.mrb[50].mxu1 }
0x1225   : > { %v7965_v32 = vpack.i.bf16 %v7691_v24, %v7690_v13  ;;  %v3777_v10 = vpop.f32.mrb[51].mxu1 }
0x1226   : > { %v7975_v63 = vpack.i.bf16 %v3777_v10, %v3774_v6 }
0x1227   : > { %7966 = vrot.lane.b32.xlu1 %v7965_v32, %s10631_s3 }
0x1228   : > { %v7698_v28 = vpop.f32.mrb[32].mxu0  ;;  %7976 = vrot.lane.b32.xlu0 %v7975_v63, %s10631_s3 }
0x1229   : > { %v3829_v25 = vpop.f32.mrb[33].mxu0 }
0x122a   : > { %v7699_v52 = vpop.f32.mrb[34].mxu0 }
0x122b   : > { %v7970_v12 = vpack.i.bf16 %v7699_v52, %v7698_v28  ;;  %v3832_v55 = vpop.f32.mrb[35].mxu0 }
0x122c   : > { %v7980_v14 = vpack.i.bf16 %v3832_v55, %v3829_v25 }
0x122d   : > { %7971 = vrot.lane.b32.xlu1 %v7970_v12, %s10632_s21 }
0x122e   : > { %7981 = vrot.lane.b32.xlu0 %v7980_v14, %s10632_s21  ;;  %s10635_s21 = sld [smem:[#allocation10_spill]] }
0x1263   : > { %v7706_v11 = vpop.f32.mrb[52].mxu1 }
0x1264   : > { %v3884_v60 = vpop.f32.mrb[53].mxu1 }
0x1265   : > { %v7707_v35 = vpop.f32.mrb[54].mxu1 }
0x1266   : > { %v7990_v17 = vpack.i.bf16 %v7707_v35, %v7706_v11  ;;  %v3887_v9 = vpop.f32.mrb[55].mxu1 }
0x1267   : > { %v7985_v61 = vpack.i.bf16 %v3887_v9, %v3884_v60 }
0x1268   : > { %7991 = vrot.lane.b32.xlu1 %v7990_v17, %s10633_s23 }
0x1269   : > { %7986 = vrot.lane.b32.xlu0 %v7985_v61, %s10633_s23 }
0x1299   : > { %v7967_v5 = vpop.permute.xlu1 %7966 }
0x129a   : > { %v7977_v23 = vpop.permute.xlu0 %7976  ;;  %v7969_v21 = vunpack.i.h.bf16 %v7967_v5  ;;  %v7968_v42 = vunpack.i.l.bf16 %v7967_v5 }
0x129b   : > { %v7979_v34 = vunpack.i.h.bf16 %v7977_v23  ;;  %v7978_v37 = vunpack.i.l.bf16 %v7977_v23 }
0x129c   : > { %v3950_v56 = vsel %vm1848_vm2, %v7683_v4, %v7969_v21  ;;  %v3949_v20 = vsel %vm1848_vm2, %v7682_v3, %v7968_v42 }
0x129d   : > { %v3948_v51 = vsel %vm1848_vm2, %v3722_v18, %v7979_v34  ;;  %v3947_v29 = vsel %vm1848_vm2, %v3719_v58, %v7978_v37  ;;  %v7103_v58 = vld [vmem:[%s10625_s8 + $0x1] ss:$0 sm:$0xff]  ;;  %vm6857_vm2 = vcmask 8192  }
0x129e   : > { %v8039_v37 = vld [vmem:[%s10575_s11 + $0x20] sm:$0xff]  }
0x129f   : > { %v7972_v26 = vpop.permute.xlu1 %7971  ;;  %7720 = vmatprep.subr.bf16.mxu1 %v8039_v37 }
0x12a0   : > { %v7982_v15 = vpop.permute.xlu0 %7981  ;;  %v7974_v46 = vunpack.i.h.bf16 %v7972_v26  ;;  %v7973_v8 = vunpack.i.l.bf16 %v7972_v26  ;;  %7721 = vmatpush3.bf16.msra.mxu1 %v8039_v37 }
0x12a1   : > { %v7984_v57 = vunpack.i.h.bf16 %v7982_v15  ;;  %v7983_v40 = vunpack.i.l.bf16 %v7982_v15 }
0x12a2   : > { %v3953_v36 = vsel %vm2105_vm6, %v3949_v20, %v7973_v8  ;;  %v3954_v1 = vsel %vm2105_vm6, %v3950_v56, %v7974_v46  ;;  %v8040_v46 = vld [vmem:[%s10575_s11 + $0x28] sm:$0xff]   ;;  %v8041_v8 = vld [vmem:[%s10575_s11 + $0x30] sm:$0xff]  }
0x12a3   : > { %v3951_v19 = vsel %vm2105_vm6, %v3947_v29, %v7983_v40  ;;  %v3952_v16 = vsel %vm2105_vm6, %v3948_v51, %v7984_v57  ;;  %7722 = vmatprep.subr.bf16.mxu1 %v8040_v46  ;;  %v8042_v57 = vld [vmem:[%s10575_s11 + $0x38] sm:$0xff]  }
0x12a4   : > { %7723 = vmatpush3.bf16.msra.mxu1 %v8040_v46 }
0x12a5   : > { %7724 = vmatprep.subr.bf16.mxu1 %v8041_v8 }
0x12a8   : > { %7725 = vmatpush3.bf16.msra.mxu1 %v8041_v8 }
0x12a9   : > { %7726 = vmatprep.subr.bf16.mxu1 %v8042_v57 }
0x12ac   : > { %7727 = vmatpush3.bf16.msra.mxu1 %v8042_v57 }
0x12da   : > { %v7992_v0 = vpop.permute.xlu1 %7991 }
0x12db   : > { %v7994_v45 = vunpack.i.h.bf16 %v7992_v0  ;;  %v7993_v27 = vunpack.i.l.bf16 %v7992_v0  ;;  %v7987_v53 = vpop.permute.xlu0 %7986 }
0x12dc   : > { %v7989_v22 = vunpack.i.h.bf16 %v7987_v53  ;;  %v7988_v33 = vunpack.i.l.bf16 %v7987_v53 }
0x12dd   : > { %v3958_v39 = vsel %vm2566_vm8, %v3954_v1, %v7994_v45  ;;  %v3957_v47 = vsel %vm2566_vm8, %v3953_v36, %v7993_v27 }
0x12de   : > { %v3960_v7 = vpack.c.bf16 %v3958_v39, %v3957_v47  ;;  %v3955_v2 = vsel %vm2566_vm8, %v3951_v19, %v7988_v33  ;;  %v3956_v59 = vsel %vm2566_vm8, %v3952_v16, %v7989_v22  ;;  %v7106_v19 = vld [vmem:[%s10626_s9 + $0x1] ss:$0 sm:$0xff] }
0x12df   : > { %v3959_v44 = vpack.c.bf16 %v3956_v59, %v3955_v2  ;;  %v7107_v59 = vld [vmem:[%s10574_s10 + $0x1] ss:$0 sm:$0xff] }
0x12e1   : > { %7716 = vmatprep.mubr.msk.bf16.mxu0 %vm1566_vm1, %v3959_v44 }
0x12e2   : > { %7717 = vmatmul.mubr.msk.bf16.vlgmr.msra.gmra.mrb[36].mxu0 %vm1566_vm1, %v3960_v7 }
0x13b5   : > { %v7718_v3 = vpop.f32.mrb[36].mxu0 }
0x13b6   : > { %v4034_v4 = vpop.f32.mrb[37].mxu0  ;;  %v4051_v18 = vadd.f32 %v7718_v3, %v9050_v49 }
0x13b7   : > { %v4049_v13 = vadd.f32 %v4034_v4, %v9046_v41  ;;  %v7719_v6 = vpop.f32.mrb[38].mxu0 }
0x13b8   : > { %v4037_v48 = vpop.f32.mrb[39].mxu0  ;;  %v9391_v32 = vadd.f32 %v7103_v58, %v4051_v18  ;;  %v4052_v10 = vadd.f32 %v7719_v6, %v9056_v54 }
0x13b9   : > { %v9388_v30 = vadd.f32 %v7103_v58, %v4049_v13  ;;  %v4050_v24 = vadd.f32 %v4037_v48, %v9052_v50 }
0x13ba   : > { %v9400_v41 = vadd.f32 %v7103_v58, %v4052_v10  ;;  %v4075_v28 = vsel %vm1566_vm1, %v9391_v32, 0.0 }
0x13bb   : > { %v9394_v63 = vadd.f32 %v7103_v58, %v4050_v24  ;;  %v4069_v38 = vsel %vm1566_vm1, %v9388_v30, 0.0 }
0x13bc   : > { %4070 = vadd.xlane.f32.xlu0 %v4069_v38  ;;  %v4078_v50 = vsel %vm1566_vm1, %v9400_v41, 0.0 }
0x13bd   : > { %v4072_v49 = vsel %vm1566_vm1, %v9394_v63, 0.0 }
0x13be   : > { %4073 = vadd.xlane.f32.xlu1 %v4072_v49 }
0x13c0   : > { %4076 = vadd.xlane.f32.xlu0 %v4075_v28  ;;  %v8043_v28 = vld [vmem:[%s10577_s13 + $0x40] sm:$0xff]  }
0x13c1   : > { %7732 = vmatprep.subr.bf16.mxu0 %v8043_v28 }
0x13c2   : > { %7733 = vmatpush3.bf16.msra.mxu0 %v8043_v28 }
0x13c4   : > { %4079 = vadd.xlane.f32.xlu0 %v4078_v50  ;;  %v8044_v50 = vld [vmem:[%s10577_s13 + $0x48] sm:$0xff]  }
0x13c5   : > { %7734 = vmatprep.subr.bf16.mxu0 %v8044_v50 }
0x13c6   : > { %7735 = vmatpush3.bf16.msra.mxu0 %v8044_v50 }
0x1449   : > { %v4071_v54 = vpop.xlane.xlu0 %4070 }
0x144a   : > { %v4081_v25 = vmul.f32 0.015625, %v4071_v54  ;;  %v8045_v54 = vld [vmem:[%s10577_s13 + $0x50] sm:$0xff]  }
0x144b   : > { %v4074_v52 = vpop.xlane.xlu1 %4073  ;;  %7736 = vmatprep.subr.bf16.mxu0 %v8045_v54 }
0x144c   : > { %v4085_v12 = vsub.f32 %v9388_v30, %v4081_v25  ;;  %v4082_v55 = vmul.f32 0.015625, %v4074_v52  ;;  %7737 = vmatpush3.bf16.msra.mxu0 %v8045_v54  ;;  %v8046_v25 = vld [vmem:[%s10577_s13 + $0x58] sm:$0xff]   ;;  %v8047_v52 = vld [vmem:[%s10577_s13 + $0x60] sm:$0xff]  }
0x144d   : > { %v4077_v14 = vpop.xlane.xlu0 %4076  ;;  %7738 = vmatprep.subr.bf16.mxu0 %v8046_v25 }
0x144e   : > { %v4086_v62 = vsub.f32 %v9394_v63, %v4082_v55  ;;  %v4083_v11 = vmul.f32 0.015625, %v4077_v14  ;;  %v4089_v60 = vmul.f32 %v4085_v12, %v4085_v12  ;;  %v8049_v55 = vld [vmem:[%s10577_s13 + $0x70] sm:$0xff]   ;;  %v8050_v14 = vld [vmem:[%s10577_s13 + $0x78] sm:$0xff]  }
0x1450   : > { %v4087_v35 = vsub.f32 %v9391_v32, %v4083_v11  ;;  %v4093_v17 = vsel %vm1566_vm1, %v4089_v60, 0.0  ;;  %v4090_v9 = vmul.f32 %v4086_v62, %v4086_v62  ;;  %7739 = vmatpush3.bf16.msra.mxu0 %v8046_v25 }
0x1451   : > { %4094 = vadd.xlane.f32.xlu0 %v4093_v17  ;;  %v4080_v61 = vpop.xlane.xlu0 %4079  ;;  %7740 = vmatprep.subr.bf16.mxu0 %v8047_v52 }
0x1452   : > { %v4084_v5 = vmul.f32 0.015625, %v4080_v61  ;;  %v4096_v23 = vsel %vm1566_vm1, %v4090_v9, 0.0  ;;  %v4091_v26 = vmul.f32 %v4087_v35, %v4087_v35 }
0x1453   : > { %4097 = vadd.xlane.f32.xlu1 %v4096_v23 }
0x1454   : > { %v4088_v21 = vsub.f32 %v9400_v41, %v4084_v5  ;;  %v4099_v42 = vsel %vm1566_vm1, %v4091_v26, 0.0  ;;  %7741 = vmatpush3.bf16.msra.mxu0 %v8047_v52 }
0x1455   : > { %4100 = vadd.xlane.f32.xlu0 %v4099_v42 }
0x1456   : > { %v4092_v15 = vmul.f32 %v4088_v21, %v4088_v21 }
0x1458   : > { %v4102_v34 = vsel %vm1566_vm1, %v4092_v15, 0.0 }
0x1459   : > { %4103 = vadd.xlane.f32.xlu1 %v4102_v34 }
0x14de   : > { %v4095_v40 = vpop.xlane.xlu0 %4094 }
0x14df   : > { %v4105_v56 = vmul.f32 0.015625, %v4095_v40 }
0x14e0   : > { %v4098_v20 = vpop.xlane.xlu1 %4097 }
0x14e1   : > { %v4109_v0 = vadd.f32 1e-05, %v4105_v56  ;;  %v4106_v51 = vmul.f32 0.015625, %v4098_v20 }
0x14e2   : > { %v4101_v29 = vpop.xlane.xlu0 %4100 }
0x14e3   : > { %8211 = vrsqrt.f32 %v4109_v0  ;;  %v4110_v45 = vadd.f32 1e-05, %v4106_v51  ;;  %v4107_v27 = vmul.f32 0.015625, %v4101_v29 }
0x14e5   : > { %8213 = vrsqrt.f32 %v4110_v45  ;;  %v4111_v53 = vadd.f32 1e-05, %v4107_v27 }
0x14e6   : > { %v4104_v36 = vpop.xlane.xlu1 %4103 }
0x14e7   : > { %8215 = vrsqrt.f32 %v4111_v53  ;;  %v4108_v1 = vmul.f32 0.015625, %v4104_v36 }
0x14e9   : > { %v4112_v22 = vadd.f32 1e-05, %v4108_v1 }
0x14eb   : > { %8217 = vrsqrt.f32 %v4112_v22 }
0x14ed   : > { %v8212_v33 = vpop.eup %8211 }
0x14ee   : > { %v4117_v16 = vmul.f32 %v8212_v33, %v4085_v12  ;;  %v8048_v12 = vld [vmem:[%s10577_s13 + $0x68] sm:$0xff]  }
0x14ef   : > { %v8214_v39 = vpop.eup %8213  ;;  %7742 = vmatprep.subr.bf16.mxu0 %v8048_v12 }
0x14f0   : > { %v4118_v47 = vmul.f32 %v8214_v39, %v4086_v62  ;;  %v4127_v7 = vmul.f32 %v7106_v19, %v4117_v16  ;;  %7743 = vmatpush3.bf16.msra.mxu0 %v8048_v12  ;;  %v7117_v62 = vld [vmem:[%s10576_s12 + $0x1] ss:$0 sm:$0xff] }
0x14f1   : > { %v8216_v2 = vpop.eup %8215  ;;  %7744 = vmatprep.subr.bf16.mxu0 %v8049_v55 }
0x14f2   : > { %v4119_v44 = vmul.f32 %v8216_v2, %v4087_v35  ;;  %v4128_v3 = vmul.f32 %v7106_v19, %v4118_v47  ;;  %v4137_v58 = vadd.f32 %v7107_v59, %v4127_v7 }
0x14f4   : > { %v4138_v4 = vadd.f32 %v7107_v59, %v4128_v3  ;;  %v4129_v48 = vmul.f32 %v7106_v19, %v4119_v44  ;;  %7745 = vmatpush3.bf16.msra.mxu0 %v8049_v55 }
0x14f5   : > { %v8218_v18 = vpop.eup %8217  ;;  %7746 = vmatprep.subr.bf16.mxu0 %v8050_v14 }
0x14f6   : > { %v4120_v13 = vmul.f32 %v8218_v18, %v4088_v21  ;;  %v4141_v6 = vpack.c.bf16 %v4138_v4, %v4137_v58  ;;  %v4139_v10 = vadd.f32 %v7107_v59, %v4129_v48 }
0x14f8   : > { %7728 = vmatprep.mubr.msk.bf16.mxu1 %vm1566_vm1, %v4141_v6  ;;  %v4130_v24 = vmul.f32 %v7106_v19, %v4120_v13  ;;  %7747 = vmatpush3.bf16.msra.mxu0 %v8050_v14 }
0x14fa   : > { %v4140_v38 = vadd.f32 %v7107_v59, %v4130_v24 }
0x14fc   : > { %v4142_v49 = vpack.c.bf16 %v4140_v38, %v4139_v10  ;;  %v7149_v38 = vld [vmem:[%s10578_s14 + $0x1] ss:$0 sm:$0xff] }
0x14fe   : > { %7729 = vmatmul.mubr.msk.bf16.vlgmr.msra.gmra.mrb[56].mxu1 %vm1566_vm1, %v4142_v49 }
0x14ff   : > { %5453 = vmatprep.mubr.bf16.mxu1 %v8308_v31 }
0x15d1   : > { %v7730_v11 = vpop.f32.mrb[56].mxu1 }
0x15d2   : > { %v4233_v60 = vadd.f32 %v7730_v11, %v7117_v62  ;;  %v4224_v35 = vpop.f32.mrb[57].mxu1 }
0x15d3   : > { %v4225_v17 = vadd.f32 %v7117_v62, %v4224_v35  ;;  %v7731_v9 = vpop.f32.mrb[58].mxu1 }
0x15d4   : > { %v4245_v61 = vmul.f32 0.044715, %v4233_v60  ;;  %v4236_v5 = vadd.f32 %v7731_v9, %v7117_v62  ;;  %v4227_v23 = vpop.f32.mrb[59].mxu1  ;;  %v4241_v7 = vmul.f32 0.5, %v4233_v60 }
0x15d5   : > { %v4243_v26 = vmul.f32 0.044715, %v4225_v17  ;;  %v4228_v21 = vadd.f32 %v7117_v62, %v4227_v23  ;;  %v4239_v44 = vmul.f32 0.5, %v4225_v17 }
0x15d6   : > { %v4249_v42 = vmul.f32 %v4245_v61, %v4233_v60  ;;  %v4246_v15 = vmul.f32 0.044715, %v4236_v5  ;;  %v4242_v2 = vmul.f32 0.5, %v4236_v5 }
0x15d7   : > { %v4247_v34 = vmul.f32 %v4243_v26, %v4225_v17  ;;  %v4244_v37 = vmul.f32 0.044715, %v4228_v21  ;;  %v4240_v3 = vmul.f32 0.5, %v4228_v21 }
0x15d8   : > { %v4253_v46 = vmul.f32 %v4249_v42, %v4233_v60  ;;  %v4250_v8 = vmul.f32 %v4246_v15, %v4236_v5  ;;  %v4482_v15 = vld [vmem:[%s10581_s17] sm:$0xff] }
0x15d9   : > { %v4251_v57 = vmul.f32 %v4247_v34, %v4225_v17  ;;  %v4248_v40 = vmul.f32 %v4244_v37, %v4228_v21  ;;  %v4498_v34 = vld [vmem:[%s10581_s17 + $0x80] sm:$0xff]  ;;  %v4484_v37 = vld [vmem:[%s10581_s17 + $0x10] sm:$0xff] }
0x15da   : > { %v4257_v56 = vadd.f32 %v4253_v46, %v4233_v60  ;;  %v4254_v20 = vmul.f32 %v4250_v8, %v4236_v5  ;;  %v7153_v46 = vcombine.high %v4482_v15, %v4498_v34  ;;  %v4500_v8 = vld [vmem:[%s10581_s17 + $0x90] sm:$0xff] }
0x15db   : > { %v4252_v0 = vmul.f32 %v4248_v40, %v4228_v21  ;;  %v4255_v51 = vadd.f32 %v4251_v57, %v4225_v17  ;;  %v7152_v57 = vcombine.low %v4482_v15, %v4498_v34  ;;  %v7156_v40 = vcombine.low %v4484_v37, %v4500_v8  ;;  %v9579_v15 = vld [vmem:[%s10580_s16] ss:$0 sm:$0xff] }
0x15dc   : > { %v4261_v29 = vmul.f32 0.7978846, %v4257_v56  ;;  %v4258_v45 = vadd.f32 %v4254_v20, %v4236_v5  ;;  %v7157_v56 = vcombine.high %v4484_v37, %v4500_v8  ;;  %5421 = vmatprep.subr.bf16.mxu1 %v7153_v46  ;;  %v4514_v20 = vld [vmem:[%s10581_s17 + $0x100] sm:$0xff] }
0x15dd   : > { %v4256_v27 = vadd.f32 %v4252_v0, %v4228_v21  ;;  %v4259_v53 = vmul.f32 0.7978846, %v4255_v51  ;;  %5422 = vmatpush1.bf16.msra.mxu1 %v7152_v57  ;;  %v4530_v0 = vld [vmem:[%s10581_s17 + $0x180] sm:$0xff]  ;;  %v4516_v51 = vld [vmem:[%s10581_s17 + $0x110] sm:$0xff] }
0x15de   : > { %8219 = vtanh.f32 %v4261_v29  ;;  %v4262_v36 = vmul.f32 0.7978846, %v4258_v45  ;;  %5507 = vmatprep.subr.bf16.mxu0 %v7157_v56  ;;  %v7185_v29 = vcombine.high %v4514_v20, %v4530_v0  ;;  %v4532_v45 = vld [vmem:[%s10581_s17 + $0x190] sm:$0xff]  ;;  %v9586_v46 = vld [vmem:[%s10584_s20] ss:$0 sm:$0xff] }
0x15df   : > { %v4260_v1 = vmul.f32 0.7978846, %v4256_v27  ;;  %8221 = vtanh.f32 %v4259_v53  ;;  %v7184_v27 = vcombine.low %v4514_v20, %v4530_v0  ;;  %v7188_v53 = vcombine.low %v4516_v51, %v4532_v45  ;;  %v4518_v20 = vld [vmem:[%s10581_s17 + $0x120] sm:$0xff] }
0x15e0   : > { %8223 = vtanh.f32 %v4262_v36  ;;  %v7189_v36 = vcombine.high %v4516_v51, %v4532_v45  ;;  %5423 = vmatprep.subr.bf16.mxu1 %v7185_v29  ;;  %v4534_v0 = vld [vmem:[%s10581_s17 + $0x1a0] sm:$0xff] }
0x15e1   : > { %8225 = vtanh.f32 %v4260_v1  ;;  %5424 = vmatpush1.bf16.msra.mxu1 %v7184_v27  ;;  %v4546_v1 = vld [vmem:[%s10581_s17 + $0x200] sm:$0xff] }
0x15e8   : > { %v8220_v22 = vpop.eup %8219 }
0x15e9   : > { %v8222_v33 = vpop.eup %8221  ;;  %v4269_v19 = vadd.f32 1.0, %v8220_v22  ;;  %v4562_v22 = vld [vmem:[%s10581_s17 + $0x280] sm:$0xff] }
0x15ea   : > { %v8224_v16 = vpop.eup %8223  ;;  %v4267_v39 = vadd.f32 1.0, %v8222_v33  ;;  %v4548_v33 = vld [vmem:[%s10581_s17 + $0x210] sm:$0xff] }
0x15eb   : > { %v8226_v47 = vpop.eup %8225  ;;  %v4270_v59 = vadd.f32 1.0, %v8224_v16  ;;  %v4273_v4 = vmul.f32 %v4269_v19, %v4241_v7  ;;  %v7217_v19 = vcombine.high %v4546_v1, %v4562_v22  ;;  %v4564_v16 = vld [vmem:[%s10581_s17 + $0x290] sm:$0xff] }
0x15ec   : > { %v4268_v58 = vadd.f32 1.0, %v8226_v47  ;;  %v4271_v13 = vmul.f32 %v4267_v39, %v4239_v44  ;;  %v7216_v39 = vcombine.low %v4546_v1, %v4562_v22  ;;  %v7220_v47 = vcombine.low %v4548_v33, %v4564_v16  ;;  %v4580_v44 = vld [vmem:[%s10581_s17 + $0x310] sm:$0xff]  ;;  %v4563_v1 = vld [vmem:[%s10581_s17 + $0x288] sm:$0xff]  ;;  %v4550_v22 = vld [vmem:[%s10581_s17 + $0x220] sm:$0xff] }
0x15ed   : > { %v4274_v18 = vmul.f32 %v4270_v59, %v4242_v2  ;;  %v7221_v7 = vcombine.high %v4548_v33, %v4564_v16  ;;  %5425 = vmatprep.subr.bf16.mxu1 %v7217_v19  ;;  %v4578_v2 = vld [vmem:[%s10581_s17 + $0x300] sm:$0xff] }
0x15ee   : > { %v4272_v6 = vmul.f32 %v4268_v58, %v4240_v3  ;;  %5426 = vmatpush1.bf16.msra.mxu1 %v7216_v39  ;;  %v4594_v59 = vld [vmem:[%s10581_s17 + $0x380] sm:$0xff]  ;;  %v7192_v39 = vcombine.low %v4518_v20, %v4534_v0 }
0x15ef   : > { %v4276_v48 = vpack.c.bf16 %v4274_v18, %v4273_v4  ;;  %v7248_v3 = vcombine.low %v4578_v2, %v4594_v59  ;;  %v7249_v58 = vcombine.high %v4578_v2, %v4594_v59  ;;  %v4596_v4 = vld [vmem:[%s10581_s17 + $0x390] sm:$0xff]  ;;  %v9541_v18 = vld [vmem:[%s10581_s17 + $0x8] sm:$0xff]  ;;  %v4566_v33 = vld [vmem:[%s10581_s17 + $0x2a0] sm:$0xff] }
0x15f0   : > { %v4275_v24 = vpack.c.bf16 %v4272_v6, %v4271_v13  ;;  %v9546_v13 = vld [vmem:[%s10581_s17 + $0x88] sm:$0xff]  ;;  %v7252_v6 = vcombine.low %v4580_v44, %v4596_v4 }
0x15f1   : > { %5427 = vmatprep.subr.bf16.mxu1 %v7249_v58  ;;  %v4579_v2 = vld [vmem:[%s10581_s17 + $0x308] sm:$0xff] }
0x15f2   : > { %7748 = vmatprep.mubr.bf16.mxu0 %v4275_v24  ;;  %v7154_v24 = vcombine.low %v9541_v18, %v9546_v13  ;;  %5428 = vmatpush1.bf16.msra.mxu1 %v7248_v3  ;;  %v4595_v59 = vld [vmem:[%s10581_s17 + $0x388] sm:$0xff]  ;;  %v4598_v3 = vld [vmem:[%s10581_s17 + $0x3a0] sm:$0xff] }
0x15f3   : > { %7749 = vmatmul.mubr.bf16.vlgmr.msra.gmra.mrb[40].mxu0 %v4276_v48  ;;  %v7253_v48 = vcombine.high %v4580_v44, %v4596_v4  ;;  %v4582_v44 = vld [vmem:[%s10581_s17 + $0x320] sm:$0xff]  ;;  %v7224_v4 = vcombine.low %v4550_v22, %v4566_v33 }
0x15f4   : > { %5539 = vmatprep.mubr.bf16.mxu0 %v8308_v31  ;;  %5508 = vmatpush1.bf16.msra.mxu0 %v7156_v40 }
0x15f5   : > { %5509 = vmatprep.subr.bf16.mxu0 %v7189_v36  ;;  %v7193_v36 = vcombine.high %v4518_v20, %v4534_v0  ;;  %v4487_v0 = vld [vmem:[%s10581_s17 + $0x28] sm:$0xff] }
0x15f8   : > { %5510 = vmatpush1.bf16.msra.mxu0 %v7188_v53  ;;  %v4547_v53 = vld [vmem:[%s10581_s17 + $0x208] sm:$0xff] }
0x15f9   : > { %5511 = vmatprep.subr.bf16.mxu0 %v7221_v7  ;;  %v7225_v7 = vcombine.high %v4550_v22, %v4566_v33  ;;  %v7218_v58 = vcombine.low %v4547_v53, %v4563_v1  ;;  %v4519_v33 = vld [vmem:[%s10581_s17 + $0x128] sm:$0xff] }
0x15fc   : > { %5512 = vmatpush1.bf16.msra.mxu0 %v7220_v47  ;;  %v7219_v47 = vcombine.high %v4547_v53, %v4563_v1 }
0x15fd   : > { %5513 = vmatprep.subr.bf16.mxu0 %v7253_v48  ;;  %v4501_v48 = vld [vmem:[%s10581_s17 + $0x98] sm:$0xff] }
0x1600   : > { %5514 = vmatpush1.bf16.msra.mxu0 %v7252_v6  ;;  %v4485_v6 = vld [vmem:[%s10581_s17 + $0x18] sm:$0xff] }
0x16c6   : > { %v7750_v10 = vpop.f32.mrb[40].mxu0 }
0x16c7   : > { %v4393_v49 = vadd.f32 %v7750_v10, %v9391_v32  ;;  %v4376_v28 = vpop.f32.mrb[41].mxu0  ;;  %v7155_v10 = vcombine.high %v9541_v18, %v9546_v13  ;;  %v7251_v18 = vcombine.high %v4579_v2, %v4595_v59  ;;  %v7257_v13 = vcombine.high %v4582_v44, %v4598_v3 }
0x16c8   : > { %v4391_v50 = vadd.f32 %v4376_v28, %v9388_v30  ;;  %v7751_v54 = vpop.f32.mrb[42].mxu0 }
0x16c9   : > { %v9468_v25 = vadd.f32 %v7149_v38, %v4393_v49  ;;  %v4394_v52 = vadd.f32 %v7751_v54, %v9400_v41  ;;  %v4379_v12 = vpop.f32.mrb[43].mxu0  ;;  %v4502_v49 = vld [vmem:[%s10581_s17 + $0xa0] sm:$0xff]  ;;  %5464 = vmatprep.subr.bf16.mxu1 %v7155_v10  ;;  %v4504_v10 = vld [vmem:[%s10581_s17 + $0xb0] sm:$0xff] }
0x16ca   : > { %v4403_v55 = vadd.f32 %v7149_v38, %v4391_v50  ;;  %v4392_v14 = vadd.f32 %v4379_v12, %v9394_v63 }
0x16cb   : > { %v9472_v62 = vadd.f32 %v7149_v38, %v4394_v52  ;;  %v4415_v21 = vsel %vm1566_vm1, %v9468_v25, 0.0 }
0x16cc   : > { %v4404_v11 = vadd.f32 %v7149_v38, %v4392_v14  ;;  %v4409_v60 = vsel %vm1566_vm1, %v4403_v55, 0.0  ;;  %v4486_v38 = vld [vmem:[%s10581_s17 + $0x20] sm:$0xff] }
0x16cd   : > { %4410 = vadd.xlane.f32.xlu0 %v4409_v60  ;;  %v4418_v42 = vsel %vm1566_vm1, %v9472_v62, 0.0  ;;  %v7160_v28 = vcombine.low %v4486_v38, %v4502_v49  ;;  %v7161_v50 = vcombine.high %v4486_v38, %v4502_v49  ;;  %v7250_v38 = vcombine.low %v4579_v2, %v4595_v59 }
0x16ce   : > { %v4412_v32 = vsel %vm1566_vm1, %v4404_v11, 0.0  ;;  %v7256_v49 = vcombine.low %v4582_v44, %v4598_v3  ;;  %v4551_v44 = vld [vmem:[%s10581_s17 + $0x228] sm:$0xff] }
0x16cf   : > { %4413 = vadd.xlane.f32.xlu1 %v4412_v32  ;;  %5593 = vmatprep.subr.bf16.mxu0 %v7161_v50  ;;  %v4567_v3 = vld [vmem:[%s10581_s17 + $0x2a8] sm:$0xff] }
0x175a   : > { %v4411_v35 = vpop.xlane.xlu0 %4410 }
0x175b   : > { %v4421_v30 = vmul.f32 0.015625, %v4411_v35 }
0x175c   : > { %v4414_v17 = vpop.xlane.xlu1 %4413 }
0x175d   : > { %v9476_v9 = vsub.f32 %v4403_v55, %v4421_v30  ;;  %v4422_v61 = vmul.f32 0.015625, %v4414_v17 }
0x175f   : > { %v9478_v41 = vsub.f32 %v4404_v11, %v4422_v61  ;;  %v4429_v63 = vmul.f32 %v9476_v9, %v9476_v9 }
0x1761   : > { %v4433_v5 = vsel %vm1566_vm1, %v4429_v63, 0.0  ;;  %v4430_v23 = vmul.f32 %v9478_v41, %v9478_v41 }
0x1762   : > { %4434 = vadd.xlane.f32.xlu0 %v4433_v5 }
0x1763   : > { %v4436_v26 = vsel %vm1566_vm1, %v4430_v23, 0.0 }
0x1764   : > { %4437 = vadd.xlane.f32.xlu1 %v4436_v26 }
0x1766   : > { %4416 = vadd.xlane.f32.xlu0 %v4415_v21 }
0x1768   : > { %4419 = vadd.xlane.f32.xlu1 %v4418_v42 }
0x17ef   : > { %v4435_v54 = vpop.xlane.xlu0 %4434 }
0x17f0   : > { %v4445_v52 = vmul.f32 0.015625, %v4435_v54  ;;  %v4517_v54 = vld [vmem:[%s10581_s17 + $0x118] sm:$0xff] }
0x17f1   : > { %v4438_v12 = vpop.xlane.xlu1 %4437 }
0x17f2   : > { %v4449_v55 = vadd.f32 1e-05, %v4445_v52  ;;  %v4446_v14 = vmul.f32 0.015625, %v4438_v12  ;;  %v4533_v52 = vld [vmem:[%s10581_s17 + $0x198] sm:$0xff]  ;;  %v4520_v12 = vld [vmem:[%s10581_s17 + $0x130] sm:$0xff] }
0x17f3   : > { %v4417_v11 = vpop.xlane.xlu0 %4416 }
0x17f4   : > { %8227 = vrsqrt.f32 %v4449_v55  ;;  %v4450_v60 = vadd.f32 1e-05, %v4446_v14  ;;  %v4423_v32 = vmul.f32 0.015625, %v4417_v11  ;;  %v4536_v55 = vld [vmem:[%s10581_s17 + $0x1b0] sm:$0xff]  ;;  %v7158_v14 = vcombine.low %v4485_v6, %v4501_v48 }
0x17f5   : > { %v4420_v35 = vpop.xlane.xlu1 %4419 }
0x17f6   : > { %8229 = vrsqrt.f32 %v4450_v60  ;;  %v9559_v30 = vsub.f32 %v9468_v25, %v4423_v32  ;;  %v4424_v17 = vmul.f32 0.015625, %v4420_v35  ;;  %v9573_v25 = vld [vmem:[%s10579_s15] ss:$0 sm:$0xff]  ;;  %v7191_v60 = vcombine.high %v4517_v54, %v4533_v52  ;;  %v4549_v35 = vld [vmem:[%s10581_s17 + $0x218] sm:$0xff] }
0x17f7   : > { %v7197_v32 = vcombine.high %v4520_v12, %v4536_v55 }
0x17f8   : > { %v9562_v61 = vsub.f32 %v9472_v62, %v4424_v17  ;;  %v4431_v63 = vmul.f32 %v9559_v30, %v9559_v30  ;;  %v4565_v17 = vld [vmem:[%s10581_s17 + $0x298] sm:$0xff] }
0x17fa   : > { %v4439_v5 = vsel %vm1566_vm1, %v4431_v63, 0.0  ;;  %v4432_v23 = vmul.f32 %v9562_v61, %v9562_v61  ;;  %v4552_v63 = vld [vmem:[%s10581_s17 + $0x230] sm:$0xff] }
0x17fb   : > { %4440 = vadd.xlane.f32.xlu0 %v4439_v5  ;;  %v4568_v5 = vld [vmem:[%s10581_s17 + $0x2b0] sm:$0xff] }
0x17fc   : > { %v4442_v26 = vsel %vm1566_vm1, %v4432_v23, 0.0  ;;  %v7190_v23 = vcombine.low %v4517_v54, %v4533_v52 }
0x17fd   : > { %4443 = vadd.xlane.f32.xlu1 %v4442_v26  ;;  %v7196_v26 = vcombine.low %v4520_v12, %v4536_v55  ;;  %v4489_v12 = vld [vmem:[%s10581_s17 + $0x38] sm:$0xff] }
0x17fe   : > { %v8228_v21 = vpop.eup %8227  ;;  %v4505_v55 = vld [vmem:[%s10581_s17 + $0xb8] sm:$0xff] }
0x17ff   : > { %v4457_v62 = vmul.f32 %v8228_v21, %v9476_v9  ;;  %v4515_v9 = vld [vmem:[%s10581_s17 + $0x108] sm:$0xff]  ;;  %v7223_v21 = vcombine.high %v4549_v35, %v4565_v17 }
0x1800   : > { %v8230_v42 = vpop.eup %8229 }
0x1801   : > { %v4458_v34 = vmul.f32 %v8230_v42, %v9478_v41  ;;  %v4467_v37 = vmul.f32 %v9573_v25, %v4457_v62  ;;  %v4531_v41 = vld [vmem:[%s10581_s17 + $0x188] sm:$0xff]  ;;  %v7229_v62 = vcombine.high %v4552_v63, %v4568_v5  ;;  %v4581_v42 = vld [vmem:[%s10581_s17 + $0x318] sm:$0xff] }
0x1802   : > { %v7187_v27 = vcombine.high %v4515_v9, %v4531_v41  ;;  %v7186_v16 = vcombine.low %v4515_v9, %v4531_v41  ;;  %v7222_v9 = vcombine.low %v4549_v35, %v4565_v17  ;;  %v7228_v41 = vcombine.low %v4552_v63, %v4568_v5  ;;  %v4521_v63 = vld [vmem:[%s10581_s17 + $0x138] sm:$0xff] }
0x1803   : > { %v4468_v8 = vmul.f32 %v9573_v25, %v4458_v34  ;;  %v9590_v57 = vadd.f32 %v9579_v15, %v4467_v37  ;;  %v4597_v34 = vld [vmem:[%s10581_s17 + $0x398] sm:$0xff]  ;;  %v4584_v37 = vld [vmem:[%s10581_s17 + $0x330] sm:$0xff]  ;;  %v7167_v35 = vcombine.high %v4489_v12, %v4505_v55 }
0x1804   : > { %v7254_v53 = vcombine.low %v4581_v42, %v4597_v34  ;;  %v4537_v5 = vld [vmem:[%s10581_s17 + $0x1b8] sm:$0xff] }
0x1805   : > { %v6487_v40 = vmul.f32 %v9586_v46, %v9590_v57  ;;  %v9601_v56 = vadd.f32 %v9579_v15, %v4468_v8  ;;  %v4600_v8 = vld [vmem:[%s10581_s17 + $0x3b0] sm:$0xff] }
0x1806   : > { %v7261_v20 = vcombine.high %v4584_v37, %v4600_v8 }
0x1807   : > { %v6491_v51 = vsel %vm1566_vm1, %v6487_v40, 0.0  ;;  %v9612_v29 = vpack.c.bf16 %v9601_v56, %v9590_v57  ;;  %v6488_v45 = vmul.f32 %v9586_v46, %v9601_v56  ;;  %v7255_v40 = vcombine.high %v4581_v42, %v4597_v34 }
0x1808   : > { %6492 = vadd.xlane.f32.xlu0 %v6491_v51  ;;  %v4503_v51 = vld [vmem:[%s10581_s17 + $0xa8] sm:$0xff]  ;;  %v7199_v42 = vcombine.high %v4521_v63, %v4537_v5 }
0x1809   : > { %7280 = vmatmul.mubr.msk.bf16.vlgmr.msra.gmra.mrb[60].mxu1 %vm1566_vm1, %v9612_v29  ;;  %7282 = vmatmul.mubr.msk.bf16.vlgmr.msra.gmra.mrb[44].mxu0 %vm1566_vm1, %v9612_v29  ;;  %v6494_v19 = vsel %vm1566_vm1, %v6488_v45, 0.0  ;;  %v4490_v45 = vld [vmem:[%s10581_s17 + $0x40] sm:$0xff]  ;;  %v7163_v1 = vcombine.high %v4487_v0, %v4503_v51 }
0x180a   : > { %5465 = vmatpush1.bf16.msra.mxu1 %v7154_v24  ;;  %5594 = vmatpush1.bf16.msra.mxu0 %v7160_v28  ;;  %v4488_v24 = vld [vmem:[%s10581_s17 + $0x30] sm:$0xff]  ;;  %v7159_v28 = vcombine.high %v4485_v6, %v4501_v48  ;;  %v7227_v6 = vcombine.high %v4551_v44, %v4567_v3 }
0x180b   : > { %6495 = vadd.xlane.f32.xlu1 %v6494_v19  ;;  %5466 = vmatprep.subr.bf16.mxu1 %v7187_v27  ;;  %v7165_v50 = vcombine.high %v4488_v24, %v4504_v10  ;;  %v7164_v11 = vcombine.low %v4488_v24, %v4504_v10  ;;  %v4506_v27 = vld [vmem:[%s10581_s17 + $0xc0] sm:$0xff]  ;;  %v4535_v19 = vld [vmem:[%s10581_s17 + $0x1a8] sm:$0xff] }
0x180c   : > { %5595 = vmatprep.subr.bf16.mxu0 %v7193_v36  ;;  %5496 = vmatprep.mubr.bf16.mxu1 %v8308_v31  ;;  %v7260_v36 = vcombine.low %v4584_v37, %v4600_v8  ;;  %v7169_v22 = vcombine.high %v4490_v45, %v4506_v27  ;;  %v7195_v2 = vcombine.high %v4519_v33, %v4535_v19  ;;  %v4583_v24 = vld [vmem:[%s10581_s17 + $0x328] sm:$0xff]  ;;  %v4553_v37 = vld [vmem:[%s10581_s17 + $0x238] sm:$0xff] }
0x180d   : > { %5625 = vmatprep.mubr.bf16.mxu0 %v8308_v31  ;;  %v4599_v10 = vld [vmem:[%s10581_s17 + $0x3a8] sm:$0xff]  ;;  %v4569_v8 = vld [vmem:[%s10581_s17 + $0x2b8] sm:$0xff] }
0x180e   : > { %5467 = vmatpush1.bf16.msra.mxu1 %v7186_v16  ;;  %5596 = vmatpush1.bf16.msra.mxu0 %v7192_v39  ;;  %v4522_v16 = vld [vmem:[%s10581_s17 + $0x140] sm:$0xff]  ;;  %v7259_v54 = vcombine.high %v4583_v24, %v4599_v10 }
0x180f   : > { %5468 = vmatprep.subr.bf16.mxu1 %v7219_v47  ;;  %5597 = vmatprep.subr.bf16.mxu0 %v7225_v7  ;;  %v4538_v39 = vld [vmem:[%s10581_s17 + $0x1c0] sm:$0xff]  ;;  %v7162_v47 = vcombine.low %v4487_v0, %v4503_v51  ;;  %v7168_v7 = vcombine.low %v4490_v45, %v4506_v27  ;;  %v7231_v0 = vcombine.high %v4553_v37, %v4569_v8  ;;  %v4585_v45 = vld [vmem:[%s10581_s17 + $0x338] sm:$0xff] }
0x1810   : > { %v7201_v59 = vcombine.high %v4522_v16, %v4538_v39  ;;  %v4601_v27 = vld [vmem:[%s10581_s17 + $0x3b8] sm:$0xff] }
0x1812   : > { %5469 = vmatpush1.bf16.msra.mxu1 %v7218_v58  ;;  %5598 = vmatpush1.bf16.msra.mxu0 %v7224_v4  ;;  %v4554_v58 = vld [vmem:[%s10581_s17 + $0x240] sm:$0xff] }
0x1813   : > { %5470 = vmatprep.subr.bf16.mxu1 %v7251_v18  ;;  %5599 = vmatprep.subr.bf16.mxu0 %v7257_v13  ;;  %v4570_v4 = vld [vmem:[%s10581_s17 + $0x2c0] sm:$0xff]  ;;  %v7194_v18 = vcombine.low %v4519_v33, %v4535_v19  ;;  %v7200_v13 = vcombine.low %v4522_v16, %v4538_v39  ;;  %v7263_v33 = vcombine.high %v4585_v45, %v4601_v27  ;;  %v4491_v16 = vld [vmem:[%s10581_s17 + $0x48] sm:$0xff] }
0x1814   : > { %v7233_v48 = vcombine.high %v4554_v58, %v4570_v4  ;;  %v4507_v39 = vld [vmem:[%s10581_s17 + $0xc8] sm:$0xff] }
0x1816   : > { %5471 = vmatpush1.bf16.msra.mxu1 %v7250_v38  ;;  %5600 = vmatpush1.bf16.msra.mxu0 %v7256_v49  ;;  %v4586_v38 = vld [vmem:[%s10581_s17 + $0x340] sm:$0xff] }
0x1817   : > { %5550 = vmatprep.subr.bf16.mxu1 %v7159_v28  ;;  %5679 = vmatprep.subr.bf16.mxu0 %v7165_v50  ;;  %v4602_v49 = vld [vmem:[%s10581_s17 + $0x3c0] sm:$0xff]  ;;  %v7226_v28 = vcombine.low %v4551_v44, %v4567_v3  ;;  %v7232_v50 = vcombine.low %v4554_v58, %v4570_v4  ;;  %v7171_v44 = vcombine.high %v4491_v16, %v4507_v39  ;;  %v4523_v58 = vld [vmem:[%s10581_s17 + $0x148] sm:$0xff] }
0x1818   : > { %v7265_v52 = vcombine.high %v4586_v38, %v4602_v49  ;;  %v4539_v4 = vld [vmem:[%s10581_s17 + $0x1c8] sm:$0xff] }
0x1819   : > { %7281 = vmatmul.mubr.msk.bf16.vlgmr.msra.gmra.mrb[64].mxu1 %vm1566_vm1, %v9612_v29  ;;  %7284 = vmatmul.mubr.msk.bf16.vlgmr.msra.gmra.mrb[48].mxu0 %vm1566_vm1, %v9612_v29 }
0x181a   : > { %5551 = vmatpush1.bf16.msra.mxu1 %v7158_v14  ;;  %5680 = vmatpush1.bf16.msra.mxu0 %v7164_v11  ;;  %v4492_v14 = vld [vmem:[%s10581_s17 + $0x50] sm:$0xff] }
0x181b   : > { %5552 = vmatprep.subr.bf16.mxu1 %v7191_v60  ;;  %5681 = vmatprep.subr.bf16.mxu0 %v7197_v32  ;;  %v4508_v11 = vld [vmem:[%s10581_s17 + $0xd0] sm:$0xff]  ;;  %v7258_v60 = vcombine.low %v4583_v24, %v4599_v10  ;;  %v7264_v32 = vcombine.low %v4586_v38, %v4602_v49  ;;  %v7203_v24 = vcombine.high %v4523_v58, %v4539_v4  ;;  %v4555_v38 = vld [vmem:[%s10581_s17 + $0x248] sm:$0xff] }
0x181c   : > { %5582 = vmatprep.mubr.bf16.mxu1 %v8308_v31  ;;  %5711 = vmatprep.mubr.bf16.mxu0 %v8308_v31  ;;  %v7173_v17 = vcombine.high %v4492_v14, %v4508_v11  ;;  %v4571_v49 = vld [vmem:[%s10581_s17 + $0x2c8] sm:$0xff] }
0x181e   : > { %5553 = vmatpush1.bf16.msra.mxu1 %v7190_v23  ;;  %5682 = vmatpush1.bf16.msra.mxu0 %v7196_v26  ;;  %v4524_v23 = vld [vmem:[%s10581_s17 + $0x150] sm:$0xff] }
0x181f   : > { %5554 = vmatprep.subr.bf16.mxu1 %v7223_v21  ;;  %5683 = vmatprep.subr.bf16.mxu0 %v7229_v62  ;;  %v4540_v26 = vld [vmem:[%s10581_s17 + $0x1d0] sm:$0xff]  ;;  %v7166_v21 = vcombine.low %v4489_v12, %v4505_v55  ;;  %v7172_v62 = vcombine.low %v4492_v14, %v4508_v11  ;;  %v7235_v12 = vcombine.high %v4555_v38, %v4571_v49  ;;  %v4587_v14 = vld [vmem:[%s10581_s17 + $0x348] sm:$0xff] }
0x1820   : > { %v7205_v34 = vcombine.high %v4524_v23, %v4540_v26  ;;  %v4603_v11 = vld [vmem:[%s10581_s17 + $0x3c8] sm:$0xff] }
0x1822   : > { %5555 = vmatpush1.bf16.msra.mxu1 %v7222_v9  ;;  %5684 = vmatpush1.bf16.msra.mxu0 %v7228_v41  ;;  %v4556_v9 = vld [vmem:[%s10581_s17 + $0x250] sm:$0xff] }
0x1823   : > { %5556 = vmatprep.subr.bf16.mxu1 %v7255_v40  ;;  %5685 = vmatprep.subr.bf16.mxu0 %v7261_v20  ;;  %v4572_v41 = vld [vmem:[%s10581_s17 + $0x2d0] sm:$0xff]  ;;  %v7198_v40 = vcombine.low %v4521_v63, %v4537_v5  ;;  %v7204_v20 = vcombine.low %v4524_v23, %v4540_v26  ;;  %v7267_v63 = vcombine.high %v4587_v14, %v4603_v11  ;;  %v4493_v23 = vld [vmem:[%s10581_s17 + $0x58] sm:$0xff] }
0x1824   : > { %v7237_v51 = vcombine.high %v4556_v9, %v4572_v41  ;;  %v4509_v26 = vld [vmem:[%s10581_s17 + $0xd8] sm:$0xff] }
0x1826   : > { %5557 = vmatpush1.bf16.msra.mxu1 %v7254_v53  ;;  %5686 = vmatpush1.bf16.msra.mxu0 %v7260_v36  ;;  %v4588_v53 = vld [vmem:[%s10581_s17 + $0x350] sm:$0xff] }
0x1827   : > { %5636 = vmatprep.subr.bf16.mxu1 %v7163_v1  ;;  %5765 = vmatprep.subr.bf16.mxu0 %v7169_v22  ;;  %v4604_v36 = vld [vmem:[%s10581_s17 + $0x3d0] sm:$0xff]  ;;  %v7230_v1 = vcombine.low %v4553_v37, %v4569_v8  ;;  %v7236_v22 = vcombine.low %v4556_v9, %v4572_v41  ;;  %v7175_v37 = vcombine.high %v4493_v23, %v4509_v26  ;;  %v4525_v9 = vld [vmem:[%s10581_s17 + $0x158] sm:$0xff] }
0x1828   : > { %v7269_v19 = vcombine.high %v4588_v53, %v4604_v36  ;;  %v4541_v41 = vld [vmem:[%s10581_s17 + $0x1d8] sm:$0xff] }
0x1829   : > { %7283 = vmatmul.mubr.msk.bf16.vlgmr.msra.gmra.mrb[68].mxu1 %vm1566_vm1, %v9612_v29  ;;  %7286 = vmatmul.mubr.msk.bf16.vlgmr.msra.gmra.mrb[52].mxu0 %vm1566_vm1, %v9612_v29 }
0x182a   : > { %5637 = vmatpush1.bf16.msra.mxu1 %v7162_v47  ;;  %5766 = vmatpush1.bf16.msra.mxu0 %v7168_v7  ;;  %v4494_v47 = vld [vmem:[%s10581_s17 + $0x60] sm:$0xff] }
0x182b   : > { %5638 = vmatprep.subr.bf16.mxu1 %v7195_v2  ;;  %5767 = vmatprep.subr.bf16.mxu0 %v7201_v59  ;;  %v4510_v7 = vld [vmem:[%s10581_s17 + $0xe0] sm:$0xff]  ;;  %v7262_v2 = vcombine.low %v4585_v45, %v4601_v27  ;;  %v7268_v59 = vcombine.low %v4588_v53, %v4604_v36  ;;  %v7207_v45 = vcombine.high %v4525_v9, %v4541_v41  ;;  %v4557_v53 = vld [vmem:[%s10581_s17 + $0x258] sm:$0xff] }
0x182c   : > { %5668 = vmatprep.mubr.bf16.mxu1 %v8308_v31  ;;  %5797 = vmatprep.mubr.bf16.mxu0 %v8308_v31  ;;  %v7177_v3 = vcombine.high %v4494_v47, %v4510_v7  ;;  %v4573_v36 = vld [vmem:[%s10581_s17 + $0x2d8] sm:$0xff] }
0x182e   : > { %5639 = vmatpush1.bf16.msra.mxu1 %v7194_v18  ;;  %5768 = vmatpush1.bf16.msra.mxu0 %v7200_v13  ;;  %v4526_v18 = vld [vmem:[%s10581_s17 + $0x160] sm:$0xff] }
0x182f   : > { %5640 = vmatprep.subr.bf16.mxu1 %v7227_v6  ;;  %5769 = vmatprep.subr.bf16.mxu0 %v7233_v48  ;;  %v4542_v13 = vld [vmem:[%s10581_s17 + $0x1e0] sm:$0xff]  ;;  %v7170_v6 = vcombine.low %v4491_v16, %v4507_v39  ;;  %v7176_v48 = vcombine.low %v4494_v47, %v4510_v7  ;;  %v7239_v16 = vcombine.high %v4557_v53, %v4573_v36  ;;  %v4589_v47 = vld [vmem:[%s10581_s17 + $0x358] sm:$0xff] }
0x1830   : > { %v7209_v10 = vcombine.high %v4526_v18, %v4542_v13  ;;  %v4605_v7 = vld [vmem:[%s10581_s17 + $0x3d8] sm:$0xff] }
0x1832   : > { %5641 = vmatpush1.bf16.msra.mxu1 %v7226_v28  ;;  %5770 = vmatpush1.bf16.msra.mxu0 %v7232_v50  ;;  %v4558_v28 = vld [vmem:[%s10581_s17 + $0x260] sm:$0xff] }
0x1833   : > { %5642 = vmatprep.subr.bf16.mxu1 %v7259_v54  ;;  %5771 = vmatprep.subr.bf16.mxu0 %v7265_v52  ;;  %v4574_v50 = vld [vmem:[%s10581_s17 + $0x2e0] sm:$0xff]  ;;  %v7202_v54 = vcombine.low %v4523_v58, %v4539_v4  ;;  %v7208_v52 = vcombine.low %v4526_v18, %v4542_v13  ;;  %v7271_v58 = vcombine.high %v4589_v47, %v4605_v7  ;;  %v4495_v18 = vld [vmem:[%s10581_s17 + $0x68] sm:$0xff] }
0x1834   : > { %v7241_v55 = vcombine.high %v4558_v28, %v4574_v50  ;;  %v4511_v13 = vld [vmem:[%s10581_s17 + $0xe8] sm:$0xff] }
0x1836   : > { %5643 = vmatpush1.bf16.msra.mxu1 %v7258_v60  ;;  %5772 = vmatpush1.bf16.msra.mxu0 %v7264_v32  ;;  %v4590_v60 = vld [vmem:[%s10581_s17 + $0x360] sm:$0xff] }
0x1837   : > { %5722 = vmatprep.subr.bf16.mxu1 %v7167_v35  ;;  %5851 = vmatprep.subr.bf16.mxu0 %v7173_v17  ;;  %v4606_v32 = vld [vmem:[%s10581_s17 + $0x3e0] sm:$0xff]  ;;  %v7234_v35 = vcombine.low %v4555_v38, %v4571_v49  ;;  %v7240_v17 = vcombine.low %v4558_v28, %v4574_v50  ;;  %v7179_v38 = vcombine.high %v4495_v18, %v4511_v13  ;;  %v4527_v28 = vld [vmem:[%s10581_s17 + $0x168] sm:$0xff] }
0x1838   : > { %v7273_v5 = vcombine.high %v4590_v60, %v4606_v32  ;;  %v4543_v50 = vld [vmem:[%s10581_s17 + $0x1e8] sm:$0xff] }
0x1839   : > { %7285 = vmatmul.mubr.msk.bf16.vlgmr.msra.gmra.mrb[72].mxu1 %vm1566_vm1, %v9612_v29  ;;  %7288 = vmatmul.mubr.msk.bf16.vlgmr.msra.gmra.mrb[56].mxu0 %vm1566_vm1, %v9612_v29 }
0x183a   : > { %5723 = vmatpush1.bf16.msra.mxu1 %v7166_v21  ;;  %5852 = vmatpush1.bf16.msra.mxu0 %v7172_v62  ;;  %v4496_v21 = vld [vmem:[%s10581_s17 + $0x70] sm:$0xff] }
0x183b   : > { %5724 = vmatprep.subr.bf16.mxu1 %v7199_v42  ;;  %5853 = vmatprep.subr.bf16.mxu0 %v7205_v34  ;;  %v4512_v62 = vld [vmem:[%s10581_s17 + $0xf0] sm:$0xff]  ;;  %v7266_v42 = vcombine.low %v4587_v14, %v4603_v11  ;;  %v7272_v34 = vcombine.low %v4590_v60, %v4606_v32  ;;  %v4559_v14 = vld [vmem:[%s10581_s17 + $0x268] sm:$0xff]  ;;  %v6379_v32 = vld [vmem:[%s10583_s19 + $0x20] sm:$0xff] }
0x183c   : > { %5754 = vmatprep.mubr.bf16.mxu1 %v8308_v31  ;;  %5883 = vmatprep.mubr.bf16.mxu0 %v8308_v31  ;;  %v7181_v8 = vcombine.high %v4496_v21, %v4512_v62  ;;  %v4575_v60 = vld [vmem:[%s10581_s17 + $0x2e8] sm:$0xff] }
0x183e   : > { %5725 = vmatpush1.bf16.msra.mxu1 %v7198_v40  ;;  %5854 = vmatpush1.bf16.msra.mxu0 %v7204_v20  ;;  %v4528_v40 = vld [vmem:[%s10581_s17 + $0x170] sm:$0xff] }
0x183f   : > { %5726 = vmatprep.subr.bf16.mxu1 %v7231_v0  ;;  %5855 = vmatprep.subr.bf16.mxu0 %v7237_v51  ;;  %v4544_v20 = vld [vmem:[%s10581_s17 + $0x1f0] sm:$0xff]  ;;  %v7174_v0 = vcombine.low %v4493_v23, %v4509_v26  ;;  %v7180_v51 = vcombine.low %v4496_v21, %v4512_v62  ;;  %v4591_v23 = vld [vmem:[%s10581_s17 + $0x368] sm:$0xff]  ;;  %v6382_v62 = vld [vmem:[%s10583_s19 + $0x38] sm:$0xff] }
0x1840   : > { %v7213_v27 = vcombine.high %v4528_v40, %v4544_v20  ;;  %v4607_v26 = vld [vmem:[%s10581_s17 + $0x3e8] sm:$0xff]  ;;  %v6381_v21 = vld [vmem:[%s10583_s19 + $0x30] sm:$0xff] }
0x1842   : > { %5727 = vmatpush1.bf16.msra.mxu1 %v7230_v1  ;;  %5856 = vmatpush1.bf16.msra.mxu0 %v7236_v22  ;;  %v4560_v1 = vld [vmem:[%s10581_s17 + $0x270] sm:$0xff] }
0x1843   : > { %5728 = vmatprep.subr.bf16.mxu1 %v7263_v33  ;;  %5857 = vmatprep.subr.bf16.mxu0 %v7269_v19  ;;  %v4576_v22 = vld [vmem:[%s10581_s17 + $0x2f0] sm:$0xff]  ;;  %v7206_v33 = vcombine.low %v4525_v9, %v4541_v41  ;;  %v7212_v19 = vcombine.low %v4528_v40, %v4544_v20  ;;  %v4513_v9 = vld [vmem:[%s10581_s17 + $0xf8] sm:$0xff]  ;;  %v7274_v41 = vcombine.low %v4591_v23, %v4607_v26 }
0x1844   : > { %v7245_v39 = vcombine.high %v4560_v1, %v4576_v22  ;;  %v4529_v20 = vld [vmem:[%s10581_s17 + $0x178] sm:$0xff] }
0x1846   : > { %5729 = vmatpush1.bf16.msra.mxu1 %v7262_v2  ;;  %5858 = vmatpush1.bf16.msra.mxu0 %v7268_v59  ;;  %v4592_v2 = vld [vmem:[%s10581_s17 + $0x370] sm:$0xff] }
0x1847   : > { %5808 = vmatprep.subr.bf16.mxu1 %v7171_v44  ;;  %5937 = vmatprep.subr.bf16.mxu0 %v7177_v3  ;;  %v4608_v59 = vld [vmem:[%s10581_s17 + $0x3f0] sm:$0xff]  ;;  %v7238_v44 = vcombine.low %v4557_v53, %v4573_v36  ;;  %v7244_v3 = vcombine.low %v4560_v1, %v4576_v22  ;;  %v4577_v53 = vld [vmem:[%s10581_s17 + $0x2f8] sm:$0xff] }
0x1848   : > { %v7277_v4 = vcombine.high %v4592_v2, %v4608_v59  ;;  %v4593_v22 = vld [vmem:[%s10581_s17 + $0x378] sm:$0xff] }
0x1849   : > { %7287 = vmatmul.mubr.msk.bf16.vlgmr.msra.gmra.mrb[76].mxu1 %vm1566_vm1, %v9612_v29  ;;  %7290 = vmatmul.mubr.msk.bf16.vlgmr.msra.gmra.mrb[60].mxu0 %vm1566_vm1, %v9612_v29 }
0x184a   : > { %5809 = vmatpush1.bf16.msra.mxu1 %v7170_v6  ;;  %5938 = vmatpush1.bf16.msra.mxu0 %v7176_v48  ;;  %v6375_v6 = vld [vmem:[%s10583_s19] sm:$0xff]  ;;  %v6376_v48 = vld [vmem:[%s10583_s19 + $0x8] sm:$0xff] }
0x184b   : > { %5810 = vmatprep.subr.bf16.mxu1 %v7203_v24  ;;  %5939 = vmatprep.subr.bf16.mxu0 %v7209_v10  ;;  %v7270_v24 = vcombine.low %v4589_v47, %v4605_v7  ;;  %v7276_v10 = vcombine.low %v4592_v2, %v4608_v59  ;;  %v7774_v49 = vpack.c.bf16 %v6376_v48, %v6375_v6 }
0x184c   : > { %5840 = vmatprep.mubr.bf16.mxu1 %v8308_v31  ;;  %5969 = vmatprep.mubr.bf16.mxu0 %v8308_v31 }
0x184e   : > { %5811 = vmatpush1.bf16.msra.mxu1 %v7202_v54  ;;  %5940 = vmatpush1.bf16.msra.mxu0 %v7208_v52  ;;  %v6377_v54 = vld [vmem:[%s10583_s19 + $0x10] sm:$0xff]  ;;  %v6378_v52 = vld [vmem:[%s10583_s19 + $0x18] sm:$0xff] }
0x184f   : > { %5812 = vmatprep.subr.bf16.mxu1 %v7235_v12  ;;  %5941 = vmatprep.subr.bf16.mxu0 %v7241_v55  ;;  %v7178_v12 = vcombine.low %v4495_v18, %v4511_v13  ;;  %v7211_v55 = vcombine.high %v4527_v28, %v4543_v50  ;;  %v7778_v11 = vpack.c.bf16 %v6378_v52, %v6377_v54  ;;  %v6109_v52 = vld [vmem:[%s10635_s21] sm:$0xff] }
0x1852   : > { %5813 = vmatpush1.bf16.msra.mxu1 %v7234_v35  ;;  %5942 = vmatpush1.bf16.msra.mxu0 %v7240_v17  ;;  %v6380_v35 = vld [vmem:[%s10583_s19 + $0x28] sm:$0xff]  ;;  %v7210_v17 = vcombine.low %v4527_v28, %v4543_v50  ;;  %v10044_v50 = vsub.s32 5, %v8708_v43 }
0x1853   : > { %5814 = vmatprep.subr.bf16.mxu1 %v7267_v63  ;;  %5943 = vmatprep.subr.bf16.mxu0 %v7273_v5  ;;  %v7243_v63 = vcombine.high %v4559_v14, %v4575_v60  ;;  %v7782_v5 = vpack.c.bf16 %v6380_v35, %v6379_v32 }
0x1856   : > { %5815 = vmatpush1.bf16.msra.mxu1 %v7266_v42  ;;  %5944 = vmatpush1.bf16.msra.mxu0 %v7272_v34  ;;  %v7242_v42 = vcombine.low %v4559_v14, %v4575_v60  ;;  %v7275_v34 = vcombine.high %v4591_v23, %v4607_v26  ;;  %v6110_v60 = vld [vmem:[%s10635_s21 + $0x8] sm:$0xff] }
0x1857   : > { %5894 = vmatprep.subr.bf16.mxu1 %v7175_v37  ;;  %6023 = vmatprep.subr.bf16.mxu0 %v7181_v8  ;;  %v7786_v37 = vpack.c.bf16 %v6382_v62, %v6381_v21  ;;  %v4497_v8 = vld [vmem:[%s10581_s17 + $0x78] sm:$0xff] }
0x1858   : > { %v7183_v40 = vcombine.high %v4497_v8, %v4513_v9 }
0x1859   : > { %7289 = vmatmul.mubr.msk.bf16.vlgmr.msra.gmra.mrb[80].mxu1 %vm1566_vm1, %v9612_v29  ;;  %7292 = vmatmul.mubr.msk.bf16.vlgmr.msra.gmra.mrb[64].mxu0 %vm1566_vm1, %v9612_v29 }
0x185a   : > { %5895 = vmatpush1.bf16.msra.mxu1 %v7174_v0  ;;  %6024 = vmatpush1.bf16.msra.mxu0 %v7180_v51  ;;  %v4545_v0 = vld [vmem:[%s10581_s17 + $0x1f8] sm:$0xff]  ;;  %v7182_v51 = vcombine.low %v4497_v8, %v4513_v9 }
0x185b   : > { %5896 = vmatprep.subr.bf16.mxu1 %v7207_v45  ;;  %6025 = vmatprep.subr.bf16.mxu0 %v7213_v27  ;;  %v7215_v45 = vcombine.high %v4529_v20, %v4545_v0  ;;  %v4561_v27 = vld [vmem:[%s10581_s17 + $0x278] sm:$0xff]  ;;  %v7214_v36 = vcombine.low %v4529_v20, %v4545_v0  ;;  %v10069_v20 = vsub.s32 3, %v8708_v43 }
0x185c   : > { %5926 = vmatprep.mubr.bf16.mxu1 %v8308_v31  ;;  %6055 = vmatprep.mubr.bf16.mxu0 %v8308_v31  ;;  %v7247_v1 = vcombine.high %v4561_v27, %v4577_v53 }
0x185e   : > { %5897 = vmatpush1.bf16.msra.mxu1 %v7206_v33  ;;  %6026 = vmatpush1.bf16.msra.mxu0 %v7212_v19  ;;  %v4609_v33 = vld [vmem:[%s10581_s17 + $0x3f8] sm:$0xff]  ;;  %v7246_v19 = vcombine.low %v4561_v27, %v4577_v53  ;;  %v6111_v53 = vld [vmem:[%s10635_s21 + $0x10] sm:$0xff] }
0x185f   : > { %5898 = vmatprep.subr.bf16.mxu1 %v7239_v16  ;;  %6027 = vmatprep.subr.bf16.mxu0 %v7245_v39  ;;  %v7279_v16 = vcombine.high %v4593_v22, %v4609_v33  ;;  %v7278_v39 = vcombine.low %v4593_v22, %v4609_v33 }
0x1862   : > { %5899 = vmatpush1.bf16.msra.mxu1 %v7238_v44  ;;  %6028 = vmatpush1.bf16.msra.mxu0 %v7244_v3 }
0x1863   : > { %5900 = vmatprep.subr.bf16.mxu1 %v7271_v58  ;;  %6029 = vmatprep.subr.bf16.mxu0 %v7277_v4 }
0x1866   : > { %5901 = vmatpush1.bf16.msra.mxu1 %v7270_v24  ;;  %6030 = vmatpush1.bf16.msra.mxu0 %v7276_v10  ;;  %v10029_v10 = vld [vmem:[%s10582_s18] sm:$0xff] }
0x1867   : > { %5980 = vmatprep.subr.bf16.mxu1 %v7179_v38  ;;  %7775 = vmatprep.subr.bf16.mxu0 %v7774_v49  ;;  %v10032_v38 = vsub.s32 1, %v8708_v43 }
0x1869   : > { %7291 = vmatmul.mubr.msk.bf16.vlgmr.msra.gmra.mrb[84].mxu1 %vm1566_vm1, %v9612_v29  ;;  %7294 = vmatmul.mubr.msk.bf16.vlgmr.msra.gmra.mrb[68].mxu0 %vm1566_vm1, %v9612_v29  ;;  %v4625_v28 = vrot.slane %v10029_v10, %v10032_v38 }
0x186a   : > { %5981 = vmatpush1.bf16.msra.mxu1 %v7178_v12  ;;  %7777 = vmatpush3.bf16.msra.mxu0 %v7774_v49 }
0x186b   : > { %7768 = vmatprep.mubr.msk.f32.mxu0 %vm1566_vm1, %v9590_v57  ;;  %5982 = vmatprep.subr.bf16.mxu1 %v7211_v55 }
0x186c   : > { %7779 = vmatprep.subr.bf16.mxu0 %v7778_v11  ;;  %6012 = vmatprep.mubr.bf16.mxu1 %v8308_v31 }
0x186e   : > { %5983 = vmatpush1.bf16.msra.mxu1 %v7210_v17  ;;  %7781 = vmatpush3.bf16.msra.mxu0 %v7778_v11  ;;  %v4641_v17 = vrot.slane %v10029_v10, %v10044_v50 }
0x186f   : > { %5984 = vmatprep.subr.bf16.mxu1 %v7243_v63  ;;  %7783 = vmatprep.subr.bf16.mxu0 %v7782_v5 }
0x1872   : > { %5985 = vmatpush1.bf16.msra.mxu1 %v7242_v42  ;;  %7785 = vmatpush3.bf16.msra.mxu0 %v7782_v5 }
0x1873   : > { %5986 = vmatprep.subr.bf16.mxu1 %v7275_v34  ;;  %7787 = vmatprep.subr.bf16.mxu0 %v7786_v37 }
0x1876   : > { %5987 = vmatpush1.bf16.msra.mxu1 %v7274_v41  ;;  %7789 = vmatpush3.bf16.msra.mxu0 %v7786_v37 }
0x1877   : > { %6066 = vmatprep.subr.bf16.mxu1 %v7183_v40  ;;  %v10066_v40 = vsub.s32 2, %v8708_v43 }
0x1879   : > { %7293 = vmatmul.mubr.msk.bf16.vlgmr.msra.gmra.mrb[88].mxu1 %vm1566_vm1, %v9612_v29  ;;  %7769 = vmatmul.mubr.msk.f32.vlgmr.msra.gmra.mrb[72].mxu0 %vm1566_vm1, %v9601_v56  ;;  %v4629_v0 = vrot.slane %v10029_v10, %v10066_v40 }
0x187a   : > { %6067 = vmatpush1.bf16.msra.mxu1 %v7182_v51  ;;  %6098 = vmatprep.mubr.bf16.mxu1 %v8308_v31  ;;  %v10076_v51 = vld [vmem:[%s10582_s18 + $0x8] sm:$0xff] }
0x187b   : > { %6068 = vmatprep.subr.bf16.mxu1 %v7215_v45  ;;  %v4633_v45 = vrot.slane %v10029_v10, %v10069_v20 }
0x187e   : > { %6069 = vmatpush1.bf16.msra.mxu1 %v7214_v36 }
0x187f   : > { %6070 = vmatprep.subr.bf16.mxu1 %v7247_v1 }
0x1882   : > { %6071 = vmatpush1.bf16.msra.mxu1 %v7246_v19 }
0x1883   : > { %6072 = vmatprep.subr.bf16.mxu1 %v7279_v16  ;;  %v6112_v16 = vld [vmem:[%s10635_s21 + $0x18] sm:$0xff] }
0x1886   : > { %6073 = vmatpush1.bf16.msra.mxu1 %v7278_v39 }
0x1888   : > { %v4441_v47 = vpop.xlane.xlu0 %4440 }
0x1889   : > { %v4447_v31 = vmul.f32 0.015625, %v4441_v47  ;;  %7295 = vmatmul.mubr.msk.bf16.vlgmr.msra.gmra.mrb[92].mxu1 %vm1566_vm1, %v9612_v29  ;;  %v6113_v47 = vld [vmem:[%s10635_s21 + $0x20] sm:$0xff] }
0x188a   : > { %v4444_v7 = vpop.xlane.xlu1 %4443 }
0x188b   : > { %v4451_v2 = vadd.f32 1e-05, %v4447_v31  ;;  %v4448_v59 = vmul.f32 0.015625, %v4444_v7  ;;  %v4657_v7 = vrot.slane %v10076_v51, %v10032_v38 }
0x188d   : > { %8231 = vrsqrt.f32 %v4451_v2  ;;  %v4452_v44 = vadd.f32 1e-05, %v4448_v59 }
0x188f   : > { %8233 = vrsqrt.f32 %v4452_v44 }
0x1897   : > { %v8232_v3 = vpop.eup %8231 }
0x1898   : > { %v4459_v58 = vmul.f32 %v8232_v3, %v9559_v30 }
0x1899   : > { %v8234_v4 = vpop.eup %8233 }
0x189a   : > { %v4460_v18 = vmul.f32 %v8234_v4, %v9562_v61  ;;  %v4469_v13 = vmul.f32 %v9573_v25, %v4459_v58 }
0x189c   : > { %v4470_v6 = vmul.f32 %v9573_v25, %v4460_v18  ;;  %v10008_v48 = vadd.f32 %v9579_v15, %v4469_v13 }
0x189e   : > { %v10011_v29 = vadd.f32 %v9579_v15, %v4470_v6  ;;  %7771 = vmatprep.mubr.msk.f32.mxu0 %vm1566_vm1, %v10008_v48  ;;  %v6489_v24 = vmul.f32 %v9586_v46, %v10008_v48  ;;  %v10024_v15 = vsub.s32 0, %v8708_v43  ;;  %v6114_v6 = vld [vmem:[%s10635_s21 + $0x28] sm:$0xff] }
0x18a0   : > { %7772 = vmatmul.mubr.msk.f32.gmra.mrb[74].mxu0 %vm1566_vm1, %v10011_v29  ;;  %v6497_v30 = vsel %vm1566_vm1, %v6489_v24, 0.0  ;;  %v6490_v61 = vmul.f32 %v9586_v46, %v10011_v29  ;;  %10634 = vst [vmem:[#allocation5_spill] sm:$0xff] %v10024_v15  ;;  %v10036_v49 = vrot.slane %v10029_v10, %v10024_v15  ;;  %v10039_v46 = vsub.s32 4, %v8708_v43 }
0x18a1   : > { %6498 = vadd.xlane.f32.xlu0 %v6497_v30  ;;  %v4653_v33 = vrot.slane %v10076_v51, %v10024_v15 }
0x18a2   : > { %v6500_v25 = vsel %vm1566_vm1, %v6490_v61, 0.0  ;;  %v4637_v14 = vrot.slane %v10029_v10, %v10039_v46 }
0x18a3   : > { %6501 = vadd.xlane.f32.xlu1 %v6500_v25 }
0x18dc   : > { %v5455_v54 = vpop.f32.mrb[60].mxu1  ;;  %v5541_v12 = vpop.f32.mrb[44].mxu0 }
0x18dd   : > { %v5456_v55 = vadd.f32 %v5455_v54, %v10036_v49  ;;  %v5457_v11 = vpop.f32.mrb[61].mxu1  ;;  %v5543_v32 = vpop.f32.mrb[45].mxu0  ;;  %v5542_v1 = vadd.f32 %v5541_v12, %v4637_v14 }
0x18de   : > { %v5458_v35 = vadd.f32 %v5457_v11, %v4625_v28  ;;  %v10057_v63 = vpop.f32.mrb[62].mxu1  ;;  %v5545_v5 = vpop.f32.mrb[46].mxu0  ;;  %v5544_v44 = vadd.f32 %v5543_v32, %v4641_v17  ;;  %v10105_v11 = vsub.s32 6, %v8708_v43 }
0x18df   : > { %v6173_v23 = vsub.f32 %v5456_v55, %v6109_v52  ;;  %v10059_v26 = vadd.f32 %v5545_v5, %v4637_v14  ;;  %v5461_v21 = vpop.f32.mrb[63].mxu1  ;;  %v5547_v62 = vpop.f32.mrb[47].mxu0  ;;  %v6177_v25 = vsub.f32 %v5542_v1, %v6113_v47 }
0x18e0   : > { %v6174_v42 = vsub.f32 %v5458_v35, %v6110_v60  ;;  %v10061_v34 = vadd.f32 %v5461_v21, %v4625_v28  ;;  %v10063_v37 = vadd.f32 %v5547_v62, %v4641_v17  ;;  %v6178_v52 = vsub.f32 %v5544_v44, %v6114_v6  ;;  %v6115_v62 = vld [vmem:[%s10635_s21 + $0x30] sm:$0xff] }
0x18e1   : > { %v6237_v8 = vand.u32 2147483647, %v6173_v23  ;;  %v6241_v55 = vand.u32 2147483647, %v6177_v25  ;;  %v10108_v60 = vsub.s32 7, %v8708_v43  ;;  %v4645_v17 = vrot.slane %v10029_v10, %v10105_v11 }
0x18e2   : > { %v6238_v9 = vand.u32 2147483647, %v6174_v42  ;;  %v6242_v32 = vand.u32 2147483647, %v6178_v52  ;;  %v4669_v43 = vrot.slane %v10076_v51, %v10039_v46  ;;  %v4661_v52 = vrot.slane %v10076_v51, %v10066_v40 }
0x18e3   : > { %v4649_v23 = vrot.slane %v10029_v10, %v10108_v60  ;;  %v6117_v10 = vld [vmem:[%s10635_s21 + $0x40] sm:$0xff] }
0x18e4   : > { %v6301_v41 = vadd.f32 %v6238_v9, %v6237_v8 }
0x18ec   : > { %v5498_v27 = vpop.f32.mrb[64].mxu1  ;;  %v5627_v36 = vpop.f32.mrb[48].mxu0 }
0x18ed   : > { %v5499_v22 = vadd.f32 %v5498_v27, %v4629_v0  ;;  %v5500_v19 = vpop.f32.mrb[65].mxu1  ;;  %v5629_v39 = vpop.f32.mrb[49].mxu0  ;;  %v5628_v8 = vadd.f32 %v5627_v36, %v4653_v33 }
0x18ee   : > { %v5501_v31 = vadd.f32 %v5500_v19, %v4633_v45  ;;  %v5502_v2 = vpop.f32.mrb[66].mxu1  ;;  %v5631_v59 = vpop.f32.mrb[50].mxu0 }
0x18ef   : > { %v6175_v3 = vsub.f32 %v5499_v22, %v6111_v53  ;;  %v10093_v58 = vadd.f32 %v5502_v2, %v4629_v0  ;;  %v10095_v4 = vadd.f32 %v5631_v59, %v4653_v33  ;;  %v5504_v18 = vpop.f32.mrb[67].mxu1  ;;  %v5633_v13 = vpop.f32.mrb[51].mxu0  ;;  %v6116_v0 = vld [vmem:[%s10635_s21 + $0x38] sm:$0xff]  ;;  %v4673_v53 = vrot.slane %v10076_v51, %v10044_v50  ;;  %v6118_v2 = vld [vmem:[%s10635_s21 + $0x48] sm:$0xff] }
0x18f0   : > { %v6176_v24 = vsub.f32 %v5501_v31, %v6112_v16  ;;  %v10100_v30 = vadd.f32 %v5504_v18, %v4633_v45  ;;  %v10102_v61 = vadd.f32 %v5633_v13, %v4657_v7  ;;  %v5630_v22 = vadd.f32 %v5629_v39, %v4657_v7 }
0x18f1   : > { %v6239_v28 = vand.u32 2147483647, %v6175_v3  ;;  %v6181_v18 = vsub.f32 %v5628_v8, %v6117_v10  ;;  %v6120_v8 = vld [vmem:[%s10635_s21 + $0x58] sm:$0xff] }
0x18f2   : > { %v6240_v54 = vand.u32 2147483647, %v6176_v24  ;;  %v6182_v39 = vsub.f32 %v5630_v22, %v6118_v2 }
0x18f3   : > { %v6302_v12 = vadd.f32 %v6301_v41, %v6239_v28  ;;  %v6245_v24 = vand.u32 2147483647, %v6181_v18 }
0x18f4   : > { %v6246_v28 = vand.u32 2147483647, %v6182_v39 }
0x18f5   : > { %v6303_v14 = vadd.f32 %v6302_v12, %v6240_v54 }
0x18f7   : > { %v6304_v35 = vadd.f32 %v6303_v14, %v6241_v55  ;;  %v10143_v55 = vld [vmem:[%s10582_s18 + $0x10] sm:$0xff]  ;;  %v4665_v14 = vrot.slane %v10076_v51, %v10069_v20 }
0x18f8   : > { %v4689_v10 = vrot.slane %v10143_v55, %v10032_v38 }
0x18f9   : > { %v6305_v5 = vadd.f32 %v6304_v35, %v6242_v32  ;;  %v6119_v35 = vld [vmem:[%s10635_s21 + $0x50] sm:$0xff] }
0x18fc   : > { %v5584_v21 = vpop.f32.mrb[68].mxu1  ;;  %v5713_v42 = vpop.f32.mrb[52].mxu0 }
0x18fd   : > { %v5585_v9 = vadd.f32 %v5584_v21, %v4645_v17  ;;  %v5586_v41 = vpop.f32.mrb[69].mxu1  ;;  %v5715_v45 = vpop.f32.mrb[53].mxu0  ;;  %v4685_v21 = vrot.slane %v10143_v55, %v10024_v15 }
0x18fe   : > { %v5587_v27 = vadd.f32 %v5586_v41, %v4649_v23  ;;  %v5588_v1 = vpop.f32.mrb[70].mxu1  ;;  %v5717_v36 = vpop.f32.mrb[54].mxu0  ;;  %v6121_v41 = vld [vmem:[%s10635_s21 + $0x60] sm:$0xff] }
0x18ff   : > { %v6179_v33 = vsub.f32 %v5585_v9, %v6115_v62  ;;  %v10127_v19 = vadd.f32 %v5588_v1, %v4645_v17  ;;  %v10129_v16 = vadd.f32 %v5717_v36, %v4669_v43  ;;  %v5590_v47 = vpop.f32.mrb[71].mxu1  ;;  %v5719_v31 = vpop.f32.mrb[55].mxu0 }
0x1900   : > { %v6180_v59 = vsub.f32 %v5587_v27, %v6116_v0  ;;  %v10134_v44 = vadd.f32 %v5590_v47, %v4649_v23  ;;  %v10136_v3 = vadd.f32 %v5719_v31, %v4673_v53  ;;  %v6122_v31 = vld [vmem:[%s10635_s21 + $0x68] sm:$0xff] }
0x1901   : > { %v6243_v13 = vand.u32 2147483647, %v6179_v33 }
0x1902   : > { %v6244_v6 = vand.u32 2147483647, %v6180_v59 }
0x1903   : > { %v6306_v7 = vadd.f32 %v6305_v5, %v6243_v13  ;;  %v5714_v5 = vadd.f32 %v5713_v42, %v4669_v43  ;;  %v5716_v43 = vadd.f32 %v5715_v45, %v4673_v53 }
0x1905   : > { %v6307_v25 = vadd.f32 %v6306_v7, %v6244_v6  ;;  %v6185_v13 = vsub.f32 %v5714_v5, %v6121_v41  ;;  %v6186_v45 = vsub.f32 %v5716_v43, %v6122_v31  ;;  %v6124_v41 = vld [vmem:[%s10635_s21 + $0x78] sm:$0xff] }
0x1907   : > { %v6308_v54 = vadd.f32 %v6307_v25, %v6245_v24  ;;  %v6249_v7 = vand.u32 2147483647, %v6185_v13  ;;  %v6250_v25 = vand.u32 2147483647, %v6186_v45  ;;  %v6126_v13 = vld [vmem:[%s10635_s21 + $0x88] sm:$0xff] }
0x1909   : > { %v6309_v12 = vadd.f32 %v6308_v54, %v6246_v28  ;;  %v4677_v54 = vrot.slane %v10076_v51, %v10105_v11 }
0x190c   : > { %v5670_v32 = vpop.f32.mrb[72].mxu1  ;;  %v5799_v17 = vpop.f32.mrb[56].mxu0 }
0x190d   : > { %v5671_v23 = vadd.f32 %v5670_v32, %v4661_v52  ;;  %v5672_v62 = vpop.f32.mrb[73].mxu1  ;;  %v5801_v9 = vpop.f32.mrb[57].mxu0  ;;  %v4681_v32 = vrot.slane %v10076_v51, %v10108_v60  ;;  %v6125_v51 = vld [vmem:[%s10635_s21 + $0x80] sm:$0xff] }
0x190e   : > { %v5673_v0 = vadd.f32 %v5672_v62, %v4665_v14  ;;  %v5674_v27 = vpop.f32.mrb[74].mxu1  ;;  %v5803_v42 = vpop.f32.mrb[58].mxu0 }
0x190f   : > { %v6183_v1 = vsub.f32 %v5671_v23, %v6119_v35  ;;  %v10160_v36 = vadd.f32 %v5674_v27, %v4661_v52  ;;  %v10162_v22 = vadd.f32 %v5803_v42, %v4685_v21  ;;  %v5676_v33 = vpop.f32.mrb[75].mxu1  ;;  %v5805_v47 = vpop.f32.mrb[59].mxu0  ;;  %v6123_v35 = vld [vmem:[%s10635_s21 + $0x70] sm:$0xff]  ;;  %v5800_v23 = vadd.f32 %v5799_v17, %v4685_v21 }
0x1910   : > { %v6184_v2 = vsub.f32 %v5673_v0, %v6120_v8  ;;  %v10167_v59 = vadd.f32 %v5676_v33, %v4665_v14  ;;  %v10169_v18 = vadd.f32 %v5805_v47, %v4689_v10  ;;  %v4705_v42 = vrot.slane %v10143_v55, %v10044_v50 }
0x1911   : > { %v6247_v6 = vand.u32 2147483647, %v6183_v1  ;;  %v5802_v21 = vadd.f32 %v5801_v9, %v4689_v10 }
0x1912   : > { %v6248_v39 = vand.u32 2147483647, %v6184_v2 }
0x1913   : > { %v6310_v53 = vadd.f32 %v6309_v12, %v6247_v6  ;;  %v4701_v12 = vrot.slane %v10143_v55, %v10039_v46  ;;  %v6190_v9 = vsub.f32 %v5802_v21, %v6126_v13  ;;  %v6129_v13 = vld [vmem:[%s10635_s21 + $0xa0] sm:$0xff] }
0x1915   : > { %v6311_v24 = vadd.f32 %v6310_v53, %v6248_v39  ;;  %v6189_v53 = vsub.f32 %v5800_v23, %v6125_v51  ;;  %v4697_v23 = vrot.slane %v10143_v55, %v10069_v20 }
0x1917   : > { %v6312_v28 = vadd.f32 %v6311_v24, %v6249_v7 }
0x1919   : > { %v6313_v52 = vadd.f32 %v6312_v28, %v6250_v25  ;;  %v6253_v25 = vand.u32 2147483647, %v6189_v53 }
0x191c   : > { %v5756_v14 = vpop.f32.mrb[76].mxu1  ;;  %v5885_v5 = vpop.f32.mrb[60].mxu0 }
0x191d   : > { %v5757_v62 = vadd.f32 %v5756_v14, %v4677_v54  ;;  %v5758_v8 = vpop.f32.mrb[77].mxu1  ;;  %v5887_v0 = vpop.f32.mrb[61].mxu0 }
0x191e   : > { %v5759_v27 = vadd.f32 %v5758_v8, %v4681_v32  ;;  %v5760_v43 = vpop.f32.mrb[78].mxu1  ;;  %v5889_v17 = vpop.f32.mrb[62].mxu0 }
0x191f   : > { %v6187_v1 = vsub.f32 %v5757_v62, %v6123_v35  ;;  %v10188_v33 = vadd.f32 %v5760_v43, %v4677_v54  ;;  %v10190_v47 = vadd.f32 %v5889_v17, %v4701_v12  ;;  %v5762_v31 = vpop.f32.mrb[79].mxu1  ;;  %v5891_v2 = vpop.f32.mrb[63].mxu0  ;;  %v6254_v54 = vand.u32 2147483647, %v6190_v9 }
0x1920   : > { %v6188_v6 = vsub.f32 %v5759_v27, %v6124_v41  ;;  %v10195_v39 = vadd.f32 %v5762_v31, %v4681_v32  ;;  %v10197_v45 = vadd.f32 %v5891_v2, %v4705_v42  ;;  %v4693_v35 = vrot.slane %v10143_v55, %v10066_v40  ;;  %v10204_v32 = vld [vmem:[%s10582_s18 + $0x18] sm:$0xff]  ;;  %v6493_v8 = vpop.xlane.xlu0 %6492  ;;  %v6496_v41 = vpop.xlane.xlu1 %6495 }
0x1921   : > { %v6251_v7 = vand.u32 2147483647, %v6187_v1  ;;  %v5886_v43 = vadd.f32 %v5885_v5, %v4701_v12  ;;  %v4717_v21 = vrot.slane %v10204_v32, %v10024_v15  ;;  %v6128_v31 = vld [vmem:[%s10635_s21 + $0x98] sm:$0xff] }
0x1922   : > { %v6252_v24 = vand.u32 2147483647, %v6188_v6 }
0x1923   : > { %v6314_v10 = vadd.f32 %v6313_v52, %v6251_v7  ;;  %v6127_v52 = vld [vmem:[%s10635_s21 + $0x90] sm:$0xff] }
0x1925   : > { %v6315_v28 = vadd.f32 %v6314_v10, %v6252_v24  ;;  %v5888_v24 = vadd.f32 %v5887_v0, %v4705_v42 }
0x1927   : > { %v6316_v14 = vadd.f32 %v6315_v28, %v6253_v25  ;;  %v6130_v28 = vld [vmem:[%s10635_s21 + $0xa8] sm:$0xff] }
0x1929   : > { %v6317_v62 = vadd.f32 %v6316_v14, %v6254_v54  ;;  %v4721_v14 = vrot.slane %v10204_v32, %v10032_v38 }
0x192c   : > { %v5842_v51 = vpop.f32.mrb[80].mxu1  ;;  %v5971_v27 = vpop.f32.mrb[64].mxu0 }
0x192d   : > { %v5843_v17 = vadd.f32 %v5842_v51, %v4693_v35  ;;  %v5844_v1 = vpop.f32.mrb[81].mxu1  ;;  %v5973_v2 = vpop.f32.mrb[65].mxu0 }
0x192e   : > { %v5845_v6 = vadd.f32 %v5844_v1, %v4697_v23  ;;  %v5846_v53 = vpop.f32.mrb[82].mxu1  ;;  %v5975_v7 = vpop.f32.mrb[66].mxu0 }
0x192f   : > { %v6191_v5 = vsub.f32 %v5843_v17, %v6127_v52  ;;  %v10219_v12 = vadd.f32 %v5846_v53, %v4693_v35  ;;  %v10221_v9 = vadd.f32 %v5975_v7, %v4717_v21  ;;  %v6499_v10 = vpop.xlane.xlu0 %6498  ;;  %v5848_v25 = vpop.f32.mrb[83].mxu1  ;;  %v6193_v35 = vsub.f32 %v5886_v43, %v6129_v13 }
0x1930   : > { %v6192_v54 = vsub.f32 %v5845_v6, %v6128_v31  ;;  %v6527_v51 = vsel %vm6504_vm9, %v6499_v10, 0.0  ;;  %v10229_v1 = vadd.f32 %v5848_v25, %v4697_v23  ;;  %v5977_v0 = vpop.f32.mrb[67].mxu0  ;;  %v6502_v42 = vpop.xlane.xlu1 %6501  ;;  %v6194_v7 = vsub.f32 %v5888_v24, %v6130_v28 }
0x1931   : > { %10636 = vst [vmem:[#allocation6_spill] sm:$0xff] %v10221_v9  ;;  %v6255_v52 = vand.u32 2147483647, %v6191_v5  ;;  %6528 = vadd.xlane.f32.xlu1 %v6527_v51  ;;  %v10231_v53 = vadd.f32 %v5977_v0, %v4721_v14  ;;  %v6538_v9 = vsel %vm6504_vm9, %v6502_v42, 0.0  ;;  %v6505_v31 = vsel %vm6504_vm9, %v6493_v8, 0.0  ;;  %v6131_v8 = vld [vmem:[%s10635_s21 + $0xb0] sm:$0xff] }
0x1932   : > { %v6256_v17 = vand.u32 2147483647, %v6192_v54  ;;  %6539 = vadd.xlane.f32.xlu0 %v6538_v9  ;;  %v6257_v38 = vand.u32 2147483647, %v6193_v35  ;;  %v6516_v23 = vsel %vm6504_vm9, %v6496_v41, 0.0  ;;  %v4709_v43 = vrot.slane %v10143_v55, %v10105_v11  ;;  %v6132_v54 = vld [vmem:[%s10635_s21 + $0xb8] sm:$0xff] }
0x1933   : > { %v6318_v15 = vadd.f32 %v6317_v62, %v6255_v52  ;;  %v6258_v10 = vand.u32 2147483647, %v6194_v7  ;;  %v4713_v62 = vrot.slane %v10143_v55, %v10108_v60  ;;  %v4733_v41 = vrot.slane %v10204_v32, %v10039_v46  ;;  %v6133_v55 = vld [vmem:[%s10635_s21 + $0xc0] sm:$0xff] }
0x1934   : > { %v4737_v42 = vrot.slane %v10204_v32, %v10044_v50 }
0x1935   : > { %v6319_v6 = vadd.f32 %v6318_v15, %v6256_v17  ;;  %6506 = vadd.xlane.f32.xlu1 %v6505_v31  ;;  %v5972_v15 = vadd.f32 %v5971_v27, %v4717_v21  ;;  %v5974_v21 = vadd.f32 %v5973_v2, %v4721_v14 }
0x1936   : > { %6517 = vadd.xlane.f32.xlu0 %v6516_v23 }
0x1937   : > { %v6320_v25 = vadd.f32 %v6319_v6, %v6257_v38  ;;  %v6134_v38 = vld [vmem:[%s10635_s21 + $0xc8] sm:$0xff]  ;;  %v6197_v50 = vsub.f32 %v5972_v15, %v6133_v55  ;;  %v6135_v15 = vld [vmem:[%s10635_s21 + $0xd0] sm:$0xff] }
0x1938   : > { %v6198_v2 = vsub.f32 %v5974_v21, %v6134_v38 }
0x1939   : > { %v6321_v13 = vadd.f32 %v6320_v25, %v6258_v10 }
0x193c   : > { %v5928_v24 = vpop.f32.mrb[84].mxu1  ;;  %v6057_v5 = vpop.f32.mrb[68].mxu0 }
0x193d   : > { %v5929_v9 = vadd.f32 %v5928_v24, %v4709_v43  ;;  %v5930_v28 = vpop.f32.mrb[85].mxu1  ;;  %v6059_v51 = vpop.f32.mrb[69].mxu0 }
0x193e   : > { %v5931_v0 = vadd.f32 %v5930_v28, %v4713_v62  ;;  %v5932_v35 = vpop.f32.mrb[86].mxu1  ;;  %v6061_v27 = vpop.f32.mrb[70].mxu0  ;;  %v6060_v38 = vadd.f32 %v6059_v51, %v4737_v42 }
0x193f   : > { %v6195_v52 = vsub.f32 %v5929_v9, %v6131_v8  ;;  %v10253_v17 = vadd.f32 %v5932_v35, %v4709_v43  ;;  %v10255_v46 = vadd.f32 %v6061_v27, %v4733_v41  ;;  %v5934_v7 = vpop.f32.mrb[87].mxu1  ;;  %v6063_v31 = vpop.f32.mrb[71].mxu0  ;;  %v6261_v43 = vand.u32 2147483647, %v6197_v50 }
0x1940   : > { %v6196_v6 = vsub.f32 %v5931_v0, %v6132_v54  ;;  %v10260_v23 = vadd.f32 %v5934_v7, %v4713_v62  ;;  %v10262_v10 = vadd.f32 %v6063_v31, %v4737_v42  ;;  %v6262_v9 = vand.u32 2147483647, %v6198_v2 }
0x1941   : > { %v6259_v25 = vand.u32 2147483647, %v6195_v52  ;;  %v4725_v35 = vrot.slane %v10204_v32, %v10066_v40  ;;  %v4729_v54 = vrot.slane %v10204_v32, %v10069_v20  ;;  %v6058_v0 = vadd.f32 %v6057_v5, %v4733_v41  ;;  %v6136_v52 = vld [vmem:[%s10635_s21 + $0xd8] sm:$0xff]  ;;  %v6137_v20 = vld [vmem:[%s10635_s21 + $0xe0] sm:$0xff] }
0x1942   : > { %v6260_v24 = vand.u32 2147483647, %v6196_v6 }
0x1943   : > { %v6322_v14 = vadd.f32 %v6321_v13, %v6259_v25  ;;  %v6138_v25 = vld [vmem:[%s10635_s21 + $0xe8] sm:$0xff]  ;;  %v6201_v42 = vsub.f32 %v6058_v0, %v6137_v20 }
0x1945   : > { %v6323_v8 = vadd.f32 %v6322_v14, %v6260_v24 }
0x1947   : > { %v6324_v28 = vadd.f32 %v6323_v8, %v6261_v43 }
0x1949   : > { %v6325_v27 = vadd.f32 %v6324_v28, %v6262_v9 }
0x194c   : > { %v6014_v62 = vpop.f32.mrb[88].mxu1  ;;  %v7770_v55 = vpop.f32.mrb[72].mxu0 }
0x194d   : > { %v6015_v21 = vadd.f32 %v6014_v62, %v4725_v35  ;;  %v6016_v13 = vpop.f32.mrb[89].mxu1  ;;  %v6461_v7 = vpop.f32.mrb[73].mxu0  ;;  %v6610_v40 = vmul.f32 %v7770_v55, %v9601_v56  ;;  %v6625_v31 = vmul.f32 %v7770_v55, %v10008_v48  ;;  %v6640_v5 = vmul.f32 %v7770_v55, %v10011_v29 }
0x194e   : > { %v6017_v6 = vadd.f32 %v6016_v13, %v4729_v54  ;;  %v6018_v50 = vpop.f32.mrb[90].mxu1  ;;  %v6565_v41 = vmul.f32 %v6461_v7, %v9601_v56  ;;  %v6202_v56 = vsub.f32 %v6060_v38, %v6138_v25  ;;  %v6549_v55 = vmul.f32 %v6461_v7, %v9590_v57 }
0x194f   : > { %v6199_v24 = vsub.f32 %v6015_v21, %v6135_v15  ;;  %v10284_v2 = vadd.f32 %v6018_v50, %v4725_v35  ;;  %v6020_v14 = vpop.f32.mrb[91].mxu1  ;;  %v6611_v43 = vsel %vm1566_vm1, %v6610_v40, 0.0  ;;  %v6626_v8 = vsel %vm1566_vm1, %v6625_v31, 0.0 }
0x1950   : > { %v6200_v9 = vsub.f32 %v6017_v6, %v6136_v52  ;;  %v10288_v51 = vadd.f32 %v6020_v14, %v4729_v54  ;;  %6612 = vadd.xlane.f32.xlu1 %v6611_v43  ;;  %6627 = vadd.xlane.f32.xlu0 %v6626_v8  ;;  %v6641_v35 = vsel %vm1566_vm1, %v6640_v5, 0.0  ;;  %v6566_v15 = vsel %vm1566_vm1, %v6565_v41, 0.0  ;;  %v6139_v41 = vld [vmem:[%s10635_s21 + $0xf0] sm:$0xff] }
0x1951   : > { %v6263_v28 = vand.u32 2147483647, %v6199_v24  ;;  %v6595_v21 = vmul.f32 %v6461_v7, %v10011_v29  ;;  %v6265_v52 = vand.u32 2147483647, %v6201_v42  ;;  %v6266_v40 = vand.u32 2147483647, %v6202_v56 }
0x1952   : > { %v6264_v62 = vand.u32 2147483647, %v6200_v9  ;;  %v6550_v0 = vsel %vm1566_vm1, %v6549_v55, 0.0  ;;  %v6580_v38 = vmul.f32 %v6461_v7, %v10008_v48  ;;  %v4741_v57 = vrot.slane %v10204_v32, %v10105_v11  ;;  %v6140_v11 = vld [vmem:[%s10635_s21 + $0xf8] sm:$0xff] }
0x1953   : > { %v6326_v13 = vadd.f32 %v6325_v27, %v6263_v28  ;;  %v6596_v20 = vsel %vm1566_vm1, %v6595_v21, 0.0  ;;  %v4745_v6 = vrot.slane %v10204_v32, %v10108_v60  ;;  %v5460_v7 = vadd.f32 %v10057_v63, %v10036_v49  ;;  %v6141_v60 = vld [vmem:[%s10635_s21 + $0x100] sm:$0xff]  ;;  %v6142_v49 = vld [vmem:[%s10635_s21 + $0x108] sm:$0xff] }
0x1954   : > { %6642 = vadd.xlane.f32.xlu1 %v6641_v35  ;;  %6567 = vadd.xlane.f32.xlu0 %v6566_v15  ;;  %v6581_v50 = vsel %vm1566_vm1, %v6580_v38, 0.0  ;;  %v6144_v15 = vld [vmem:[%s10635_s21 + $0x118] sm:$0xff] }
0x1955   : > { %v6327_v54 = vadd.f32 %v6326_v13, %v6264_v62  ;;  %v6205_v28 = vsub.f32 %v5460_v7, %v6141_v60  ;;  %v6143_v62 = vld [vmem:[%s10635_s21 + $0x110] sm:$0xff]  ;;  %v6206_v13 = vsub.f32 %v10061_v34, %v6142_v49  ;;  %v6146_v34 = vld [vmem:[%s10635_s21 + $0x128] sm:$0xff]  ;;  %v6149_v7 = vld [vmem:[%s10635_s21 + $0x140] sm:$0xff] }
0x1956   : > { %v6151_v49 = vld [vmem:[%s10635_s21 + $0x150] sm:$0xff] }
0x1957   : > { %v6328_v31 = vadd.f32 %v6327_v54, %v6265_v52  ;;  %v6269_v21 = vand.u32 2147483647, %v6205_v28  ;;  %v6207_v52 = vsub.f32 %v10093_v58, %v6143_v62  ;;  %v6147_v58 = vld [vmem:[%s10635_s21 + $0x130] sm:$0xff] }
0x1958   : > { %6551 = vadd.xlane.f32.xlu1 %v6550_v0  ;;  %6597 = vadd.xlane.f32.xlu0 %v6596_v20  ;;  %v6208_v0 = vsub.f32 %v10100_v30, %v6144_v15  ;;  %v6148_v30 = vld [vmem:[%s10635_s21 + $0x138] sm:$0xff]  ;;  %v6153_v15 = vld [vmem:[%s10635_s21 + $0x160] sm:$0xff] }
0x1959   : > { %v6329_v27 = vadd.f32 %v6328_v31, %v6266_v40  ;;  %v6145_v40 = vld [vmem:[%s10635_s21 + $0x120] sm:$0xff]  ;;  %v6270_v31 = vand.u32 2147483647, %v6206_v13 }
0x195a   : > { %v6209_v38 = vsub.f32 %v10059_v26, %v6145_v40  ;;  %v6211_v26 = vsub.f32 %v10127_v19, %v6147_v58 }
0x195c   : > { %v6100_v5 = vpop.f32.mrb[92].mxu1  ;;  %6582 = vadd.xlane.f32.xlu1 %v6581_v50  ;;  %v6272_v50 = vand.u32 2147483647, %v6208_v0 }
0x195d   : > { %v6101_v25 = vadd.f32 %v6100_v5, %v4741_v57  ;;  %v6102_v24 = vpop.f32.mrb[93].mxu1 }
0x195e   : > { %v6103_v32 = vadd.f32 %v6102_v24, %v4745_v6  ;;  %v6104_v14 = vpop.f32.mrb[94].mxu1 }
0x195f   : > { %v6203_v43 = vsub.f32 %v6101_v25, %v6139_v41  ;;  %v10313_v8 = vadd.f32 %v6104_v14, %v4741_v57  ;;  %v6106_v9 = vpop.f32.mrb[95].mxu1  ;;  %v6271_v57 = vand.u32 2147483647, %v6207_v52  ;;  %v6273_v41 = vand.u32 2147483647, %v6209_v38 }
0x1960   : > { %v6204_v63 = vsub.f32 %v6103_v32, %v6140_v11  ;;  %v10318_v42 = vadd.f32 %v6106_v9, %v4745_v6  ;;  %v6210_v6 = vsub.f32 %v10063_v37, %v6146_v34  ;;  %v6150_v11 = vld [vmem:[%s10635_s21 + $0x148] sm:$0xff]  ;;  %v6212_v37 = vsub.f32 %v10134_v44, %v6148_v30  ;;  %v6152_v44 = vld [vmem:[%s10635_s21 + $0x158] sm:$0xff] }
0x1961   : > { %v6267_v56 = vand.u32 2147483647, %v6203_v43  ;;  %v6213_v32 = vsub.f32 %v10095_v4, %v6149_v7  ;;  %v6275_v14 = vand.u32 2147483647, %v6211_v26  ;;  %v6214_v9 = vsub.f32 %v10102_v61, %v6150_v11 }
0x1962   : > { %v6268_v55 = vand.u32 2147483647, %v6204_v63  ;;  %v6274_v24 = vand.u32 2147483647, %v6210_v6  ;;  %v6276_v19 = vand.u32 2147483647, %v6212_v37  ;;  %v6215_v4 = vsub.f32 %v10160_v36, %v6151_v49 }
0x1963   : > { %v6330_v35 = vadd.f32 %v6329_v27, %v6267_v56  ;;  %v6277_v56 = vand.u32 2147483647, %v6213_v32  ;;  %v6154_v36 = vld [vmem:[%s10635_s21 + $0x168] sm:$0xff] }
0x1965   : > { %v6331_v54 = vadd.f32 %v6330_v35, %v6268_v55  ;;  %v6278_v35 = vand.u32 2147483647, %v6214_v9 }
0x1967   : > { %v6332_v20 = vadd.f32 %v6331_v54, %v6269_v21  ;;  %v6216_v21 = vsub.f32 %v10167_v59, %v6152_v44  ;;  %v6218_v59 = vsub.f32 %v10136_v3, %v6154_v36  ;;  %v6158_v3 = vld [vmem:[%s10635_s21 + $0x188] sm:$0xff] }
0x1969   : > { %v6333_v27 = vadd.f32 %v6332_v20, %v6270_v31  ;;  %v6279_v31 = vand.u32 2147483647, %v6215_v4  ;;  %v6155_v20 = vld [vmem:[%s10635_s21 + $0x170] sm:$0xff]  ;;  %v6280_v34 = vand.u32 2147483647, %v6216_v21 }
0x196a   : > { %v6219_v58 = vsub.f32 %v10188_v33, %v6155_v20  ;;  %v6159_v33 = vld [vmem:[%s10635_s21 + $0x190] sm:$0xff] }
0x196b   : > { %v6334_v5 = vadd.f32 %v6333_v27, %v6271_v57  ;;  %v6156_v57 = vld [vmem:[%s10635_s21 + $0x178] sm:$0xff]  ;;  %v10637_v21 = vld [vmem:[#allocation6_spill] sm:$0xff] }
0x196c   : > { %v6283_v7 = vand.u32 2147483647, %v6219_v58 }
0x196d   : > { %v6335_v25 = vadd.f32 %v6334_v5, %v6272_v50  ;;  %v6282_v50 = vand.u32 2147483647, %v6218_v59  ;;  %v6220_v5 = vsub.f32 %v10195_v39, %v6156_v57  ;;  %v6160_v39 = vld [vmem:[%s10635_s21 + $0x198] sm:$0xff] }
0x196f   : > { %v6336_v60 = vadd.f32 %v6335_v25, %v6273_v41  ;;  %v6222_v25 = vsub.f32 %v10169_v18, %v6158_v3  ;;  %v6162_v18 = vld [vmem:[%s10635_s21 + $0x1a8] sm:$0xff] }
0x1971   : > { %v6337_v43 = vadd.f32 %v6336_v60, %v6274_v24  ;;  %v6284_v24 = vand.u32 2147483647, %v6220_v5  ;;  %v6223_v60 = vsub.f32 %v10219_v12, %v6159_v33  ;;  %v6163_v12 = vld [vmem:[%s10635_s21 + $0x1b0] sm:$0xff] }
0x1973   : > { %v6338_v63 = vadd.f32 %v6337_v43, %v6275_v14  ;;  %v10356_v28 = vpop.f32.mrb[74].mxu0  ;;  %v6286_v14 = vand.u32 2147483647, %v6222_v25  ;;  %v6224_v43 = vsub.f32 %v10229_v1, %v6160_v39  ;;  %v6164_v1 = vld [vmem:[%s10635_s21 + $0x1b8] sm:$0xff] }
0x1974   : > { %v6471_v62 = vpop.f32.mrb[75].mxu0 }
0x1975   : > { %v6339_v55 = vadd.f32 %v6338_v63, %v6276_v19  ;;  %v6655_v13 = vmul.f32 %v6471_v62, %v10008_v48  ;;  %v6670_v61 = vmul.f32 %v6471_v62, %v10011_v29  ;;  %v6217_v48 = vsub.f32 %v10129_v16, %v6153_v15  ;;  %v6157_v16 = vld [vmem:[%s10635_s21 + $0x180] sm:$0xff] }
0x1976   : > { %v6221_v41 = vsub.f32 %v10162_v22, %v6157_v16  ;;  %v6161_v22 = vld [vmem:[%s10635_s21 + $0x1a0] sm:$0xff]  ;;  %v6287_v19 = vand.u32 2147483647, %v6223_v60  ;;  %v6288_v44 = vand.u32 2147483647, %v6224_v43 }
0x1977   : > { %v6340_v52 = vadd.f32 %v6339_v55, %v6277_v56  ;;  %v6656_v54 = vsel %vm1566_vm1, %v6655_v13, 0.0  ;;  %v6671_v40 = vsel %vm1566_vm1, %v6670_v61, 0.0  ;;  %v6281_v27 = vand.u32 2147483647, %v6217_v48 }
0x1978   : > { %6672 = vadd.xlane.f32.xlu1 %v6671_v40  ;;  %6657 = vadd.xlane.f32.xlu0 %v6656_v54  ;;  %v6285_v37 = vand.u32 2147483647, %v6221_v41  ;;  %v6225_v49 = vsub.f32 %v10190_v47, %v6161_v22  ;;  %v6226_v56 = vsub.f32 %v10197_v45, %v6162_v18  ;;  %v6227_v55 = vsub.f32 %v10253_v17, %v6163_v12  ;;  %v6165_v47 = vld [vmem:[%s10635_s21 + $0x1c0] sm:$0xff]  ;;  %v6166_v45 = vld [vmem:[%s10635_s21 + $0x1c8] sm:$0xff]  ;;  %v6167_v17 = vld [vmem:[%s10635_s21 + $0x1d0] sm:$0xff] }
0x1979   : > { %v6341_v0 = vadd.f32 %v6340_v52, %v6278_v35  ;;  %v6228_v35 = vsub.f32 %v10260_v23, %v6164_v1  ;;  %v6229_v52 = vsub.f32 %v10637_v21, %v6165_v47  ;;  %v6230_v36 = vsub.f32 %v10231_v53, %v6166_v45  ;;  %v6168_v23 = vld [vmem:[%s10635_s21 + $0x1d8] sm:$0xff]  ;;  %v6170_v53 = vld [vmem:[%s10635_s21 + $0x1e8] sm:$0xff] }
0x197a   : > { %v6289_v4 = vand.u32 2147483647, %v6225_v49  ;;  %v6290_v61 = vand.u32 2147483647, %v6226_v56  ;;  %v6291_v54 = vand.u32 2147483647, %v6227_v55  ;;  %v6231_v20 = vsub.f32 %v10284_v2, %v6167_v17 }
0x197b   : > { %v6342_v38 = vadd.f32 %v6341_v0, %v6279_v31  ;;  %v6292_v48 = vand.u32 2147483647, %v6228_v35  ;;  %v6293_v0 = vand.u32 2147483647, %v6229_v52  ;;  %v6232_v57 = vsub.f32 %v10288_v51, %v6168_v23  ;;  %v6171_v2 = vld [vmem:[%s10635_s21 + $0x1f0] sm:$0xff]  ;;  %v6172_v51 = vld [vmem:[%s10635_s21 + $0x1f8] sm:$0xff] }
0x197c   : > { %v6235_v41 = vsub.f32 %v10313_v8, %v6171_v2  ;;  %v6236_v33 = vsub.f32 %v10318_v42, %v6172_v51 }
0x197d   : > { %v6343_v6 = vadd.f32 %v6342_v38, %v6280_v34  ;;  %v6169_v34 = vld [vmem:[%s10635_s21 + $0x1e0] sm:$0xff]  ;;  %v6294_v38 = vand.u32 2147483647, %v6230_v36  ;;  %v6296_v5 = vand.u32 2147483647, %v6232_v57 }
0x197e   : > { %v6233_v58 = vsub.f32 %v10255_v46, %v6169_v34  ;;  %v6299_v25 = vand.u32 2147483647, %v6235_v41  ;;  %v6300_v39 = vand.u32 2147483647, %v6236_v33 }
0x197f   : > { %v6344_v30 = vadd.f32 %v6343_v6, %v6281_v27  ;;  %v6295_v6 = vand.u32 2147483647, %v6231_v20 }
0x1980   : > { %v6297_v3 = vand.u32 2147483647, %v6233_v58 }
0x1981   : > { %v6345_v26 = vadd.f32 %v6344_v30, %v6282_v50  ;;  %v6234_v50 = vsub.f32 %v10262_v10, %v6170_v53  ;;  %v6685_v10 = vmul.f32 %v10356_v28, %v10011_v29 }
0x1983   : > { %v6346_v11 = vadd.f32 %v6345_v26, %v6283_v7  ;;  %v6298_v26 = vand.u32 2147483647, %v6234_v50  ;;  %v6686_v60 = vsel %vm1566_vm1, %v6685_v10, 0.0 }
0x1985   : > { %v6347_v32 = vadd.f32 %v6346_v11, %v6284_v24 }
0x1987   : > { %v6348_v9 = vadd.f32 %v6347_v32, %v6285_v37 }
0x1989   : > { %v6349_v63 = vadd.f32 %v6348_v9, %v6286_v14 }
0x198b   : > { %v6350_v62 = vadd.f32 %v6349_v63, %v6287_v19 }
0x198d   : > { %v6351_v13 = vadd.f32 %v6350_v62, %v6288_v44 }
0x198f   : > { %v6352_v15 = vadd.f32 %v6351_v13, %v6289_v4 }
0x1991   : > { %v6353_v40 = vadd.f32 %v6352_v15, %v6290_v61 }
0x1993   : > { %v6354_v31 = vadd.f32 %v6353_v40, %v6291_v54 }
0x1995   : > { %v6355_v59 = vadd.f32 %v6354_v31, %v6292_v48 }
0x1997   : > { %v6356_v27 = vadd.f32 %v6355_v59, %v6293_v0 }
0x1999   : > { %v6357_v16 = vadd.f32 %v6356_v27, %v6294_v38 }
0x199b   : > { %v6358_v30 = vadd.f32 %v6357_v16, %v6295_v6 }
0x199d   : > { %v6359_v7 = vadd.f32 %v6358_v30, %v6296_v5 }
0x199f   : > { %v6360_v46 = vadd.f32 %v6359_v7, %v6297_v3 }
0x19a1   : > { %v6361_v24 = vadd.f32 %v6360_v46, %v6298_v26 }
0x19a3   : > { %v6362_v11 = vadd.f32 %v6361_v24, %v6299_v25 }
0x19a5   : > { %v6363_v37 = vadd.f32 %v6362_v11, %v6300_v39 }
0x19a7   : > { %6364 = vadd.xlane.f32.xlu0 %v6363_v37 }
0x19ab   : > { %6687 = vadd.xlane.f32.xlu0 %v6686_v60 }
0x19be   : > { %v6529_v32 = vpop.xlane.xlu1 %6528 }
0x19bf   : > { %v6540_v22 = vpop.xlane.xlu0 %6539  ;;  %v6530_v56 = vrot.slane %v6529_v32, 4 }
0x19c0   : > { %v6541_v44 = vrot.slane %v6540_v22, 4 }
0x19c1   : > { %v6531_v13 = vadd.f32 %v6530_v56, %v6529_v32 }
0x19c2   : > { %v6507_v8 = vpop.xlane.xlu1 %6506  ;;  %v6542_v47 = vadd.f32 %v6541_v44, %v6540_v22 }
0x19c3   : > { %v6518_v14 = vpop.xlane.xlu0 %6517  ;;  %v6508_v19 = vrot.slane %v6507_v8, 4  ;;  %v6532_v31 = vrot.slane %v6531_v13, 2 }
0x19c4   : > { %v6519_v63 = vrot.slane %v6518_v14, 4  ;;  %v6543_v23 = vrot.slane %v6542_v47, 2 }
0x19c5   : > { %v6509_v62 = vadd.f32 %v6508_v19, %v6507_v8  ;;  %v6533_v41 = vadd.f32 %v6532_v31, %v6531_v13 }
0x19c6   : > { %v6520_v28 = vadd.f32 %v6519_v63, %v6518_v14  ;;  %v6544_v7 = vadd.f32 %v6543_v23, %v6542_v47 }
0x19c7   : > { %v6510_v35 = vrot.slane %v6509_v62, 2  ;;  %v6534_v14 = vrot.slane %v6533_v41, 1 }
0x19c8   : > { %v6521_v45 = vrot.slane %v6520_v28, 2 }
0x19c9   : > { %v6511_v57 = vadd.f32 %v6510_v35, %v6509_v62 }
0x19ca   : > { %v6522_v16 = vadd.f32 %v6521_v45, %v6520_v28 }
0x19cb   : > { %v6512_v39 = vrot.slane %v6511_v57, 1 }
0x19cc   : > { %v6523_v32 = vrot.slane %v6522_v16, 1 }
0x19ce   : > { %v6524_v62 = vadd.f32 %v6523_v32, %v6522_v16 }
0x19dd   : > { %v6613_v43 = vpop.xlane.xlu1 %6612  ;;  %v6628_v9 = vpop.xlane.xlu0 %6627 }
0x19de   : > { %v6614_v21 = vrot.slane %v6613_v43, 4  ;;  %v6629_v40 = vrot.slane %v6628_v9, 4 }
0x19e0   : > { %v6615_v27 = vadd.f32 %v6614_v21, %v6613_v43  ;;  %v6630_v2 = vadd.f32 %v6629_v40, %v6628_v9  ;;  %v6545_v43 = vrot.slane %v6544_v7, 1 }
0x19e1   : > { %v6643_v18 = vpop.xlane.xlu1 %6642  ;;  %v6568_v42 = vpop.xlane.xlu0 %6567 }
0x19e2   : > { %v6569_v55 = vrot.slane %v6568_v42, 4  ;;  %v6644_v0 = vrot.slane %v6643_v18, 4  ;;  %v6616_v24 = vrot.slane %v6615_v27, 2  ;;  %v6631_v10 = vrot.slane %v6630_v2, 2 }
0x19e3   : > { %v6546_v47 = vadd.f32 %v6545_v43, %v6544_v7 }
0x19e4   : > { %v6570_v17 = vadd.f32 %v6569_v55, %v6568_v42  ;;  %v6645_v51 = vadd.f32 %v6644_v0, %v6643_v18  ;;  %v6617_v44 = vadd.f32 %v6616_v24, %v6615_v27  ;;  %v6632_v28 = vadd.f32 %v6631_v10, %v6630_v2 }
0x19e5   : > { %v6552_v49 = vpop.xlane.xlu1 %6551  ;;  %v6598_v12 = vpop.xlane.xlu0 %6597 }
0x19e6   : > { %v6553_v1 = vrot.slane %v6552_v49, 4  ;;  %v6599_v15 = vrot.slane %v6598_v12, 4  ;;  %v6571_v50 = vrot.slane %v6570_v17, 2  ;;  %v6646_v8 = vrot.slane %v6645_v51, 2 }
0x19e7   : > { %v6618_v45 = vrot.slane %v6617_v44, 1 }
0x19e8   : > { %v6554_v52 = vadd.f32 %v6553_v1, %v6552_v49  ;;  %v6600_v59 = vadd.f32 %v6599_v15, %v6598_v12  ;;  %v6572_v22 = vadd.f32 %v6571_v50, %v6570_v17  ;;  %v6513_v12 = vadd.f32 %v6512_v39, %v6511_v57 }
0x19e9   : > { %v6583_v29 = vpop.xlane.xlu1 %6582  ;;  %v6535_v1 = vadd.f32 %v6534_v14, %v6533_v41  ;;  %v6647_v55 = vadd.f32 %v6646_v8, %v6645_v51  ;;  %v6619_v23 = vadd.f32 %v6618_v45, %v6617_v44 }
0x19ea   : > { %v6584_v61 = vrot.slane %v6583_v29, 4  ;;  %v6555_v53 = vrot.slane %v6554_v52, 2  ;;  %v6601_v26 = vrot.slane %v6600_v59, 2 }
0x19eb   : > { %v6648_v17 = vrot.slane %v6647_v55, 1 }
0x19ec   : > { %v6585_v20 = vadd.f32 %v6584_v61, %v6583_v29  ;;  %v6556_v37 = vadd.f32 %v6555_v53, %v6554_v52  ;;  %v6602_v19 = vadd.f32 %v6601_v26, %v6600_v59  ;;  %v6573_v29 = vrot.slane %v6572_v22, 1  ;;  %v6503_v53 = vld [vmem:[#allocation3] sm:$0x1] }
0x19ed   : > { %v6649_v59 = vadd.f32 %v6648_v17, %v6647_v55  ;;  %v10457_v16 = vmul.f32 8.0, %v6503_v53 }
0x19ee   : > { %v6586_v3 = vrot.slane %v6585_v20, 2  ;;  %v6557_v56 = vrot.slane %v6556_v37, 1  ;;  %v6603_v61 = vrot.slane %v6602_v19, 1  ;;  %v6574_v52 = vadd.f32 %v6573_v29, %v6572_v22 }
0x19f0   : > { %v6587_v9 = vadd.f32 %v6586_v3, %v6585_v20  ;;  %v6558_v15 = vadd.f32 %v6557_v56, %v6556_v37 }
0x1a05   : > { %v6658_v4 = vpop.xlane.xlu0 %6657  ;;  %v6673_v36 = vpop.xlane.xlu1 %6672 }
0x1a06   : > { %v6659_v34 = vrot.slane %v6658_v4, 4  ;;  %v6674_v58 = vrot.slane %v6673_v36, 4 }
0x1a08   : > { %v6660_v46 = vadd.f32 %v6659_v34, %v6658_v4  ;;  %v6675_v11 = vadd.f32 %v6674_v58, %v6673_v36  ;;  %v6588_v4 = vrot.slane %v6587_v9, 1  ;;  %v6604_v36 = vadd.f32 %v6603_v61, %v6602_v19 }
0x1a0a   : > { %v6661_v18 = vrot.slane %v6660_v46, 2  ;;  %v6676_v63 = vrot.slane %v6675_v11, 2  ;;  %v6589_v40 = vadd.f32 %v6588_v4, %v6587_v9 }
0x1a0c   : > { %v6662_v35 = vadd.f32 %v6661_v18, %v6660_v46  ;;  %v6677_v21 = vadd.f32 %v6676_v63, %v6675_v11 }
0x1a0e   : > { %v6678_v0 = vrot.slane %v6677_v21, 1 }
0x1a10   : > { %v6679_v57 = vadd.f32 %v6678_v0, %v6677_v21 }
0x1a34   : > { %v6365_v54 = vpop.xlane.xlu0 %6364 }
0x1a35   : > { %v6366_v48 = vrot.slane %v6365_v54, 4 }
0x1a37   : > { %v6367_v38 = vadd.f32 %v6366_v48, %v6365_v54  ;;  %v6633_v54 = vrot.slane %v6632_v28, 1  ;;  %v6663_v48 = vrot.slane %v6662_v35, 1 }
0x1a38   : > { %v6688_v6 = vpop.xlane.xlu0 %6687 }
0x1a39   : > { %v6368_v5 = vrot.slane %v6367_v38, 2  ;;  %v6689_v30 = vrot.slane %v6688_v6, 4  ;;  %v6634_v20 = vadd.f32 %v6633_v54, %v6632_v28  ;;  %v6664_v34 = vadd.f32 %v6663_v48, %v6662_v35 }
0x1a3b   : > { %v6690_v33 = vadd.f32 %v6689_v30, %v6688_v6  ;;  %v6369_v25 = vadd.f32 %v6368_v5, %v6367_v38 }
0x1a3d   : > { %v6370_v60 = vrot.slane %v6369_v25, 1  ;;  %v6691_v42 = vrot.slane %v6690_v33, 2 }
0x1a3f   : > { %v6371_v49 = vadd.f32 %v6370_v60, %v6369_v25  ;;  %v6692_v13 = vadd.f32 %v6691_v42, %v6690_v33 }
0x1a41   : > { %7806 = vpush %v6371_v49  ;;  %v6693_v31 = vrot.slane %v6692_v13, 1 }
0x1a42   : > { %7808 = vpush %v6513_v12 }
0x1a43   : > { %7810 = vpush %v6524_v62  ;;  %v6694_v38 = vadd.f32 %v6693_v31, %v6692_v13 }
0x1a44   : > { %7812 = vpush %v6535_v1 }
0x1a45   : > { %7814 = vpush %v6546_v47 }
0x1a46   : > { %7816 = vpush %v6558_v15 }
0x1a47   : > { %7818 = vpush %v6574_v52 }
0x1a48   : > { %7820 = vpush %v6589_v40 }
0x1a49   : > { %7822 = vpush %v6604_v36 }
0x1a4a   : > { %7824 = vpush %v6619_v23 }
0x1a4b   : > { %7826 = vpush %v6634_v20 }
0x1a4c   : > { %7828 = vpush %v6649_v59 }
0x1a4d   : > { %7830 = vpush %v6664_v34 }
0x1a4e   : > { %7832 = vpush %v6679_v57 }
0x1a4f   : > { %7834 = vpush %v6694_v38 }
0x1a72   : > { %s10450_s3 = spop %7806 }
0x1a73   : > { %s7809_s6 = spop %7808 }
0x1a74   : > { %s7811_s29 = spop %7810  ;;  %v10452_v27 = vstv %s7809_s6 }
0x1a75   : > { %s7813_s4 = spop %7812  ;;  %v10461_v2 = vstv %s7811_s29 }
0x1a76   : > { %s7815_s2 = spop %7814  ;;  %v10472_v3 = vstv %s7813_s4 }
0x1a77   : > { %s7817_s23 = spop %7816  ;;  %v10477_v46 = vstv %s7815_s2 }
0x1a78   : > { %v6560_v58 = vstv %s7817_s23  ;;  %s10454_s1 = spop %7818 }
0x1a79   : > { %v6561_v6 = vadd.f32 %v6560_v58, %v10452_v27  ;;  %s10459_s28 = spop %7820  ;;  %v6576_v14 = vstv %s10454_s1 }
0x1a7a   : > { %s10463_s26 = spop %7822  ;;  %v6577_v42 = vadd.f32 %v6576_v14, %v10452_v27  ;;  %v6591_v19 = vstv %s10459_s28 }
0x1a7b   : > { %v6562_v50 = vadd.f32 %v6561_v6, %v10452_v27  ;;  %s7825_s6 = spop %7824  ;;  %v6592_v29 = vadd.f32 %v6591_v19, %v10452_v27  ;;  %v6606_v55 = vstv %s10463_s26 }
0x1a7c   : > { %v6621_v5 = vstv %s7825_s6  ;;  %s10466_s7 = spop %7826  ;;  %v6578_v4 = vadd.f32 %v6577_v42, %v10461_v2  ;;  %v6607_v0 = vadd.f32 %v6606_v55, %v10452_v27 }
0x1a7d   : > { %v6564_v30 = vadd.f32 %v10457_v16, %v6562_v50  ;;  %v6622_v51 = vadd.f32 %v6621_v5, %v10461_v2  ;;  %s10470_s23 = spop %7828  ;;  %v6636_v56 = vstv %s10466_s7  ;;  %v6593_v59 = vadd.f32 %v6592_v29, %v10472_v3  ;;  %s8317_s7 = smov 1  }
0x1a7e   : > { %s7831_s8 = spop %7830  ;;  %v6637_v13 = vadd.f32 %v6636_v56, %v10461_v2  ;;  %v6651_v21 = vstv %s10470_s23  ;;  %v6579_v23 = vadd.f32 %v6578_v4, %v10457_v16  ;;  %v6608_v53 = vadd.f32 %v6607_v0, %v10477_v46 }
0x1a7f   : > { %8235 = vrsqrt.f32 %v6564_v30  ;;  %s10474_s29 = spop %7832  ;;  %v6623_v41 = vadd.f32 %v6622_v51, %v10461_v2  ;;  %v6666_v7 = vstv %s7831_s8  ;;  %vm6702_vm10 = vcmp.eq.f32.partialorder %v6564_v30, inf }
0x1a80   : > { %s7835_s9 = spop %7834  ;;  %v6667_v25 = vadd.f32 %v6666_v7, %v10472_v3  ;;  %v6705_v22 = vand.u32 2147483648, %v6564_v30  ;;  %vm6704_vm11 = vcmp.eq.f32.partialorder %v6564_v30, 0.0  ;;  %v6681_v17 = vstv %s10474_s29 }
0x1a81   : > { %v6696_v26 = vstv %s7835_s9  ;;  %v6624_v33 = vadd.f32 %v6623_v41, %v10457_v16  ;;  %v6652_v20 = vadd.f32 %v6651_v21, %v10461_v2  ;;  %v6638_v34 = vadd.f32 %v6637_v13, %v10472_v3 }
0x1a82   : > { %v6697_v24 = vadd.f32 %v6696_v26, %v10477_v46  ;;  %v6668_v11 = vadd.f32 %v6667_v25, %v10472_v3  ;;  %v6682_v38 = vadd.f32 %v6681_v17, %v10472_v3  ;;  %v6594_v50 = vadd.f32 %v6593_v59, %v10457_v16 }
0x1a83   : > { %8237 = vrsqrt.f32 %v6624_v33  ;;  %vm6712_vm12 = vcmp.eq.f32.partialorder %v6624_v33, inf  ;;  %v6715_v63 = vand.u32 2147483648, %v6624_v33  ;;  %vm6714_vm13 = vcmp.eq.f32.partialorder %v6624_v33, 0.0 }
0x1a84   : > { %v6698_v39 = vadd.f32 %v6697_v24, %v10477_v46  ;;  %v6669_v37 = vadd.f32 %v6668_v11, %v10457_v16  ;;  %v6653_v58 = vadd.f32 %v6652_v20, %v10477_v46  ;;  %v6639_v27 = vadd.f32 %v6638_v34, %v10457_v16 }
0x1a85   : > { %v6683_v2 = vadd.f32 %v6682_v38, %v10477_v46  ;;  %v6609_v7 = vadd.f32 %v6608_v53, %v10457_v16 }
0x1a86   : > { %v6699_v10 = vadd.f32 %v6698_v39, %v10457_v16  ;;  %8239 = vrsqrt.f32 %v6669_v37  ;;  %vm6722_vm14 = vcmp.eq.f32.partialorder %v6669_v37, inf  ;;  %v6725_v61 = vand.u32 2147483648, %v6669_v37 }
0x1a87   : > { %vm6724_vm15 = vcmp.eq.f32.partialorder %v6669_v37, 0.0  ;;  %v6654_v3 = vadd.f32 %v6653_v58, %v10457_v16 }
0x1a88   : > { %8241 = vrsqrt.f32 %v6699_v10  ;;  %vm6732_vm0 = vcmp.eq.f32.partialorder %v6699_v10, inf  ;;  %v6735_v45 = vand.u32 2147483648, %v6699_v10  ;;  %vm6734_vm1 = vcmp.eq.f32.partialorder %v6699_v10, 0.0 }
0x1a89   : > { %v8236_v60 = vpop.eup %8235 }
0x1a8a   : > { %v6701_v32 = vmul.f32 %v8236_v60, %v6564_v30 }
0x1a8c   : > { %v6703_v8 = vsel %vm6702_vm10, %v6564_v30, %v6701_v32 }
0x1a8d   : > { %v6706_v43 = vsel %vm6704_vm11, %v6705_v22, %v6703_v8  ;;  %v8238_v9 = vpop.eup %8237 }
0x1a8e   : > { %v6707_v18 = vmax.f32 %v6706_v43, 1e-12  ;;  %v6711_v49 = vmul.f32 %v8238_v9, %v6624_v33 }
0x1a90   : > { %8243 = vrcp.f32 %v6707_v18  ;;  %v6713_v12 = vsel %vm6712_vm12, %v6624_v33, %v6711_v49  ;;  %v8240_v62 = vpop.eup %8239  ;;  %v6684_v33 = vadd.f32 %v6683_v2, %v10457_v16 }
0x1a91   : > { %v6716_v44 = vsel %vm6714_vm13, %v6715_v63, %v6713_v12  ;;  %v6721_v47 = vmul.f32 %v8240_v62, %v6669_v37 }
0x1a92   : > { %v6717_v28 = vmax.f32 %v6716_v44, 1e-12  ;;  %v8242_v1 = vpop.eup %8241 }
0x1a93   : > { %v6731_v35 = vmul.f32 %v8242_v1, %v6699_v10  ;;  %v6723_v15 = vsel %vm6722_vm14, %v6669_v37, %v6721_v47 }
0x1a94   : > { %8245 = vrcp.f32 %v6717_v28  ;;  %v6726_v52 = vsel %vm6724_vm15, %v6725_v61, %v6723_v15 }
0x1a95   : > { %v6733_v54 = vsel %vm6732_vm0, %v6699_v10, %v6731_v35  ;;  %v6727_v40 = vmax.f32 %v6726_v52, 1e-12 }
0x1a96   : > { %v6736_v36 = vsel %vm6734_vm1, %v6735_v45, %v6733_v54 }
0x1a97   : > { %v6737_v48 = vmax.f32 %v6736_v36, 1e-12  ;;  %8247 = vrcp.f32 %v6727_v40 }
0x1a99   : > { %8249 = vrcp.f32 %v6737_v48 }
0x1a9a   : > { %v8244_v31 = vpop.eup %8243 }
0x1a9b   : > { %v6740_v57 = vmul.f32 %v8244_v31, %v6579_v23  ;;  %v6743_v51 = vmul.f32 %v8244_v31, %v6594_v50  ;;  %v6746_v24 = vmul.f32 %v8244_v31, %v6609_v7 }
0x1a9e   : > { %v8246_v6 = vpop.eup %8245 }
0x1a9f   : > { %v6741_v5 = vmul.f32 %v8246_v6, %v6740_v57  ;;  %v6749_v30 = vmul.f32 %v8246_v6, %v6579_v23  ;;  %v6752_v41 = vmul.f32 %v8246_v6, %v6639_v27  ;;  %v6755_v11 = vmul.f32 %v8246_v6, %v6654_v3 }
0x1aa1   : > { %v6750_v26 = vmul.f32 %v8244_v31, %v6749_v30  ;;  %v8248_v25 = vpop.eup %8247  ;;  %v6742_v39 = vmul.f32 20.0, %v6741_v5 }
0x1aa2   : > { %v6764_v60 = vmul.f32 %v8248_v25, %v6684_v33  ;;  %v6744_v32 = vmul.f32 %v8248_v25, %v6743_v51  ;;  %v6753_v46 = vmul.f32 %v8248_v25, %v6752_v41  ;;  %v6758_v22 = vmul.f32 %v8248_v25, %v6594_v50 }
0x1aa3   : > { %v6751_v37 = vmul.f32 20.0, %v6750_v26  ;;  %v8250_v10 = vpop.eup %8249  ;;  %v6761_v43 = vmul.f32 %v8248_v25, %v6639_v27 }
0x1aa4   : > { %v6747_v8 = vmul.f32 %v8250_v10, %v6746_v24  ;;  %v6756_v14 = vmul.f32 %v8250_v10, %v6755_v11  ;;  %v6767_v9 = vmul.f32 %v8250_v10, %v6609_v7  ;;  %v10510_v18 = vmul.f32 20.0, %v6744_v32 }
0x1aa5   : > { %v6754_v42 = vmul.f32 20.0, %v6753_v46  ;;  %v6759_v49 = vmul.f32 %v8244_v31, %v6758_v22  ;;  %v6765_v19 = vmul.f32 %v8250_v10, %v6764_v60  ;;  %v6762_v12 = vmul.f32 %v8246_v6, %v6761_v43 }
0x1aa6   : > { %v6748_v16 = vmul.f32 20.0, %v6747_v8  ;;  %v10512_v63 = vmul.f32 20.0, %v6756_v14  ;;  %v6768_v56 = vmul.f32 %v8244_v31, %v6767_v9  ;;  %v6770_v62 = vmul.f32 %v8250_v10, %v6654_v3 }
0x1aa7   : > { %v10514_v44 = vmul.f32 20.0, %v6759_v49  ;;  %v6773_v29 = vmul.f32 %v8250_v10, %v6684_v33  ;;  %v6763_v28 = vmul.f32 20.0, %v6762_v12  ;;  %v6776_v1 = vmax.f32 %v6742_v39, %v10510_v18 }
0x1aa8   : > { %v6793_v4 = vmax.f32 %v6751_v37, %v6754_v42  ;;  %v6766_v55 = vmul.f32 20.0, %v6765_v19  ;;  %v6769_v13 = vmul.f32 20.0, %v6768_v56  ;;  %v6771_v47 = vmul.f32 %v8246_v6, %v6770_v62 }
0x1aa9   : > { %v6774_v61 = vmul.f32 %v8248_v25, %v6773_v29  ;;  %v10517_v35 = vmax.f32 %v6776_v1, %v6748_v16  ;;  %v6811_v45 = vmax.f32 %v10514_v44, %v6763_v28 }
0x1aaa   : > { %v10520_v15 = vmax.f32 %v6793_v4, %v10512_v63  ;;  %v10523_v21 = vmul.f32 20.0, %v6771_v47 }
0x1aab   : > { %v6775_v52 = vmul.f32 20.0, %v6774_v61  ;;  %v6778_v54 = vsub.f32 %v6742_v39, %v10517_v35  ;;  %v6781_v40 = vsub.f32 %v10510_v18, %v10517_v35  ;;  %v6785_v17 = vsub.f32 %v6748_v16, %v10517_v35 }
0x1aac   : > { %v6795_v36 = vsub.f32 %v6751_v37, %v10520_v15  ;;  %v6798_v48 = vsub.f32 %v6754_v42, %v10520_v15  ;;  %v6802_v31 = vsub.f32 %v10512_v63, %v10520_v15  ;;  %v10533_v23 = vmax.f32 %v6811_v45, %v6766_v55 }
0x1aad   : > { %v6829_v0 = vmax.f32 %v6769_v13, %v10523_v21  ;;  %v6779_v20 = vmul.f32 1.442695, %v6778_v54  ;;  %v6782_v59 = vmul.f32 1.442695, %v6781_v40  ;;  %v6786_v34 = vmul.f32 1.442695, %v6785_v17 }
0x1aae   : > { %v6796_v38 = vmul.f32 1.442695, %v6795_v36  ;;  %v6799_v57 = vmul.f32 1.442695, %v6798_v48  ;;  %v6813_v53 = vsub.f32 %v10514_v44, %v10533_v23  ;;  %v6816_v58 = vsub.f32 %v6763_v28, %v10533_v23 }
0x1aaf   : > { %8251 = vpow2.f32 %v6779_v20  ;;  %v6820_v6 = vsub.f32 %v6766_v55, %v10533_v23  ;;  %v6830_v50 = vmax.f32 %v6829_v0, %v6775_v52  ;;  %v6803_v27 = vmul.f32 1.442695, %v6802_v31 }
0x1ab0   : > { %8253 = vpow2.f32 %v6782_v59  ;;  %v6814_v2 = vmul.f32 1.442695, %v6813_v53  ;;  %v6817_v30 = vmul.f32 1.442695, %v6816_v58 }
0x1ab1   : > { %8255 = vpow2.f32 %v6786_v34  ;;  %v6831_v5 = vsub.f32 %v6769_v13, %v6830_v50  ;;  %v6834_v51 = vsub.f32 %v10523_v21, %v6830_v50  ;;  %v6821_v41 = vmul.f32 1.442695, %v6820_v6 }
0x1ab2   : > { %8257 = vpow2.f32 %v6796_v38  ;;  %v6838_v7 = vsub.f32 %v6775_v52, %v6830_v50 }
0x1ab3   : > { %8259 = vpow2.f32 %v6799_v57  ;;  %v6832_v3 = vmul.f32 1.442695, %v6831_v5  ;;  %v6835_v26 = vmul.f32 1.442695, %v6834_v51 }
0x1ab4   : > { %8261 = vpow2.f32 %v6803_v27  ;;  %v6839_v33 = vmul.f32 1.442695, %v6838_v7 }
0x1ab5   : > { %8263 = vpow2.f32 %v6814_v2 }
0x1ab6   : > { %8265 = vpow2.f32 %v6817_v30 }
0x1ab7   : > { %8267 = vpow2.f32 %v6821_v41 }
0x1ab8   : > { %8269 = vpow2.f32 %v6832_v3 }
0x1ab9   : > { %v8252_v25 = vpop.eup %8251  ;;  %8271 = vpow2.f32 %v6835_v26 }
0x1aba   : > { %v8254_v24 = vpop.eup %8253  ;;  %8273 = vpow2.f32 %v6839_v33 }
0x1abb   : > { %v8256_v11 = vpop.eup %8255  ;;  %v6784_v39 = vadd.f32 %v8254_v24, %v8252_v25 }
0x1abc   : > { %v8258_v37 = vpop.eup %8257 }
0x1abd   : > { %v8260_v10 = vpop.eup %8259  ;;  %v6788_v60 = vadd.f32 %v8256_v11, %v6784_v39 }
0x1abe   : > { %v8262_v32 = vpop.eup %8261  ;;  %v6801_v46 = vadd.f32 %v8260_v10, %v8258_v37 }
0x1abf   : > { %v8264_v22 = vpop.eup %8263  ;;  %8275 = vlog2.f32 %v6788_v60 }
0x1ac0   : > { %v8266_v8 = vpop.eup %8265  ;;  %v6805_v14 = vadd.f32 %v8262_v32, %v6801_v46 }
0x1ac1   : > { %v8268_v43 = vpop.eup %8267  ;;  %v6819_v9 = vadd.f32 %v8266_v8, %v8264_v22 }
0x1ac2   : > { %v8270_v42 = vpop.eup %8269  ;;  %8277 = vlog2.f32 %v6805_v14 }
0x1ac3   : > { %v8272_v49 = vpop.eup %8271  ;;  %v6823_v19 = vadd.f32 %v8268_v43, %v6819_v9 }
0x1ac4   : > { %v6837_v16 = vadd.f32 %v8272_v49, %v8270_v42  ;;  %v8274_v12 = vpop.eup %8273 }
0x1ac5   : > { %8279 = vlog2.f32 %v6823_v19 }
0x1ac6   : > { %v6841_v56 = vadd.f32 %v8274_v12, %v6837_v16 }
0x1ac8   : > { %8281 = vlog2.f32 %v6841_v56 }
0x1ac9   : > { %v8276_v62 = vpop.eup %8275 }
0x1aca   : > { %v6790_v29 = vmul.f32 0.6931472, %v8276_v62 }
0x1acc   : > { %v8278_v28 = vpop.eup %8277  ;;  %v6791_v1 = vadd.f32 %v6790_v29, %v10517_v35 }
0x1acd   : > { %v6807_v4 = vmul.f32 0.6931472, %v8278_v28 }
0x1ace   : > { %v6792_v13 = vsub.f32 %v6791_v1, %v10510_v18  ;;  %v10638_v18 = vld [vmem:[#allocation5_spill] sm:$0xff] }
0x1acf   : > { %v8280_v55 = vpop.eup %8279  ;;  %v6808_v47 = vadd.f32 %v6807_v4, %v10520_v15  ;;  %v6373_v15 = vstv %s10450_s3 }
0x1ad0   : > { %v6825_v61 = vmul.f32 0.6931472, %v8280_v55  ;;  %v6374_v34 = vmul.f32 1.5258789e-05, %v6373_v15 }
0x1ad1   : > { %v6809_v45 = vsub.f32 %v6808_v47, %v10512_v63 }
0x1ad2   : > { %v8282_v52 = vpop.eup %8281  ;;  %v6826_v54 = vadd.f32 %v6825_v61, %v10533_v23 }
0x1ad3   : > { %v6810_v40 = vadd.f32 %v6809_v45, %v6792_v13  ;;  %v6843_v17 = vmul.f32 0.6931472, %v8282_v52 }
0x1ad4   : > { %v6827_v36 = vsub.f32 %v6826_v54, %v10514_v44 }
0x1ad5   : > { %v6844_v48 = vadd.f32 %v6843_v17, %v6830_v50 }
0x1ad6   : > { %v6828_v31 = vadd.f32 %v6827_v36, %v6810_v40 }
0x1ad7   : > { %v6845_v35 = vsub.f32 %v6844_v48, %v10523_v21 }
0x1ad9   : > { %v6846_v0 = vadd.f32 %v6845_v35, %v6828_v31 }
0x1adb   : > { %v6847_v20 = vmul.f32 0.25, %v6846_v0 }
0x1add   : > { %v6852_v59 = vrot.slane %v6847_v20, %v10638_v18 }
0x1adf   : > { %6853 = vrot.lane.b32.xlu1 %v6852_v59, %s8317_s7 }
0x1b51   : > { %v6854_v63 = vpop.permute.xlu1 %6853 }
0x1b52   : > { %v6856_v23 = vsel %vm6504_vm9, %v6374_v34, %v6854_v63 }
0x1b53   : > { %6858 = vst.msk [vmem:[%s10586_s22] sm:$0x1] %vm6857_vm2, %v6856_v23 }
0x1b54 PF: > { %p31_p11 = scmp.ge.s32.totalorder %s8455_s0, 6   ;;  %s10639_s29 = smov %s8301_s30 }
0x1b55   : > { %s10640_s30 = smov %s8464_s5  ;;  %s10641_s4 = smov %s8455_s0 }
0x1b56   :  { %33 = sbr.rel (!%p31_p11) target bundleno = 13 (0xd), region = 184 }

</bundles_post_ra>
